<compile_context>
chip_gen: v7x
topology: tpu7x:2x2x1
jax: 0.10.0
libtpu: 0.0.40
codegen_flags: <defaults>
</compile_context>

<pallas_src>
import math
import functools

import jax
import jax.numpy as jnp
from jax import lax
from jax.experimental import pallas as pl
from jax.experimental.pallas import tpu as pltpu

NEG_FILL = -10000.0  # masked_fill value from ScaledDotProductAttention


# ----------------------------- fused decoder-layer kernel -----------------------------

def decoder_layer_kernel(dec_q_ref, dec_kv_ref, enc_ref, tmask_ref, smask_ref, *rest,
                         num_heads, dim_key, dim_value, with_attn):
    """One decoder layer for a (batch, query-tile) grid cell.

    Fuses self-attn (QKV proj + attention + out proj + residual + LN),
    cross-attn (Q / fused-KV proj + attention + out proj + residual + LN) and
    the positionwise FFN (+ residual + LN). bf16 MXU operands, f32 elementwise.
    """
    if with_attn:
        *wrefs, out_ref, cattn_ref = rest
    else:
        *wrefs, out_ref = rest
        cattn_ref = None
    (w_q_s, b_q_s, w_kv_s, b_kv_s, wo_s, bo_s, ln1_g, ln1_b,
     w_q_c, b_q_c, w_kv_c, b_kv_c, wo_c, bo_c, ln2_g, ln2_b,
     w1, b1, w2, b2, ln3_g, ln3_b) = wrefs

    H, dk, dv = num_heads, dim_key, dim_value
    bf16 = jnp.bfloat16
    inv_temp = jnp.float32(1.0 / math.sqrt(float(dk)))

    x_q = dec_q_ref[0]                          # (tq, D) query rows / residual base (f32)
    x_kv = dec_kv_ref[0]                        # (T, D)  all rows -> self-attn K/V
    enc = enc_ref[0]                            # (S, De)
    tmask = tmask_ref[0].astype(jnp.float32)    # (tq, T) {0,1}
    smask = smask_ref[0].astype(jnp.float32)    # (tq, S) {0,1}

    def layer_norm(v, g_ref, b_ref):
        mean = jnp.mean(v, axis=-1, keepdims=True)
        var = jnp.mean((v - mean) ** 2, axis=-1, keepdims=True)
        return (v - mean) * lax.rsqrt(var + 1e-5) * g_ref[...] + b_ref[...]

    def mha(q_all, k_all, v_all, mask, wo_ref, bo_ref, attn_ref=None):
        # q_all (tq, H*dk) f32, k_all (Tk, H*dk) f32, v_all (Tk, H*dv) f32.
        # Heads are static lane slices; per-head energy/softmax, then the
        # per-head PV results are concatenated lane-wise and projected with a
        # SINGLE (tq, H*dv) x (H*dv, D) matmul.
        keep = mask > 0.5                            # mask compare hoisted out of the head loop
        q_b = (q_all * inv_temp).astype(bf16)        # fold 1/temperature once
        k_b = k_all.astype(bf16)
        v_b = v_all.astype(bf16)
        dims = (((1,), (1,)), ((), ()))              # contract last dims; no k transpose
        outs, attns = [], []
        for h in range(H):
            q_h = q_b[:, h * dk:(h + 1) * dk]
            k_h = k_b[:, h * dk:(h + 1) * dk]
            v_h = v_b[:, h * dv:(h + 1) * dv]
            energy = lax.dot_general(q_h, k_h, dims,
                                     preferred_element_type=jnp.float32)    # (tq, Tk)
            energy = jnp.where(keep, energy, jnp.float32(NEG_FILL))
            emax = jnp.max(energy, axis=-1, keepdims=True)
            e = jnp.exp(energy - emax)
            denom = jnp.sum(e, axis=-1, keepdims=True)
            attn = e * pl.reciprocal(denom, approx=True)   # EUP reciprocal, not VALU divide
            if attn_ref is not None:
                attns.append(attn)
            outs.append(jnp.dot(attn.astype(bf16), v_h,
                                preferred_element_type=jnp.float32))         # (tq, dv)
        out_all = jnp.concatenate(outs, axis=-1)                             # (tq, H*dv)
        if attn_ref is not None:
            # lane-dense store: all heads in one (tq, H*S) slab
            attn_ref[0] = jnp.concatenate(attns, axis=-1)
        proj = jnp.dot(out_all.astype(bf16), wo_ref[...],
                       preferred_element_type=jnp.float32)                   # ONE out-proj matmul
        return proj + bo_ref[...]

    # -------- self attention + residual + LayerNorm --------
    q_s = jnp.dot(x_q.astype(bf16), w_q_s[...],
                  preferred_element_type=jnp.float32) + b_q_s[...]
    kv_s = jnp.dot(x_kv.astype(bf16), w_kv_s[...],
                   preferred_element_type=jnp.float32) + b_kv_s[...]          # fused K|V proj
    sa = mha(q_s, kv_s[:, :H * dk], kv_s[:, H * dk:], tmask, wo_s, bo_s)
    x = layer_norm(x_q + sa, ln1_g, ln1_b)

    # -------- cross attention + residual + LayerNorm --------
    q_c = jnp.dot(x.astype(bf16), w_q_c[...],
                  preferred_element_type=jnp.float32) + b_q_c[...]
    kv_c = jnp.dot(enc.astype(bf16), w_kv_c[...],
                   preferred_element_type=jnp.float32) + b_kv_c[...]          # fused K|V proj
    ca = mha(q_c, kv_c[:, :H * dk], kv_c[:, H * dk:], smask, wo_c, bo_c,
             attn_ref=cattn_ref)
    x = layer_norm(x + ca, ln2_g, ln2_b)

    # -------- positionwise feed-forward + residual + LayerNorm --------
    hdn = jnp.dot(x.astype(bf16), w1[...],
                  preferred_element_type=jnp.float32) + b1[...]
    hdn = jnp.maximum(hdn, 0.0)
    ff = jnp.dot(hdn.astype(bf16), w2[...],
                 preferred_element_type=jnp.float32) + b2[...]
    out_ref[0] = layer_norm(x + ff, ln3_g, ln3_b)


# ----------------------------- pallas_call wrapper -----------------------------

def _layer_pallas_call(dec, enc, tmask, smask, weights, *, num_heads, dim_key,
                       dim_value, q_tile, with_attn, single_buffer_weights):
    B, T, D = dec.shape
    S = enc.shape[1]
    H = num_heads
    HS = H * S
    num_q_tiles = T // q_tile

    if single_buffer_weights:
        # Grid-invariant weights: one VMEM buffer instead of the default
        # double-buffering (halves weight VMEM, important for v7x's 64 MiB);
        # also raise the scoped VMEM limit for large-weight configs.
        weight_kwargs = dict(pipeline_mode=pl.Buffered(1))
        compiler_params = pltpu.CompilerParams(
            dimension_semantics=("parallel", "parallel"),
            vmem_limit_bytes=64 * 1024 * 1024)
    else:
        weight_kwargs = {}
        compiler_params = pltpu.CompilerParams(
            dimension_semantics=("parallel", "parallel"))

    def weight_spec(arr):
        nd = arr.ndim
        return pl.BlockSpec(arr.shape, lambda b, q, _nd=nd: (0,) * _nd,
                            **weight_kwargs)

    def batch_full_spec(arr):  # whole per-batch block (revisited across q-tiles -> DMA'd once)
        return pl.BlockSpec((1,) + tuple(arr.shape[1:]), lambda b, q: (b, 0, 0))

    def batch_qtile_spec(last_dim):  # (1, q_tile, last) block per (batch, q-tile)
        return pl.BlockSpec((1, q_tile, last_dim), lambda b, q: (b, q, 0))

    in_specs = ([batch_qtile_spec(D),      # dec query-rows tile (also residual base)
                 batch_full_spec(dec),     # dec full rows for self-attn K/V
                 batch_full_spec(enc),     # encoder output
                 batch_qtile_spec(T),      # target mask tile
                 batch_qtile_spec(S)]      # source mask tile
                + [weight_spec(w) for w in weights])

    out_shape = [jax.ShapeDtypeStruct((B, T, D), jnp.float32)]
    out_specs = [batch_qtile_spec(D)]
    if with_attn:
        out_shape.append(jax.ShapeDtypeStruct((B, T, HS), jnp.float32))
        out_specs.append(batch_qtile_spec(HS))

    kernel = functools.partial(decoder_layer_kernel, num_heads=H, dim_key=dim_key,
                               dim_value=dim_value, with_attn=with_attn)

    results = pl.pallas_call(
        kernel,
        grid=(B, num_q_tiles),
        out_shape=tuple(out_shape),
        in_specs=in_specs,
        out_specs=tuple(out_specs),
        compiler_params=compiler_params,
    )(dec, dec, enc, tmask, smask, *weights)

    if with_attn:
        out, cattn_flat = results
        # lane-dense (B, T, H*S) slab -> reference layout (B, H, T, S)
        cattn = cattn_flat.reshape(B, T, H, S).transpose(0, 2, 1, 3)
        return out, cattn
    (out,) = results
    return out, None


_SINGLE_BUFFER_WEIGHTS_OK = True  # flipped off if pipeline_mode=pl.Buffered(1) is unsupported


def decoder_layer(dec, enc, source_mask, target_mask, layer_params, *, num_heads,
                  dim_key, dim_value, q_tile, return_attention):
    """Single fused-pallas_call decoder layer (dropout = identity, eval mode)."""
    global _SINGLE_BUFFER_WEIGHTS_OK
    p_s, p_c = layer_params["self_attn"], layer_params["cross_attn"]
    bf16 = jnp.bfloat16
    # bf16 projection weights (halves weight DMA / VMEM); biases & LN params stay f32.
    weights = [
        p_s["wq"].astype(bf16), p_s["bq"],
        jnp.concatenate([p_s["wk"], p_s["wv"]], axis=1).astype(bf16),
        jnp.concatenate([p_s["bk"], p_s["bv"]], axis=1),
        p_s["wo"].astype(bf16), p_s["bo"],
        layer_params["ln1_g"], layer_params["ln1_b"],
        p_c["wq"].astype(bf16), p_c["bq"],
        jnp.concatenate([p_c["wk"], p_c["wv"]], axis=1).astype(bf16),
        jnp.concatenate([p_c["bk"], p_c["bv"]], axis=1),
        p_c["wo"].astype(bf16), p_c["bo"],
        layer_params["ln2_g"], layer_params["ln2_b"],
        layer_params["ffn_w1"].astype(bf16), layer_params["ffn_b1"],
        layer_params["ffn_w2"].astype(bf16), layer_params["ffn_b2"],
        layer_params["ln3_g"], layer_params["ln3_b"],
    ]
    kwargs = dict(num_heads=num_heads, dim_key=dim_key, dim_value=dim_value,
                  q_tile=q_tile, with_attn=return_attention)
    if _SINGLE_BUFFER_WEIGHTS_OK:
        try:
            return _layer_pallas_call(dec, enc, target_mask, source_mask, weights,
                                      single_buffer_weights=True, **kwargs)
        except Exception:
            _SINGLE_BUFFER_WEIGHTS_OK = False
    return _layer_pallas_call(dec, enc, target_mask, source_mask, weights,
                              single_buffer_weights=False, **kwargs)


# ----------------------------- final projection kernel -----------------------------

def linear_kernel(x_ref, w_ref, b_ref, o_ref):
    o_ref[0] = jnp.dot(x_ref[0].astype(jnp.bfloat16), w_ref[...],
                       preferred_element_type=jnp.float32) + b_ref[...]


def final_linear(x, w, b):
    B, T, D = x.shape
    V = w.shape[1]
    return pl.pallas_call(
        linear_kernel,
        grid=(B,),
        out_shape=jax.ShapeDtypeStruct((B, T, V), jnp.float32),
        in_specs=[pl.BlockSpec((1, T, D), lambda i: (i, 0, 0)),
                  pl.BlockSpec((D, V), lambda i: (0, 0)),
                  pl.BlockSpec((1, V), lambda i: (0, 0))],
        out_specs=pl.BlockSpec((1, T, V), lambda i: (i, 0, 0)),
        compiler_params=pltpu.CompilerParams(dimension_semantics=("parallel",)),
    )(x, w.astype(jnp.bfloat16), b)


# ----------------------------- TransformerDecoder forward -----------------------------

def positional_encoding(T, D):
    pos = jnp.arange(T, dtype=jnp.float32)[:, None]
    div = jnp.exp(jnp.arange(0, D, 2, dtype=jnp.float32) * (-math.log(10000.0) / D))
    pe = jnp.zeros((T, D), jnp.float32)
    pe = pe.at[:, 0::2].set(jnp.sin(pos * div))
    pe = pe.at[:, 1::2].set(jnp.cos(pos * div))
    return pe


def transformer_decoder(encoder_output, target, source_mask, target_mask, params, *,
                        num_heads, dim_key, dim_value, q_tile=None,
                        return_attentions=False):
    B, T, D = target.shape
    if q_tile is None:
        q_tile = T
    assert T % q_tile == 0 and q_tile % 8 == 0

    # PositionalEncoding (dropout = identity in eval); plain JAX glue around kernels.
    x = target + positional_encoding(T, D)[None]

    # Masks travel as bf16 {0,1} (half the DMA bytes); converted to the exact
    # -10000 fill inside the kernel, once per MHA call.
    smask_b = source_mask.astype(jnp.bfloat16)
    tmask_b = target_mask.astype(jnp.bfloat16)

    attentions = []
    for lp in params["layers"]:
        x, attn = decoder_layer(x, encoder_output, smask_b, tmask_b, lp,
                                num_heads=num_heads, dim_key=dim_key,
                                dim_value=dim_value, q_tile=q_tile,
                                return_attention=return_attentions)
        if return_attentions:
            attentions.append(attn)

    # TODO(synk): optional word_embeddings concat before the final fc is not
    # implemented (word_embedding_dim=None path only).
    logits = final_linear(x, params["fc_w"], params["fc_b"])
    return logits, attentions


# ----------------------------- pure-JAX reference -----------------------------

def _ref_mha(query, key, value, mask, p, H, dk, dv):
    B, Tq, _ = query.shape
    Tk = key.shape[1]
    q = (query.reshape(B * Tq, -1) @ p["wq"] + p["bq"]).reshape(B, Tq, H, dk).transpose(0, 2, 1, 3)
    k = (key.reshape(B * Tk, -1) @ p["wk"] + p["bk"]).reshape(B, Tk, H, dk).transpose(0, 2, 1, 3)
    v = (value.reshape(B * Tk, -1) @ p["wv"] + p["bv"]).reshape(B, Tk, H, dv).transpose(0, 2, 1, 3)
    energy = jnp.einsum("bhqd,bhkd->bhqk", q, k) / math.sqrt(float(dk))
    energy = jnp.where(mask[:, None] == 0.0, NEG_FILL, energy)
    attn = jax.nn.softmax(energy, axis=-1)
    out = jnp.einsum("bhqk,bhkd->bhqd", attn, v)
    out = out.transpose(0, 2, 1, 3).reshape(B * Tq, H * dv)
    out = (out @ p["wo"] + p["bo"]).reshape(B, Tq, -1)
    return out, attn


def _ref_ln(x, g, b):
    m = x.mean(-1, keepdims=True)
    v = ((x - m) ** 2).mean(-1, keepdims=True)
    return (x - m) / jnp.sqrt(v + 1e-5) * g + b


def _ref_decoder_layer(dec, enc, smask, tmask, p, H, dk, dv):
    sa, _ = _ref_mha(dec, dec, dec, tmask, p["self_attn"], H, dk, dv)
    x = _ref_ln(dec + sa, p["ln1_g"], p["ln1_b"])
    ca, cattn = _ref_mha(x, enc, enc, smask, p["cross_attn"], H, dk, dv)
    x = _ref_ln(x + ca, p["ln2_g"], p["ln2_b"])
    h = jnp.maximum(x @ p["ffn_w1"] + p["ffn_b1"], 0.0)
    ff = h @ p["ffn_w2"] + p["ffn_b2"]
    x = _ref_ln(x + ff, p["ln3_g"], p["ln3_b"])
    return x, cattn


def _ref_transformer_decoder(enc, target, smask, tmask, params, H, dk, dv):
    B, T, D = target.shape
    x = target + positional_encoding(T, D)[None]
    attns = []
    for lp in params["layers"]:
        x, a = _ref_decoder_layer(x, enc, smask, tmask, lp, H, dk, dv)
        attns.append(a)
    logits = (x.reshape(B * T, D) @ params["fc_w"] + params["fc_b"]).reshape(B, T, -1)
    return logits, attns


# ----------------------------- setup / main -----------------------------

def make_params(key, num_layers, dim_model, dim_model_encoder, dim_key, dim_value,
                num_heads, dim_feedforward, num_target_vocab):
    keys = jax.random.split(key, num_layers + 1)

    def lin(k, kin, kout):
        k1, k2 = jax.random.split(k)
        scale = 1.0 / math.sqrt(kin)
        w = jax.random.uniform(k1, (kin, kout), jnp.float32, -scale, scale)
        b = jax.random.uniform(k2, (1, kout), jnp.float32, -scale, scale)
        return w, b

    def mha_params(k, dim_in_kv):
        kq, kk, kv, ko = jax.random.split(k, 4)
        wq, bq = lin(kq, dim_model, num_heads * dim_key)
        wk, bk = lin(kk, dim_in_kv, num_heads * dim_key)
        wv, bv = lin(kv, dim_in_kv, num_heads * dim_value)
        wo, bo = lin(ko, num_heads * dim_value, dim_model)
        return dict(wq=wq, bq=bq, wk=wk, bk=bk, wv=wv, bv=bv, wo=wo, bo=bo)

    def ln_params(k):
        kg, kb = jax.random.split(k)
        g = jax.random.uniform(kg, (1, dim_model), jnp.float32, 0.9, 1.1)
        b = jax.random.uniform(kb, (1, dim_model), jnp.float32, -0.1, 0.1)
        return g, b

    def layer_params(k):
        k1, k2, k3, k4, k5, k6, k7 = jax.random.split(k, 7)
        w1, b1 = lin(k3, dim_model, dim_feedforward)
        w2, b2 = lin(k4, dim_feedforward, dim_model)
        g1, be1 = ln_params(k5)
        g2, be2 = ln_params(k6)
        g3, be3 = ln_params(k7)
        return dict(self_attn=mha_params(k1, dim_model),
                    cross_attn=mha_params(k2, dim_model_encoder),
                    ln1_g=g1, ln1_b=be1, ln2_g=g2, ln2_b=be2, ln3_g=g3, ln3_b=be3,
                    ffn_w1=w1, ffn_b1=b1, ffn_w2=w2, ffn_b2=b2)

    layers = [layer_params(keys[i]) for i in range(num_layers)]
    fc_w, fc_b = lin(keys[-1], dim_model, num_target_vocab)
    return dict(layers=layers, fc_w=fc_w, fc_b=fc_b)


if __name__ == "__main__":
    # Small but lane-aligned shapes: D=128, H*dk=H*dv=128, De=256, F=256, H*S=128.
    B, T, S = 2, 32, 32
    dim_model, dim_model_encoder = 128, 256
    num_heads, dim_key, dim_value = 4, 32, 32
    dim_feedforward = 256
    num_layers = 2
    num_target_vocab = 16
    q_tile = 16  # grid = (B, T // q_tile) = (2, 2)

    key = jax.random.PRNGKey(0)
    k_tgt, k_enc, k_par = jax.random.split(key, 3)

    target = jax.random.normal(k_tgt, (B, T, dim_model), jnp.float32)
    encoder_output = jax.random.normal(k_enc, (B, S, dim_model_encoder), jnp.float32)

    # target mask: causal; source mask: last 4 source tokens padded in batch 1
    target_mask = jnp.tril(jnp.ones((T, T), jnp.float32))[None].repeat(B, axis=0)
    source_mask = jnp.ones((B, T, S), jnp.float32).at[1, :, S - 4:].set(0.0)

    params = make_params(k_par, num_layers, dim_model, dim_model_encoder, dim_key,
                         dim_value, num_heads, dim_feedforward, num_target_vocab)

    logits, cross_attns = transformer_decoder(
        encoder_output, target, source_mask, target_mask, params,
        num_heads=num_heads, dim_key=dim_key, dim_value=dim_value,
        q_tile=q_tile, return_attentions=True)
    logits = jax.block_until_ready(logits)
    cross_attns = [jax.block_until_ready(a) for a in cross_attns]

    ref_logits, ref_attns = _ref_transformer_decoder(
        encoder_output, target, source_mask, target_mask, params,
        num_heads, dim_key, dim_value)

    assert logits.shape == (B, T, num_target_vocab)
    assert all(a.shape == (B, num_heads, T, S) for a in cross_attns)

    # bf16 MXU operands vs f32 reference -> loosened tolerances.
    max_logit_diff = float(jnp.max(jnp.abs(logits - ref_logits)))
    assert jnp.allclose(logits, ref_logits, atol=1e-1, rtol=1e-1), \
        f"logits mismatch (max abs diff {max_logit_diff})"
    for a, ra in zip(cross_attns, ref_attns):
        assert jnp.allclose(a, ra, atol=2e-2, rtol=2e-2), "cross-attention mismatch"

    print("KERNEL_OK")
</pallas_src>

<mosaic_0001>
module attributes {stable_mosaic.version = 11 : i64} {
  func.func @decoder_layer_kernel(%arg0: i32, %arg1: i32, %arg2: memref<1x16x128xf32, #tpu.memory_space<vmem>>, %arg3: memref<1x32x128xf32, #tpu.memory_space<vmem>>, %arg4: memref<1x32x256xf32, #tpu.memory_space<vmem>>, %arg5: memref<1x16x32xbf16, #tpu.memory_space<vmem>>, %arg6: memref<1x16x32xbf16, #tpu.memory_space<vmem>>, %arg7: memref<128x128xbf16, #tpu.memory_space<vmem>>, %arg8: memref<1x128xf32, #tpu.memory_space<vmem>>, %arg9: memref<128x256xbf16, #tpu.memory_space<vmem>>, %arg10: memref<1x256xf32, #tpu.memory_space<vmem>>, %arg11: memref<128x128xbf16, #tpu.memory_space<vmem>>, %arg12: memref<1x128xf32, #tpu.memory_space<vmem>>, %arg13: memref<1x128xf32, #tpu.memory_space<vmem>>, %arg14: memref<1x128xf32, #tpu.memory_space<vmem>>, %arg15: memref<128x128xbf16, #tpu.memory_space<vmem>>, %arg16: memref<1x128xf32, #tpu.memory_space<vmem>>, %arg17: memref<256x256xbf16, #tpu.memory_space<vmem>>, %arg18: memref<1x256xf32, #tpu.memory_space<vmem>>, %arg19: memref<128x128xbf16, #tpu.memory_space<vmem>>, %arg20: memref<1x128xf32, #tpu.memory_space<vmem>>, %arg21: memref<1x128xf32, #tpu.memory_space<vmem>>, %arg22: memref<1x128xf32, #tpu.memory_space<vmem>>, %arg23: memref<128x256xbf16, #tpu.memory_space<vmem>>, %arg24: memref<1x256xf32, #tpu.memory_space<vmem>>, %arg25: memref<256x128xbf16, #tpu.memory_space<vmem>>, %arg26: memref<1x128xf32, #tpu.memory_space<vmem>>, %arg27: memref<1x128xf32, #tpu.memory_space<vmem>>, %arg28: memref<1x128xf32, #tpu.memory_space<vmem>>, %arg29: memref<1x16x128xf32, #tpu.memory_space<vmem>>, %arg30: memref<1x16x128xf32, #tpu.memory_space<vmem>>) attributes {dimension_semantics = [#tpu.dimension_semantics<parallel>, #tpu.dimension_semantics<parallel>], iteration_bounds = array<i64: 2, 2>, scalar_prefetch = 0 : i64, scratch_operands = 0 : i64, tpu.core_type = #tpu.core_type<tc>, window_params = [{transform_indices = @transform_0, window_bounds = array<i64: 1, 16, 128>}, {transform_indices = @transform_1, window_bounds = array<i64: 1, 32, 128>}, {transform_indices = @transform_2, window_bounds = array<i64: 1, 32, 256>}, {transform_indices = @transform_3, window_bounds = array<i64: 1, 16, 32>}, {transform_indices = @transform_4, window_bounds = array<i64: 1, 16, 32>}, {pipeline_mode = #tpu.pipeline_mode<synchronous>, transform_indices = @transform_5, window_bounds = array<i64: 128, 128>}, {pipeline_mode = #tpu.pipeline_mode<synchronous>, transform_indices = @transform_6, window_bounds = array<i64: 1, 128>}, {pipeline_mode = #tpu.pipeline_mode<synchronous>, transform_indices = @transform_7, window_bounds = array<i64: 128, 256>}, {pipeline_mode = #tpu.pipeline_mode<synchronous>, transform_indices = @transform_8, window_bounds = array<i64: 1, 256>}, {pipeline_mode = #tpu.pipeline_mode<synchronous>, transform_indices = @transform_9, window_bounds = array<i64: 128, 128>}, {pipeline_mode = #tpu.pipeline_mode<synchronous>, transform_indices = @transform_10, window_bounds = array<i64: 1, 128>}, {pipeline_mode = #tpu.pipeline_mode<synchronous>, transform_indices = @transform_11, window_bounds = array<i64: 1, 128>}, {pipeline_mode = #tpu.pipeline_mode<synchronous>, transform_indices = @transform_12, window_bounds = array<i64: 1, 128>}, {pipeline_mode = #tpu.pipeline_mode<synchronous>, transform_indices = @transform_13, window_bounds = array<i64: 128, 128>}, {pipeline_mode = #tpu.pipeline_mode<synchronous>, transform_indices = @transform_14, window_bounds = array<i64: 1, 128>}, {pipeline_mode = #tpu.pipeline_mode<synchronous>, transform_indices = @transform_15, window_bounds = array<i64: 256, 256>}, {pipeline_mode = #tpu.pipeline_mode<synchronous>, transform_indices = @transform_16, window_bounds = array<i64: 1, 256>}, {pipeline_mode = #tpu.pipeline_mode<synchronous>, transform_indices = @transform_17, window_bounds = array<i64: 128, 128>}, {pipeline_mode = #tpu.pipeline_mode<synchronous>, transform_indices = @transform_18, window_bounds = array<i64: 1, 128>}, {pipeline_mode = #tpu.pipeline_mode<synchronous>, transform_indices = @transform_19, window_bounds = array<i64: 1, 128>}, {pipeline_mode = #tpu.pipeline_mode<synchronous>, transform_indices = @transform_20, window_bounds = array<i64: 1, 128>}, {pipeline_mode = #tpu.pipeline_mode<synchronous>, transform_indices = @transform_21, window_bounds = array<i64: 128, 256>}, {pipeline_mode = #tpu.pipeline_mode<synchronous>, transform_indices = @transform_22, window_bounds = array<i64: 1, 256>}, {pipeline_mode = #tpu.pipeline_mode<synchronous>, transform_indices = @transform_23, window_bounds = array<i64: 256, 128>}, {pipeline_mode = #tpu.pipeline_mode<synchronous>, transform_indices = @transform_24, window_bounds = array<i64: 1, 128>}, {pipeline_mode = #tpu.pipeline_mode<synchronous>, transform_indices = @transform_25, window_bounds = array<i64: 1, 128>}, {pipeline_mode = #tpu.pipeline_mode<synchronous>, transform_indices = @transform_26, window_bounds = array<i64: 1, 128>}, {transform_indices = @transform_27, window_bounds = array<i64: 1, 16, 128>}, {transform_indices = @transform_28, window_bounds = array<i64: 1, 16, 128>}]} {
    %c0 = arith.constant 0 : index
    %c0_0 = arith.constant 0 : index
    %c0_1 = arith.constant 0 : index
    %0 = vector.load %arg2[%c0, %c0_0, %c0_1] : memref<1x16x128xf32, #tpu.memory_space<vmem>>, vector<1x16x128xf32>
    %1 = vector.shape_cast %0 : vector<1x16x128xf32> to vector<16x128xf32>
    %c0_2 = arith.constant 0 : index
    %c0_3 = arith.constant 0 : index
    %c0_4 = arith.constant 0 : index
    %2 = vector.load %arg3[%c0_2, %c0_3, %c0_4] : memref<1x32x128xf32, #tpu.memory_space<vmem>>, vector<1x32x128xf32>
    %3 = vector.shape_cast %2 : vector<1x32x128xf32> to vector<32x128xf32>
    %c0_5 = arith.constant 0 : index
    %c0_6 = arith.constant 0 : index
    %c0_7 = arith.constant 0 : index
    %4 = vector.load %arg4[%c0_5, %c0_6, %c0_7] : memref<1x32x256xf32, #tpu.memory_space<vmem>>, vector<1x32x256xf32>
    %5 = vector.shape_cast %4 : vector<1x32x256xf32> to vector<32x256xf32>
    %c0_8 = arith.constant 0 : index
    %c0_9 = arith.constant 0 : index
    %c0_10 = arith.constant 0 : index
    %6 = vector.load %arg5[%c0_8, %c0_9, %c0_10] : memref<1x16x32xbf16, #tpu.memory_space<vmem>>, vector<1x16x32xbf16>
    %7 = vector.shape_cast %6 : vector<1x16x32xbf16> to vector<16x32xbf16>
    %8 = arith.extf %7 : vector<16x32xbf16> to vector<16x32xf32>
    %c0_11 = arith.constant 0 : index
    %c0_12 = arith.constant 0 : index
    %c0_13 = arith.constant 0 : index
    %9 = vector.load %arg6[%c0_11, %c0_12, %c0_13] : memref<1x16x32xbf16, #tpu.memory_space<vmem>>, vector<1x16x32xbf16>
    %10 = vector.shape_cast %9 : vector<1x16x32xbf16> to vector<16x32xbf16>
    %11 = arith.extf %10 : vector<16x32xbf16> to vector<16x32xf32>
    %12 = arith.truncf %1 : vector<16x128xf32> to vector<16x128xbf16>
    %c0_14 = arith.constant 0 : index
    %c0_15 = arith.constant 0 : index
    %13 = vector.load %arg7[%c0_14, %c0_15] : memref<128x128xbf16, #tpu.memory_space<vmem>>, vector<128x128xbf16>
    %cst = arith.constant dense<0.000000e+00> : vector<16x128xf32>
    %14 = tpu.matmul %12, %13, %cst {dimension_numbers = #tpu.dot_dimension_numbers<[1], [0], [0], [1], [0, 0, 1, 1], [], []>} : vector<16x128xbf16>, vector<128x128xbf16>, vector<16x128xf32> -> vector<16x128xf32>
    %c0_16 = arith.constant 0 : index
    %c0_17 = arith.constant 0 : index
    %15 = vector.load %arg8[%c0_16, %c0_17] : memref<1x128xf32, #tpu.memory_space<vmem>>, vector<1x128xf32>
    %16 = vector.broadcast %15 : vector<1x128xf32> to vector<16x128xf32>
    %17 = arith.addf %14, %16 : vector<16x128xf32>
    %18 = arith.truncf %3 : vector<32x128xf32> to vector<32x128xbf16>
    %c0_18 = arith.constant 0 : index
    %c0_19 = arith.constant 0 : index
    %19 = vector.load %arg9[%c0_18, %c0_19] : memref<128x256xbf16, #tpu.memory_space<vmem>>, vector<128x256xbf16>
    %cst_20 = arith.constant dense<0.000000e+00> : vector<32x256xf32>
    %20 = tpu.matmul %18, %19, %cst_20 {dimension_numbers = #tpu.dot_dimension_numbers<[1], [0], [0], [1], [0, 0, 1, 1], [], []>} : vector<32x128xbf16>, vector<128x256xbf16>, vector<32x256xf32> -> vector<32x256xf32>
    %c0_21 = arith.constant 0 : index
    %c0_22 = arith.constant 0 : index
    %21 = vector.load %arg10[%c0_21, %c0_22] : memref<1x256xf32, #tpu.memory_space<vmem>>, vector<1x256xf32>
    %22 = vector.broadcast %21 : vector<1x256xf32> to vector<32x256xf32>
    %23 = arith.addf %20, %22 : vector<32x256xf32>
    %24 = vector.extract_strided_slice %23 {offsets = [0, 0], sizes = [32, 128], strides = [1, 1]} : vector<32x256xf32> to vector<32x128xf32>
    %25 = vector.extract_strided_slice %23 {offsets = [0, 128], sizes = [32, 128], strides = [1, 1]} : vector<32x256xf32> to vector<32x128xf32>
    %cst_23 = arith.constant 5.000000e-01 : f32
    %26 = vector.broadcast %cst_23 : f32 to vector<16x32xf32>
    %27 = arith.cmpf ogt, %8, %26 : vector<16x32xf32>
    %cst_24 = arith.constant 0.176776692 : f32
    %28 = vector.broadcast %cst_24 : f32 to vector<16x128xf32>
    %29 = arith.mulf %17, %28 : vector<16x128xf32>
    %30 = arith.truncf %29 : vector<16x128xf32> to vector<16x128xbf16>
    %31 = arith.truncf %24 : vector<32x128xf32> to vector<32x128xbf16>
    %32 = arith.truncf %25 : vector<32x128xf32> to vector<32x128xbf16>
    %33 = vector.extract_strided_slice %30 {offsets = [0, 0], sizes = [16, 32], strides = [1, 1]} : vector<16x128xbf16> to vector<16x32xbf16>
    %34 = vector.extract_strided_slice %31 {offsets = [0, 0], sizes = [32, 32], strides = [1, 1]} : vector<32x128xbf16> to vector<32x32xbf16>
    %35 = vector.extract_strided_slice %32 {offsets = [0, 0], sizes = [32, 32], strides = [1, 1]} : vector<32x128xbf16> to vector<32x32xbf16>
    %cst_25 = arith.constant dense<0.000000e+00> : vector<16x32xf32>
    %36 = tpu.matmul %33, %34, %cst_25 {dimension_numbers = #tpu.dot_dimension_numbers<[1], [1], [0], [0], [0, 0, 1, 0], [], []>} : vector<16x32xbf16>, vector<32x32xbf16>, vector<16x32xf32> -> vector<16x32xf32>
    %cst_26 = arith.constant -1.000000e+04 : f32
    %37 = vector.broadcast %cst_26 : f32 to vector<16x32xf32>
    %38 = arith.select %27, %36, %37 : vector<16x32xi1>, vector<16x32xf32>
    %cst_27 = arith.constant dense<0xFF800000> : vector<16xf32>
    %39 = vector.multi_reduction <maximumf>, %38, %cst_27 [1] : vector<16x32xf32> to vector<16xf32>
    %40 = vector.shape_cast %39 : vector<16xf32> to vector<16x1xf32>
    %41 = vector.broadcast %40 : vector<16x1xf32> to vector<16x32xf32>
    %42 = arith.subf %38, %41 : vector<16x32xf32>
    %43 = math.exp %42 : vector<16x32xf32>
    %cst_28 = arith.constant dense<0.000000e+00> : vector<16xf32>
    %44 = vector.multi_reduction <add>, %43, %cst_28 [1] : vector<16x32xf32> to vector<16xf32>
    %45 = vector.shape_cast %44 : vector<16xf32> to vector<16x1xf32>
    %46 = tpu.reciprocal %45 {approx = true} : vector<16x1xf32> -> vector<16x1xf32>
    %47 = vector.broadcast %46 : vector<16x1xf32> to vector<16x32xf32>
    %48 = arith.mulf %43, %47 : vector<16x32xf32>
    %49 = arith.truncf %48 : vector<16x32xf32> to vector<16x32xbf16>
    %cst_29 = arith.constant dense<0.000000e+00> : vector<16x32xf32>
    %50 = tpu.matmul %49, %35, %cst_29 {dimension_numbers = #tpu.dot_dimension_numbers<[1], [0], [0], [1], [0, 0, 1, 1], [], []>} : vector<16x32xbf16>, vector<32x32xbf16>, vector<16x32xf32> -> vector<16x32xf32>
    %51 = vector.extract_strided_slice %30 {offsets = [0, 32], sizes = [16, 32], strides = [1, 1]} : vector<16x128xbf16> to vector<16x32xbf16>
    %52 = vector.extract_strided_slice %31 {offsets = [0, 32], sizes = [32, 32], strides = [1, 1]} : vector<32x128xbf16> to vector<32x32xbf16>
    %53 = vector.extract_strided_slice %32 {offsets = [0, 32], sizes = [32, 32], strides = [1, 1]} : vector<32x128xbf16> to vector<32x32xbf16>
    %cst_30 = arith.constant dense<0.000000e+00> : vector<16x32xf32>
    %54 = tpu.matmul %51, %52, %cst_30 {dimension_numbers = #tpu.dot_dimension_numbers<[1], [1], [0], [0], [0, 0, 1, 0], [], []>} : vector<16x32xbf16>, vector<32x32xbf16>, vector<16x32xf32> -> vector<16x32xf32>
    %cst_31 = arith.constant -1.000000e+04 : f32
    %55 = vector.broadcast %cst_31 : f32 to vector<16x32xf32>
    %56 = arith.select %27, %54, %55 : vector<16x32xi1>, vector<16x32xf32>
    %cst_32 = arith.constant dense<0xFF800000> : vector<16xf32>
    %57 = vector.multi_reduction <maximumf>, %56, %cst_32 [1] : vector<16x32xf32> to vector<16xf32>
    %58 = vector.shape_cast %57 : vector<16xf32> to vector<16x1xf32>
    %59 = vector.broadcast %58 : vector<16x1xf32> to vector<16x32xf32>
    %60 = arith.subf %56, %59 : vector<16x32xf32>
    %61 = math.exp %60 : vector<16x32xf32>
    %cst_33 = arith.constant dense<0.000000e+00> : vector<16xf32>
    %62 = vector.multi_reduction <add>, %61, %cst_33 [1] : vector<16x32xf32> to vector<16xf32>
    %63 = vector.shape_cast %62 : vector<16xf32> to vector<16x1xf32>
    %64 = tpu.reciprocal %63 {approx = true} : vector<16x1xf32> -> vector<16x1xf32>
    %65 = vector.broadcast %64 : vector<16x1xf32> to vector<16x32xf32>
    %66 = arith.mulf %61, %65 : vector<16x32xf32>
    %67 = arith.truncf %66 : vector<16x32xf32> to vector<16x32xbf16>
    %cst_34 = arith.constant dense<0.000000e+00> : vector<16x32xf32>
    %68 = tpu.matmul %67, %53, %cst_34 {dimension_numbers = #tpu.dot_dimension_numbers<[1], [0], [0], [1], [0, 0, 1, 1], [], []>} : vector<16x32xbf16>, vector<32x32xbf16>, vector<16x32xf32> -> vector<16x32xf32>
    %69 = vector.extract_strided_slice %30 {offsets = [0, 64], sizes = [16, 32], strides = [1, 1]} : vector<16x128xbf16> to vector<16x32xbf16>
    %70 = vector.extract_strided_slice %31 {offsets = [0, 64], sizes = [32, 32], strides = [1, 1]} : vector<32x128xbf16> to vector<32x32xbf16>
    %71 = vector.extract_strided_slice %32 {offsets = [0, 64], sizes = [32, 32], strides = [1, 1]} : vector<32x128xbf16> to vector<32x32xbf16>
    %cst_35 = arith.constant dense<0.000000e+00> : vector<16x32xf32>
    %72 = tpu.matmul %69, %70, %cst_35 {dimension_numbers = #tpu.dot_dimension_numbers<[1], [1], [0], [0], [0, 0, 1, 0], [], []>} : vector<16x32xbf16>, vector<32x32xbf16>, vector<16x32xf32> -> vector<16x32xf32>
    %cst_36 = arith.constant -1.000000e+04 : f32
    %73 = vector.broadcast %cst_36 : f32 to vector<16x32xf32>
    %74 = arith.select %27, %72, %73 : vector<16x32xi1>, vector<16x32xf32>
    %cst_37 = arith.constant dense<0xFF800000> : vector<16xf32>
    %75 = vector.multi_reduction <maximumf>, %74, %cst_37 [1] : vector<16x32xf32> to vector<16xf32>
    %76 = vector.shape_cast %75 : vector<16xf32> to vector<16x1xf32>
    %77 = vector.broadcast %76 : vector<16x1xf32> to vector<16x32xf32>
    %78 = arith.subf %74, %77 : vector<16x32xf32>
    %79 = math.exp %78 : vector<16x32xf32>
    %cst_38 = arith.constant dense<0.000000e+00> : vector<16xf32>
    %80 = vector.multi_reduction <add>, %79, %cst_38 [1] : vector<16x32xf32> to vector<16xf32>
    %81 = vector.shape_cast %80 : vector<16xf32> to vector<16x1xf32>
    %82 = tpu.reciprocal %81 {approx = true} : vector<16x1xf32> -> vector<16x1xf32>
    %83 = vector.broadcast %82 : vector<16x1xf32> to vector<16x32xf32>
    %84 = arith.mulf %79, %83 : vector<16x32xf32>
    %85 = arith.truncf %84 : vector<16x32xf32> to vector<16x32xbf16>
    %cst_39 = arith.constant dense<0.000000e+00> : vector<16x32xf32>
    %86 = tpu.matmul %85, %71, %cst_39 {dimension_numbers = #tpu.dot_dimension_numbers<[1], [0], [0], [1], [0, 0, 1, 1], [], []>} : vector<16x32xbf16>, vector<32x32xbf16>, vector<16x32xf32> -> vector<16x32xf32>
    %87 = vector.extract_strided_slice %30 {offsets = [0, 96], sizes = [16, 32], strides = [1, 1]} : vector<16x128xbf16> to vector<16x32xbf16>
    %88 = vector.extract_strided_slice %31 {offsets = [0, 96], sizes = [32, 32], strides = [1, 1]} : vector<32x128xbf16> to vector<32x32xbf16>
    %89 = vector.extract_strided_slice %32 {offsets = [0, 96], sizes = [32, 32], strides = [1, 1]} : vector<32x128xbf16> to vector<32x32xbf16>
    %cst_40 = arith.constant dense<0.000000e+00> : vector<16x32xf32>
    %90 = tpu.matmul %87, %88, %cst_40 {dimension_numbers = #tpu.dot_dimension_numbers<[1], [1], [0], [0], [0, 0, 1, 0], [], []>} : vector<16x32xbf16>, vector<32x32xbf16>, vector<16x32xf32> -> vector<16x32xf32>
    %cst_41 = arith.constant -1.000000e+04 : f32
    %91 = vector.broadcast %cst_41 : f32 to vector<16x32xf32>
    %92 = arith.select %27, %90, %91 : vector<16x32xi1>, vector<16x32xf32>
    %cst_42 = arith.constant dense<0xFF800000> : vector<16xf32>
    %93 = vector.multi_reduction <maximumf>, %92, %cst_42 [1] : vector<16x32xf32> to vector<16xf32>
    %94 = vector.shape_cast %93 : vector<16xf32> to vector<16x1xf32>
    %95 = vector.broadcast %94 : vector<16x1xf32> to vector<16x32xf32>
    %96 = arith.subf %92, %95 : vector<16x32xf32>
    %97 = math.exp %96 : vector<16x32xf32>
    %cst_43 = arith.constant dense<0.000000e+00> : vector<16xf32>
    %98 = vector.multi_reduction <add>, %97, %cst_43 [1] : vector<16x32xf32> to vector<16xf32>
    %99 = vector.shape_cast %98 : vector<16xf32> to vector<16x1xf32>
    %100 = tpu.reciprocal %99 {approx = true} : vector<16x1xf32> -> vector<16x1xf32>
    %101 = vector.broadcast %100 : vector<16x1xf32> to vector<16x32xf32>
    %102 = arith.mulf %97, %101 : vector<16x32xf32>
    %103 = arith.truncf %102 : vector<16x32xf32> to vector<16x32xbf16>
    %cst_44 = arith.constant dense<0.000000e+00> : vector<16x32xf32>
    %104 = tpu.matmul %103, %89, %cst_44 {dimension_numbers = #tpu.dot_dimension_numbers<[1], [0], [0], [1], [0, 0, 1, 1], [], []>} : vector<16x32xbf16>, vector<32x32xbf16>, vector<16x32xf32> -> vector<16x32xf32>
    %105 = tpu.concatenate %50, %68, %86, %104 in 1 : vector<16x32xf32>, vector<16x32xf32>, vector<16x32xf32>, vector<16x32xf32> -> vector<16x128xf32>
    %106 = arith.truncf %105 : vector<16x128xf32> to vector<16x128xbf16>
    %c0_45 = arith.constant 0 : index
    %c0_46 = arith.constant 0 : index
    %107 = vector.load %arg11[%c0_45, %c0_46] : memref<128x128xbf16, #tpu.memory_space<vmem>>, vector<128x128xbf16>
    %cst_47 = arith.constant dense<0.000000e+00> : vector<16x128xf32>
    %108 = tpu.matmul %106, %107, %cst_47 {dimension_numbers = #tpu.dot_dimension_numbers<[1], [0], [0], [1], [0, 0, 1, 1], [], []>} : vector<16x128xbf16>, vector<128x128xbf16>, vector<16x128xf32> -> vector<16x128xf32>
    %c0_48 = arith.constant 0 : index
    %c0_49 = arith.constant 0 : index
    %109 = vector.load %arg12[%c0_48, %c0_49] : memref<1x128xf32, #tpu.memory_space<vmem>>, vector<1x128xf32>
    %110 = vector.broadcast %109 : vector<1x128xf32> to vector<16x128xf32>
    %111 = arith.addf %108, %110 : vector<16x128xf32>
    %112 = arith.addf %1, %111 : vector<16x128xf32>
    %cst_50 = arith.constant dense<0.000000e+00> : vector<16xf32>
    %113 = vector.multi_reduction <add>, %112, %cst_50 [1] : vector<16x128xf32> to vector<16xf32>
    %114 = vector.shape_cast %113 : vector<16xf32> to vector<16x1xf32>
    %cst_51 = arith.constant 1.280000e+02 : f32
    %115 = vector.broadcast %cst_51 : f32 to vector<16x1xf32>
    %116 = arith.divf %114, %115 : vector<16x1xf32>
    %117 = vector.broadcast %116 : vector<16x1xf32> to vector<16x128xf32>
    %118 = arith.subf %112, %117 : vector<16x128xf32>
    %119 = arith.mulf %118, %118 : vector<16x128xf32>
    %cst_52 = arith.constant dense<0.000000e+00> : vector<16xf32>
    %120 = vector.multi_reduction <add>, %119, %cst_52 [1] : vector<16x128xf32> to vector<16xf32>
    %121 = vector.shape_cast %120 : vector<16xf32> to vector<16x1xf32>
    %cst_53 = arith.constant 1.280000e+02 : f32
    %122 = vector.broadcast %cst_53 : f32 to vector<16x1xf32>
    %123 = arith.divf %121, %122 : vector<16x1xf32>
    %124 = vector.broadcast %116 : vector<16x1xf32> to vector<16x128xf32>
    %125 = arith.subf %112, %124 : vector<16x128xf32>
    %cst_54 = arith.constant 9.99999974E-6 : f32
    %126 = vector.broadcast %cst_54 : f32 to vector<16x1xf32>
    %127 = arith.addf %123, %126 : vector<16x1xf32>
    %128 = math.rsqrt %127 : vector<16x1xf32>
    %129 = vector.broadcast %128 : vector<16x1xf32> to vector<16x128xf32>
    %130 = arith.mulf %125, %129 : vector<16x128xf32>
    %c0_55 = arith.constant 0 : index
    %c0_56 = arith.constant 0 : index
    %131 = vector.load %arg13[%c0_55, %c0_56] : memref<1x128xf32, #tpu.memory_space<vmem>>, vector<1x128xf32>
    %132 = vector.broadcast %131 : vector<1x128xf32> to vector<16x128xf32>
    %133 = arith.mulf %130, %132 : vector<16x128xf32>
    %c0_57 = arith.constant 0 : index
    %c0_58 = arith.constant 0 : index
    %134 = vector.load %arg14[%c0_57, %c0_58] : memref<1x128xf32, #tpu.memory_space<vmem>>, vector<1x128xf32>
    %135 = vector.broadcast %134 : vector<1x128xf32> to vector<16x128xf32>
    %136 = arith.addf %133, %135 : vector<16x128xf32>
    %137 = arith.truncf %136 : vector<16x128xf32> to vector<16x128xbf16>
    %c0_59 = arith.constant 0 : index
    %c0_60 = arith.constant 0 : index
    %138 = vector.load %arg15[%c0_59, %c0_60] : memref<128x128xbf16, #tpu.memory_space<vmem>>, vector<128x128xbf16>
    %cst_61 = arith.constant dense<0.000000e+00> : vector<16x128xf32>
    %139 = tpu.matmul %137, %138, %cst_61 {dimension_numbers = #tpu.dot_dimension_numbers<[1], [0], [0], [1], [0, 0, 1, 1], [], []>} : vector<16x128xbf16>, vector<128x128xbf16>, vector<16x128xf32> -> vector<16x128xf32>
    %c0_62 = arith.constant 0 : index
    %c0_63 = arith.constant 0 : index
    %140 = vector.load %arg16[%c0_62, %c0_63] : memref<1x128xf32, #tpu.memory_space<vmem>>, vector<1x128xf32>
    %141 = vector.broadcast %140 : vector<1x128xf32> to vector<16x128xf32>
    %142 = arith.addf %139, %141 : vector<16x128xf32>
    %143 = arith.truncf %5 : vector<32x256xf32> to vector<32x256xbf16>
    %c0_64 = arith.constant 0 : index
    %c0_65 = arith.constant 0 : index
    %144 = vector.load %arg17[%c0_64, %c0_65] : memref<256x256xbf16, #tpu.memory_space<vmem>>, vector<256x256xbf16>
    %cst_66 = arith.constant dense<0.000000e+00> : vector<32x256xf32>
    %145 = tpu.matmul %143, %144, %cst_66 {dimension_numbers = #tpu.dot_dimension_numbers<[1], [0], [0], [1], [0, 0, 1, 1], [], []>} : vector<32x256xbf16>, vector<256x256xbf16>, vector<32x256xf32> -> vector<32x256xf32>
    %c0_67 = arith.constant 0 : index
    %c0_68 = arith.constant 0 : index
    %146 = vector.load %arg18[%c0_67, %c0_68] : memref<1x256xf32, #tpu.memory_space<vmem>>, vector<1x256xf32>
    %147 = vector.broadcast %146 : vector<1x256xf32> to vector<32x256xf32>
    %148 = arith.addf %145, %147 : vector<32x256xf32>
    %149 = vector.extract_strided_slice %148 {offsets = [0, 0], sizes = [32, 128], strides = [1, 1]} : vector<32x256xf32> to vector<32x128xf32>
    %150 = vector.extract_strided_slice %148 {offsets = [0, 128], sizes = [32, 128], strides = [1, 1]} : vector<32x256xf32> to vector<32x128xf32>
    %cst_69 = arith.constant 5.000000e-01 : f32
    %151 = vector.broadcast %cst_69 : f32 to vector<16x32xf32>
    %152 = arith.cmpf ogt, %11, %151 : vector<16x32xf32>
    %cst_70 = arith.constant 0.176776692 : f32
    %153 = vector.broadcast %cst_70 : f32 to vector<16x128xf32>
    %154 = arith.mulf %142, %153 : vector<16x128xf32>
    %155 = arith.truncf %154 : vector<16x128xf32> to vector<16x128xbf16>
    %156 = arith.truncf %149 : vector<32x128xf32> to vector<32x128xbf16>
    %157 = arith.truncf %150 : vector<32x128xf32> to vector<32x128xbf16>
    %158 = vector.extract_strided_slice %155 {offsets = [0, 0], sizes = [16, 32], strides = [1, 1]} : vector<16x128xbf16> to vector<16x32xbf16>
    %159 = vector.extract_strided_slice %156 {offsets = [0, 0], sizes = [32, 32], strides = [1, 1]} : vector<32x128xbf16> to vector<32x32xbf16>
    %160 = vector.extract_strided_slice %157 {offsets = [0, 0], sizes = [32, 32], strides = [1, 1]} : vector<32x128xbf16> to vector<32x32xbf16>
    %cst_71 = arith.constant dense<0.000000e+00> : vector<16x32xf32>
    %161 = tpu.matmul %158, %159, %cst_71 {dimension_numbers = #tpu.dot_dimension_numbers<[1], [1], [0], [0], [0, 0, 1, 0], [], []>} : vector<16x32xbf16>, vector<32x32xbf16>, vector<16x32xf32> -> vector<16x32xf32>
    %cst_72 = arith.constant -1.000000e+04 : f32
    %162 = vector.broadcast %cst_72 : f32 to vector<16x32xf32>
    %163 = arith.select %152, %161, %162 : vector<16x32xi1>, vector<16x32xf32>
    %cst_73 = arith.constant dense<0xFF800000> : vector<16xf32>
    %164 = vector.multi_reduction <maximumf>, %163, %cst_73 [1] : vector<16x32xf32> to vector<16xf32>
    %165 = vector.shape_cast %164 : vector<16xf32> to vector<16x1xf32>
    %166 = vector.broadcast %165 : vector<16x1xf32> to vector<16x32xf32>
    %167 = arith.subf %163, %166 : vector<16x32xf32>
    %168 = math.exp %167 : vector<16x32xf32>
    %cst_74 = arith.constant dense<0.000000e+00> : vector<16xf32>
    %169 = vector.multi_reduction <add>, %168, %cst_74 [1] : vector<16x32xf32> to vector<16xf32>
    %170 = vector.shape_cast %169 : vector<16xf32> to vector<16x1xf32>
    %171 = tpu.reciprocal %170 {approx = true} : vector<16x1xf32> -> vector<16x1xf32>
    %172 = vector.broadcast %171 : vector<16x1xf32> to vector<16x32xf32>
    %173 = arith.mulf %168, %172 : vector<16x32xf32>
    %174 = arith.truncf %173 : vector<16x32xf32> to vector<16x32xbf16>
    %cst_75 = arith.constant dense<0.000000e+00> : vector<16x32xf32>
    %175 = tpu.matmul %174, %160, %cst_75 {dimension_numbers = #tpu.dot_dimension_numbers<[1], [0], [0], [1], [0, 0, 1, 1], [], []>} : vector<16x32xbf16>, vector<32x32xbf16>, vector<16x32xf32> -> vector<16x32xf32>
    %176 = vector.extract_strided_slice %155 {offsets = [0, 32], sizes = [16, 32], strides = [1, 1]} : vector<16x128xbf16> to vector<16x32xbf16>
    %177 = vector.extract_strided_slice %156 {offsets = [0, 32], sizes = [32, 32], strides = [1, 1]} : vector<32x128xbf16> to vector<32x32xbf16>
    %178 = vector.extract_strided_slice %157 {offsets = [0, 32], sizes = [32, 32], strides = [1, 1]} : vector<32x128xbf16> to vector<32x32xbf16>
    %cst_76 = arith.constant dense<0.000000e+00> : vector<16x32xf32>
    %179 = tpu.matmul %176, %177, %cst_76 {dimension_numbers = #tpu.dot_dimension_numbers<[1], [1], [0], [0], [0, 0, 1, 0], [], []>} : vector<16x32xbf16>, vector<32x32xbf16>, vector<16x32xf32> -> vector<16x32xf32>
    %cst_77 = arith.constant -1.000000e+04 : f32
    %180 = vector.broadcast %cst_77 : f32 to vector<16x32xf32>
    %181 = arith.select %152, %179, %180 : vector<16x32xi1>, vector<16x32xf32>
    %cst_78 = arith.constant dense<0xFF800000> : vector<16xf32>
    %182 = vector.multi_reduction <maximumf>, %181, %cst_78 [1] : vector<16x32xf32> to vector<16xf32>
    %183 = vector.shape_cast %182 : vector<16xf32> to vector<16x1xf32>
    %184 = vector.broadcast %183 : vector<16x1xf32> to vector<16x32xf32>
    %185 = arith.subf %181, %184 : vector<16x32xf32>
    %186 = math.exp %185 : vector<16x32xf32>
    %cst_79 = arith.constant dense<0.000000e+00> : vector<16xf32>
    %187 = vector.multi_reduction <add>, %186, %cst_79 [1] : vector<16x32xf32> to vector<16xf32>
    %188 = vector.shape_cast %187 : vector<16xf32> to vector<16x1xf32>
    %189 = tpu.reciprocal %188 {approx = true} : vector<16x1xf32> -> vector<16x1xf32>
    %190 = vector.broadcast %189 : vector<16x1xf32> to vector<16x32xf32>
    %191 = arith.mulf %186, %190 : vector<16x32xf32>
    %192 = arith.truncf %191 : vector<16x32xf32> to vector<16x32xbf16>
    %cst_80 = arith.constant dense<0.000000e+00> : vector<16x32xf32>
    %193 = tpu.matmul %192, %178, %cst_80 {dimension_numbers = #tpu.dot_dimension_numbers<[1], [0], [0], [1], [0, 0, 1, 1], [], []>} : vector<16x32xbf16>, vector<32x32xbf16>, vector<16x32xf32> -> vector<16x32xf32>
    %194 = vector.extract_strided_slice %155 {offsets = [0, 64], sizes = [16, 32], strides = [1, 1]} : vector<16x128xbf16> to vector<16x32xbf16>
    %195 = vector.extract_strided_slice %156 {offsets = [0, 64], sizes = [32, 32], strides = [1, 1]} : vector<32x128xbf16> to vector<32x32xbf16>
    %196 = vector.extract_strided_slice %157 {offsets = [0, 64], sizes = [32, 32], strides = [1, 1]} : vector<32x128xbf16> to vector<32x32xbf16>
    %cst_81 = arith.constant dense<0.000000e+00> : vector<16x32xf32>
    %197 = tpu.matmul %194, %195, %cst_81 {dimension_numbers = #tpu.dot_dimension_numbers<[1], [1], [0], [0], [0, 0, 1, 0], [], []>} : vector<16x32xbf16>, vector<32x32xbf16>, vector<16x32xf32> -> vector<16x32xf32>
    %cst_82 = arith.constant -1.000000e+04 : f32
    %198 = vector.broadcast %cst_82 : f32 to vector<16x32xf32>
    %199 = arith.select %152, %197, %198 : vector<16x32xi1>, vector<16x32xf32>
    %cst_83 = arith.constant dense<0xFF800000> : vector<16xf32>
    %200 = vector.multi_reduction <maximumf>, %199, %cst_83 [1] : vector<16x32xf32> to vector<16xf32>
    %201 = vector.shape_cast %200 : vector<16xf32> to vector<16x1xf32>
    %202 = vector.broadcast %201 : vector<16x1xf32> to vector<16x32xf32>
    %203 = arith.subf %199, %202 : vector<16x32xf32>
    %204 = math.exp %203 : vector<16x32xf32>
    %cst_84 = arith.constant dense<0.000000e+00> : vector<16xf32>
    %205 = vector.multi_reduction <add>, %204, %cst_84 [1] : vector<16x32xf32> to vector<16xf32>
    %206 = vector.shape_cast %205 : vector<16xf32> to vector<16x1xf32>
    %207 = tpu.reciprocal %206 {approx = true} : vector<16x1xf32> -> vector<16x1xf32>
    %208 = vector.broadcast %207 : vector<16x1xf32> to vector<16x32xf32>
    %209 = arith.mulf %204, %208 : vector<16x32xf32>
    %210 = arith.truncf %209 : vector<16x32xf32> to vector<16x32xbf16>
    %cst_85 = arith.constant dense<0.000000e+00> : vector<16x32xf32>
    %211 = tpu.matmul %210, %196, %cst_85 {dimension_numbers = #tpu.dot_dimension_numbers<[1], [0], [0], [1], [0, 0, 1, 1], [], []>} : vector<16x32xbf16>, vector<32x32xbf16>, vector<16x32xf32> -> vector<16x32xf32>
    %212 = vector.extract_strided_slice %155 {offsets = [0, 96], sizes = [16, 32], strides = [1, 1]} : vector<16x128xbf16> to vector<16x32xbf16>
    %213 = vector.extract_strided_slice %156 {offsets = [0, 96], sizes = [32, 32], strides = [1, 1]} : vector<32x128xbf16> to vector<32x32xbf16>
    %214 = vector.extract_strided_slice %157 {offsets = [0, 96], sizes = [32, 32], strides = [1, 1]} : vector<32x128xbf16> to vector<32x32xbf16>
    %cst_86 = arith.constant dense<0.000000e+00> : vector<16x32xf32>
    %215 = tpu.matmul %212, %213, %cst_86 {dimension_numbers = #tpu.dot_dimension_numbers<[1], [1], [0], [0], [0, 0, 1, 0], [], []>} : vector<16x32xbf16>, vector<32x32xbf16>, vector<16x32xf32> -> vector<16x32xf32>
    %cst_87 = arith.constant -1.000000e+04 : f32
    %216 = vector.broadcast %cst_87 : f32 to vector<16x32xf32>
    %217 = arith.select %152, %215, %216 : vector<16x32xi1>, vector<16x32xf32>
    %cst_88 = arith.constant dense<0xFF800000> : vector<16xf32>
    %218 = vector.multi_reduction <maximumf>, %217, %cst_88 [1] : vector<16x32xf32> to vector<16xf32>
    %219 = vector.shape_cast %218 : vector<16xf32> to vector<16x1xf32>
    %220 = vector.broadcast %219 : vector<16x1xf32> to vector<16x32xf32>
    %221 = arith.subf %217, %220 : vector<16x32xf32>
    %222 = math.exp %221 : vector<16x32xf32>
    %cst_89 = arith.constant dense<0.000000e+00> : vector<16xf32>
    %223 = vector.multi_reduction <add>, %222, %cst_89 [1] : vector<16x32xf32> to vector<16xf32>
    %224 = vector.shape_cast %223 : vector<16xf32> to vector<16x1xf32>
    %225 = tpu.reciprocal %224 {approx = true} : vector<16x1xf32> -> vector<16x1xf32>
    %226 = vector.broadcast %225 : vector<16x1xf32> to vector<16x32xf32>
    %227 = arith.mulf %222, %226 : vector<16x32xf32>
    %228 = arith.truncf %227 : vector<16x32xf32> to vector<16x32xbf16>
    %cst_90 = arith.constant dense<0.000000e+00> : vector<16x32xf32>
    %229 = tpu.matmul %228, %214, %cst_90 {dimension_numbers = #tpu.dot_dimension_numbers<[1], [0], [0], [1], [0, 0, 1, 1], [], []>} : vector<16x32xbf16>, vector<32x32xbf16>, vector<16x32xf32> -> vector<16x32xf32>
    %230 = tpu.concatenate %175, %193, %211, %229 in 1 : vector<16x32xf32>, vector<16x32xf32>, vector<16x32xf32>, vector<16x32xf32> -> vector<16x128xf32>
    %231 = tpu.concatenate %173, %191, %209, %227 in 1 : vector<16x32xf32>, vector<16x32xf32>, vector<16x32xf32>, vector<16x32xf32> -> vector<16x128xf32>
    %c0_91 = arith.constant 0 : index
    %c0_92 = arith.constant 0 : index
    %c0_93 = arith.constant 0 : index
    %232 = vector.load %arg30[%c0_91, %c0_92, %c0_93] : memref<1x16x128xf32, #tpu.memory_space<vmem>>, vector<1x16x128xf32>
    %233 = vector.shape_cast %232 : vector<1x16x128xf32> to vector<16x128xf32>
    %234 = vector.shape_cast %231 : vector<16x128xf32> to vector<1x16x128xf32>
    tpu.vector_store %arg30[%c0_91, %c0_92, %c0_93], %234 {strides = array<i32>} : memref<1x16x128xf32, #tpu.memory_space<vmem>>, vector<1x16x128xf32>,
    %235 = arith.truncf %230 : vector<16x128xf32> to vector<16x128xbf16>
    %c0_94 = arith.constant 0 : index
    %c0_95 = arith.constant 0 : index
    %236 = vector.load %arg19[%c0_94, %c0_95] : memref<128x128xbf16, #tpu.memory_space<vmem>>, vector<128x128xbf16>
    %cst_96 = arith.constant dense<0.000000e+00> : vector<16x128xf32>
    %237 = tpu.matmul %235, %236, %cst_96 {dimension_numbers = #tpu.dot_dimension_numbers<[1], [0], [0], [1], [0, 0, 1, 1], [], []>} : vector<16x128xbf16>, vector<128x128xbf16>, vector<16x128xf32> -> vector<16x128xf32>
    %c0_97 = arith.constant 0 : index
    %c0_98 = arith.constant 0 : index
    %238 = vector.load %arg20[%c0_97, %c0_98] : memref<1x128xf32, #tpu.memory_space<vmem>>, vector<1x128xf32>
    %239 = vector.broadcast %238 : vector<1x128xf32> to vector<16x128xf32>
    %240 = arith.addf %237, %239 : vector<16x128xf32>
    %241 = arith.addf %136, %240 : vector<16x128xf32>
    %cst_99 = arith.constant dense<0.000000e+00> : vector<16xf32>
    %242 = vector.multi_reduction <add>, %241, %cst_99 [1] : vector<16x128xf32> to vector<16xf32>
    %243 = vector.shape_cast %242 : vector<16xf32> to vector<16x1xf32>
    %cst_100 = arith.constant 1.280000e+02 : f32
    %244 = vector.broadcast %cst_100 : f32 to vector<16x1xf32>
    %245 = arith.divf %243, %244 : vector<16x1xf32>
    %246 = vector.broadcast %245 : vector<16x1xf32> to vector<16x128xf32>
    %247 = arith.subf %241, %246 : vector<16x128xf32>
    %248 = arith.mulf %247, %247 : vector<16x128xf32>
    %cst_101 = arith.constant dense<0.000000e+00> : vector<16xf32>
    %249 = vector.multi_reduction <add>, %248, %cst_101 [1] : vector<16x128xf32> to vector<16xf32>
    %250 = vector.shape_cast %249 : vector<16xf32> to vector<16x1xf32>
    %cst_102 = arith.constant 1.280000e+02 : f32
    %251 = vector.broadcast %cst_102 : f32 to vector<16x1xf32>
    %252 = arith.divf %250, %251 : vector<16x1xf32>
    %253 = vector.broadcast %245 : vector<16x1xf32> to vector<16x128xf32>
    %254 = arith.subf %241, %253 : vector<16x128xf32>
    %cst_103 = arith.constant 9.99999974E-6 : f32
    %255 = vector.broadcast %cst_103 : f32 to vector<16x1xf32>
    %256 = arith.addf %252, %255 : vector<16x1xf32>
    %257 = math.rsqrt %256 : vector<16x1xf32>
    %258 = vector.broadcast %257 : vector<16x1xf32> to vector<16x128xf32>
    %259 = arith.mulf %254, %258 : vector<16x128xf32>
    %c0_104 = arith.constant 0 : index
    %c0_105 = arith.constant 0 : index
    %260 = vector.load %arg21[%c0_104, %c0_105] : memref<1x128xf32, #tpu.memory_space<vmem>>, vector<1x128xf32>
    %261 = vector.broadcast %260 : vector<1x128xf32> to vector<16x128xf32>
    %262 = arith.mulf %259, %261 : vector<16x128xf32>
    %c0_106 = arith.constant 0 : index
    %c0_107 = arith.constant 0 : index
    %263 = vector.load %arg22[%c0_106, %c0_107] : memref<1x128xf32, #tpu.memory_space<vmem>>, vector<1x128xf32>
    %264 = vector.broadcast %263 : vector<1x128xf32> to vector<16x128xf32>
    %265 = arith.addf %262, %264 : vector<16x128xf32>
    %266 = arith.truncf %265 : vector<16x128xf32> to vector<16x128xbf16>
    %c0_108 = arith.constant 0 : index
    %c0_109 = arith.constant 0 : index
    %267 = vector.load %arg23[%c0_108, %c0_109] : memref<128x256xbf16, #tpu.memory_space<vmem>>, vector<128x256xbf16>
    %cst_110 = arith.constant dense<0.000000e+00> : vector<16x256xf32>
    %268 = tpu.matmul %266, %267, %cst_110 {dimension_numbers = #tpu.dot_dimension_numbers<[1], [0], [0], [1], [0, 0, 1, 1], [], []>} : vector<16x128xbf16>, vector<128x256xbf16>, vector<16x256xf32> -> vector<16x256xf32>
    %c0_111 = arith.constant 0 : index
    %c0_112 = arith.constant 0 : index
    %269 = vector.load %arg24[%c0_111, %c0_112] : memref<1x256xf32, #tpu.memory_space<vmem>>, vector<1x256xf32>
    %270 = vector.broadcast %269 : vector<1x256xf32> to vector<16x256xf32>
    %271 = arith.addf %268, %270 : vector<16x256xf32>
    %cst_113 = arith.constant 0.000000e+00 : f32
    %272 = vector.broadcast %cst_113 : f32 to vector<16x256xf32>
    %273 = arith.maximumf %271, %272 : vector<16x256xf32>
    %274 = arith.truncf %273 : vector<16x256xf32> to vector<16x256xbf16>
    %c0_114 = arith.constant 0 : index
    %c0_115 = arith.constant 0 : index
    %275 = vector.load %arg25[%c0_114, %c0_115] : memref<256x128xbf16, #tpu.memory_space<vmem>>, vector<256x128xbf16>
    %cst_116 = arith.constant dense<0.000000e+00> : vector<16x128xf32>
    %276 = tpu.matmul %274, %275, %cst_116 {dimension_numbers = #tpu.dot_dimension_numbers<[1], [0], [0], [1], [0, 0, 1, 1], [], []>} : vector<16x256xbf16>, vector<256x128xbf16>, vector<16x128xf32> -> vector<16x128xf32>
    %c0_117 = arith.constant 0 : index
    %c0_118 = arith.constant 0 : index
    %277 = vector.load %arg26[%c0_117, %c0_118] : memref<1x128xf32, #tpu.memory_space<vmem>>, vector<1x128xf32>
    %278 = vector.broadcast %277 : vector<1x128xf32> to vector<16x128xf32>
    %279 = arith.addf %276, %278 : vector<16x128xf32>
    %280 = arith.addf %265, %279 : vector<16x128xf32>
    %cst_119 = arith.constant dense<0.000000e+00> : vector<16xf32>
    %281 = vector.multi_reduction <add>, %280, %cst_119 [1] : vector<16x128xf32> to vector<16xf32>
    %282 = vector.shape_cast %281 : vector<16xf32> to vector<16x1xf32>
    %cst_120 = arith.constant 1.280000e+02 : f32
    %283 = vector.broadcast %cst_120 : f32 to vector<16x1xf32>
    %284 = arith.divf %282, %283 : vector<16x1xf32>
    %285 = vector.broadcast %284 : vector<16x1xf32> to vector<16x128xf32>
    %286 = arith.subf %280, %285 : vector<16x128xf32>
    %287 = arith.mulf %286, %286 : vector<16x128xf32>
    %cst_121 = arith.constant dense<0.000000e+00> : vector<16xf32>
    %288 = vector.multi_reduction <add>, %287, %cst_121 [1] : vector<16x128xf32> to vector<16xf32>
    %289 = vector.shape_cast %288 : vector<16xf32> to vector<16x1xf32>
    %cst_122 = arith.constant 1.280000e+02 : f32
    %290 = vector.broadcast %cst_122 : f32 to vector<16x1xf32>
    %291 = arith.divf %289, %290 : vector<16x1xf32>
    %292 = vector.broadcast %284 : vector<16x1xf32> to vector<16x128xf32>
    %293 = arith.subf %280, %292 : vector<16x128xf32>
    %cst_123 = arith.constant 9.99999974E-6 : f32
    %294 = vector.broadcast %cst_123 : f32 to vector<16x1xf32>
    %295 = arith.addf %291, %294 : vector<16x1xf32>
    %296 = math.rsqrt %295 : vector<16x1xf32>
    %297 = vector.broadcast %296 : vector<16x1xf32> to vector<16x128xf32>
    %298 = arith.mulf %293, %297 : vector<16x128xf32>
    %c0_124 = arith.constant 0 : index
    %c0_125 = arith.constant 0 : index
    %299 = vector.load %arg27[%c0_124, %c0_125] : memref<1x128xf32, #tpu.memory_space<vmem>>, vector<1x128xf32>
    %300 = vector.broadcast %299 : vector<1x128xf32> to vector<16x128xf32>
    %301 = arith.mulf %298, %300 : vector<16x128xf32>
    %c0_126 = arith.constant 0 : index
    %c0_127 = arith.constant 0 : index
    %302 = vector.load %arg28[%c0_126, %c0_127] : memref<1x128xf32, #tpu.memory_space<vmem>>, vector<1x128xf32>
    %303 = vector.broadcast %302 : vector<1x128xf32> to vector<16x128xf32>
    %304 = arith.addf %301, %303 : vector<16x128xf32>
    %c0_128 = arith.constant 0 : index
    %c0_129 = arith.constant 0 : index
    %c0_130 = arith.constant 0 : index
    %305 = vector.load %arg29[%c0_128, %c0_129, %c0_130] : memref<1x16x128xf32, #tpu.memory_space<vmem>>, vector<1x16x128xf32>
    %306 = vector.shape_cast %305 : vector<1x16x128xf32> to vector<16x128xf32>
    %307 = vector.shape_cast %304 : vector<16x128xf32> to vector<1x16x128xf32>
    tpu.vector_store %arg29[%c0_128, %c0_129, %c0_130], %307 {strides = array<i32>} : memref<1x16x128xf32, #tpu.memory_space<vmem>>, vector<1x16x128xf32>,
    return
  }
  func.func @transform_0(%arg0: i32, %arg1: i32) -> (i32, i32, i32) {
    %c0_i32 = arith.constant 0 : i32
    %c0_i32_0 = arith.constant 0 : i32
    return %arg0, %arg1, %c0_i32 : i32, i32, i32
  }
  func.func @transform_1(%arg0: i32, %arg1: i32) -> (i32, i32, i32) {
    %c0_i32 = arith.constant 0 : i32
    %c0_i32_0 = arith.constant 0 : i32
    %c0_i32_1 = arith.constant 0 : i32
    return %arg0, %c0_i32, %c0_i32_0 : i32, i32, i32
  }
  func.func @transform_2(%arg0: i32, %arg1: i32) -> (i32, i32, i32) {
    %c0_i32 = arith.constant 0 : i32
    %c0_i32_0 = arith.constant 0 : i32
    %c0_i32_1 = arith.constant 0 : i32
    return %arg0, %c0_i32, %c0_i32_0 : i32, i32, i32
  }
  func.func @transform_3(%arg0: i32, %arg1: i32) -> (i32, i32, i32) {
    %c0_i32 = arith.constant 0 : i32
    %c0_i32_0 = arith.constant 0 : i32
    return %arg0, %arg1, %c0_i32 : i32, i32, i32
  }
  func.func @transform_4(%arg0: i32, %arg1: i32) -> (i32, i32, i32) {
    %c0_i32 = arith.constant 0 : i32
    %c0_i32_0 = arith.constant 0 : i32
    return %arg0, %arg1, %c0_i32 : i32, i32, i32
  }
  func.func @transform_5(%arg0: i32, %arg1: i32) -> (i32, i32) {
    %c0_i32 = arith.constant 0 : i32
    %c0_i32_0 = arith.constant 0 : i32
    %c0_i32_1 = arith.constant 0 : i32
    return %c0_i32, %c0_i32_0 : i32, i32
  }
  func.func @transform_6(%arg0: i32, %arg1: i32) -> (i32, i32) {
    %c0_i32 = arith.constant 0 : i32
    %c0_i32_0 = arith.constant 0 : i32
    %c0_i32_1 = arith.constant 0 : i32
    return %c0_i32, %c0_i32_0 : i32, i32
  }
  func.func @transform_7(%arg0: i32, %arg1: i32) -> (i32, i32) {
    %c0_i32 = arith.constant 0 : i32
    %c0_i32_0 = arith.constant 0 : i32
    %c0_i32_1 = arith.constant 0 : i32
    return %c0_i32, %c0_i32_0 : i32, i32
  }
  func.func @transform_8(%arg0: i32, %arg1: i32) -> (i32, i32) {
    %c0_i32 = arith.constant 0 : i32
    %c0_i32_0 = arith.constant 0 : i32
    %c0_i32_1 = arith.constant 0 : i32
    return %c0_i32, %c0_i32_0 : i32, i32
  }
  func.func @transform_9(%arg0: i32, %arg1: i32) -> (i32, i32) {
    %c0_i32 = arith.constant 0 : i32
    %c0_i32_0 = arith.constant 0 : i32
    %c0_i32_1 = arith.constant 0 : i32
    return %c0_i32, %c0_i32_0 : i32, i32
  }
  func.func @transform_10(%arg0: i32, %arg1: i32) -> (i32, i32) {
    %c0_i32 = arith.constant 0 : i32
    %c0_i32_0 = arith.constant 0 : i32
    %c0_i32_1 = arith.constant 0 : i32
    return %c0_i32, %c0_i32_0 : i32, i32
  }
  func.func @transform_11(%arg0: i32, %arg1: i32) -> (i32, i32) {
    %c0_i32 = arith.constant 0 : i32
    %c0_i32_0 = arith.constant 0 : i32
    %c0_i32_1 = arith.constant 0 : i32
    return %c0_i32, %c0_i32_0 : i32, i32
  }
  func.func @transform_12(%arg0: i32, %arg1: i32) -> (i32, i32) {
    %c0_i32 = arith.constant 0 : i32
    %c0_i32_0 = arith.constant 0 : i32
    %c0_i32_1 = arith.constant 0 : i32
    return %c0_i32, %c0_i32_0 : i32, i32
  }
  func.func @transform_13(%arg0: i32, %arg1: i32) -> (i32, i32) {
    %c0_i32 = arith.constant 0 : i32
    %c0_i32_0 = arith.constant 0 : i32
    %c0_i32_1 = arith.constant 0 : i32
    return %c0_i32, %c0_i32_0 : i32, i32
  }
  func.func @transform_14(%arg0: i32, %arg1: i32) -> (i32, i32) {
    %c0_i32 = arith.constant 0 : i32
    %c0_i32_0 = arith.constant 0 : i32
    %c0_i32_1 = arith.constant 0 : i32
    return %c0_i32, %c0_i32_0 : i32, i32
  }
  func.func @transform_15(%arg0: i32, %arg1: i32) -> (i32, i32) {
    %c0_i32 = arith.constant 0 : i32
    %c0_i32_0 = arith.constant 0 : i32
    %c0_i32_1 = arith.constant 0 : i32
    return %c0_i32, %c0_i32_0 : i32, i32
  }
  func.func @transform_16(%arg0: i32, %arg1: i32) -> (i32, i32) {
    %c0_i32 = arith.constant 0 : i32
    %c0_i32_0 = arith.constant 0 : i32
    %c0_i32_1 = arith.constant 0 : i32
    return %c0_i32, %c0_i32_0 : i32, i32
  }
  func.func @transform_17(%arg0: i32, %arg1: i32) -> (i32, i32) {
    %c0_i32 = arith.constant 0 : i32
    %c0_i32_0 = arith.constant 0 : i32
    %c0_i32_1 = arith.constant 0 : i32
    return %c0_i32, %c0_i32_0 : i32, i32
  }
  func.func @transform_18(%arg0: i32, %arg1: i32) -> (i32, i32) {
    %c0_i32 = arith.constant 0 : i32
    %c0_i32_0 = arith.constant 0 : i32
    %c0_i32_1 = arith.constant 0 : i32
    return %c0_i32, %c0_i32_0 : i32, i32
  }
  func.func @transform_19(%arg0: i32, %arg1: i32) -> (i32, i32) {
    %c0_i32 = arith.constant 0 : i32
    %c0_i32_0 = arith.constant 0 : i32
    %c0_i32_1 = arith.constant 0 : i32
    return %c0_i32, %c0_i32_0 : i32, i32
  }
  func.func @transform_20(%arg0: i32, %arg1: i32) -> (i32, i32) {
    %c0_i32 = arith.constant 0 : i32
    %c0_i32_0 = arith.constant 0 : i32
    %c0_i32_1 = arith.constant 0 : i32
    return %c0_i32, %c0_i32_0 : i32, i32
  }
  func.func @transform_21(%arg0: i32, %arg1: i32) -> (i32, i32) {
    %c0_i32 = arith.constant 0 : i32
    %c0_i32_0 = arith.constant 0 : i32
    %c0_i32_1 = arith.constant 0 : i32
    return %c0_i32, %c0_i32_0 : i32, i32
  }
  func.func @transform_22(%arg0: i32, %arg1: i32) -> (i32, i32) {
    %c0_i32 = arith.constant 0 : i32
    %c0_i32_0 = arith.constant 0 : i32
    %c0_i32_1 = arith.constant 0 : i32
    return %c0_i32, %c0_i32_0 : i32, i32
  }
  func.func @transform_23(%arg0: i32, %arg1: i32) -> (i32, i32) {
    %c0_i32 = arith.constant 0 : i32
    %c0_i32_0 = arith.constant 0 : i32
    %c0_i32_1 = arith.constant 0 : i32
    return %c0_i32, %c0_i32_0 : i32, i32
  }
  func.func @transform_24(%arg0: i32, %arg1: i32) -> (i32, i32) {
    %c0_i32 = arith.constant 0 : i32
    %c0_i32_0 = arith.constant 0 : i32
    %c0_i32_1 = arith.constant 0 : i32
    return %c0_i32, %c0_i32_0 : i32, i32
  }
  func.func @transform_25(%arg0: i32, %arg1: i32) -> (i32, i32) {
    %c0_i32 = arith.constant 0 : i32
    %c0_i32_0 = arith.constant 0 : i32
    %c0_i32_1 = arith.constant 0 : i32
    return %c0_i32, %c0_i32_0 : i32, i32
  }
  func.func @transform_26(%arg0: i32, %arg1: i32) -> (i32, i32) {
    %c0_i32 = arith.constant 0 : i32
    %c0_i32_0 = arith.constant 0 : i32
    %c0_i32_1 = arith.constant 0 : i32
    return %c0_i32, %c0_i32_0 : i32, i32
  }
  func.func @transform_27(%arg0: i32, %arg1: i32) -> (i32, i32, i32) {
    %c0_i32 = arith.constant 0 : i32
    %c0_i32_0 = arith.constant 0 : i32
    return %arg0, %arg1, %c0_i32 : i32, i32, i32
  }
  func.func @transform_28(%arg0: i32, %arg1: i32) -> (i32, i32, i32) {
    %c0_i32 = arith.constant 0 : i32
    %c0_i32_0 = arith.constant 0 : i32
    return %arg0, %arg1, %c0_i32 : i32, i32, i32
  }
}

module attributes {stable_mosaic.version = 11 : i64} {
  func.func @decoder_layer_kernel(%arg0: i32, %arg1: i32, %arg2: memref<1x16x128xf32, #tpu.memory_space<vmem>>, %arg3: memref<1x32x128xf32, #tpu.memory_space<vmem>>, %arg4: memref<1x32x256xf32, #tpu.memory_space<vmem>>, %arg5: memref<1x16x32xbf16, #tpu.memory_space<vmem>>, %arg6: memref<1x16x32xbf16, #tpu.memory_space<vmem>>, %arg7: memref<128x128xbf16, #tpu.memory_space<vmem>>, %arg8: memref<1x128xf32, #tpu.memory_space<vmem>>, %arg9: memref<128x256xbf16, #tpu.memory_space<vmem>>, %arg10: memref<1x256xf32, #tpu.memory_space<vmem>>, %arg11: memref<128x128xbf16, #tpu.memory_space<vmem>>, %arg12: memref<1x128xf32, #tpu.memory_space<vmem>>, %arg13: memref<1x128xf32, #tpu.memory_space<vmem>>, %arg14: memref<1x128xf32, #tpu.memory_space<vmem>>, %arg15: memref<128x128xbf16, #tpu.memory_space<vmem>>, %arg16: memref<1x128xf32, #tpu.memory_space<vmem>>, %arg17: memref<256x256xbf16, #tpu.memory_space<vmem>>, %arg18: memref<1x256xf32, #tpu.memory_space<vmem>>, %arg19: memref<128x128xbf16, #tpu.memory_space<vmem>>, %arg20: memref<1x128xf32, #tpu.memory_space<vmem>>, %arg21: memref<1x128xf32, #tpu.memory_space<vmem>>, %arg22: memref<1x128xf32, #tpu.memory_space<vmem>>, %arg23: memref<128x256xbf16, #tpu.memory_space<vmem>>, %arg24: memref<1x256xf32, #tpu.memory_space<vmem>>, %arg25: memref<256x128xbf16, #tpu.memory_space<vmem>>, %arg26: memref<1x128xf32, #tpu.memory_space<vmem>>, %arg27: memref<1x128xf32, #tpu.memory_space<vmem>>, %arg28: memref<1x128xf32, #tpu.memory_space<vmem>>, %arg29: memref<1x16x128xf32, #tpu.memory_space<vmem>>, %arg30: memref<1x16x128xf32, #tpu.memory_space<vmem>>) attributes {dimension_semantics = [#tpu.dimension_semantics<parallel>, #tpu.dimension_semantics<parallel>], iteration_bounds = array<i64: 2, 2>, scalar_prefetch = 0 : i64, scratch_operands = 0 : i64, tpu.core_type = #tpu.core_type<tc>, window_params = [{transform_indices = @transform_0, window_bounds = array<i64: 1, 16, 128>}, {transform_indices = @transform_1, window_bounds = array<i64: 1, 32, 128>}, {transform_indices = @transform_2, window_bounds = array<i64: 1, 32, 256>}, {transform_indices = @transform_3, window_bounds = array<i64: 1, 16, 32>}, {transform_indices = @transform_4, window_bounds = array<i64: 1, 16, 32>}, {pipeline_mode = #tpu.pipeline_mode<synchronous>, transform_indices = @transform_5, window_bounds = array<i64: 128, 128>}, {pipeline_mode = #tpu.pipeline_mode<synchronous>, transform_indices = @transform_6, window_bounds = array<i64: 1, 128>}, {pipeline_mode = #tpu.pipeline_mode<synchronous>, transform_indices = @transform_7, window_bounds = array<i64: 128, 256>}, {pipeline_mode = #tpu.pipeline_mode<synchronous>, transform_indices = @transform_8, window_bounds = array<i64: 1, 256>}, {pipeline_mode = #tpu.pipeline_mode<synchronous>, transform_indices = @transform_9, window_bounds = array<i64: 128, 128>}, {pipeline_mode = #tpu.pipeline_mode<synchronous>, transform_indices = @transform_10, window_bounds = array<i64: 1, 128>}, {pipeline_mode = #tpu.pipeline_mode<synchronous>, transform_indices = @transform_11, window_bounds = array<i64: 1, 128>}, {pipeline_mode = #tpu.pipeline_mode<synchronous>, transform_indices = @transform_12, window_bounds = array<i64: 1, 128>}, {pipeline_mode = #tpu.pipeline_mode<synchronous>, transform_indices = @transform_13, window_bounds = array<i64: 128, 128>}, {pipeline_mode = #tpu.pipeline_mode<synchronous>, transform_indices = @transform_14, window_bounds = array<i64: 1, 128>}, {pipeline_mode = #tpu.pipeline_mode<synchronous>, transform_indices = @transform_15, window_bounds = array<i64: 256, 256>}, {pipeline_mode = #tpu.pipeline_mode<synchronous>, transform_indices = @transform_16, window_bounds = array<i64: 1, 256>}, {pipeline_mode = #tpu.pipeline_mode<synchronous>, transform_indices = @transform_17, window_bounds = array<i64: 128, 128>}, {pipeline_mode = #tpu.pipeline_mode<synchronous>, transform_indices = @transform_18, window_bounds = array<i64: 1, 128>}, {pipeline_mode = #tpu.pipeline_mode<synchronous>, transform_indices = @transform_19, window_bounds = array<i64: 1, 128>}, {pipeline_mode = #tpu.pipeline_mode<synchronous>, transform_indices = @transform_20, window_bounds = array<i64: 1, 128>}, {pipeline_mode = #tpu.pipeline_mode<synchronous>, transform_indices = @transform_21, window_bounds = array<i64: 128, 256>}, {pipeline_mode = #tpu.pipeline_mode<synchronous>, transform_indices = @transform_22, window_bounds = array<i64: 1, 256>}, {pipeline_mode = #tpu.pipeline_mode<synchronous>, transform_indices = @transform_23, window_bounds = array<i64: 256, 128>}, {pipeline_mode = #tpu.pipeline_mode<synchronous>, transform_indices = @transform_24, window_bounds = array<i64: 1, 128>}, {pipeline_mode = #tpu.pipeline_mode<synchronous>, transform_indices = @transform_25, window_bounds = array<i64: 1, 128>}, {pipeline_mode = #tpu.pipeline_mode<synchronous>, transform_indices = @transform_26, window_bounds = array<i64: 1, 128>}, {transform_indices = @transform_27, window_bounds = array<i64: 1, 16, 128>}, {transform_indices = @transform_28, window_bounds = array<i64: 1, 16, 128>}]} {
    %c0 = arith.constant 0 : index
    %c0_0 = arith.constant 0 : index
    %c0_1 = arith.constant 0 : index
    %0 = vector.load %arg2[%c0, %c0_0, %c0_1] : memref<1x16x128xf32, #tpu.memory_space<vmem>>, vector<1x16x128xf32>
    %1 = vector.shape_cast %0 : vector<1x16x128xf32> to vector<16x128xf32>
    %c0_2 = arith.constant 0 : index
    %c0_3 = arith.constant 0 : index
    %c0_4 = arith.constant 0 : index
    %2 = vector.load %arg3[%c0_2, %c0_3, %c0_4] : memref<1x32x128xf32, #tpu.memory_space<vmem>>, vector<1x32x128xf32>
    %3 = vector.shape_cast %2 : vector<1x32x128xf32> to vector<32x128xf32>
    %c0_5 = arith.constant 0 : index
    %c0_6 = arith.constant 0 : index
    %c0_7 = arith.constant 0 : index
    %4 = vector.load %arg4[%c0_5, %c0_6, %c0_7] : memref<1x32x256xf32, #tpu.memory_space<vmem>>, vector<1x32x256xf32>
    %5 = vector.shape_cast %4 : vector<1x32x256xf32> to vector<32x256xf32>
    %c0_8 = arith.constant 0 : index
    %c0_9 = arith.constant 0 : index
    %c0_10 = arith.constant 0 : index
    %6 = vector.load %arg5[%c0_8, %c0_9, %c0_10] : memref<1x16x32xbf16, #tpu.memory_space<vmem>>, vector<1x16x32xbf16>
    %7 = vector.shape_cast %6 : vector<1x16x32xbf16> to vector<16x32xbf16>
    %8 = arith.extf %7 : vector<16x32xbf16> to vector<16x32xf32>
    %c0_11 = arith.constant 0 : index
    %c0_12 = arith.constant 0 : index
    %c0_13 = arith.constant 0 : index
    %9 = vector.load %arg6[%c0_11, %c0_12, %c0_13] : memref<1x16x32xbf16, #tpu.memory_space<vmem>>, vector<1x16x32xbf16>
    %10 = vector.shape_cast %9 : vector<1x16x32xbf16> to vector<16x32xbf16>
    %11 = arith.extf %10 : vector<16x32xbf16> to vector<16x32xf32>
    %12 = arith.truncf %1 : vector<16x128xf32> to vector<16x128xbf16>
    %c0_14 = arith.constant 0 : index
    %c0_15 = arith.constant 0 : index
    %13 = vector.load %arg7[%c0_14, %c0_15] : memref<128x128xbf16, #tpu.memory_space<vmem>>, vector<128x128xbf16>
    %cst = arith.constant dense<0.000000e+00> : vector<16x128xf32>
    %14 = tpu.matmul %12, %13, %cst {dimension_numbers = #tpu.dot_dimension_numbers<[1], [0], [0], [1], [0, 0, 1, 1], [], []>} : vector<16x128xbf16>, vector<128x128xbf16>, vector<16x128xf32> -> vector<16x128xf32>
    %c0_16 = arith.constant 0 : index
    %c0_17 = arith.constant 0 : index
    %15 = vector.load %arg8[%c0_16, %c0_17] : memref<1x128xf32, #tpu.memory_space<vmem>>, vector<1x128xf32>
    %16 = vector.broadcast %15 : vector<1x128xf32> to vector<16x128xf32>
    %17 = arith.addf %14, %16 : vector<16x128xf32>
    %18 = arith.truncf %3 : vector<32x128xf32> to vector<32x128xbf16>
    %c0_18 = arith.constant 0 : index
    %c0_19 = arith.constant 0 : index
    %19 = vector.load %arg9[%c0_18, %c0_19] : memref<128x256xbf16, #tpu.memory_space<vmem>>, vector<128x256xbf16>
    %cst_20 = arith.constant dense<0.000000e+00> : vector<32x256xf32>
    %20 = tpu.matmul %18, %19, %cst_20 {dimension_numbers = #tpu.dot_dimension_numbers<[1], [0], [0], [1], [0, 0, 1, 1], [], []>} : vector<32x128xbf16>, vector<128x256xbf16>, vector<32x256xf32> -> vector<32x256xf32>
    %c0_21 = arith.constant 0 : index
    %c0_22 = arith.constant 0 : index
    %21 = vector.load %arg10[%c0_21, %c0_22] : memref<1x256xf32, #tpu.memory_space<vmem>>, vector<1x256xf32>
    %22 = vector.broadcast %21 : vector<1x256xf32> to vector<32x256xf32>
    %23 = arith.addf %20, %22 : vector<32x256xf32>
    %24 = vector.extract_strided_slice %23 {offsets = [0, 0], sizes = [32, 128], strides = [1, 1]} : vector<32x256xf32> to vector<32x128xf32>
    %25 = vector.extract_strided_slice %23 {offsets = [0, 128], sizes = [32, 128], strides = [1, 1]} : vector<32x256xf32> to vector<32x128xf32>
    %cst_23 = arith.constant 5.000000e-01 : f32
    %26 = vector.broadcast %cst_23 : f32 to vector<16x32xf32>
    %27 = arith.cmpf ogt, %8, %26 : vector<16x32xf32>
    %cst_24 = arith.constant 0.176776692 : f32
    %28 = vector.broadcast %cst_24 : f32 to vector<16x128xf32>
    %29 = arith.mulf %17, %28 : vector<16x128xf32>
    %30 = arith.truncf %29 : vector<16x128xf32> to vector<16x128xbf16>
    %31 = arith.truncf %24 : vector<32x128xf32> to vector<32x128xbf16>
    %32 = arith.truncf %25 : vector<32x128xf32> to vector<32x128xbf16>
    %33 = vector.extract_strided_slice %30 {offsets = [0, 0], sizes = [16, 32], strides = [1, 1]} : vector<16x128xbf16> to vector<16x32xbf16>
    %34 = vector.extract_strided_slice %31 {offsets = [0, 0], sizes = [32, 32], strides = [1, 1]} : vector<32x128xbf16> to vector<32x32xbf16>
    %35 = vector.extract_strided_slice %32 {offsets = [0, 0], sizes = [32, 32], strides = [1, 1]} : vector<32x128xbf16> to vector<32x32xbf16>
    %cst_25 = arith.constant dense<0.000000e+00> : vector<16x32xf32>
    %36 = tpu.matmul %33, %34, %cst_25 {dimension_numbers = #tpu.dot_dimension_numbers<[1], [1], [0], [0], [0, 0, 1, 0], [], []>} : vector<16x32xbf16>, vector<32x32xbf16>, vector<16x32xf32> -> vector<16x32xf32>
    %cst_26 = arith.constant -1.000000e+04 : f32
    %37 = vector.broadcast %cst_26 : f32 to vector<16x32xf32>
    %38 = arith.select %27, %36, %37 : vector<16x32xi1>, vector<16x32xf32>
    %cst_27 = arith.constant dense<0xFF800000> : vector<16xf32>
    %39 = vector.multi_reduction <maximumf>, %38, %cst_27 [1] : vector<16x32xf32> to vector<16xf32>
    %40 = vector.shape_cast %39 : vector<16xf32> to vector<16x1xf32>
    %41 = vector.broadcast %40 : vector<16x1xf32> to vector<16x32xf32>
    %42 = arith.subf %38, %41 : vector<16x32xf32>
    %43 = math.exp %42 : vector<16x32xf32>
    %cst_28 = arith.constant dense<0.000000e+00> : vector<16xf32>
    %44 = vector.multi_reduction <add>, %43, %cst_28 [1] : vector<16x32xf32> to vector<16xf32>
    %45 = vector.shape_cast %44 : vector<16xf32> to vector<16x1xf32>
    %46 = tpu.reciprocal %45 {approx = true} : vector<16x1xf32> -> vector<16x1xf32>
    %47 = vector.broadcast %46 : vector<16x1xf32> to vector<16x32xf32>
    %48 = arith.mulf %43, %47 : vector<16x32xf32>
    %49 = arith.truncf %48 : vector<16x32xf32> to vector<16x32xbf16>
    %cst_29 = arith.constant dense<0.000000e+00> : vector<16x32xf32>
    %50 = tpu.matmul %49, %35, %cst_29 {dimension_numbers = #tpu.dot_dimension_numbers<[1], [0], [0], [1], [0, 0, 1, 1], [], []>} : vector<16x32xbf16>, vector<32x32xbf16>, vector<16x32xf32> -> vector<16x32xf32>
    %51 = vector.extract_strided_slice %30 {offsets = [0, 32], sizes = [16, 32], strides = [1, 1]} : vector<16x128xbf16> to vector<16x32xbf16>
    %52 = vector.extract_strided_slice %31 {offsets = [0, 32], sizes = [32, 32], strides = [1, 1]} : vector<32x128xbf16> to vector<32x32xbf16>
    %53 = vector.extract_strided_slice %32 {offsets = [0, 32], sizes = [32, 32], strides = [1, 1]} : vector<32x128xbf16> to vector<32x32xbf16>
    %cst_30 = arith.constant dense<0.000000e+00> : vector<16x32xf32>
    %54 = tpu.matmul %51, %52, %cst_30 {dimension_numbers = #tpu.dot_dimension_numbers<[1], [1], [0], [0], [0, 0, 1, 0], [], []>} : vector<16x32xbf16>, vector<32x32xbf16>, vector<16x32xf32> -> vector<16x32xf32>
    %cst_31 = arith.constant -1.000000e+04 : f32
    %55 = vector.broadcast %cst_31 : f32 to vector<16x32xf32>
    %56 = arith.select %27, %54, %55 : vector<16x32xi1>, vector<16x32xf32>
    %cst_32 = arith.constant dense<0xFF800000> : vector<16xf32>
    %57 = vector.multi_reduction <maximumf>, %56, %cst_32 [1] : vector<16x32xf32> to vector<16xf32>
    %58 = vector.shape_cast %57 : vector<16xf32> to vector<16x1xf32>
    %59 = vector.broadcast %58 : vector<16x1xf32> to vector<16x32xf32>
    %60 = arith.subf %56, %59 : vector<16x32xf32>
    %61 = math.exp %60 : vector<16x32xf32>
    %cst_33 = arith.constant dense<0.000000e+00> : vector<16xf32>
    %62 = vector.multi_reduction <add>, %61, %cst_33 [1] : vector<16x32xf32> to vector<16xf32>
    %63 = vector.shape_cast %62 : vector<16xf32> to vector<16x1xf32>
    %64 = tpu.reciprocal %63 {approx = true} : vector<16x1xf32> -> vector<16x1xf32>
    %65 = vector.broadcast %64 : vector<16x1xf32> to vector<16x32xf32>
    %66 = arith.mulf %61, %65 : vector<16x32xf32>
    %67 = arith.truncf %66 : vector<16x32xf32> to vector<16x32xbf16>
    %cst_34 = arith.constant dense<0.000000e+00> : vector<16x32xf32>
    %68 = tpu.matmul %67, %53, %cst_34 {dimension_numbers = #tpu.dot_dimension_numbers<[1], [0], [0], [1], [0, 0, 1, 1], [], []>} : vector<16x32xbf16>, vector<32x32xbf16>, vector<16x32xf32> -> vector<16x32xf32>
    %69 = vector.extract_strided_slice %30 {offsets = [0, 64], sizes = [16, 32], strides = [1, 1]} : vector<16x128xbf16> to vector<16x32xbf16>
    %70 = vector.extract_strided_slice %31 {offsets = [0, 64], sizes = [32, 32], strides = [1, 1]} : vector<32x128xbf16> to vector<32x32xbf16>
    %71 = vector.extract_strided_slice %32 {offsets = [0, 64], sizes = [32, 32], strides = [1, 1]} : vector<32x128xbf16> to vector<32x32xbf16>
    %cst_35 = arith.constant dense<0.000000e+00> : vector<16x32xf32>
    %72 = tpu.matmul %69, %70, %cst_35 {dimension_numbers = #tpu.dot_dimension_numbers<[1], [1], [0], [0], [0, 0, 1, 0], [], []>} : vector<16x32xbf16>, vector<32x32xbf16>, vector<16x32xf32> -> vector<16x32xf32>
    %cst_36 = arith.constant -1.000000e+04 : f32
    %73 = vector.broadcast %cst_36 : f32 to vector<16x32xf32>
    %74 = arith.select %27, %72, %73 : vector<16x32xi1>, vector<16x32xf32>
    %cst_37 = arith.constant dense<0xFF800000> : vector<16xf32>
    %75 = vector.multi_reduction <maximumf>, %74, %cst_37 [1] : vector<16x32xf32> to vector<16xf32>
    %76 = vector.shape_cast %75 : vector<16xf32> to vector<16x1xf32>
    %77 = vector.broadcast %76 : vector<16x1xf32> to vector<16x32xf32>
    %78 = arith.subf %74, %77 : vector<16x32xf32>
    %79 = math.exp %78 : vector<16x32xf32>
    %cst_38 = arith.constant dense<0.000000e+00> : vector<16xf32>
    %80 = vector.multi_reduction <add>, %79, %cst_38 [1] : vector<16x32xf32> to vector<16xf32>
    %81 = vector.shape_cast %80 : vector<16xf32> to vector<16x1xf32>
    %82 = tpu.reciprocal %81 {approx = true} : vector<16x1xf32> -> vector<16x1xf32>
    %83 = vector.broadcast %82 : vector<16x1xf32> to vector<16x32xf32>
    %84 = arith.mulf %79, %83 : vector<16x32xf32>
    %85 = arith.truncf %84 : vector<16x32xf32> to vector<16x32xbf16>
    %cst_39 = arith.constant dense<0.000000e+00> : vector<16x32xf32>
    %86 = tpu.matmul %85, %71, %cst_39 {dimension_numbers = #tpu.dot_dimension_numbers<[1], [0], [0], [1], [0, 0, 1, 1], [], []>} : vector<16x32xbf16>, vector<32x32xbf16>, vector<16x32xf32> -> vector<16x32xf32>
    %87 = vector.extract_strided_slice %30 {offsets = [0, 96], sizes = [16, 32], strides = [1, 1]} : vector<16x128xbf16> to vector<16x32xbf16>
    %88 = vector.extract_strided_slice %31 {offsets = [0, 96], sizes = [32, 32], strides = [1, 1]} : vector<32x128xbf16> to vector<32x32xbf16>
    %89 = vector.extract_strided_slice %32 {offsets = [0, 96], sizes = [32, 32], strides = [1, 1]} : vector<32x128xbf16> to vector<32x32xbf16>
    %cst_40 = arith.constant dense<0.000000e+00> : vector<16x32xf32>
    %90 = tpu.matmul %87, %88, %cst_40 {dimension_numbers = #tpu.dot_dimension_numbers<[1], [1], [0], [0], [0, 0, 1, 0], [], []>} : vector<16x32xbf16>, vector<32x32xbf16>, vector<16x32xf32> -> vector<16x32xf32>
    %cst_41 = arith.constant -1.000000e+04 : f32
    %91 = vector.broadcast %cst_41 : f32 to vector<16x32xf32>
    %92 = arith.select %27, %90, %91 : vector<16x32xi1>, vector<16x32xf32>
    %cst_42 = arith.constant dense<0xFF800000> : vector<16xf32>
    %93 = vector.multi_reduction <maximumf>, %92, %cst_42 [1] : vector<16x32xf32> to vector<16xf32>
    %94 = vector.shape_cast %93 : vector<16xf32> to vector<16x1xf32>
    %95 = vector.broadcast %94 : vector<16x1xf32> to vector<16x32xf32>
    %96 = arith.subf %92, %95 : vector<16x32xf32>
    %97 = math.exp %96 : vector<16x32xf32>
    %cst_43 = arith.constant dense<0.000000e+00> : vector<16xf32>
    %98 = vector.multi_reduction <add>, %97, %cst_43 [1] : vector<16x32xf32> to vector<16xf32>
    %99 = vector.shape_cast %98 : vector<16xf32> to vector<16x1xf32>
    %100 = tpu.reciprocal %99 {approx = true} : vector<16x1xf32> -> vector<16x1xf32>
    %101 = vector.broadcast %100 : vector<16x1xf32> to vector<16x32xf32>
    %102 = arith.mulf %97, %101 : vector<16x32xf32>
    %103 = arith.truncf %102 : vector<16x32xf32> to vector<16x32xbf16>
    %cst_44 = arith.constant dense<0.000000e+00> : vector<16x32xf32>
    %104 = tpu.matmul %103, %89, %cst_44 {dimension_numbers = #tpu.dot_dimension_numbers<[1], [0], [0], [1], [0, 0, 1, 1], [], []>} : vector<16x32xbf16>, vector<32x32xbf16>, vector<16x32xf32> -> vector<16x32xf32>
    %105 = tpu.concatenate %50, %68, %86, %104 in 1 : vector<16x32xf32>, vector<16x32xf32>, vector<16x32xf32>, vector<16x32xf32> -> vector<16x128xf32>
    %106 = arith.truncf %105 : vector<16x128xf32> to vector<16x128xbf16>
    %c0_45 = arith.constant 0 : index
    %c0_46 = arith.constant 0 : index
    %107 = vector.load %arg11[%c0_45, %c0_46] : memref<128x128xbf16, #tpu.memory_space<vmem>>, vector<128x128xbf16>
    %cst_47 = arith.constant dense<0.000000e+00> : vector<16x128xf32>
    %108 = tpu.matmul %106, %107, %cst_47 {dimension_numbers = #tpu.dot_dimension_numbers<[1], [0], [0], [1], [0, 0, 1, 1], [], []>} : vector<16x128xbf16>, vector<128x128xbf16>, vector<16x128xf32> -> vector<16x128xf32>
    %c0_48 = arith.constant 0 : index
    %c0_49 = arith.constant 0 : index
    %109 = vector.load %arg12[%c0_48, %c0_49] : memref<1x128xf32, #tpu.memory_space<vmem>>, vector<1x128xf32>
    %110 = vector.broadcast %109 : vector<1x128xf32> to vector<16x128xf32>
    %111 = arith.addf %108, %110 : vector<16x128xf32>
    %112 = arith.addf %1, %111 : vector<16x128xf32>
    %cst_50 = arith.constant dense<0.000000e+00> : vector<16xf32>
    %113 = vector.multi_reduction <add>, %112, %cst_50 [1] : vector<16x128xf32> to vector<16xf32>
    %114 = vector.shape_cast %113 : vector<16xf32> to vector<16x1xf32>
    %cst_51 = arith.constant 1.280000e+02 : f32
    %115 = vector.broadcast %cst_51 : f32 to vector<16x1xf32>
    %116 = arith.divf %114, %115 : vector<16x1xf32>
    %117 = vector.broadcast %116 : vector<16x1xf32> to vector<16x128xf32>
    %118 = arith.subf %112, %117 : vector<16x128xf32>
    %119 = arith.mulf %118, %118 : vector<16x128xf32>
    %cst_52 = arith.constant dense<0.000000e+00> : vector<16xf32>
    %120 = vector.multi_reduction <add>, %119, %cst_52 [1] : vector<16x128xf32> to vector<16xf32>
    %121 = vector.shape_cast %120 : vector<16xf32> to vector<16x1xf32>
    %cst_53 = arith.constant 1.280000e+02 : f32
    %122 = vector.broadcast %cst_53 : f32 to vector<16x1xf32>
    %123 = arith.divf %121, %122 : vector<16x1xf32>
    %124 = vector.broadcast %116 : vector<16x1xf32> to vector<16x128xf32>
    %125 = arith.subf %112, %124 : vector<16x128xf32>
    %cst_54 = arith.constant 9.99999974E-6 : f32
    %126 = vector.broadcast %cst_54 : f32 to vector<16x1xf32>
    %127 = arith.addf %123, %126 : vector<16x1xf32>
    %128 = math.rsqrt %127 : vector<16x1xf32>
    %129 = vector.broadcast %128 : vector<16x1xf32> to vector<16x128xf32>
    %130 = arith.mulf %125, %129 : vector<16x128xf32>
    %c0_55 = arith.constant 0 : index
    %c0_56 = arith.constant 0 : index
    %131 = vector.load %arg13[%c0_55, %c0_56] : memref<1x128xf32, #tpu.memory_space<vmem>>, vector<1x128xf32>
    %132 = vector.broadcast %131 : vector<1x128xf32> to vector<16x128xf32>
    %133 = arith.mulf %130, %132 : vector<16x128xf32>
    %c0_57 = arith.constant 0 : index
    %c0_58 = arith.constant 0 : index
    %134 = vector.load %arg14[%c0_57, %c0_58] : memref<1x128xf32, #tpu.memory_space<vmem>>, vector<1x128xf32>
    %135 = vector.broadcast %134 : vector<1x128xf32> to vector<16x128xf32>
    %136 = arith.addf %133, %135 : vector<16x128xf32>
    %137 = arith.truncf %136 : vector<16x128xf32> to vector<16x128xbf16>
    %c0_59 = arith.constant 0 : index
    %c0_60 = arith.constant 0 : index
    %138 = vector.load %arg15[%c0_59, %c0_60] : memref<128x128xbf16, #tpu.memory_space<vmem>>, vector<128x128xbf16>
    %cst_61 = arith.constant dense<0.000000e+00> : vector<16x128xf32>
    %139 = tpu.matmul %137, %138, %cst_61 {dimension_numbers = #tpu.dot_dimension_numbers<[1], [0], [0], [1], [0, 0, 1, 1], [], []>} : vector<16x128xbf16>, vector<128x128xbf16>, vector<16x128xf32> -> vector<16x128xf32>
    %c0_62 = arith.constant 0 : index
    %c0_63 = arith.constant 0 : index
    %140 = vector.load %arg16[%c0_62, %c0_63] : memref<1x128xf32, #tpu.memory_space<vmem>>, vector<1x128xf32>
    %141 = vector.broadcast %140 : vector<1x128xf32> to vector<16x128xf32>
    %142 = arith.addf %139, %141 : vector<16x128xf32>
    %143 = arith.truncf %5 : vector<32x256xf32> to vector<32x256xbf16>
    %c0_64 = arith.constant 0 : index
    %c0_65 = arith.constant 0 : index
    %144 = vector.load %arg17[%c0_64, %c0_65] : memref<256x256xbf16, #tpu.memory_space<vmem>>, vector<256x256xbf16>
    %cst_66 = arith.constant dense<0.000000e+00> : vector<32x256xf32>
    %145 = tpu.matmul %143, %144, %cst_66 {dimension_numbers = #tpu.dot_dimension_numbers<[1], [0], [0], [1], [0, 0, 1, 1], [], []>} : vector<32x256xbf16>, vector<256x256xbf16>, vector<32x256xf32> -> vector<32x256xf32>
    %c0_67 = arith.constant 0 : index
    %c0_68 = arith.constant 0 : index
    %146 = vector.load %arg18[%c0_67, %c0_68] : memref<1x256xf32, #tpu.memory_space<vmem>>, vector<1x256xf32>
    %147 = vector.broadcast %146 : vector<1x256xf32> to vector<32x256xf32>
    %148 = arith.addf %145, %147 : vector<32x256xf32>
    %149 = vector.extract_strided_slice %148 {offsets = [0, 0], sizes = [32, 128], strides = [1, 1]} : vector<32x256xf32> to vector<32x128xf32>
    %150 = vector.extract_strided_slice %148 {offsets = [0, 128], sizes = [32, 128], strides = [1, 1]} : vector<32x256xf32> to vector<32x128xf32>
    %cst_69 = arith.constant 5.000000e-01 : f32
    %151 = vector.broadcast %cst_69 : f32 to vector<16x32xf32>
    %152 = arith.cmpf ogt, %11, %151 : vector<16x32xf32>
    %cst_70 = arith.constant 0.176776692 : f32
    %153 = vector.broadcast %cst_70 : f32 to vector<16x128xf32>
    %154 = arith.mulf %142, %153 : vector<16x128xf32>
    %155 = arith.truncf %154 : vector<16x128xf32> to vector<16x128xbf16>
    %156 = arith.truncf %149 : vector<32x128xf32> to vector<32x128xbf16>
    %157 = arith.truncf %150 : vector<32x128xf32> to vector<32x128xbf16>
    %158 = vector.extract_strided_slice %155 {offsets = [0, 0], sizes = [16, 32], strides = [1, 1]} : vector<16x128xbf16> to vector<16x32xbf16>
    %159 = vector.extract_strided_slice %156 {offsets = [0, 0], sizes = [32, 32], strides = [1, 1]} : vector<32x128xbf16> to vector<32x32xbf16>
    %160 = vector.extract_strided_slice %157 {offsets = [0, 0], sizes = [32, 32], strides = [1, 1]} : vector<32x128xbf16> to vector<32x32xbf16>
    %cst_71 = arith.constant dense<0.000000e+00> : vector<16x32xf32>
    %161 = tpu.matmul %158, %159, %cst_71 {dimension_numbers = #tpu.dot_dimension_numbers<[1], [1], [0], [0], [0, 0, 1, 0], [], []>} : vector<16x32xbf16>, vector<32x32xbf16>, vector<16x32xf32> -> vector<16x32xf32>
    %cst_72 = arith.constant -1.000000e+04 : f32
    %162 = vector.broadcast %cst_72 : f32 to vector<16x32xf32>
    %163 = arith.select %152, %161, %162 : vector<16x32xi1>, vector<16x32xf32>
    %cst_73 = arith.constant dense<0xFF800000> : vector<16xf32>
    %164 = vector.multi_reduction <maximumf>, %163, %cst_73 [1] : vector<16x32xf32> to vector<16xf32>
    %165 = vector.shape_cast %164 : vector<16xf32> to vector<16x1xf32>
    %166 = vector.broadcast %165 : vector<16x1xf32> to vector<16x32xf32>
    %167 = arith.subf %163, %166 : vector<16x32xf32>
    %168 = math.exp %167 : vector<16x32xf32>
    %cst_74 = arith.constant dense<0.000000e+00> : vector<16xf32>
    %169 = vector.multi_reduction <add>, %168, %cst_74 [1] : vector<16x32xf32> to vector<16xf32>
    %170 = vector.shape_cast %169 : vector<16xf32> to vector<16x1xf32>
    %171 = tpu.reciprocal %170 {approx = true} : vector<16x1xf32> -> vector<16x1xf32>
    %172 = vector.broadcast %171 : vector<16x1xf32> to vector<16x32xf32>
    %173 = arith.mulf %168, %172 : vector<16x32xf32>
    %174 = arith.truncf %173 : vector<16x32xf32> to vector<16x32xbf16>
    %cst_75 = arith.constant dense<0.000000e+00> : vector<16x32xf32>
    %175 = tpu.matmul %174, %160, %cst_75 {dimension_numbers = #tpu.dot_dimension_numbers<[1], [0], [0], [1], [0, 0, 1, 1], [], []>} : vector<16x32xbf16>, vector<32x32xbf16>, vector<16x32xf32> -> vector<16x32xf32>
    %176 = vector.extract_strided_slice %155 {offsets = [0, 32], sizes = [16, 32], strides = [1, 1]} : vector<16x128xbf16> to vector<16x32xbf16>
    %177 = vector.extract_strided_slice %156 {offsets = [0, 32], sizes = [32, 32], strides = [1, 1]} : vector<32x128xbf16> to vector<32x32xbf16>
    %178 = vector.extract_strided_slice %157 {offsets = [0, 32], sizes = [32, 32], strides = [1, 1]} : vector<32x128xbf16> to vector<32x32xbf16>
    %cst_76 = arith.constant dense<0.000000e+00> : vector<16x32xf32>
    %179 = tpu.matmul %176, %177, %cst_76 {dimension_numbers = #tpu.dot_dimension_numbers<[1], [1], [0], [0], [0, 0, 1, 0], [], []>} : vector<16x32xbf16>, vector<32x32xbf16>, vector<16x32xf32> -> vector<16x32xf32>
    %cst_77 = arith.constant -1.000000e+04 : f32
    %180 = vector.broadcast %cst_77 : f32 to vector<16x32xf32>
    %181 = arith.select %152, %179, %180 : vector<16x32xi1>, vector<16x32xf32>
    %cst_78 = arith.constant dense<0xFF800000> : vector<16xf32>
    %182 = vector.multi_reduction <maximumf>, %181, %cst_78 [1] : vector<16x32xf32> to vector<16xf32>
    %183 = vector.shape_cast %182 : vector<16xf32> to vector<16x1xf32>
    %184 = vector.broadcast %183 : vector<16x1xf32> to vector<16x32xf32>
    %185 = arith.subf %181, %184 : vector<16x32xf32>
    %186 = math.exp %185 : vector<16x32xf32>
    %cst_79 = arith.constant dense<0.000000e+00> : vector<16xf32>
    %187 = vector.multi_reduction <add>, %186, %cst_79 [1] : vector<16x32xf32> to vector<16xf32>
    %188 = vector.shape_cast %187 : vector<16xf32> to vector<16x1xf32>
    %189 = tpu.reciprocal %188 {approx = true} : vector<16x1xf32> -> vector<16x1xf32>
    %190 = vector.broadcast %189 : vector<16x1xf32> to vector<16x32xf32>
    %191 = arith.mulf %186, %190 : vector<16x32xf32>
    %192 = arith.truncf %191 : vector<16x32xf32> to vector<16x32xbf16>
    %cst_80 = arith.constant dense<0.000000e+00> : vector<16x32xf32>
    %193 = tpu.matmul %192, %178, %cst_80 {dimension_numbers = #tpu.dot_dimension_numbers<[1], [0], [0], [1], [0, 0, 1, 1], [], []>} : vector<16x32xbf16>, vector<32x32xbf16>, vector<16x32xf32> -> vector<16x32xf32>
    %194 = vector.extract_strided_slice %155 {offsets = [0, 64], sizes = [16, 32], strides = [1, 1]} : vector<16x128xbf16> to vector<16x32xbf16>
    %195 = vector.extract_strided_slice %156 {offsets = [0, 64], sizes = [32, 32], strides = [1, 1]} : vector<32x128xbf16> to vector<32x32xbf16>
    %196 = vector.extract_strided_slice %157 {offsets = [0, 64], sizes = [32, 32], strides = [1, 1]} : vector<32x128xbf16> to vector<32x32xbf16>
    %cst_81 = arith.constant dense<0.000000e+00> : vector<16x32xf32>
    %197 = tpu.matmul %194, %195, %cst_81 {dimension_numbers = #tpu.dot_dimension_numbers<[1], [1], [0], [0], [0, 0, 1, 0], [], []>} : vector<16x32xbf16>, vector<32x32xbf16>, vector<16x32xf32> -> vector<16x32xf32>
    %cst_82 = arith.constant -1.000000e+04 : f32
    %198 = vector.broadcast %cst_82 : f32 to vector<16x32xf32>
    %199 = arith.select %152, %197, %198 : vector<16x32xi1>, vector<16x32xf32>
    %cst_83 = arith.constant dense<0xFF800000> : vector<16xf32>
    %200 = vector.multi_reduction <maximumf>, %199, %cst_83 [1] : vector<16x32xf32> to vector<16xf32>
    %201 = vector.shape_cast %200 : vector<16xf32> to vector<16x1xf32>
    %202 = vector.broadcast %201 : vector<16x1xf32> to vector<16x32xf32>
    %203 = arith.subf %199, %202 : vector<16x32xf32>
    %204 = math.exp %203 : vector<16x32xf32>
    %cst_84 = arith.constant dense<0.000000e+00> : vector<16xf32>
    %205 = vector.multi_reduction <add>, %204, %cst_84 [1] : vector<16x32xf32> to vector<16xf32>
    %206 = vector.shape_cast %205 : vector<16xf32> to vector<16x1xf32>
    %207 = tpu.reciprocal %206 {approx = true} : vector<16x1xf32> -> vector<16x1xf32>
    %208 = vector.broadcast %207 : vector<16x1xf32> to vector<16x32xf32>
    %209 = arith.mulf %204, %208 : vector<16x32xf32>
    %210 = arith.truncf %209 : vector<16x32xf32> to vector<16x32xbf16>
    %cst_85 = arith.constant dense<0.000000e+00> : vector<16x32xf32>
    %211 = tpu.matmul %210, %196, %cst_85 {dimension_numbers = #tpu.dot_dimension_numbers<[1], [0], [0], [1], [0, 0, 1, 1], [], []>} : vector<16x32xbf16>, vector<32x32xbf16>, vector<16x32xf32> -> vector<16x32xf32>
    %212 = vector.extract_strided_slice %155 {offsets = [0, 96], sizes = [16, 32], strides = [1, 1]} : vector<16x128xbf16> to vector<16x32xbf16>
    %213 = vector.extract_strided_slice %156 {offsets = [0, 96], sizes = [32, 32], strides = [1, 1]} : vector<32x128xbf16> to vector<32x32xbf16>
    %214 = vector.extract_strided_slice %157 {offsets = [0, 96], sizes = [32, 32], strides = [1, 1]} : vector<32x128xbf16> to vector<32x32xbf16>
    %cst_86 = arith.constant dense<0.000000e+00> : vector<16x32xf32>
    %215 = tpu.matmul %212, %213, %cst_86 {dimension_numbers = #tpu.dot_dimension_numbers<[1], [1], [0], [0], [0, 0, 1, 0], [], []>} : vector<16x32xbf16>, vector<32x32xbf16>, vector<16x32xf32> -> vector<16x32xf32>
    %cst_87 = arith.constant -1.000000e+04 : f32
    %216 = vector.broadcast %cst_87 : f32 to vector<16x32xf32>
    %217 = arith.select %152, %215, %216 : vector<16x32xi1>, vector<16x32xf32>
    %cst_88 = arith.constant dense<0xFF800000> : vector<16xf32>
    %218 = vector.multi_reduction <maximumf>, %217, %cst_88 [1] : vector<16x32xf32> to vector<16xf32>
    %219 = vector.shape_cast %218 : vector<16xf32> to vector<16x1xf32>
    %220 = vector.broadcast %219 : vector<16x1xf32> to vector<16x32xf32>
    %221 = arith.subf %217, %220 : vector<16x32xf32>
    %222 = math.exp %221 : vector<16x32xf32>
    %cst_89 = arith.constant dense<0.000000e+00> : vector<16xf32>
    %223 = vector.multi_reduction <add>, %222, %cst_89 [1] : vector<16x32xf32> to vector<16xf32>
    %224 = vector.shape_cast %223 : vector<16xf32> to vector<16x1xf32>
    %225 = tpu.reciprocal %224 {approx = true} : vector<16x1xf32> -> vector<16x1xf32>
    %226 = vector.broadcast %225 : vector<16x1xf32> to vector<16x32xf32>
    %227 = arith.mulf %222, %226 : vector<16x32xf32>
    %228 = arith.truncf %227 : vector<16x32xf32> to vector<16x32xbf16>
    %cst_90 = arith.constant dense<0.000000e+00> : vector<16x32xf32>
    %229 = tpu.matmul %228, %214, %cst_90 {dimension_numbers = #tpu.dot_dimension_numbers<[1], [0], [0], [1], [0, 0, 1, 1], [], []>} : vector<16x32xbf16>, vector<32x32xbf16>, vector<16x32xf32> -> vector<16x32xf32>
    %230 = tpu.concatenate %175, %193, %211, %229 in 1 : vector<16x32xf32>, vector<16x32xf32>, vector<16x32xf32>, vector<16x32xf32> -> vector<16x128xf32>
    %231 = tpu.concatenate %173, %191, %209, %227 in 1 : vector<16x32xf32>, vector<16x32xf32>, vector<16x32xf32>, vector<16x32xf32> -> vector<16x128xf32>
    %c0_91 = arith.constant 0 : index
    %c0_92 = arith.constant 0 : index
    %c0_93 = arith.constant 0 : index
    %232 = vector.load %arg30[%c0_91, %c0_92, %c0_93] : memref<1x16x128xf32, #tpu.memory_space<vmem>>, vector<1x16x128xf32>
    %233 = vector.shape_cast %232 : vector<1x16x128xf32> to vector<16x128xf32>
    %234 = vector.shape_cast %231 : vector<16x128xf32> to vector<1x16x128xf32>
    tpu.vector_store %arg30[%c0_91, %c0_92, %c0_93], %234 {strides = array<i32>} : memref<1x16x128xf32, #tpu.memory_space<vmem>>, vector<1x16x128xf32>,
    %235 = arith.truncf %230 : vector<16x128xf32> to vector<16x128xbf16>
    %c0_94 = arith.constant 0 : index
    %c0_95 = arith.constant 0 : index
    %236 = vector.load %arg19[%c0_94, %c0_95] : memref<128x128xbf16, #tpu.memory_space<vmem>>, vector<128x128xbf16>
    %cst_96 = arith.constant dense<0.000000e+00> : vector<16x128xf32>
    %237 = tpu.matmul %235, %236, %cst_96 {dimension_numbers = #tpu.dot_dimension_numbers<[1], [0], [0], [1], [0, 0, 1, 1], [], []>} : vector<16x128xbf16>, vector<128x128xbf16>, vector<16x128xf32> -> vector<16x128xf32>
    %c0_97 = arith.constant 0 : index
    %c0_98 = arith.constant 0 : index
    %238 = vector.load %arg20[%c0_97, %c0_98] : memref<1x128xf32, #tpu.memory_space<vmem>>, vector<1x128xf32>
    %239 = vector.broadcast %238 : vector<1x128xf32> to vector<16x128xf32>
    %240 = arith.addf %237, %239 : vector<16x128xf32>
    %241 = arith.addf %136, %240 : vector<16x128xf32>
    %cst_99 = arith.constant dense<0.000000e+00> : vector<16xf32>
    %242 = vector.multi_reduction <add>, %241, %cst_99 [1] : vector<16x128xf32> to vector<16xf32>
    %243 = vector.shape_cast %242 : vector<16xf32> to vector<16x1xf32>
    %cst_100 = arith.constant 1.280000e+02 : f32
    %244 = vector.broadcast %cst_100 : f32 to vector<16x1xf32>
    %245 = arith.divf %243, %244 : vector<16x1xf32>
    %246 = vector.broadcast %245 : vector<16x1xf32> to vector<16x128xf32>
    %247 = arith.subf %241, %246 : vector<16x128xf32>
    %248 = arith.mulf %247, %247 : vector<16x128xf32>
    %cst_101 = arith.constant dense<0.000000e+00> : vector<16xf32>
    %249 = vector.multi_reduction <add>, %248, %cst_101 [1] : vector<16x128xf32> to vector<16xf32>
    %250 = vector.shape_cast %249 : vector<16xf32> to vector<16x1xf32>
    %cst_102 = arith.constant 1.280000e+02 : f32
    %251 = vector.broadcast %cst_102 : f32 to vector<16x1xf32>
    %252 = arith.divf %250, %251 : vector<16x1xf32>
    %253 = vector.broadcast %245 : vector<16x1xf32> to vector<16x128xf32>
    %254 = arith.subf %241, %253 : vector<16x128xf32>
    %cst_103 = arith.constant 9.99999974E-6 : f32
    %255 = vector.broadcast %cst_103 : f32 to vector<16x1xf32>
    %256 = arith.addf %252, %255 : vector<16x1xf32>
    %257 = math.rsqrt %256 : vector<16x1xf32>
    %258 = vector.broadcast %257 : vector<16x1xf32> to vector<16x128xf32>
    %259 = arith.mulf %254, %258 : vector<16x128xf32>
    %c0_104 = arith.constant 0 : index
    %c0_105 = arith.constant 0 : index
    %260 = vector.load %arg21[%c0_104, %c0_105] : memref<1x128xf32, #tpu.memory_space<vmem>>, vector<1x128xf32>
    %261 = vector.broadcast %260 : vector<1x128xf32> to vector<16x128xf32>
    %262 = arith.mulf %259, %261 : vector<16x128xf32>
    %c0_106 = arith.constant 0 : index
    %c0_107 = arith.constant 0 : index
    %263 = vector.load %arg22[%c0_106, %c0_107] : memref<1x128xf32, #tpu.memory_space<vmem>>, vector<1x128xf32>
    %264 = vector.broadcast %263 : vector<1x128xf32> to vector<16x128xf32>
    %265 = arith.addf %262, %264 : vector<16x128xf32>
    %266 = arith.truncf %265 : vector<16x128xf32> to vector<16x128xbf16>
    %c0_108 = arith.constant 0 : index
    %c0_109 = arith.constant 0 : index
    %267 = vector.load %arg23[%c0_108, %c0_109] : memref<128x256xbf16, #tpu.memory_space<vmem>>, vector<128x256xbf16>
    %cst_110 = arith.constant dense<0.000000e+00> : vector<16x256xf32>
    %268 = tpu.matmul %266, %267, %cst_110 {dimension_numbers = #tpu.dot_dimension_numbers<[1], [0], [0], [1], [0, 0, 1, 1], [], []>} : vector<16x128xbf16>, vector<128x256xbf16>, vector<16x256xf32> -> vector<16x256xf32>
    %c0_111 = arith.constant 0 : index
    %c0_112 = arith.constant 0 : index
    %269 = vector.load %arg24[%c0_111, %c0_112] : memref<1x256xf32, #tpu.memory_space<vmem>>, vector<1x256xf32>
    %270 = vector.broadcast %269 : vector<1x256xf32> to vector<16x256xf32>
    %271 = arith.addf %268, %270 : vector<16x256xf32>
    %cst_113 = arith.constant 0.000000e+00 : f32
    %272 = vector.broadcast %cst_113 : f32 to vector<16x256xf32>
    %273 = arith.maximumf %271, %272 : vector<16x256xf32>
    %274 = arith.truncf %273 : vector<16x256xf32> to vector<16x256xbf16>
    %c0_114 = arith.constant 0 : index
    %c0_115 = arith.constant 0 : index
    %275 = vector.load %arg25[%c0_114, %c0_115] : memref<256x128xbf16, #tpu.memory_space<vmem>>, vector<256x128xbf16>
    %cst_116 = arith.constant dense<0.000000e+00> : vector<16x128xf32>
    %276 = tpu.matmul %274, %275, %cst_116 {dimension_numbers = #tpu.dot_dimension_numbers<[1], [0], [0], [1], [0, 0, 1, 1], [], []>} : vector<16x256xbf16>, vector<256x128xbf16>, vector<16x128xf32> -> vector<16x128xf32>
    %c0_117 = arith.constant 0 : index
    %c0_118 = arith.constant 0 : index
    %277 = vector.load %arg26[%c0_117, %c0_118] : memref<1x128xf32, #tpu.memory_space<vmem>>, vector<1x128xf32>
    %278 = vector.broadcast %277 : vector<1x128xf32> to vector<16x128xf32>
    %279 = arith.addf %276, %278 : vector<16x128xf32>
    %280 = arith.addf %265, %279 : vector<16x128xf32>
    %cst_119 = arith.constant dense<0.000000e+00> : vector<16xf32>
    %281 = vector.multi_reduction <add>, %280, %cst_119 [1] : vector<16x128xf32> to vector<16xf32>
    %282 = vector.shape_cast %281 : vector<16xf32> to vector<16x1xf32>
    %cst_120 = arith.constant 1.280000e+02 : f32
    %283 = vector.broadcast %cst_120 : f32 to vector<16x1xf32>
    %284 = arith.divf %282, %283 : vector<16x1xf32>
    %285 = vector.broadcast %284 : vector<16x1xf32> to vector<16x128xf32>
    %286 = arith.subf %280, %285 : vector<16x128xf32>
    %287 = arith.mulf %286, %286 : vector<16x128xf32>
    %cst_121 = arith.constant dense<0.000000e+00> : vector<16xf32>
    %288 = vector.multi_reduction <add>, %287, %cst_121 [1] : vector<16x128xf32> to vector<16xf32>
    %289 = vector.shape_cast %288 : vector<16xf32> to vector<16x1xf32>
    %cst_122 = arith.constant 1.280000e+02 : f32
    %290 = vector.broadcast %cst_122 : f32 to vector<16x1xf32>
    %291 = arith.divf %289, %290 : vector<16x1xf32>
    %292 = vector.broadcast %284 : vector<16x1xf32> to vector<16x128xf32>
    %293 = arith.subf %280, %292 : vector<16x128xf32>
    %cst_123 = arith.constant 9.99999974E-6 : f32
    %294 = vector.broadcast %cst_123 : f32 to vector<16x1xf32>
    %295 = arith.addf %291, %294 : vector<16x1xf32>
    %296 = math.rsqrt %295 : vector<16x1xf32>
    %297 = vector.broadcast %296 : vector<16x1xf32> to vector<16x128xf32>
    %298 = arith.mulf %293, %297 : vector<16x128xf32>
    %c0_124 = arith.constant 0 : index
    %c0_125 = arith.constant 0 : index
    %299 = vector.load %arg27[%c0_124, %c0_125] : memref<1x128xf32, #tpu.memory_space<vmem>>, vector<1x128xf32>
    %300 = vector.broadcast %299 : vector<1x128xf32> to vector<16x128xf32>
    %301 = arith.mulf %298, %300 : vector<16x128xf32>
    %c0_126 = arith.constant 0 : index
    %c0_127 = arith.constant 0 : index
    %302 = vector.load %arg28[%c0_126, %c0_127] : memref<1x128xf32, #tpu.memory_space<vmem>>, vector<1x128xf32>
    %303 = vector.broadcast %302 : vector<1x128xf32> to vector<16x128xf32>
    %304 = arith.addf %301, %303 : vector<16x128xf32>
    %c0_128 = arith.constant 0 : index
    %c0_129 = arith.constant 0 : index
    %c0_130 = arith.constant 0 : index
    %305 = vector.load %arg29[%c0_128, %c0_129, %c0_130] : memref<1x16x128xf32, #tpu.memory_space<vmem>>, vector<1x16x128xf32>
    %306 = vector.shape_cast %305 : vector<1x16x128xf32> to vector<16x128xf32>
    %307 = vector.shape_cast %304 : vector<16x128xf32> to vector<1x16x128xf32>
    tpu.vector_store %arg29[%c0_128, %c0_129, %c0_130], %307 {strides = array<i32>} : memref<1x16x128xf32, #tpu.memory_space<vmem>>, vector<1x16x128xf32>,
    return
  }
  func.func @transform_0(%arg0: i32, %arg1: i32) -> (i32, i32, i32) {
    %c0_i32 = arith.constant 0 : i32
    %c0_i32_0 = arith.constant 0 : i32
    return %arg0, %arg1, %c0_i32 : i32, i32, i32
  }
  func.func @transform_1(%arg0: i32, %arg1: i32) -> (i32, i32, i32) {
    %c0_i32 = arith.constant 0 : i32
    %c0_i32_0 = arith.constant 0 : i32
    %c0_i32_1 = arith.constant 0 : i32
    return %arg0, %c0_i32, %c0_i32_0 : i32, i32, i32
  }
  func.func @transform_2(%arg0: i32, %arg1: i32) -> (i32, i32, i32) {
    %c0_i32 = arith.constant 0 : i32
    %c0_i32_0 = arith.constant 0 : i32
    %c0_i32_1 = arith.constant 0 : i32
    return %arg0, %c0_i32, %c0_i32_0 : i32, i32, i32
  }
  func.func @transform_3(%arg0: i32, %arg1: i32) -> (i32, i32, i32) {
    %c0_i32 = arith.constant 0 : i32
    %c0_i32_0 = arith.constant 0 : i32
    return %arg0, %arg1, %c0_i32 : i32, i32, i32
  }
  func.func @transform_4(%arg0: i32, %arg1: i32) -> (i32, i32, i32) {
    %c0_i32 = arith.constant 0 : i32
    %c0_i32_0 = arith.constant 0 : i32
    return %arg0, %arg1, %c0_i32 : i32, i32, i32
  }
  func.func @transform_5(%arg0: i32, %arg1: i32) -> (i32, i32) {
    %c0_i32 = arith.constant 0 : i32
    %c0_i32_0 = arith.constant 0 : i32
    %c0_i32_1 = arith.constant 0 : i32
    return %c0_i32, %c0_i32_0 : i32, i32
  }
  func.func @transform_6(%arg0: i32, %arg1: i32) -> (i32, i32) {
    %c0_i32 = arith.constant 0 : i32
    %c0_i32_0 = arith.constant 0 : i32
    %c0_i32_1 = arith.constant 0 : i32
    return %c0_i32, %c0_i32_0 : i32, i32
  }
  func.func @transform_7(%arg0: i32, %arg1: i32) -> (i32, i32) {
    %c0_i32 = arith.constant 0 : i32
    %c0_i32_0 = arith.constant 0 : i32
    %c0_i32_1 = arith.constant 0 : i32
    return %c0_i32, %c0_i32_0 : i32, i32
  }
  func.func @transform_8(%arg0: i32, %arg1: i32) -> (i32, i32) {
    %c0_i32 = arith.constant 0 : i32
    %c0_i32_0 = arith.constant 0 : i32
    %c0_i32_1 = arith.constant 0 : i32
    return %c0_i32, %c0_i32_0 : i32, i32
  }
  func.func @transform_9(%arg0: i32, %arg1: i32) -> (i32, i32) {
    %c0_i32 = arith.constant 0 : i32
    %c0_i32_0 = arith.constant 0 : i32
    %c0_i32_1 = arith.constant 0 : i32
    return %c0_i32, %c0_i32_0 : i32, i32
  }
  func.func @transform_10(%arg0: i32, %arg1: i32) -> (i32, i32) {
    %c0_i32 = arith.constant 0 : i32
    %c0_i32_0 = arith.constant 0 : i32
    %c0_i32_1 = arith.constant 0 : i32
    return %c0_i32, %c0_i32_0 : i32, i32
  }
  func.func @transform_11(%arg0: i32, %arg1: i32) -> (i32, i32) {
    %c0_i32 = arith.constant 0 : i32
    %c0_i32_0 = arith.constant 0 : i32
    %c0_i32_1 = arith.constant 0 : i32
    return %c0_i32, %c0_i32_0 : i32, i32
  }
  func.func @transform_12(%arg0: i32, %arg1: i32) -> (i32, i32) {
    %c0_i32 = arith.constant 0 : i32
    %c0_i32_0 = arith.constant 0 : i32
    %c0_i32_1 = arith.constant 0 : i32
    return %c0_i32, %c0_i32_0 : i32, i32
  }
  func.func @transform_13(%arg0: i32, %arg1: i32) -> (i32, i32) {
    %c0_i32 = arith.constant 0 : i32
    %c0_i32_0 = arith.constant 0 : i32
    %c0_i32_1 = arith.constant 0 : i32
    return %c0_i32, %c0_i32_0 : i32, i32
  }
  func.func @transform_14(%arg0: i32, %arg1: i32) -> (i32, i32) {
    %c0_i32 = arith.constant 0 : i32
    %c0_i32_0 = arith.constant 0 : i32
    %c0_i32_1 = arith.constant 0 : i32
    return %c0_i32, %c0_i32_0 : i32, i32
  }
  func.func @transform_15(%arg0: i32, %arg1: i32) -> (i32, i32) {
    %c0_i32 = arith.constant 0 : i32
    %c0_i32_0 = arith.constant 0 : i32
    %c0_i32_1 = arith.constant 0 : i32
    return %c0_i32, %c0_i32_0 : i32, i32
  }
  func.func @transform_16(%arg0: i32, %arg1: i32) -> (i32, i32) {
    %c0_i32 = arith.constant 0 : i32
    %c0_i32_0 = arith.constant 0 : i32
    %c0_i32_1 = arith.constant 0 : i32
    return %c0_i32, %c0_i32_0 : i32, i32
  }
  func.func @transform_17(%arg0: i32, %arg1: i32) -> (i32, i32) {
    %c0_i32 = arith.constant 0 : i32
    %c0_i32_0 = arith.constant 0 : i32
    %c0_i32_1 = arith.constant 0 : i32
    return %c0_i32, %c0_i32_0 : i32, i32
  }
  func.func @transform_18(%arg0: i32, %arg1: i32) -> (i32, i32) {
    %c0_i32 = arith.constant 0 : i32
    %c0_i32_0 = arith.constant 0 : i32
    %c0_i32_1 = arith.constant 0 : i32
    return %c0_i32, %c0_i32_0 : i32, i32
  }
  func.func @transform_19(%arg0: i32, %arg1: i32) -> (i32, i32) {
    %c0_i32 = arith.constant 0 : i32
    %c0_i32_0 = arith.constant 0 : i32
    %c0_i32_1 = arith.constant 0 : i32
    return %c0_i32, %c0_i32_0 : i32, i32
  }
  func.func @transform_20(%arg0: i32, %arg1: i32) -> (i32, i32) {
    %c0_i32 = arith.constant 0 : i32
    %c0_i32_0 = arith.constant 0 : i32
    %c0_i32_1 = arith.constant 0 : i32
    return %c0_i32, %c0_i32_0 : i32, i32
  }
  func.func @transform_21(%arg0: i32, %arg1: i32) -> (i32, i32) {
    %c0_i32 = arith.constant 0 : i32
    %c0_i32_0 = arith.constant 0 : i32
    %c0_i32_1 = arith.constant 0 : i32
    return %c0_i32, %c0_i32_0 : i32, i32
  }
  func.func @transform_22(%arg0: i32, %arg1: i32) -> (i32, i32) {
    %c0_i32 = arith.constant 0 : i32
    %c0_i32_0 = arith.constant 0 : i32
    %c0_i32_1 = arith.constant 0 : i32
    return %c0_i32, %c0_i32_0 : i32, i32
  }
  func.func @transform_23(%arg0: i32, %arg1: i32) -> (i32, i32) {
    %c0_i32 = arith.constant 0 : i32
    %c0_i32_0 = arith.constant 0 : i32
    %c0_i32_1 = arith.constant 0 : i32
    return %c0_i32, %c0_i32_0 : i32, i32
  }
  func.func @transform_24(%arg0: i32, %arg1: i32) -> (i32, i32) {
    %c0_i32 = arith.constant 0 : i32
    %c0_i32_0 = arith.constant 0 : i32
    %c0_i32_1 = arith.constant 0 : i32
    return %c0_i32, %c0_i32_0 : i32, i32
  }
  func.func @transform_25(%arg0: i32, %arg1: i32) -> (i32, i32) {
    %c0_i32 = arith.constant 0 : i32
    %c0_i32_0 = arith.constant 0 : i32
    %c0_i32_1 = arith.constant 0 : i32
    return %c0_i32, %c0_i32_0 : i32, i32
  }
  func.func @transform_26(%arg0: i32, %arg1: i32) -> (i32, i32) {
    %c0_i32 = arith.constant 0 : i32
    %c0_i32_0 = arith.constant 0 : i32
    %c0_i32_1 = arith.constant 0 : i32
    return %c0_i32, %c0_i32_0 : i32, i32
  }
  func.func @transform_27(%arg0: i32, %arg1: i32) -> (i32, i32, i32) {
    %c0_i32 = arith.constant 0 : i32
    %c0_i32_0 = arith.constant 0 : i32
    return %arg0, %arg1, %c0_i32 : i32, i32, i32
  }
  func.func @transform_28(%arg0: i32, %arg1: i32) -> (i32, i32, i32) {
    %c0_i32 = arith.constant 0 : i32
    %c0_i32_0 = arith.constant 0 : i32
    return %arg0, %arg1, %c0_i32 : i32, i32, i32
  }
}

</mosaic_0001>

<bundles_post_ra>
// kernel: tpu_custom_call.1
= control target key start
LH: loop header
LB: loop body
LE: loop exit
PB: predicated region body
PF: predicated region fallthrough
CT: control target
= control target key end

     0   :  { %s8129_s0 = inlined_call_operand.hbm [shape: f32[2,32,128], index: 0, kind: input, shape index: {}]   ;;  %s8130_s1 = inlined_call_operand.hbm [shape: f32[2,32,128], index: 1, kind: input, shape index: {}]   ;;  %s8131_s2 = inlined_call_operand.hbm [shape: f32[2,32,256], index: 2, kind: input, shape index: {}]   ;;  %s8132_s3 = inlined_call_operand.hbm [shape: bf16[2,32,32], index: 3, kind: input, shape index: {}]   ;;  %s8133_s4 = inlined_call_operand.hbm [shape: bf16[2,32,32], index: 4, kind: input, shape index: {}]   ;;  %s8134_s5 = inlined_call_operand.hbm [shape: bf16[128,128], index: 5, kind: input, shape index: {}]   ;;  %s8135_s6 = inlined_call_operand.hbm [shape: f32[1,128], index: 6, kind: input, shape index: {}]   ;;  %s8136_s7 = inlined_call_operand.hbm [shape: bf16[128,256], index: 7, kind: input, shape index: {}]   ;;  %s8137_s8 = inlined_call_operand.hbm [shape: f32[1,256], index: 8, kind: input, shape index: {}]   ;;  %s8138_s9 = inlined_call_operand.hbm [shape: bf16[128,128], index: 9, kind: input, shape index: {}]   ;;  %s8139_s10 = inlined_call_operand.hbm [shape: f32[1,128], index: 10, kind: input, shape index: {}]   ;;  %s8140_s11 = inlined_call_operand.hbm [shape: f32[1,128], index: 11, kind: input, shape index: {}]   ;;  %s8141_s12 = inlined_call_operand.hbm [shape: f32[1,128], index: 12, kind: input, shape index: {}]   ;;  %s8142_s13 = inlined_call_operand.hbm [shape: bf16[128,128], index: 13, kind: input, shape index: {}]   ;;  %s8143_s14 = inlined_call_operand.hbm [shape: f32[1,128], index: 14, kind: input, shape index: {}]   ;;  %s8144_s15 = inlined_call_operand.hbm [shape: bf16[256,256], index: 15, kind: input, shape index: {}]   ;;  %s8145_s16 = inlined_call_operand.hbm [shape: f32[1,256], index: 16, kind: input, shape index: {}]   ;;  %s8146_s17 = inlined_call_operand.hbm [shape: bf16[128,128], index: 17, kind: input, shape index: {}]   ;;  %s8147_s18 = inlined_call_operand.hbm [shape: f32[1,128], index: 18, kind: input, shape index: {}]   ;;  %s8148_s19 = inlined_call_operand.hbm [shape: f32[1,128], index: 19, kind: input, shape index: {}]   ;;  %s8149_s20 = inlined_call_operand.hbm [shape: f32[1,128], index: 20, kind: input, shape index: {}]   ;;  %s8150_s21 = inlined_call_operand.hbm [shape: bf16[128,256], index: 21, kind: input, shape index: {}]   ;;  %s8151_s22 = inlined_call_operand.hbm [shape: f32[1,256], index: 22, kind: input, shape index: {}]   ;;  %s8152_s23 = inlined_call_operand.hbm [shape: bf16[256,128], index: 23, kind: input, shape index: {}]   ;;  %s8153_s24 = inlined_call_operand.hbm [shape: f32[1,128], index: 24, kind: input, shape index: {}]   ;;  %s8154_s25 = inlined_call_operand.hbm [shape: f32[1,128], index: 25, kind: input, shape index: {}]   ;;  %s8155_s26 = inlined_call_operand.hbm [shape: f32[1,128], index: 26, kind: input, shape index: {}]   ;;  %s8156_s27 = inlined_call_operand.hbm [shape: f32[2,32,128], index: 27, kind: output, shape index: {0}]   ;;  %s8157_s28 = inlined_call_operand.hbm [shape: f32[2,32,128], index: 28, kind: output, shape index: {1}]  }
   0x1   :  { %8245 = sst [smem:[#allocation85_spill]] %s8129_s0 }
   0x2   :  { %8246 = sst [smem:[#allocation86_spill]] %s8130_s1 }
   0x3   :  { %8247 = sst [smem:[#allocation87_spill]] %s8131_s2 }
   0x4   :  { %8248 = sst [smem:[#allocation88_spill]] %s8132_s3 }
   0x5   :  { %8249 = sst [smem:[#allocation89_spill]] %s8133_s4 }
   0x6   :  { %8250 = sst [smem:[#allocation90_spill]] %s8134_s5 }
   0x7   :  { %8251 = sst [smem:[#allocation91_spill]] %s8135_s6 }
   0x8   :  { %8252 = sst [smem:[#allocation92_spill]] %s8136_s7 }
   0x9   :  { %8253 = sst [smem:[#allocation93_spill]] %s8137_s8 }
   0xa   :  { %8254 = sst [smem:[#allocation94_spill]] %s8138_s9 }
   0xb   :  { %8255 = sst [smem:[#allocation95_spill]] %s8139_s10 }
   0xc   :  { %8256 = sst [smem:[#allocation96_spill]] %s8140_s11 }
   0xd   :  { %8257 = sst [smem:[#allocation97_spill]] %s8141_s12 }
   0xe   :  { %8258 = sst [smem:[#allocation98_spill]] %s8142_s13 }
   0xf   :  { %8259 = sst [smem:[#allocation99_spill]] %s8143_s14 }
  0x10   :  { %8260 = sst [smem:[#allocation100_spill]] %s8144_s15 }
  0x11   :  { %8261 = sst [smem:[#allocation101_spill]] %s8145_s16 }
  0x12   :  { %8262 = sst [smem:[#allocation102_spill]] %s8146_s17 }
  0x13   :  { %8263 = sst [smem:[#allocation103_spill]] %s8147_s18 }
  0x14   :  { %8264 = sst [smem:[#allocation104_spill]] %s8148_s19 }
  0x15   :  { %8265 = sst [smem:[#allocation105_spill]] %s8149_s20 }
  0x16   :  { %8266 = sst [smem:[#allocation106_spill]] %s8150_s21 }
  0x17   :  { %8267 = sst [smem:[#allocation107_spill]] %s8151_s22 }
  0x18   :  { %8268 = sst [smem:[#allocation108_spill]] %s8152_s23 }
  0x19   :  { %8269 = sst [smem:[#allocation109_spill]] %s8153_s24 }
  0x1a   :  { %8270 = sst [smem:[#allocation110_spill]] %s8154_s25 }
  0x1b   :  { %8271 = sst [smem:[#allocation111_spill]] %s8155_s26 }
  0x1c   :  { %8272 = sst [smem:[#allocation112_spill]] %s8156_s27 }
  0x1d   :  { %8273 = sst [smem:[#allocation113_spill]] %s8157_s28 }
  0x1e   :  { %34 = vsyncpa [#allocation3], 0 }
  0x1f   :  { %36 = vsyncpa [#allocation3 + $0x1], 0 }
  0x20   :  { %37 = vsyncpa [#allocation6], 0 }
  0x21   :  { %39 = vsyncpa [#allocation6 + $0x1], 0 }
  0x22   :  { %40 = vsyncpa [#allocation9], 0 }
  0x23   :  { %42 = vsyncpa [#allocation9 + $0x1], 0 }
  0x24   :  { %43 = vsyncpa [#allocation12], 0 }
  0x25   :  { %44 = vsyncpa [#allocation15], 0 }
  0x26   :  { %45 = vsyncpa [#allocation18], 0 }
  0x27   :  { %46 = vsyncpa [#allocation21], 0 }
  0x28   :  { %47 = vsyncpa [#allocation24], 0 }
  0x29   :  { %48 = vsyncpa [#allocation27], 0 }
  0x2a   :  { %49 = vsyncpa [#allocation30], 0 }
  0x2b   :  { %50 = vsyncpa [#allocation33], 0 }
  0x2c   :  { %51 = vsyncpa [#allocation36], 0 }
  0x2d   :  { %52 = vsyncpa [#allocation39], 0 }
  0x2e   :  { %53 = vsyncpa [#allocation42], 0 }
  0x2f   :  { %54 = vsyncpa [#allocation4], 0 }
  0x30   :  { %56 = vsyncpa [#allocation4 + $0x1], 0 }
  0x31   :  { %57 = vsyncpa [#allocation46], 0 }
  0x32   :  { %59 = vsyncpa [#allocation46 + $0x1], 0  ;;  %s6648_s8 = smov 0   ;;  %s6650_s5 = smov 0  }
  0x33   :  { %s6652_s9 = smov 0   ;;  %s6654_s30 = smov 0  }
  0x34   :  { %s6656_s3 = smov 0   ;;  %s6658_s6 = smov 0  }
  0x35   :  { %s6660_s10 = smov 0   ;;  %s6662_s0 = smov 0  }
  0x36   :  { %s6664_s11 = smov 0   ;;  %s6666_s29 = smov 0  }
  0x37   :  { %s6668_s2 = smov 0  }
  0x38 LB: > { %8274 = sst [smem:[#allocation63_spill]] %s6422_s5  ;;  %s6704_s7 = sadd.s32 4294967295, %s6458_s2   ;;  %s6458_s2 = sphi %s6668_s2, %s65_s2   ;;  %s6454_s29 = sphi %s6666_s29, %s8429_s29   ;;  %s6450_s11 = sphi %s6664_s11, %s8426_s11   ;;  %s6446_s0 = sphi %s6662_s0, %s8428_s0   ;;  %s6442_s10 = sphi %s6660_s10, %s8425_s10   ;;  %s6438_s6 = sphi %s6658_s6, %s8424_s6   ;;  %s6434_s3 = sphi %s6656_s3, %s8423_s3   ;;  %s6430_s30 = sphi %s6654_s30, %s8422_s30   ;;  %s6426_s9 = sphi %s6652_s9, %s8421_s9   ;;  %s6422_s5 = sphi %s6650_s5, %s8420_s5   ;;  %s6418_s8 = sphi %s6648_s8, %s8419_s8  }
  0x39   : > { %8275 = sst [smem:[#allocation64_spill]] %s6426_s9  ;;  %p4329_p0 = scmp.ge.s32.totalorder %s6458_s2, 1 }
  0x3a   : > { %8276 = sst [smem:[#allocation65_spill]] %s6430_s30  ;;  %p8179_p1 = scmp.eq.s32.totalorder %s6704_s7, 0 }
  0x3b   : > { %8277 = sst [smem:[#allocation66_spill]] %s6434_s3  ;;  %p736_p2 = scmp.lt.s32.totalorder %s6458_s2, 5 }
  0x3c   : > { %8278 = sst [smem:[#allocation67_spill]] %s6438_s6  ;;  %s6460_s1 = smov [#allocation11]  }
  0x3d   : > { %8279 = sst [smem:[#allocation68_spill]] %s6442_s10  ;;  %p6709_p3 = pnand %p4329_p0, %p736_p2 }
  0x3e   : > { %8280 = sst [smem:[#allocation69_spill]] %s6446_s0  ;;  %s748_s4 = sshll.u32 %s6460_s1, 4  ;;  %s749_s4 = int_to_ptr.vmem [resolvable:$true] %s748_s4 }
  0x3f   : > { %8281 = sst [smem:[#allocation70_spill]] %s6450_s11  ;;  %p4976_p4 = pneg %p6709_p3 }
  0x40   : > { %8282 = sst [smem:[#allocation71_spill]] %s6458_s2  ;;  %s6461_s28 = smov [#allocation14]  }
  0x41   : > { %8283 = sst [smem:[#allocation72_spill]] %s6704_s7  ;;  %p6717_p5 = pnand %p4976_p4, %p8179_p1 }
  0x42   : > { %s8284_s12 = scalar_select %p6709_p3, 1, 0 }
  0x43   : > { %s8286_s27 = scalar_select %p6717_p5, 1, 0 }
  0x44   : > { %8285 = sst [smem:[#allocation73_spill]] %s8284_s12  ;;  %s772_s0 = sshll.u32 %s6461_s28, 4  ;;  %s6721_s0 = int_to_ptr.vmem [resolvable:$true] %s772_s0 }
  0x45   : > { %s8287_s24 = sld [smem:[#allocation90_spill]]  ;;  %p6731_p7 = pneg %p6717_p5 }
  0x47   : > { %s8288_s1 = scalar_select %p6731_p7, 1, 0 }
  0x4b   : > { %s5486_s22 = scalar_lea.hbm %s8287_s24, 1024 }
  0x4c   : > { %p5487_p6 = scmp.ne.s32.totalorder %s8287_s24, %s5486_s22  ;;  %p5493_p10 = scmp.lt.u32.totalorder %s5486_s22, %s8287_s24 }
  0x4e   : > { %p5489_p8 = pnand %p6731_p7, %p5487_p6 }
  0x50   : > { %p5490_p9 = pneg %p5489_p8 }
  0x52   : > { %p5495_p11 = pnand %p5493_p10, %p5490_p9 }
  0x54   : > { %5498 = shalt.err (!%p5495_p11)
}
  0x55   : > { %s5499_s26 = scalar_lea.vmem %s749_s4, 1024  ;;  %p5507_p2 = scmp.lt.s32.totalorder %s749_s4, %s749_s4 }
  0x56   : > { %p5500_p12 = scmp.ne.s32.totalorder %s749_s4, %s5499_s26  ;;  %p5508_p4 = scmp.lt.s32.totalorder %s5499_s26, %s5499_s26 }
  0x58   : > { %p5502_p13 = pnand %p5500_p12, %p6731_p7  ;;  %p5509_p1 = por %p5508_p4, %p5507_p2 }
  0x5a   : > { %p5503_p0 = pneg %p5502_p13 }
  0x5c   : > { %p5510_p3 = pnand %p5509_p1, %p5503_p0 }
  0x5e   : > { %5513 = shalt.err (!%p5510_p3)
}
  0x5f   : > { %s8185_s18 = smov 64   ;;  %s8187_s20 = smov 4  }
  0x60   : > { %4979 = dma.hbm_to_vmem [thread:$0]  (!%p6717_p5), %s8287_s24, 1024, %s749_s4, [#allocation12], %s8185_s18, %s8185_s18, %s8187_s20  }
  0x61   : > { %s8289_s16 = sld [smem:[#allocation92_spill]] }
  0x67   : > { %s5514_s14 = scalar_lea.hbm %s8289_s16, 2048 }
  0x68   : > { %p5515_p1 = scmp.ne.s32.totalorder %s8289_s16, %s5514_s14  ;;  %p5521_p8 = scmp.lt.u32.totalorder %s5514_s14, %s8289_s16 }
  0x6a   : > { %p5517_p3 = pnand %p5515_p1, %p6731_p7 }
  0x6c   : > { %p5518_p6 = pneg %p5517_p3 }
  0x6e   : > { %p5523_p9 = pnand %p5521_p8, %p5518_p6 }
  0x70   : > { %5526 = shalt.err (!%p5523_p9)
}
  0x71   : > { %s5527_s4 = scalar_lea.vmem %s6721_s0, 2048  ;;  %p5535_p13 = scmp.lt.s32.totalorder %s6721_s0, %s6721_s0 }
  0x72   : > { %p5528_p10 = scmp.ne.s32.totalorder %s6721_s0, %s5527_s4  ;;  %p5536_p0 = scmp.lt.s32.totalorder %s5527_s4, %s5527_s4 }
  0x74   : > { %p5530_p11 = pnand %p5528_p10, %p6731_p7  ;;  %p5537_p2 = por %p5536_p0, %p5535_p13 }
  0x76   : > { %p5531_p12 = pneg %p5530_p11 }
  0x78   : > { %p5538_p4 = pnand %p5537_p2, %p5531_p12 }
  0x7a   : > { %5541 = shalt.err (!%p5538_p4)
}
  0x7b   : > { %s8191_s30 = smov 128   ;;  %s8193_s14 = smov 8  }
  0x7c   : > { %4985 = dma.hbm_to_vmem [thread:$0]  (!%p6717_p5), %s8289_s16, 2048, %s6721_s0, [#allocation15], %s8191_s30, %s8191_s30, %s8193_s14  }
  0x7d   : > { %s6466_s22 = smov [#allocation17]   ;;  %s6467_s12 = smov [#allocation20]  }
  0x7e   : > { %s796_s10 = sshll.u32 %s6466_s22, 4  ;;  %s821_s28 = sshll.u32 %s6467_s12, 4  ;;  %s797_s10 = int_to_ptr.vmem [resolvable:$true] %s796_s10  ;;  %s6776_s28 = int_to_ptr.vmem [resolvable:$true] %s821_s28 }
  0x7f   : > { %s8290_s18 = sld [smem:[#allocation94_spill]] }
  0x85   : > { %s5542_s20 = scalar_lea.hbm %s8290_s18, 1024 }
  0x86   : > { %p5543_p1 = scmp.ne.s32.totalorder %s8290_s18, %s5542_s20  ;;  %p5549_p8 = scmp.lt.u32.totalorder %s5542_s20, %s8290_s18 }
  0x88   : > { %p5545_p3 = pnand %p5543_p1, %p6731_p7 }
  0x8a   : > { %p5546_p6 = pneg %p5545_p3 }
  0x8c   : > { %p5551_p9 = pnand %p5549_p8, %p5546_p6 }
  0x8e   : > { %5554 = shalt.err (!%p5551_p9)
}
  0x8f   : > { %s5555_s6 = scalar_lea.vmem %s797_s10, 1024  ;;  %p5563_p13 = scmp.lt.s32.totalorder %s797_s10, %s797_s10 }
  0x90   : > { %p5556_p10 = scmp.ne.s32.totalorder %s797_s10, %s5555_s6  ;;  %p5564_p0 = scmp.lt.s32.totalorder %s5555_s6, %s5555_s6 }
  0x92   : > { %p5558_p11 = pnand %p5556_p10, %p6731_p7  ;;  %p5565_p2 = por %p5564_p0, %p5563_p13 }
  0x94   : > { %p5559_p12 = pneg %p5558_p11 }
  0x96   : > { %p5566_p4 = pnand %p5565_p2, %p5559_p12 }
  0x98   : > { %5569 = shalt.err (!%p5566_p4)
}
  0x99   : > { %s8291_s24 = smov 4   ;;  %s8292_s11 = smov 64  }
  0x9a   : > { %4991 = dma.hbm_to_vmem [thread:$0]  (!%p6717_p5), %s8290_s18, 1024, %s797_s10, [#allocation18], %s8292_s11, %s8292_s11, %s8291_s24  }
  0x9b   : > { %s8293_s4 = sld [smem:[#allocation96_spill]] }
  0xa1   : > { %s5570_s3 = scalar_lea.hbm %s8293_s4, 16 }
  0xa2   : > { %p5571_p1 = scmp.ne.s32.totalorder %s8293_s4, %s5570_s3  ;;  %p5577_p8 = scmp.lt.u32.totalorder %s5570_s3, %s8293_s4 }
  0xa4   : > { %p5573_p3 = pnand %p5571_p1, %p6731_p7 }
  0xa6   : > { %p5574_p6 = pneg %p5573_p3 }
  0xa8   : > { %p5579_p9 = pnand %p5577_p8, %p5574_p6 }
  0xaa   : > { %5582 = shalt.err (!%p5579_p9)
}
  0xab   : > { %s5583_s10 = scalar_lea.vmem %s6776_s28, 16  ;;  %s5590_s30 = scalar_lea.vmem %s6776_s28, 32 }
  0xac   : > { %p5584_p10 = scmp.ne.s32.totalorder %s6776_s28, %s5583_s10  ;;  %p5591_p13 = scmp.lt.s32.totalorder %s6776_s28, %s6776_s28 }
  0xad   : > { %p5592_p0 = scmp.lt.s32.totalorder %s5590_s30, %s5583_s10 }
  0xae   : > { %p5586_p11 = pnand %p5584_p10, %p6731_p7 }
  0xaf   : > { %p5593_p2 = por %p5592_p0, %p5591_p13 }
  0xb0   : > { %p5587_p12 = pneg %p5586_p11 }
  0xb2   : > { %p5594_p4 = pnand %p5593_p2, %p5587_p12 }
  0xb4   : > { %5597 = shalt.err (!%p5594_p4)
}
  0xb5   : > { %4997 = dma.hbm_to_vmem [thread:$0]  (!%p6717_p5), %s8293_s4, 16, %s6776_s28, [#allocation21]  }
  0xb6   : > { %s6468_s20 = smov [#allocation23]   ;;  %s6469_s26 = smov [#allocation26]  }
  0xb7   : > { %s842_s12 = sshll.u32 %s6468_s20, 4  ;;  %s866_s3 = sshll.u32 %s6469_s26, 4  ;;  %s843_s12 = int_to_ptr.vmem [resolvable:$true] %s842_s12  ;;  %s6823_s3 = int_to_ptr.vmem [resolvable:$true] %s866_s3 }
  0xb8   : > { %s8294_s13 = sld [smem:[#allocation98_spill]] }
  0xbe   : > { %s5598_s10 = scalar_lea.hbm %s8294_s13, 1024 }
  0xbf   : > { %p5599_p1 = scmp.ne.s32.totalorder %s8294_s13, %s5598_s10  ;;  %p5605_p8 = scmp.lt.u32.totalorder %s5598_s10, %s8294_s13 }
  0xc1   : > { %p5601_p3 = pnand %p5599_p1, %p6731_p7 }
  0xc3   : > { %p5602_p6 = pneg %p5601_p3 }
  0xc5   : > { %p5607_p9 = pnand %p5605_p8, %p5602_p6 }
  0xc7   : > { %5610 = shalt.err (!%p5607_p9)
}
  0xc8   : > { %s5611_s22 = scalar_lea.vmem %s843_s12, 1024  ;;  %p5619_p13 = scmp.lt.s32.totalorder %s843_s12, %s843_s12 }
  0xc9   : > { %p5612_p10 = scmp.ne.s32.totalorder %s843_s12, %s5611_s22  ;;  %p5620_p0 = scmp.lt.s32.totalorder %s5611_s22, %s5611_s22 }
  0xcb   : > { %p5614_p11 = pnand %p5612_p10, %p6731_p7  ;;  %p5621_p2 = por %p5620_p0, %p5619_p13 }
  0xcd   : > { %p5615_p12 = pneg %p5614_p11 }
  0xcf   : > { %p5622_p4 = pnand %p5621_p2, %p5615_p12 }
  0xd1   : > { %5625 = shalt.err (!%p5622_p4)
}
  0xd2   : > { %5003 = dma.hbm_to_vmem [thread:$0]  (!%p6717_p5), %s8294_s13, 1024, %s843_s12, [#allocation24], %s8292_s11, %s8292_s11, %s8291_s24  }
  0xd3   : > { %s8295_s15 = sld [smem:[#allocation100_spill]] }
  0xd9   : > { %s5626_s6 = scalar_lea.hbm %s8295_s15, 4096 }
  0xda   : > { %p5627_p1 = scmp.ne.s32.totalorder %s8295_s15, %s5626_s6  ;;  %p5633_p8 = scmp.lt.u32.totalorder %s5626_s6, %s8295_s15 }
  0xdc   : > { %p5629_p3 = pnand %p5627_p1, %p6731_p7 }
  0xde   : > { %p5630_p6 = pneg %p5629_p3 }
  0xe0   : > { %p5635_p9 = pnand %p5633_p8, %p5630_p6 }
  0xe2   : > { %5638 = shalt.err (!%p5635_p9)
}
  0xe3   : > { %s5639_s12 = scalar_lea.vmem %s6823_s3, 4096  ;;  %p5647_p13 = scmp.lt.s32.totalorder %s6823_s3, %s6823_s3 }
  0xe4   : > { %p5640_p10 = scmp.ne.s32.totalorder %s6823_s3, %s5639_s12  ;;  %p5648_p0 = scmp.lt.s32.totalorder %s5639_s12, %s5639_s12 }
  0xe6   : > { %p5642_p11 = pnand %p5640_p10, %p6731_p7  ;;  %p5649_p2 = por %p5648_p0, %p5647_p13 }
  0xe8   : > { %p5643_p12 = pneg %p5642_p11 }
  0xea   : > { %p5650_p4 = pnand %p5649_p2, %p5643_p12 }
  0xec   : > { %5653 = shalt.err (!%p5650_p4)
}
  0xed   : > { %s8296_s22 = smov 8   ;;  %s8297_s16 = smov 128  }
  0xee   : > { %5009 = dma.hbm_to_vmem [thread:$0]  (!%p6717_p5), %s8295_s15, 4096, %s6823_s3, [#allocation27], %s8297_s16, %s8297_s16, %s8296_s22  }
  0xef   : > { %s6470_s0 = smov [#allocation29]   ;;  %s6471_s10 = smov [#allocation32]  }
  0xf0   : > { %s890_s6 = sshll.u32 %s6470_s0, 4  ;;  %s915_s30 = sshll.u32 %s6471_s10, 4  ;;  %s891_s6 = int_to_ptr.vmem [resolvable:$true] %s890_s6  ;;  %s6872_s30 = int_to_ptr.vmem [resolvable:$true] %s915_s30 }
  0xf1   : > { %s8298_s17 = sld [smem:[#allocation102_spill]] }
  0xf7   : > { %s5654_s12 = scalar_lea.hbm %s8298_s17, 1024 }
  0xf8   : > { %p5655_p1 = scmp.ne.s32.totalorder %s8298_s17, %s5654_s12  ;;  %p5661_p8 = scmp.lt.u32.totalorder %s5654_s12, %s8298_s17 }
  0xfa   : > { %p5657_p3 = pnand %p5655_p1, %p6731_p7 }
  0xfc   : > { %p5658_p6 = pneg %p5657_p3 }
  0xfe   : > { %p5663_p9 = pnand %p5661_p8, %p5658_p6 }
 0x100   : > { %5666 = shalt.err (!%p5663_p9)
}
 0x101   : > { %s5667_s26 = scalar_lea.vmem %s891_s6, 1024  ;;  %p5675_p13 = scmp.lt.s32.totalorder %s891_s6, %s891_s6 }
 0x102   : > { %p5668_p10 = scmp.ne.s32.totalorder %s891_s6, %s5667_s26  ;;  %p5676_p0 = scmp.lt.s32.totalorder %s5667_s26, %s5667_s26 }
 0x104   : > { %p5670_p11 = pnand %p5668_p10, %p6731_p7  ;;  %p5677_p2 = por %p5676_p0, %p5675_p13 }
 0x106   : > { %p5671_p12 = pneg %p5670_p11 }
 0x108   : > { %p5678_p4 = pnand %p5677_p2, %p5671_p12 }
 0x10a   : > { %5681 = shalt.err (!%p5678_p4)
}
 0x10b   : > { %5015 = dma.hbm_to_vmem [thread:$0]  (!%p6717_p5), %s8298_s17, 1024, %s891_s6, [#allocation30], %s8292_s11, %s8292_s11, %s8291_s24  }
 0x10c   : > { %s8299_s19 = sld [smem:[#allocation104_spill]] }
 0x112   : > { %s5682_s14 = scalar_lea.hbm %s8299_s19, 16 }
 0x113   : > { %p5683_p1 = scmp.ne.s32.totalorder %s8299_s19, %s5682_s14  ;;  %p5689_p8 = scmp.lt.u32.totalorder %s5682_s14, %s8299_s19 }
 0x115   : > { %p5685_p3 = pnand %p5683_p1, %p6731_p7 }
 0x117   : > { %p5686_p6 = pneg %p5685_p3 }
 0x119   : > { %p5691_p9 = pnand %p5689_p8, %p5686_p6 }
 0x11b   : > { %5694 = shalt.err (!%p5691_p9)
}
 0x11c   : > { %s5695_s6 = scalar_lea.vmem %s6872_s30, 16  ;;  %s5702_s26 = scalar_lea.vmem %s6872_s30, 32 }
 0x11d   : > { %p5696_p10 = scmp.ne.s32.totalorder %s6872_s30, %s5695_s6  ;;  %p5703_p13 = scmp.lt.s32.totalorder %s6872_s30, %s6872_s30 }
 0x11e   : > { %p5704_p0 = scmp.lt.s32.totalorder %s5702_s26, %s5695_s6 }
 0x11f   : > { %p5698_p11 = pnand %p5696_p10, %p6731_p7 }
 0x120   : > { %p5705_p2 = por %p5704_p0, %p5703_p13 }
 0x121   : > { %p5699_p12 = pneg %p5698_p11 }
 0x123   : > { %p5706_p4 = pnand %p5705_p2, %p5699_p12 }
 0x125   : > { %5709 = shalt.err (!%p5706_p4)
}
 0x126   : > { %5021 = dma.hbm_to_vmem [thread:$0]  (!%p6717_p5), %s8299_s19, 16, %s6872_s30, [#allocation33]  }
 0x127   : > { %s6472_s0 = smov [#allocation35]   ;;  %s6473_s14 = smov [#allocation38]  }
 0x128   : > { %s936_s10 = sshll.u32 %s6472_s0, 4  ;;  %s960_s28 = sshll.u32 %s6473_s14, 4  ;;  %s937_s10 = int_to_ptr.vmem [resolvable:$true] %s936_s10  ;;  %s6919_s28 = int_to_ptr.vmem [resolvable:$true] %s960_s28 }
 0x129   : > { %s8300_s21 = sld [smem:[#allocation106_spill]] }
 0x12f   : > { %s5710_s3 = scalar_lea.hbm %s8300_s21, 2048 }
 0x130   : > { %p5711_p1 = scmp.ne.s32.totalorder %s8300_s21, %s5710_s3  ;;  %p5717_p8 = scmp.lt.u32.totalorder %s5710_s3, %s8300_s21 }
 0x132   : > { %p5713_p3 = pnand %p5711_p1, %p6731_p7 }
 0x134   : > { %p5714_p6 = pneg %p5713_p3 }
 0x136   : > { %p5719_p9 = pnand %p5717_p8, %p5714_p6 }
 0x138   : > { %5722 = shalt.err (!%p5719_p9)
}
 0x139   : > { %s5723_s4 = scalar_lea.vmem %s937_s10, 2048  ;;  %p5731_p13 = scmp.lt.s32.totalorder %s937_s10, %s937_s10 }
 0x13a   : > { %p5724_p10 = scmp.ne.s32.totalorder %s937_s10, %s5723_s4  ;;  %p5732_p0 = scmp.lt.s32.totalorder %s5723_s4, %s5723_s4 }
 0x13c   : > { %p5726_p11 = pnand %p5724_p10, %p6731_p7  ;;  %p5733_p2 = por %p5732_p0, %p5731_p13 }
 0x13e   : > { %p5727_p12 = pneg %p5726_p11 }
 0x140   : > { %p5734_p4 = pnand %p5733_p2, %p5727_p12 }
 0x142   : > { %5737 = shalt.err (!%p5734_p4)
}
 0x143   : > { %5027 = dma.hbm_to_vmem [thread:$0]  (!%p6717_p5), %s8300_s21, 2048, %s937_s10, [#allocation36], %s8297_s16, %s8297_s16, %s8296_s22  }
 0x144   : > { %s8301_s23 = sld [smem:[#allocation108_spill]] }
 0x14a   : > { %s5738_s3 = scalar_lea.hbm %s8301_s23, 2048 }
 0x14b   : > { %p5739_p1 = scmp.ne.s32.totalorder %s8301_s23, %s5738_s3  ;;  %p5745_p8 = scmp.lt.u32.totalorder %s5738_s3, %s8301_s23 }
 0x14d   : > { %p5741_p3 = pnand %p5739_p1, %p6731_p7 }
 0x14f   : > { %p5742_p6 = pneg %p5741_p3 }
 0x151   : > { %p5747_p9 = pnand %p5745_p8, %p5742_p6 }
 0x153   : > { %5750 = shalt.err (!%p5747_p9)
}
 0x154   : > { %s5751_s10 = scalar_lea.vmem %s6919_s28, 2048  ;;  %p5759_p13 = scmp.lt.s32.totalorder %s6919_s28, %s6919_s28 }
 0x155   : > { %p5752_p10 = scmp.ne.s32.totalorder %s6919_s28, %s5751_s10  ;;  %p5760_p0 = scmp.lt.s32.totalorder %s5751_s10, %s5751_s10 }
 0x157   : > { %p5754_p11 = pnand %p5752_p10, %p6731_p7  ;;  %p5761_p2 = por %p5760_p0, %p5759_p13 }
 0x159   : > { %p5755_p12 = pneg %p5754_p11 }
 0x15b   : > { %p5762_p4 = pnand %p5761_p2, %p5755_p12 }
 0x15d   : > { %5765 = shalt.err (!%p5762_p4)
}
 0x15e   : > { %5033 = dma.hbm_to_vmem [thread:$0]  (!%p6717_p5), %s8301_s23, 2048, %s6919_s28, [#allocation39], %s8292_s11, %s8292_s11, %s8291_s24  }
 0x15f   : > { %s6474_s14 = smov [#allocation41]   ;;  %s8302_s25 = sld [smem:[#allocation110_spill]] }
 0x160   : > { %s985_s12 = sshll.u32 %s6474_s14, 4  ;;  %s986_s12 = int_to_ptr.vmem [resolvable:$true] %s985_s12 }
 0x165   : > { %s5766_s6 = scalar_lea.hbm %s8302_s25, 16 }
 0x166   : > { %p5767_p1 = scmp.ne.s32.totalorder %s8302_s25, %s5766_s6  ;;  %p5773_p8 = scmp.lt.u32.totalorder %s5766_s6, %s8302_s25 }
 0x168   : > { %p5769_p3 = pnand %p5767_p1, %p6731_p7 }
 0x16a   : > { %p5770_p6 = pneg %p5769_p3 }
 0x16c   : > { %p5775_p9 = pnand %p5773_p8, %p5770_p6 }
 0x16e   : > { %5778 = shalt.err (!%p5775_p9)
}
 0x16f   : > { %s5779_s28 = scalar_lea.vmem %s986_s12, 16  ;;  %s5786_s4 = scalar_lea.vmem %s986_s12, 32 }
 0x170   : > { %p5780_p10 = scmp.ne.s32.totalorder %s986_s12, %s5779_s28  ;;  %p5787_p13 = scmp.lt.s32.totalorder %s986_s12, %s986_s12 }
 0x171   : > { %p5788_p0 = scmp.lt.s32.totalorder %s5786_s4, %s5779_s28 }
 0x172   : > { %p5782_p11 = pnand %p5780_p10, %p6731_p7 }
 0x173   : > { %p5789_p2 = por %p5788_p0, %p5787_p13 }
 0x174   : > { %p5783_p12 = pneg %p5782_p11 }
 0x176   : > { %p5790_p4 = pnand %p5789_p2, %p5783_p12 }
 0x178   : > { %5793 = shalt.err (!%p5790_p4)
}
 0x179   : > { %5039 = dma.hbm_to_vmem [thread:$0]  (!%p6717_p5), %s8302_s25, 16, %s986_s12, [#allocation42]  }
 0x17a   : > { %p8198_p1 = scmp.eq.s32.totalorder %s6458_s2, 0  ;;  %p119_p3 = scmp.ne.s32.totalorder %s6426_s9, %s6422_s5 }
 0x17b   : > { %p125_p6 = scmp.ne.s32.totalorder %s6422_s5, %s6418_s8  ;;  %p8197_p8 = scmp.lt.s32.totalorder %s6458_s2, 4 }
 0x17c   : > { %p121_p9 = por %p119_p3, %p8198_p1  ;;  %s8199_s3 = sand.u32 1, %s6458_s2  }
 0x17d   : > { %p8303_p10 = scmp.eq.s32.totalorder %s6704_s7, 0  ;;  %s1032_s26 = sand.u32 1, %s6426_s9  }
 0x17e   : > { %s4550_s13 = sshll.u32 %s6454_s29, 9  ;;  %s4357_s30 = sshll.u32 %s1032_s26, 5 }
 0x17f   : > { %p6998_p11 = por %p125_p6, %p8303_p10  ;;  %s8306_s12 = sld [smem:[#allocation86_spill]] }
 0x180   : > { %p7011_p12 = pnand %p8197_p8, %p121_p9  ;;  %s1034_s0 = scalar_lea.vmem [#allocation5], %s4357_s30 }
 0x181   : > { %s8304_s6 = scalar_select %p6998_p11, 1, 0 }
 0x182   : > { %s8307_s8 = scalar_select %p7011_p12, 1, 0 }
 0x183   : > { %8305 = sst [smem:[#allocation74_spill]] %s8304_s6  ;;  %s1041_s14 = sshll.u32 %s1034_s0, 4  ;;  %s7017_s14 = int_to_ptr.vmem [resolvable:$true] %s1041_s14 }
 0x184   : > { %8308 = sst [smem:[#allocation75_spill]] %s8307_s8  ;;  %s7015_s20 = sshll.u32 %s1032_s26, 6 }
 0x185   : > { %s7007_s4 = scalar_lea.hbm %s8306_s12, %s4550_s13  ;;  %s7021_s13 = scalar_lea.sflag [#allocation6], %s8199_s3 }
 0x186   : > { %8309 = sst [smem:[#allocation76_spill]] %s7021_s13  ;;  %s5794_s10 = scalar_lea.hbm %s7007_s4, 512 }
 0x187   : > { %p5795_p13 = scmp.ne.s32.totalorder %s7007_s4, %s5794_s10  ;;  %p8211_p0 = pneg %p7011_p12 }
 0x188   : > { %s5799_s30 = scalar_lea.hbm %s8306_s12, 1024  ;;  %p5800_p3 = scmp.lt.u32.totalorder %s7007_s4, %s8306_s12 }
 0x189   : > { %p5797_p2 = pnand %p8211_p0, %p5795_p13  ;;  %p5801_p6 = scmp.lt.u32.totalorder %s5799_s30, %s5794_s10 }
 0x18a   : > { %p5803_p10 = scmp.lt.u32.totalorder %s5794_s10, %s7007_s4 }
 0x18b   : > { %p5798_p4 = pneg %p5797_p2  ;;  %p5802_p9 = por %p5801_p6, %p5800_p3 }
 0x18d   : > { %p5804_p8 = por %p5803_p10, %p5802_p9 }
 0x18f   : > { %p5805_p1 = pnand %p5804_p8, %p5798_p4 }
 0x191   : > { %5808 = shalt.err (!%p5805_p1)
}
 0x192   : > { %s5809_s3 = scalar_lea.vmem %s7017_s14, 512  ;;  %s6475_s15 = smov [#allocation5]  }
 0x193   : > { %p5810_p13 = scmp.ne.s32.totalorder %s7017_s14, %s5809_s3  ;;  %s5814_s28 = sshll.u32 %s6475_s15, 4  ;;  %s5815_s28 = int_to_ptr.vmem [resolvable:$false] %s5814_s28 }
 0x194   : > { %s5816_s0 = scalar_lea.vmem %s5815_s28, 1024  ;;  %p5817_p5 = scmp.lt.s32.totalorder %s7017_s14, %s5815_s28 }
 0x195   : > { %p5812_p2 = pnand %p5810_p13, %p8211_p0  ;;  %p5818_p3 = scmp.lt.s32.totalorder %s5816_s0, %s5809_s3 }
 0x197   : > { %p5813_p11 = pneg %p5812_p2  ;;  %p5819_p6 = por %p5818_p3, %p5817_p5 }
 0x199   : > { %p5820_p9 = pnand %p5819_p6, %p5813_p11 }
 0x19b   : > { %5823 = shalt.err (!%p5820_p9)
}
 0x19c   : > { %s8310_s10 = sld [smem:[#allocation70_spill]]  ;;  %s8311_s30 = sld [smem:[#allocation67_spill]] }
 0x19d   : > { %s8312_s26 = sld [smem:[#allocation66_spill]]  ;;  %s8313_s3 = sld [smem:[#allocation65_spill]] }
 0x19e   : > { %5049 = dma.hbm_to_vmem [thread:$0]  (!%p7011_p12), %s7007_s4, 512, %s7017_s14, %s7021_s13, %s8297_s16, %s8297_s16, %s8296_s22  }
 0x19f   : > { %s1055_s15 = scalar_lea.vmem [#allocation7], %s7015_s20  ;;  %s4328_s0 = sadd.s32 4294967294, %s6458_s2  }
 0x1a0   : > { %s7053_s28 = sshll.u32 %s1055_s15, 4  ;;  %s77_s17 = sadd.s32 1, %s6454_s29  ;;  %s7416_s28 = int_to_ptr.vmem [resolvable:$true] %s7053_s28 }
 0x1a1   : > { %p8315_p8 = scmp.eq.s32.totalorder %s6458_s2, 0  ;;  %p695_p13 = scmp.eq.s32.totalorder %s6704_s7, 3 }
 0x1a2   : > { %s74_s12 = sadd.s32 1, %s8310_s10  ;;  %s86_s18 = sadd.s32 1, %s8311_s30 }
 0x1a3   : > { %p75_p5 = scmp.ge.s32.totalorder %s74_s12, 2  ;;  %p93_p1 = scmp.ne.s32.totalorder %s8311_s30, %s8312_s26 }
 0x1a4   : > { %p99_p10 = scmp.ne.s32.totalorder %s8312_s26, %s8313_s3  ;;  %p701_p2 = scmp.eq.s32.totalorder %s4328_s0, 3 }
 0x1a5   : > { %s8431_s12 = smov (%p75_p5, %s74_s12), 0  ;;  %s8433_s17 = smov (!%p75_p5, %s77_s17), %s6454_s29 }
 0x1a6   : > { %8314 = sst [smem:[#allocation77_spill]] %s8431_s12  ;;  %s82_s19 = ssub.s32 %s8310_s10, %s8431_s12 }
 0x1a7   : > { %p7068_p11 = por %p8315_p8, %p93_p1  ;;  %p79_p4 = scmp.ge.s32.totalorder %s8433_s17, 2 }
 0x1a8   : > { %p8318_p3 = scmp.eq.s32.totalorder %s6704_s7, 0  ;;  %p7083_p9 = por %p695_p13, %p93_p1 }
 0x1a9   : > { %s8435_s17 = smov (%p79_p4, %s8433_s17), 0  ;;  %p7089_p5 = por %p701_p2, %p99_p10 }
 0x1aa   : > { %8317 = sst [smem:[#allocation78_spill]] %s8435_s17  ;;  %p7079_p6 = por %p8318_p3, %p99_p10 }
 0x1ab   : > { %s8321_s14 = scalar_select %p7083_p9, 1, 0 }
 0x1ac   : > { %s8319_s4 = scalar_select %p7079_p6, 1, 0 }
 0x1ad   : > { %8322 = sst [smem:[#allocation80_spill]] %s8321_s14  ;;  %s81_s15 = ssub.s32 %s6454_s29, %s8435_s17 }
 0x1ae   : > { %8320 = sst [smem:[#allocation79_spill]] %s8319_s4  ;;  %s83_s26 = sor.u32 %s82_s19, %s81_s15 }
 0x1af   : > { %s8323_s21 = scalar_select %p7089_p5, 1, 0 }
 0x1b0   : > { %p110_p8 = scmp.eq.s32.totalorder %s81_s15, 0  ;;  %p84_p4 = scmp.eq.s32.totalorder %s83_s26, 0 }
 0x1b1   : > { %8324 = sst [smem:[#allocation81_spill]] %s8323_s21  ;;  %s7094_s3 = sand.u32 1, %s8311_s30  }
 0x1b2   : > { %s8325_s0 = sadd.s32 1, %s6426_s9  ;;  %s8437_s30 = smov (!%p84_p4, %s8311_s30), %s86_s18 }
 0x1b3   : > { %s7099_s23 = scalar_select %p110_p8, %s6426_s9, %s8325_s0  }
 0x1b4   : > { %8327 = sst [smem:[#allocation83_spill]] %s8437_s30  ;;  %s4354_s25 = sshll.u32 %s8310_s10, 1 }
 0x1b5   : > { %8326 = sst [smem:[#allocation82_spill]] %s7099_s23  ;;  %s4355_s12 = sshll.u32 %s6454_s29, 2 }
 0x1b6   : > { %s7106_s17 = sadd.s32 %s4355_s12, %s4354_s25  ;;  %p8328_p1 = scmp.lt.s32.totalorder %s6458_s2, 4 }
 0x1b7   : > { %s8209_s15 = sshll.u32 %s7094_s3, 3  ;;  %s8210_s26 = sshll.u32 %s7106_s17, 6 }
 0x1b8   : > { %p7112_p10 = pnand %p8328_p1, %p7068_p11  ;;  %s1076_s0 = scalar_lea.vmem [#allocation8], %s8209_s15 }
 0x1b9   : > { %s1085_s23 = sshll.u32 %s1076_s0, 4  ;;  %s8330_s30 = sld [smem:[#allocation88_spill]]  ;;  %s7127_s23 = int_to_ptr.vmem [resolvable:$true] %s1085_s23 }
 0x1ba   : > { %s8329_s19 = scalar_select %p7112_p10, 1, 0 }
 0x1bb   : > { %s8332_s12 = sand.u32 1, %s6458_s2   ;;  %p7137_p13 = pneg %p7112_p10 }
 0x1bc   : > { %s7131_s20 = scalar_lea.sflag [#allocation9], %s8332_s12 }
 0x1bd   : > { %8333 = sst [smem:[#allocation84_spill]] %s7131_s20 }
 0x1be   : > { %s8334_s0 = scalar_select %p7137_p13, 1, 0 }
 0x1bf   : > { %s8331_s21 = smov %s8330_s30  ;;  %s7125_s25 = scalar_lea.hbm %s8330_s30, %s8210_s26 }
 0x1c0   : > { %s5824_s9 = scalar_lea.hbm %s7125_s25, 128  ;;  %s5829_s10 = scalar_lea.hbm %s8331_s21, 512 }
 0x1c1   : > { %p5825_p11 = scmp.ne.s32.totalorder %s7125_s25, %s5824_s9  ;;  %p5830_p8 = scmp.lt.u32.totalorder %s7125_s25, %s8331_s21 }
 0x1c2   : > { %p5831_p4 = scmp.lt.u32.totalorder %s5829_s10, %s5824_s9  ;;  %p5833_p0 = scmp.lt.u32.totalorder %s5824_s9, %s7125_s25 }
 0x1c3   : > { %p5827_p2 = pnand %p7137_p13, %p5825_p11 }
 0x1c4   : > { %p5832_p1 = por %p5831_p4, %p5830_p8 }
 0x1c5   : > { %p5828_p3 = pneg %p5827_p2 }
 0x1c6   : > { %p5834_p5 = por %p5833_p0, %p5832_p1 }
 0x1c8   : > { %p5835_p9 = pnand %p5834_p5, %p5828_p3 }
 0x1ca   : > { %5838 = shalt.err (!%p5835_p9)
}
 0x1cb   : > { %s5839_s12 = scalar_lea.vmem %s7127_s23, 128  ;;  %s6476_s30 = smov [#allocation8]  }
 0x1cc   : > { %p5840_p11 = scmp.ne.s32.totalorder %s7127_s23, %s5839_s12  ;;  %s5844_s18 = sshll.u32 %s6476_s30, 4  ;;  %s5845_s18 = int_to_ptr.vmem [resolvable:$false] %s5844_s18 }
 0x1cd   : > { %s5846_s15 = scalar_lea.vmem %s5845_s18, 256  ;;  %p5847_p12 = scmp.lt.s32.totalorder %s7127_s23, %s5845_s18 }
 0x1ce   : > { %p5842_p2 = pnand %p5840_p11, %p7137_p13  ;;  %p5848_p7 = scmp.lt.s32.totalorder %s5846_s15, %s5839_s12 }
 0x1d0   : > { %p5843_p6 = pneg %p5842_p2  ;;  %p5849_p8 = por %p5848_p7, %p5847_p12 }
 0x1d2   : > { %p5850_p4 = pnand %p5849_p8, %p5843_p6 }
 0x1d4   : > { %5853 = shalt.err (!%p5850_p4)
}
 0x1d5   : > { %5055 = dma.hbm_to_vmem [thread:$0]  (!%p7112_p10), %s7125_s25, 128, %s7127_s23, %s7131_s20, %s8292_s11, %s8292_s11, %s8291_s24  }
 0x1d6   : > { %s8335_s9 = sshll.u32 %s7106_s17, 6  ;;  %s8336_s30 = sld [smem:[#allocation89_spill]] }
 0x1d7   : > { %s8338_s15 = sshll.u32 %s7094_s3, 3  ;;  %s6477_s14 = smov [#allocation13]  }
 0x1d8   : > { %s1099_s21 = scalar_lea.vmem [#allocation10], %s8338_s15  ;;  %s762_s6 = sshll.u32 %s6477_s14, 4  ;;  %s763_s6 = int_to_ptr.vmem [resolvable:$true] %s762_s6 }
 0x1d9   : > { %s1108_s2 = sshll.u32 %s1099_s21, 4  ;;  %s8339_s4 = sld [smem:[#allocation91_spill]]  ;;  %s7173_s2 = int_to_ptr.vmem [resolvable:$true] %s1108_s2 }
 0x1da   : > { %p8340_p12 = scmp.ne.s32.totalorder %s8288_s1, 0 }
 0x1dc   : > { %s8337_s18 = smov %s8336_s30  ;;  %s7169_s12 = scalar_lea.hbm %s8336_s30, %s8335_s9 }
 0x1df   : > { %s5854_s13 = scalar_lea.hbm %s8339_s4, 16 }
 0x1e0   : > { %p5855_p7 = scmp.ne.s32.totalorder %s8339_s4, %s5854_s13  ;;  %p5861_p9 = scmp.lt.u32.totalorder %s5854_s13, %s8339_s4 }
 0x1e2   : > { %p5857_p0 = pnand %p5855_p7, %p8340_p12 }
 0x1e4   : > { %p5858_p6 = pneg %p5857_p0 }
 0x1e6   : > { %p5863_p5 = pnand %p5861_p9, %p5858_p6 }
 0x1e8   : > { %5866 = shalt.err (!%p5863_p5)
}
 0x1e9   : > { %s5867_s21 = scalar_lea.vmem %s763_s6, 16  ;;  %s5874_s5 = scalar_lea.vmem %s763_s6, 32 }
 0x1ea   : > { %p5868_p3 = scmp.ne.s32.totalorder %s763_s6, %s5867_s21  ;;  %p5875_p2 = scmp.lt.s32.totalorder %s763_s6, %s763_s6 }
 0x1eb   : > { %p5876_p8 = scmp.lt.s32.totalorder %s5874_s5, %s5867_s21 }
 0x1ec   : > { %p5870_p1 = pnand %p5868_p3, %p8340_p12 }
 0x1ed   : > { %p5877_p4 = por %p5876_p8, %p5875_p2 }
 0x1ee   : > { %p5871_p11 = pneg %p5870_p1 }
 0x1f0   : > { %p5878_p10 = pnand %p5877_p4, %p5871_p11 }
 0x1f2   : > { %5881 = shalt.err (!%p5878_p10)
}
 0x1f3   : > { %p8341_p7 = scmp.ne.s32.totalorder %s8286_s27, 0  ;;  %s6478_s13 = smov [#allocation16]  }
 0x1f4   : > { %s786_s14 = sshll.u32 %s6478_s13, 4  ;;  %s6479_s26 = smov [#allocation19]   ;;  %s787_s14 = int_to_ptr.vmem [resolvable:$true] %s786_s14 }
 0x1f5   : > { %4982 = dma.hbm_to_vmem [thread:$0]  (!%p8341_p7), %s8339_s4, 16, %s763_s6, [#allocation12]  }
 0x1f6   : > { %s810_s10 = sshll.u32 %s6479_s26, 4  ;;  %s8342_s23 = sld [smem:[#allocation93_spill]]  ;;  %s811_s10 = int_to_ptr.vmem [resolvable:$true] %s810_s10 }
 0x1fc   : > { %s5882_s25 = scalar_lea.hbm %s8342_s23, 32 }
 0x1fd   : > { %p5883_p10 = scmp.ne.s32.totalorder %s8342_s23, %s5882_s25  ;;  %p5889_p9 = scmp.lt.u32.totalorder %s5882_s25, %s8342_s23 }
 0x1ff   : > { %p5885_p0 = pnand %p5883_p10, %p8340_p12 }
 0x201   : > { %p5886_p6 = pneg %p5885_p0 }
 0x203   : > { %p5891_p5 = pnand %p5889_p9, %p5886_p6 }
 0x205   : > { %5894 = shalt.err (!%p5891_p5)
}
 0x206   : > { %s5895_s6 = scalar_lea.vmem %s787_s14, 32  ;;  %p5903_p2 = scmp.lt.s32.totalorder %s787_s14, %s787_s14 }
 0x207   : > { %p5896_p3 = scmp.ne.s32.totalorder %s787_s14, %s5895_s6  ;;  %p5904_p8 = scmp.lt.s32.totalorder %s5895_s6, %s5895_s6 }
 0x209   : > { %p5898_p1 = pnand %p5896_p3, %p8340_p12  ;;  %p5905_p4 = por %p5904_p8, %p5903_p2 }
 0x20b   : > { %p5899_p11 = pneg %p5898_p1 }
 0x20d   : > { %p5906_p13 = pnand %p5905_p4, %p5899_p11 }
 0x20f   : > { %5909 = shalt.err (!%p5906_p13)
}
 0x210   : > { %4988 = dma.hbm_to_vmem [thread:$0]  (!%p8341_p7), %s8342_s23, 32, %s787_s14, [#allocation15]  }
 0x211   : > { %s8343_s15 = sld [smem:[#allocation95_spill]] }
 0x217   : > { %s5910_s25 = scalar_lea.hbm %s8343_s15, 16 }
 0x218   : > { %p5911_p10 = scmp.ne.s32.totalorder %s8343_s15, %s5910_s25  ;;  %p5917_p13 = scmp.lt.u32.totalorder %s5910_s25, %s8343_s15 }
 0x21a   : > { %p5913_p0 = pnand %p5911_p10, %p8340_p12 }
 0x21c   : > { %p5914_p6 = pneg %p5913_p0 }
 0x21e   : > { %p5919_p9 = pnand %p5917_p13, %p5914_p6 }
 0x220   : > { %5922 = shalt.err (!%p5919_p9)
}
 0x221   : > { %s5923_s6 = scalar_lea.vmem %s811_s10, 16  ;;  %s5930_s14 = scalar_lea.vmem %s811_s10, 32 }
 0x222   : > { %p5924_p5 = scmp.ne.s32.totalorder %s811_s10, %s5923_s6  ;;  %p5931_p11 = scmp.lt.s32.totalorder %s811_s10, %s811_s10 }
 0x223   : > { %p5932_p2 = scmp.lt.s32.totalorder %s5930_s14, %s5923_s6 }
 0x224   : > { %p5926_p3 = pnand %p5924_p5, %p8340_p12 }
 0x225   : > { %p5933_p8 = por %p5932_p2, %p5931_p11 }
 0x226   : > { %p5927_p1 = pneg %p5926_p3 }
 0x228   : > { %p5934_p4 = pnand %p5933_p8, %p5927_p1 }
 0x22a   : > { %5937 = shalt.err (!%p5934_p4)
}
 0x22b   : > { %4994 = dma.hbm_to_vmem [thread:$0]  (!%p8341_p7), %s8343_s15, 16, %s811_s10, [#allocation18]  }
 0x22c   : > { %s6480_s26 = smov [#allocation22]   ;;  %s6481_s25 = smov [#allocation25]  }
 0x22d   : > { %s832_s30 = sshll.u32 %s6480_s26, 4  ;;  %s856_s9 = sshll.u32 %s6481_s25, 4  ;;  %s833_s30 = int_to_ptr.vmem [resolvable:$true] %s832_s30  ;;  %s857_s9 = int_to_ptr.vmem [resolvable:$true] %s856_s9 }
 0x22e   : > { %s8344_s7 = sld [smem:[#allocation97_spill]] }
 0x234   : > { %s5938_s4 = scalar_lea.hbm %s8344_s7, 16 }
 0x235   : > { %p5939_p10 = scmp.ne.s32.totalorder %s8344_s7, %s5938_s4  ;;  %p5945_p13 = scmp.lt.u32.totalorder %s5938_s4, %s8344_s7 }
 0x237   : > { %p5941_p0 = pnand %p5939_p10, %p8340_p12 }
 0x239   : > { %p5942_p6 = pneg %p5941_p0 }
 0x23b   : > { %p5947_p9 = pnand %p5945_p13, %p5942_p6 }
 0x23d   : > { %5950 = shalt.err (!%p5947_p9)
}
 0x23e   : > { %s5951_s10 = scalar_lea.vmem %s833_s30, 16  ;;  %s5958_s13 = scalar_lea.vmem %s833_s30, 32 }
 0x23f   : > { %p5952_p5 = scmp.ne.s32.totalorder %s833_s30, %s5951_s10  ;;  %p5959_p11 = scmp.lt.s32.totalorder %s833_s30, %s833_s30 }
 0x240   : > { %p5960_p2 = scmp.lt.s32.totalorder %s5958_s13, %s5951_s10 }
 0x241   : > { %p5954_p3 = pnand %p5952_p5, %p8340_p12 }
 0x242   : > { %p5961_p8 = por %p5960_p2, %p5959_p11 }
 0x243   : > { %p5955_p1 = pneg %p5954_p3 }
 0x245   : > { %p5962_p4 = pnand %p5961_p8, %p5955_p1 }
 0x247   : > { %5965 = shalt.err (!%p5962_p4)
}
 0x248   : > { %5000 = dma.hbm_to_vmem [thread:$0]  (!%p8341_p7), %s8344_s7, 16, %s833_s30, [#allocation21]  }
 0x249   : > { %s8345_s21 = sld [smem:[#allocation99_spill]] }
 0x24f   : > { %s5966_s5 = scalar_lea.hbm %s8345_s21, 16 }
 0x250   : > { %p5967_p10 = scmp.ne.s32.totalorder %s8345_s21, %s5966_s5  ;;  %p5973_p13 = scmp.lt.u32.totalorder %s5966_s5, %s8345_s21 }
 0x252   : > { %p5969_p0 = pnand %p5967_p10, %p8340_p12 }
 0x254   : > { %p5970_p6 = pneg %p5969_p0 }
 0x256   : > { %p5975_p9 = pnand %p5973_p13, %p5970_p6 }
 0x258   : > { %5978 = shalt.err (!%p5975_p9)
}
 0x259   : > { %s5979_s13 = scalar_lea.vmem %s857_s9, 16  ;;  %s5986_s30 = scalar_lea.vmem %s857_s9, 32 }
 0x25a   : > { %p5980_p5 = scmp.ne.s32.totalorder %s857_s9, %s5979_s13  ;;  %p5987_p11 = scmp.lt.s32.totalorder %s857_s9, %s857_s9 }
 0x25b   : > { %p5988_p2 = scmp.lt.s32.totalorder %s5986_s30, %s5979_s13 }
 0x25c   : > { %p5982_p3 = pnand %p5980_p5, %p8340_p12 }
 0x25d   : > { %p5989_p8 = por %p5988_p2, %p5987_p11 }
 0x25e   : > { %p5983_p1 = pneg %p5982_p3 }
 0x260   : > { %p5990_p4 = pnand %p5989_p8, %p5983_p1 }
 0x262   : > { %5993 = shalt.err (!%p5990_p4)
}
 0x263   : > { %5006 = dma.hbm_to_vmem [thread:$0]  (!%p8341_p7), %s8345_s21, 16, %s857_s9, [#allocation24]  }
 0x264   : > { %s6482_s4 = smov [#allocation28]   ;;  %s6483_s5 = smov [#allocation31]  }
 0x265   : > { %s880_s23 = sshll.u32 %s6482_s4, 4  ;;  %s904_s6 = sshll.u32 %s6483_s5, 4  ;;  %s881_s23 = int_to_ptr.vmem [resolvable:$true] %s880_s23  ;;  %s905_s6 = int_to_ptr.vmem [resolvable:$true] %s904_s6 }
 0x266   : > { %s8346_s10 = sld [smem:[#allocation101_spill]] }
 0x26c   : > { %s8347_s7 = smov %s8346_s10  ;;  %s5994_s15 = scalar_lea.hbm %s8346_s10, 32 }
 0x26d   : > { %p5995_p10 = scmp.ne.s32.totalorder %s8347_s7, %s5994_s15  ;;  %p6001_p13 = scmp.lt.u32.totalorder %s5994_s15, %s8347_s7 }
 0x26f   : > { %p5997_p0 = pnand %p5995_p10, %p8340_p12 }
 0x271   : > { %p5998_p6 = pneg %p5997_p0 }
 0x273   : > { %p6003_p9 = pnand %p6001_p13, %p5998_p6 }
 0x275   : > { %6006 = shalt.err (!%p6003_p9)
}
 0x276   : > { %s6007_s9 = scalar_lea.vmem %s881_s23, 32  ;;  %p6015_p11 = scmp.lt.s32.totalorder %s881_s23, %s881_s23 }
 0x277   : > { %p6008_p5 = scmp.ne.s32.totalorder %s881_s23, %s6007_s9  ;;  %p6016_p2 = scmp.lt.s32.totalorder %s6007_s9, %s6007_s9 }
 0x279   : > { %p6010_p3 = pnand %p6008_p5, %p8340_p12  ;;  %p6017_p8 = por %p6016_p2, %p6015_p11 }
 0x27b   : > { %p6011_p1 = pneg %p6010_p3 }
 0x27d   : > { %p6018_p4 = pnand %p6017_p8, %p6011_p1 }
 0x27f   : > { %6021 = shalt.err (!%p6018_p4)
}
 0x280   : > { %5012 = dma.hbm_to_vmem [thread:$0]  (!%p8341_p7), %s8347_s7, 32, %s881_s23, [#allocation27]  }
 0x281   : > { %s8348_s5 = sld [smem:[#allocation103_spill]] }
 0x287   : > { %s8349_s14 = smov %s8348_s5  ;;  %s6022_s8 = scalar_lea.hbm %s8348_s5, 16 }
 0x288   : > { %p6023_p10 = scmp.ne.s32.totalorder %s8349_s14, %s6022_s8  ;;  %p6029_p13 = scmp.lt.u32.totalorder %s6022_s8, %s8349_s14 }
 0x28a   : > { %p6025_p0 = pnand %p6023_p10, %p8340_p12 }
 0x28c   : > { %p6026_p6 = pneg %p6025_p0 }
 0x28e   : > { %p6031_p9 = pnand %p6029_p13, %p6026_p6 }
 0x290   : > { %6034 = shalt.err (!%p6031_p9)
}
 0x291   : > { %s6035_s9 = scalar_lea.vmem %s905_s6, 16  ;;  %s6042_s23 = scalar_lea.vmem %s905_s6, 32 }
 0x292   : > { %p6036_p5 = scmp.ne.s32.totalorder %s905_s6, %s6035_s9  ;;  %p6043_p11 = scmp.lt.s32.totalorder %s905_s6, %s905_s6 }
 0x293   : > { %p6044_p2 = scmp.lt.s32.totalorder %s6042_s23, %s6035_s9 }
 0x294   : > { %p6038_p3 = pnand %p6036_p5, %p8340_p12 }
 0x295   : > { %p6045_p8 = por %p6044_p2, %p6043_p11 }
 0x296   : > { %p6039_p1 = pneg %p6038_p3 }
 0x298   : > { %p6046_p4 = pnand %p6045_p8, %p6039_p1 }
 0x29a   : > { %6049 = shalt.err (!%p6046_p4)
}
 0x29b   : > { %5018 = dma.hbm_to_vmem [thread:$0]  (!%p8341_p7), %s8349_s14, 16, %s905_s6, [#allocation30]  }
 0x29c   : > { %s6484_s20 = smov [#allocation34]   ;;  %s6485_s5 = smov [#allocation37]  }
 0x29d   : > { %s926_s15 = sshll.u32 %s6484_s20, 4  ;;  %s950_s8 = sshll.u32 %s6485_s5, 4  ;;  %s927_s15 = int_to_ptr.vmem [resolvable:$true] %s926_s15  ;;  %s951_s8 = int_to_ptr.vmem [resolvable:$true] %s950_s8 }
 0x29e   : > { %s8350_s30 = sld [smem:[#allocation105_spill]] }
 0x2a4   : > { %s8351_s26 = smov %s8350_s30  ;;  %s6050_s7 = scalar_lea.hbm %s8350_s30, 16 }
 0x2a5   : > { %p6051_p10 = scmp.ne.s32.totalorder %s8351_s26, %s6050_s7  ;;  %p6057_p13 = scmp.lt.u32.totalorder %s6050_s7, %s8351_s26 }
 0x2a7   : > { %p6053_p0 = pnand %p6051_p10, %p8340_p12 }
 0x2a9   : > { %p6054_p6 = pneg %p6053_p0 }
 0x2ab   : > { %p6059_p9 = pnand %p6057_p13, %p6054_p6 }
 0x2ad   : > { %6062 = shalt.err (!%p6059_p9)
}
 0x2ae   : > { %s6063_s6 = scalar_lea.vmem %s927_s15, 16  ;;  %s6070_s4 = scalar_lea.vmem %s927_s15, 32 }
 0x2af   : > { %p6064_p5 = scmp.ne.s32.totalorder %s927_s15, %s6063_s6  ;;  %p6071_p11 = scmp.lt.s32.totalorder %s927_s15, %s927_s15 }
 0x2b0   : > { %p6072_p2 = scmp.lt.s32.totalorder %s6070_s4, %s6063_s6 }
 0x2b1   : > { %p6066_p3 = pnand %p6064_p5, %p8340_p12 }
 0x2b2   : > { %p6073_p8 = por %p6072_p2, %p6071_p11 }
 0x2b3   : > { %p6067_p1 = pneg %p6066_p3 }
 0x2b5   : > { %p6074_p4 = pnand %p6073_p8, %p6067_p1 }
 0x2b7   : > { %6077 = shalt.err (!%p6074_p4)
}
 0x2b8   : > { %5024 = dma.hbm_to_vmem [thread:$0]  (!%p8341_p7), %s8351_s26, 16, %s927_s15, [#allocation33]  }
 0x2b9   : > { %s8352_s10 = sld [smem:[#allocation107_spill]] }
 0x2bf   : > { %s8353_s13 = smov %s8352_s10  ;;  %s6078_s30 = scalar_lea.hbm %s8352_s10, 32 }
 0x2c0   : > { %p6079_p10 = scmp.ne.s32.totalorder %s8353_s13, %s6078_s30  ;;  %p6085_p13 = scmp.lt.u32.totalorder %s6078_s30, %s8353_s13 }
 0x2c2   : > { %p6081_p0 = pnand %p6079_p10, %p8340_p12 }
 0x2c4   : > { %p6082_p6 = pneg %p6081_p0 }
 0x2c6   : > { %p6087_p9 = pnand %p6085_p13, %p6082_p6 }
 0x2c8   : > { %6090 = shalt.err (!%p6087_p9)
}
 0x2c9   : > { %s6091_s4 = scalar_lea.vmem %s951_s8, 32  ;;  %p6099_p11 = scmp.lt.s32.totalorder %s951_s8, %s951_s8 }
 0x2ca   : > { %p6092_p5 = scmp.ne.s32.totalorder %s951_s8, %s6091_s4  ;;  %p6100_p2 = scmp.lt.s32.totalorder %s6091_s4, %s6091_s4 }
 0x2cc   : > { %p6094_p3 = pnand %p6092_p5, %p8340_p12  ;;  %p6101_p8 = por %p6100_p2, %p6099_p11 }
 0x2ce   : > { %p6095_p1 = pneg %p6094_p3 }
 0x2d0   : > { %p6102_p4 = pnand %p6101_p8, %p6095_p1 }
 0x2d2   : > { %6105 = shalt.err (!%p6102_p4)
}
 0x2d3   : > { %5030 = dma.hbm_to_vmem [thread:$0]  (!%p8341_p7), %s8353_s13, 32, %s951_s8, [#allocation36]  }
 0x2d4   : > { %s6486_s5 = smov [#allocation40]   ;;  %s6487_s21 = smov [#allocation43]  }
 0x2d5   : > { %s974_s7 = sshll.u32 %s6486_s5, 4  ;;  %s996_s10 = sshll.u32 %s6487_s21, 4  ;;  %s975_s7 = int_to_ptr.vmem [resolvable:$true] %s974_s7  ;;  %s997_s10 = int_to_ptr.vmem [resolvable:$true] %s996_s10 }
 0x2d6   : > { %s8354_s23 = sld [smem:[#allocation109_spill]] }
 0x2dc   : > { %s6106_s25 = scalar_lea.hbm %s8354_s23, 16 }
 0x2dd   : > { %p6107_p10 = scmp.ne.s32.totalorder %s8354_s23, %s6106_s25  ;;  %p6113_p13 = scmp.lt.u32.totalorder %s6106_s25, %s8354_s23 }
 0x2df   : > { %p6109_p0 = pnand %p6107_p10, %p8340_p12 }
 0x2e1   : > { %p6110_p6 = pneg %p6109_p0 }
 0x2e3   : > { %p6115_p9 = pnand %p6113_p13, %p6110_p6 }
 0x2e5   : > { %6118 = shalt.err (!%p6115_p9)
}
 0x2e6   : > { %s6119_s8 = scalar_lea.vmem %s975_s7, 16  ;;  %s6126_s20 = scalar_lea.vmem %s975_s7, 32 }
 0x2e7   : > { %p6120_p5 = scmp.ne.s32.totalorder %s975_s7, %s6119_s8  ;;  %p6127_p11 = scmp.lt.s32.totalorder %s975_s7, %s975_s7 }
 0x2e8   : > { %p6128_p2 = scmp.lt.s32.totalorder %s6126_s20, %s6119_s8 }
 0x2e9   : > { %p6122_p3 = pnand %p6120_p5, %p8340_p12 }
 0x2ea   : > { %p6129_p8 = por %p6128_p2, %p6127_p11 }
 0x2eb   : > { %p6123_p1 = pneg %p6122_p3 }
 0x2ed   : > { %p6130_p4 = pnand %p6129_p8, %p6123_p1 }
 0x2ef   : > { %6133 = shalt.err (!%p6130_p4)
}
 0x2f0   : > { %5036 = dma.hbm_to_vmem [thread:$0]  (!%p8341_p7), %s8354_s23, 16, %s975_s7, [#allocation39]  }
 0x2f1   : > { %s8355_s9 = sld [smem:[#allocation111_spill]] }
 0x2f7   : > { %s8356_s25 = smov %s8355_s9  ;;  %s6134_s6 = scalar_lea.hbm %s8355_s9, 16 }
 0x2f8   : > { %p6135_p10 = scmp.ne.s32.totalorder %s8356_s25, %s6134_s6  ;;  %p6141_p13 = scmp.lt.u32.totalorder %s6134_s6, %s8356_s25 }
 0x2fa   : > { %p6137_p0 = pnand %p6135_p10, %p8340_p12 }
 0x2fc   : > { %p6138_p6 = pneg %p6137_p0 }
 0x2fe   : > { %p6143_p9 = pnand %p6141_p13, %p6138_p6 }
 0x300   : > { %6146 = shalt.err (!%p6143_p9)
}
 0x301   : > { %s6147_s5 = scalar_lea.vmem %s997_s10, 16  ;;  %s6154_s7 = scalar_lea.vmem %s997_s10, 32 }
 0x302   : > { %p6148_p5 = scmp.ne.s32.totalorder %s997_s10, %s6147_s5  ;;  %p6155_p11 = scmp.lt.s32.totalorder %s997_s10, %s997_s10 }
 0x303   : > { %p6156_p2 = scmp.lt.s32.totalorder %s6154_s7, %s6147_s5 }
 0x304   : > { %p6150_p3 = pnand %p6148_p5, %p8340_p12 }
 0x305   : > { %p6157_p8 = por %p6156_p2, %p6155_p11 }
 0x306   : > { %p6151_p1 = pneg %p6150_p3 }
 0x308   : > { %p6158_p4 = pnand %p6157_p8, %p6151_p1 }
 0x30a   : > { %6161 = shalt.err (!%p6158_p4)
}
 0x30b   : > { %5042 = dma.hbm_to_vmem [thread:$0]  (!%p8341_p7), %s8356_s25, 16, %s997_s10, [#allocation42]  }
 0x30c   : > { %s4353_s1 = sshll.u32 %s7094_s3, 4  ;;  %s4356_s30 = sshll.u32 %s7106_s17, 7 }
 0x30d   : > { %s8357_s4 = sld [smem:[#allocation85_spill]]  ;;  %s1011_s27 = scalar_lea.vmem [#allocation2], %s4353_s1 }
 0x30e   : > { %s1020_s8 = sshll.u32 %s1011_s27, 4  ;;  %s4551_s20 = sshll.u32 %s6454_s29, 10  ;;  %s7381_s8 = int_to_ptr.vmem [resolvable:$true] %s1020_s8 }
 0x30f   : > { %s8358_s21 = sld [smem:[#allocation87_spill]]  ;;  %s1008_s17 = scalar_lea.sflag [#allocation3], %s7094_s3 }
 0x310   : > { %p8359_p7 = scmp.ne.s32.totalorder %s8334_s0, 0 }
 0x313   : > { %s7378_s15 = scalar_lea.hbm %s8357_s4, %s4356_s30  ;;  %s6167_s6 = scalar_lea.hbm %s8357_s4, 1024 }
 0x314   : > { %s6162_s14 = scalar_lea.hbm %s7378_s15, 256  ;;  %p6168_p6 = scmp.lt.u32.totalorder %s7378_s15, %s8357_s4 }
 0x315   : > { %s7386_s10 = scalar_lea.hbm %s8358_s21, %s4551_s20  ;;  %p6163_p12 = scmp.ne.s32.totalorder %s7378_s15, %s6162_s14 }
 0x316   : > { %p6169_p13 = scmp.lt.u32.totalorder %s6167_s6, %s6162_s14  ;;  %p6171_p5 = scmp.lt.u32.totalorder %s6162_s14, %s7378_s15 }
 0x317   : > { %p6165_p10 = pnand %p6163_p12, %p8359_p7 }
 0x318   : > { %p6170_p9 = por %p6169_p13, %p6168_p6 }
 0x319   : > { %p6166_p0 = pneg %p6165_p10 }
 0x31a   : > { %p6172_p3 = por %p6171_p5, %p6170_p9 }
 0x31c   : > { %p6173_p1 = pnand %p6172_p3, %p6166_p0 }
 0x31e   : > { %6176 = shalt.err (!%p6173_p1)
}
 0x31f   : > { %s6177_s20 = scalar_lea.vmem %s7381_s8, 256  ;;  %s6488_s5 = smov [#allocation2]  }
 0x320   : > { %p6178_p11 = scmp.ne.s32.totalorder %s7381_s8, %s6177_s20  ;;  %s6182_s7 = sshll.u32 %s6488_s5, 4  ;;  %s6183_s7 = int_to_ptr.vmem [resolvable:$false] %s6182_s7 }
 0x321   : > { %s6184_s30 = scalar_lea.vmem %s6183_s7, 512  ;;  %p6185_p4 = scmp.lt.s32.totalorder %s7381_s8, %s6183_s7 }
 0x322   : > { %p6180_p2 = pnand %p6178_p11, %p8359_p7  ;;  %p6186_p12 = scmp.lt.s32.totalorder %s6184_s30, %s6177_s20 }
 0x324   : > { %p6181_p8 = pneg %p6180_p2  ;;  %p6187_p10 = por %p6186_p12, %p6185_p4 }
 0x326   : > { %p6188_p6 = pnand %p6187_p10, %p6181_p8 }
 0x328   : > { %6191 = shalt.err (!%p6188_p6)
}
 0x329   : > { %p8360_p0 = scmp.ne.s32.totalorder %s8329_s19, 0  ;;  %s8361_s14 = sld [smem:[#allocation75_spill]] }
 0x32a   : > { %s6192_s9 = scalar_lea.hbm %s7386_s10, 1024  ;;  %s6197_s3 = scalar_lea.hbm %s8358_s21, 2048 }
 0x32b   : > { %5046 = dma.hbm_to_vmem [thread:$0]  (!%p8360_p0), %s7378_s15, 256, %s7381_s8, %s1008_s17, %s8297_s16, %s8297_s16, %s8296_s22  }
 0x32c   : > { %p6193_p13 = scmp.ne.s32.totalorder %s7386_s10, %s6192_s9  ;;  %p6198_p11 = scmp.lt.u32.totalorder %s7386_s10, %s8358_s21 }
 0x32d   : > { %p6199_p2 = scmp.lt.u32.totalorder %s6197_s3, %s6192_s9  ;;  %p6201_p4 = scmp.lt.u32.totalorder %s6192_s9, %s7386_s10 }
 0x32f   : > { %p8362_p9 = scmp.ne.s32.totalorder %s8361_s14, 0  ;;  %p6200_p8 = por %p6199_p2, %p6198_p11 }
 0x331   : > { %p8363_p5 = pneg %p8362_p9  ;;  %p6202_p12 = por %p6201_p4, %p6200_p8 }
 0x333   : > { %p6195_p3 = pnand %p6193_p13, %p8363_p5 }
 0x335   : > { %p6196_p1 = pneg %p6195_p3 }
 0x337   : > { %p6203_p10 = pnand %p6202_p12, %p6196_p1 }
 0x339   : > { %6206 = shalt.err (!%p6203_p10)
}
 0x33a   : > { %s6207_s22 = scalar_lea.vmem %s7416_s28, 1024  ;;  %p8364_p13 = pmov %p8363_p5 }
 0x33b   : > { %p6208_p6 = scmp.ne.s32.totalorder %s7416_s28, %s6207_s22  ;;  %s6489_s16 = smov [#allocation7]  }
 0x33c   : > { %s6212_s15 = sshll.u32 %s6489_s16, 4  ;;  %s6213_s15 = int_to_ptr.vmem [resolvable:$false] %s6212_s15 }
 0x33d   : > { %p6210_p5 = pnand %p6208_p6, %p8364_p13  ;;  %s6214_s8 = scalar_lea.vmem %s6213_s15, 2048 }
 0x33e   : > { %p6215_p0 = scmp.lt.s32.totalorder %s7416_s28, %s6213_s15  ;;  %p6216_p11 = scmp.lt.s32.totalorder %s6214_s8, %s6207_s22 }
 0x33f   : > { %p6211_p3 = pneg %p6210_p5 }
 0x340   : > { %p6217_p2 = por %p6216_p11, %p6215_p0 }
 0x342   : > { %p6218_p8 = pnand %p6217_p2, %p6211_p3 }
 0x344   : > { %6221 = shalt.err (!%p6218_p8)
}
 0x345   : > { %s6490_s17 = smov 256   ;;  %s8365_s5 = sld [smem:[#allocation76_spill]] }
 0x346   : > { %s6491_s7 = smov 16   ;;  %s6222_s30 = scalar_lea.hbm %s7169_s12, 128 }
 0x347   : > { %p6223_p1 = scmp.ne.s32.totalorder %s7169_s12, %s6222_s30  ;;  %s6227_s1 = scalar_lea.hbm %s8337_s18, 512 }
 0x348   : > { %p6228_p12 = scmp.lt.u32.totalorder %s7169_s12, %s8337_s18  ;;  %p6229_p10 = scmp.lt.u32.totalorder %s6227_s1, %s6222_s30 }
 0x349   : > { %p6225_p4 = pnand %p6223_p1, %p8359_p7  ;;  %p6231_p13 = scmp.lt.u32.totalorder %s6222_s30, %s7169_s12 }
 0x34a   : > { %p6230_p6 = por %p6229_p10, %p6228_p12 }
 0x34b   : > { %5052 = dma.hbm_to_vmem [thread:$0]  (!%p8362_p9), %s7386_s10, 1024, %s7416_s28, %s8365_s5, %s6490_s17, %s6490_s17, %s6491_s7  }
 0x34c   : > { %p6226_p0 = pneg %p6225_p4  ;;  %p6232_p5 = por %p6231_p13, %p6230_p6 }
 0x34e   : > { %p6233_p3 = pnand %p6232_p5, %p6226_p0 }
 0x350   : > { %6236 = shalt.err (!%p6233_p3)
}
 0x351   : > { %s6237_s28 = scalar_lea.vmem %s7173_s2, 128  ;;  %s6492_s10 = smov [#allocation10]  }
 0x352   : > { %p6238_p9 = scmp.ne.s32.totalorder %s7173_s2, %s6237_s28  ;;  %s6242_s14 = sshll.u32 %s6492_s10, 4  ;;  %s6243_s14 = int_to_ptr.vmem [resolvable:$false] %s6242_s14 }
 0x353   : > { %s6244_s20 = scalar_lea.vmem %s6243_s14, 256  ;;  %p6245_p8 = scmp.lt.s32.totalorder %s7173_s2, %s6243_s14 }
 0x354   : > { %p6240_p11 = pnand %p6238_p9, %p8359_p7  ;;  %p6246_p1 = scmp.lt.s32.totalorder %s6244_s20, %s6237_s28 }
 0x356   : > { %p6241_p2 = pneg %p6240_p11  ;;  %p6247_p4 = por %p6246_p1, %p6245_p8 }
 0x358   : > { %p6248_p12 = pnand %p6247_p4, %p6241_p2 }
 0x35a   : > { %6251 = shalt.err (!%p6248_p12)
}
 0x35b   : > { %p8366_p0 = scmp.ne.s32.totalorder %s8329_s19, 0  ;;  %s8367_s22 = sld [smem:[#allocation84_spill]] }
 0x35c   : > { %s8368_s0 = sld [smem:[#allocation73_spill]] }
 0x361   : > { %5058 = dma.hbm_to_vmem [thread:$0]  (!%p8366_p0), %s7169_s12, 128, %s7173_s2, %s8367_s22, %s8292_s11, %s8292_s11, %s8291_s24  }
 0x362   : > { %p8369_p7 = scmp.ne.s32.totalorder %s8368_s0, 0 }
 0x363   : > { %s8370_s16 = sld [smem:[#allocation66_spill]] (!%p8369_p7) }
 0x364   : > { %1120 = sbr.rel (%p8369_p7) target bundleno = 7806 (0x1e7e), region = 128  ;;  %s8371_s15 = sld [smem:[#allocation79_spill]] (!%p8369_p7) }
 0x369   : > { %s7470_s8 = sand.u32 (!%p8369_p7), 1, %s8370_s16  }
 0x36a   : > { %s7473_s17 = sshll.u32 (!%p8369_p7), %s7470_s8, 4  ;;  %s1123_s19 = scalar_lea.sflag (!%p8369_p7), [#allocation3], %s7470_s8 }
 0x36b   : > { %s1126_s5 = scalar_lea.vmem [#allocation2], %s7473_s17  ;;  %p8372_p10 = scmp.ne.s32.totalorder %s8371_s15, 0 }
 0x36d   : > { %6353 = dma.done.wait (%p8372_p10), %s1123_s19, 256  }
 0x36e   : > { %6355 = vsyncadd (%p8372_p10), %s1123_s19, 4294967040  ;;  %s8373_s2 = sld [smem:[#allocation72_spill]]  ;;  %s8374_s24 = sld [smem:[#allocation63_spill]] }
 0x36f   : > { %s8375_s11 = sld [smem:[#allocation74_spill]] }
 0x374   : > { %s1131_s12 = sand.u32 1, %s8373_s2   ;;  %s1133_s7 = sand.u32 1, %s8374_s24  }
 0x375   : > { %s4373_s30 = sshll.u32 %s1133_s7, 5  ;;  %s1132_s9 = scalar_lea.sflag [#allocation6], %s1131_s12 }
 0x376   : > { %s7483_s6 = scalar_lea.vmem [#allocation5], %s4373_s30  ;;  %p8376_p6 = scmp.ne.s32.totalorder %s8375_s11, 0 }
 0x378   : > { %6357 = dma.done.wait (%p8376_p6), %s1132_s9, 1536  }
 0x379   : > { %6359 = vsyncadd (%p8376_p6), %s1132_s9, 4294965760  ;;  %s4374_s1 = sshll.u32 %s1133_s7, 6  ;;  %s4375_s3 = sshll.u32 %s7470_s8, 3 }
 0x37a   : > { %s7490_s27 = scalar_lea.vmem [#allocation7], %s4374_s1  ;;  %s1150_s28 = scalar_lea.sflag [#allocation9], %s1131_s12 }
 0x37b   : > { %s7492_s10 = scalar_lea.vmem [#allocation8], %s4375_s3 }
 0x37c   : > { %6361 = dma.done.wait (%p8372_p10), %s1150_s28, 256  }
 0x37d   : > { %6363 = vsyncadd (%p8372_p10), %s1150_s28, 4294967040  ;;  %s7498_s14 = scalar_lea.vmem [#allocation10], %s4375_s3  ;;  %p8377_p13 = scmp.eq.s32.totalorder %s8373_s2, 0 }
 0x37f   : > { %6365 = dma.done.wait (%p8377_p13), [#allocation12], 1040   ;;  %p8378_p5 = pmov %p8377_p13 }
 0x381   : > { %6367 = vsyncadd (%p8378_p5), [#allocation12], 4294966256  ;;  %p8379_p3 = pmov %p8378_p5 }
 0x383   : > { %6369 = dma.done.wait (%p8379_p3), [#allocation15], 2080   ;;  %p8380_p9 = pmov %p8379_p3 }
 0x384   : > { %p8381_p11 = pmov %p8379_p3 }
 0x385   : > { %6371 = vsyncadd (%p8380_p9), [#allocation15], 4294965216 }
 0x386   : > { %6373 = dma.done.wait (%p8381_p11), [#allocation18], 1040   ;;  %p8382_p2 = pmov %p8379_p3 }
 0x388   : > { %6375 = vsyncadd (%p8382_p2), [#allocation18], 4294966256  ;;  %p8383_p8 = pmov %p8382_p2 }
 0x389   : > { %p8384_p1 = pmov %p8382_p2 }
 0x38a   : > { %6377 = dma.done.wait (%p8383_p8), [#allocation21], 32  }
 0x38b   : > { %6379 = vsyncadd (%p8384_p1), [#allocation21], 4294967264  ;;  %p8385_p4 = pmov %p8384_p1 }
 0x38c   : > { %p8386_p12 = pmov %p8384_p1 }
 0x38d   : > { %6381 = dma.done.wait (%p8385_p4), [#allocation24], 1040  }
 0x38e   : > { %6383 = vsyncadd (%p8386_p12), [#allocation24], 4294966256  ;;  %p8387_p0 = pmov %p8384_p1 }
 0x390   : > { %6385 = dma.done.wait (%p8387_p0), [#allocation27], 4128   ;;  %p8388_p7 = pmov %p8387_p0 }
 0x391   : > { %p8389_p10 = pmov %p8387_p0 }
 0x392   : > { %6387 = vsyncadd (%p8388_p7), [#allocation27], 4294963168 }
 0x393   : > { %6389 = dma.done.wait (%p8389_p10), [#allocation30], 1040   ;;  %p8390_p6 = pmov %p8387_p0 }
 0x394   : > { %p8391_p13 = pmov %p8387_p0 }
 0x395   : > { %6391 = vsyncadd (%p8390_p6), [#allocation30], 4294966256 }
 0x396   : > { %6393 = dma.done.wait (%p8391_p13), [#allocation33], 32   ;;  %p8392_p5 = pmov %p8387_p0 }
 0x397   : > { %p8393_p3 = pmov %p8387_p0 }
 0x398   : > { %6395 = vsyncadd (%p8392_p5), [#allocation33], 4294967264 }
 0x399   : > { %6397 = dma.done.wait (%p8393_p3), [#allocation36], 2080   ;;  %p8394_p9 = pmov %p8387_p0 }
 0x39a   : > { %p8395_p11 = pmov %p8387_p0 }
 0x39b   : > { %6399 = vsyncadd (%p8394_p9), [#allocation36], 4294965216 }
 0x39c   : > { %6401 = dma.done.wait (%p8395_p11), [#allocation39], 2064   ;;  %p8396_p2 = pmov %p8387_p0 }
 0x39d   : > { %p8397_p8 = pmov %p8387_p0 }
 0x39e   : > { %6403 = vsyncadd (%p8396_p2), [#allocation39], 4294965232 }
 0x39f   : > { %6405 = dma.done.wait (%p8397_p8), [#allocation42], 32   ;;  %p8398_p1 = pmov %p8387_p0 }
 0x3a0   : > { %v6493_v0 = vmov 0.0   ;;  %v6494_v1 = vmov 0   ;;  %vm6495_vm0 = vmmov 0   ;;  %v5266_v2 = vld [vmem:[#allocation14 + $0x4] ss:$8 sps:$4 sm:$0xff]   ;;  %v5287_v14 = vld [vmem:[#allocation11 + $0x18] sm:$0xff]   ;;  %v1509_v35 = vlaneseq }
 0x3a1   : > { %6407 = vsyncadd (%p8398_p1), [#allocation42], 4294967264  ;;  %4666 = vmatprep.subr.bf16.mxu0 %v6493_v0  ;;  %1631 = vmatprep.mubr.bf16.mxu1 %v6494_v1  ;;  %v5268_v3 = vld [vmem:[#allocation14] ss:$8 sps:$4 sm:$0xff]   ;;  %v5269_v4 = vld [vmem:[#allocation14 + $0x14] ss:$8 sps:$4 sm:$0xff]  }
 0x3a2   : > { %4682 = vmatprep.mubr.msk.bf16.mxu0 %vm6495_vm0, %v6493_v0  ;;  %1599 = vmatprep.subr.bf16.mxu1 %v5266_v2  ;;  %v5271_v5 = vld [vmem:[#allocation14 + $0x10] ss:$8 sps:$4 sm:$0xff]   ;;  %v5272_v6 = vld [vmem:[#allocation14 + $0x24] ss:$8 sps:$4 sm:$0xff]   ;;  %v5274_v8 = vld [vmem:[#allocation14 + $0x20] ss:$8 sps:$4 sm:$0xff]  }
 0x3a3   : > { %1600 = vmatpush1.bf16.msra.mxu1 %v5268_v3  ;;  %v5275_v7 = vld [vmem:[#allocation11] sm:$0xff]   ;;  %v5279_v9 = vld [vmem:[#allocation11 + $0x8] sm:$0xff]   ;;  %v5283_v11 = vld [vmem:[#allocation11 + $0x10] sm:$0xff]   ;;  %v1510_v36 = vshrl.u32 %v1509_v35, 7  ;;  %vm1661_vm1 = vcmask 261120   ;;  %s6496_s20 = smov 96  }
 0x3a4   : > { %1601 = vmatprep.subr.bf16.mxu1 %v5269_v4  ;;  %4667 = vmatpush3.bf16.msra.mxu0 %v5275_v7  ;;  %v5276_v10 = vld [vmem:[#allocation14 + $0x34] ss:$8 sps:$4 sm:$0xff]   ;;  %v5278_v12 = vld [vmem:[#allocation14 + $0x30] ss:$8 sps:$4 sm:$0xff]   ;;  %v5280_v13 = vld [vmem:[#allocation14 + $0x44] ss:$8 sps:$4 sm:$0xff]  }
 0x3a5   : > { %4668 = vmatprep.subr.bf16.mxu0 %v6493_v0  ;;  %v5282_v15 = vld [vmem:[#allocation14 + $0x40] ss:$8 sps:$4 sm:$0xff]   ;;  %v5284_v16 = vld [vmem:[#allocation14 + $0x54] ss:$8 sps:$4 sm:$0xff]   ;;  %v5286_v18 = vld [vmem:[#allocation14 + $0x50] ss:$8 sps:$4 sm:$0xff]  }
 0x3a6   : > { %v5291_v17 = vld [vmem:[#allocation11 + $0x20] sm:$0xff]   ;;  %v5295_v20 = vld [vmem:[#allocation11 + $0x28] sm:$0xff]   ;;  %v5296_v23 = vld [vmem:[#allocation11 + $0x30] sm:$0xff]   ;;  %v7576_v37 = vsub.s32 0, %v1510_v36  ;;  %v7578_v39 = vsub.s32 1, %v1510_v36  ;;  %s6497_s22 = smov 64  }
 0x3a7   : > { %1602 = vmatpush1.bf16.msra.mxu1 %v5271_v5  ;;  %v5288_v19 = vld [vmem:[#allocation14 + $0x64] ss:$8 sps:$4 sm:$0xff]   ;;  %v5290_v21 = vld [vmem:[#allocation14 + $0x60] ss:$8 sps:$4 sm:$0xff]   ;;  %v5292_v22 = vld [vmem:[#allocation14 + $0x74] ss:$8 sps:$4 sm:$0xff]  }
 0x3a8   : > { %1603 = vmatprep.subr.bf16.mxu1 %v5272_v6  ;;  %4669 = vmatpush3.bf16.msra.mxu0 %v5279_v9  ;;  %v5294_v24 = vld [vmem:[#allocation14 + $0x70] ss:$8 sps:$4 sm:$0xff]   ;;  %v1356_v25 = vld [vmem:[%s7483_s6] sm:$0xff]  ;;  %v1357_v26 = vld [vmem:[%s7483_s6 + $0x8] sm:$0xff]  ;;  %s6498_s0 = smov 32   ;;  %vm2205_vm4 = vcmask 523264  }
 0x3a9   : > { %4670 = vmatprep.subr.bf16.mxu0 %v6493_v0  ;;  %v5297_v27 = vld [vmem:[#allocation11 + $0x38] sm:$0xff]   ;;  %v7558_v28 = vld [vmem:[%s1126_s5] sm:$0xff]  ;;  %v1489_v30 = vpack.c.bf16 %v1357_v26, %v1356_v25  ;;  %vm2208_vm5 = vcmask 785408   ;;  %s8407_s16 = sld [smem:[#allocation68_spill]]  ;;  %s8408_s15 = sld [smem:[#allocation69_spill]] }
 0x3aa   : > { %v7562_v29 = vld [vmem:[%s1126_s5 + $0x8] sm:$0xff]  ;;  %v1358_v31 = vld [vmem:[%s7483_s6 + $0x10] sm:$0xff]  ;;  %v1507_v38 = vld [vmem:[#allocation16] sm:$0x3]  ;;  %s1347_s24 = scalar_lea.vmem [#allocation45], %s7473_s17  ;;  %s8409_s12 = sld [smem:[#allocation80_spill]] }
 0x3ab   : > { %1604 = vmatpush1.bf16.msra.mxu1 %v5274_v8  ;;  %v1359_v32 = vld [vmem:[%s7483_s6 + $0x18] sm:$0xff]  ;;  %v1376_v33 = vpack.c.bf16 %v7562_v29, %v7558_v28  ;;  %v1512_v40 = vrot.slane %v1507_v38, %v7576_v37  ;;  %v1516_v42 = vrot.slane %v1507_v38, %v7578_v39  ;;  %v4401_v44 = vld [vmem:[#allocation13] ss:$0 sm:$0xff]  ;;  %s3901_s11 = sshll.u32 %s1347_s24, 4  ;;  %s8410_s6 = sld [smem:[#allocation113_spill]]  ;;  %s8014_s11 = int_to_ptr.vmem [resolvable:$true] %s3901_s11 }
 0x3ac   : > { %1605 = vmatprep.subr.bf16.mxu1 %v5276_v10  ;;  %4671 = vmatpush3.bf16.msra.mxu0 %v5283_v11  ;;  %v1490_v34 = vpack.c.bf16 %v1359_v32, %v1358_v31  ;;  %s6252_s28 = scalar_lea.vmem %s8014_s11, 256 }
 0x3ad   : > { %4672 = vmatprep.subr.bf16.mxu0 %v6493_v0  ;;  %p6253_p4 = scmp.ne.s32.totalorder %s8014_s11, %s6252_s28 }
 0x3af   : > { %1606 = vmatpush1.bf16.msra.mxu1 %v5278_v12  ;;  %v4553_v12 = vld [vmem:[%s7492_s10] sm:$0xff]   ;;  %s4542_s19 = sshll.u32 %s8407_s16, 1  ;;  %s4543_s5 = sshll.u32 %s8408_s15, 2 }
 0x3b0   : > { %1607 = vmatprep.subr.bf16.mxu1 %v5280_v13  ;;  %4673 = vmatpush3.bf16.msra.mxu0 %v5287_v14  ;;  %v4554_v13 = vunpack.c.l.bf16 %v4553_v12  ;;  %v4555_v14 = vunpack.c.h.bf16 %v4553_v12  ;;  %s8005_s2 = sadd.s32 %s4543_s5, %s4542_s19  ;;  %p8412_p12 = scmp.ne.s32.totalorder %s8409_s12, 0 }
 0x3b1   : > { %4674 = vmatprep.subr.bf16.mxu0 %v6493_v0  ;;  %s4544_s7 = sshll.u32 %s8005_s2, 7  ;;  %s8411_s1 = smov %s8410_s6 }
 0x3b2   : > { %vm7607_vm2 = vcmp.gt.f32.partialorder %v4554_v13, 0.5  ;;  %vm7611_vm3 = vcmp.gt.f32.partialorder %v4555_v14, 0.5  ;;  %s8023_s3 = scalar_lea.hbm %s8410_s6, %s4544_s7  ;;  %p6254_p0 = pnand %p6253_p4, %p8412_p12 }
 0x3b3   : > { %1608 = vmatpush1.bf16.msra.mxu1 %v5282_v15  ;;  %s6499_s10 = smov [#allocation45]  }
 0x3b4   : > { %1609 = vmatprep.subr.bf16.mxu1 %v5284_v16  ;;  %4675 = vmatpush3.bf16.msra.mxu0 %v5291_v17  ;;  %p6255_p7 = pneg %p6254_p0 }
 0x3b5   : > { %4676 = vmatprep.subr.bf16.mxu0 %v6493_v0 }
 0x3b7   : > { %1610 = vmatpush1.bf16.msra.mxu1 %v5286_v18 }
 0x3b8   : > { %1611 = vmatprep.subr.bf16.mxu1 %v5288_v19  ;;  %4677 = vmatpush3.bf16.msra.mxu0 %v5295_v20 }
 0x3b9   : > { %4678 = vmatprep.subr.bf16.mxu0 %v6493_v0 }
 0x3bb   : > { %1612 = vmatpush1.bf16.msra.mxu1 %v5290_v21 }
 0x3bc   : > { %1613 = vmatprep.subr.bf16.mxu1 %v5292_v22  ;;  %4679 = vmatpush3.bf16.msra.mxu0 %v5296_v23 }
 0x3bd   : > { %4680 = vmatprep.subr.bf16.mxu0 %v6493_v0 }
 0x3bf   : > { %1614 = vmatpush1.bf16.msra.mxu1 %v5294_v24 }
 0x3c0   : > { %4710 = vmatprep.subr.bf16.mxu1 %v6493_v0  ;;  %4681 = vmatpush3.bf16.msra.mxu0 %v5297_v27 }
 0x3c1   : > { %4686 = vmatprep.subr.bf16.mxu0 %v6493_v0 }
 0x3c2   : > { %1632 = vmatmul.mubr.bf16.vlgmr.msra.gmra.mrb[0].mxu1 %v1489_v30 }
 0x3c3   : > { %1641 = vmatprep.mubr.bf16.mxu1 %v6494_v1  ;;  %4683 = vmatmul.mubr.bf16.vlgmr.msra.gmra.mrb[0].mxu0 %v1376_v33 }
 0x3c4   : > { %4690 = vmatprep.mubr.msk.bf16.mxu0 %vm6495_vm0, %v6493_v0 }
 0x3ca   : > { %1642 = vmatmul.mubr.bf16.gmra.mrb[4].mxu1 %v1490_v34 }
 0x3cb   : > { %4714 = vmatprep.mubr.msk.bf16.mxu1 %vm6495_vm0, %v6493_v0 }
 0x495   : > { %v1633_v41 = vpop.f32.mrb[0].mxu1 }
 0x496   : > { %v1635_v43 = vpop.f32.mrb[1].mxu1  ;;  %v1634_v46 = vadd.f32 %v1633_v41, %v1512_v40  ;;  %v1482_v49 = vpop.f32.mrb[0].mxu0 }
 0x497   : > { %v1637_v45 = vpop.f32.mrb[2].mxu1  ;;  %v1636_v50 = vadd.f32 %v1635_v43, %v1516_v42  ;;  %v1483_v52 = vadd.f32 %v4401_v44, %v1482_v49  ;;  %v4684_v53 = vpop.f32.mrb[1].mxu0 }
 0x498   : > { %v1638_v47 = vadd.f32 %v1637_v45, %v1512_v40  ;;  %v1639_v48 = vpop.f32.mrb[3].mxu1  ;;  %v1485_v55 = vpop.f32.mrb[2].mxu0 }
 0x499   : > { %v1640_v51 = vadd.f32 %v1639_v48, %v1516_v42  ;;  %v1654_v57 = vmul.f32 0.17677669, %v1483_v52  ;;  %v1486_v58 = vadd.f32 %v4401_v44, %v1485_v55  ;;  %v4685_v59 = vpop.f32.mrb[3].mxu0 }
 0x49a   : > { %v7582_v54 = vpack.c.bf16 %v1638_v47, %v1634_v46 }
 0x49b   : > { %v7584_v56 = vpack.c.bf16 %v1640_v51, %v1636_v50  ;;  %v1655_v62 = vmul.f32 0.17677669, %v1486_v58 }
 0x49c   : > { %v1666_v60 = vsel %vm1661_vm1, %v7582_v54, 0 }
 0x49d   : > { %v1643_v61 = vpop.f32.mrb[4].mxu1  ;;  %4687 = vmatpush3.bf16.xpose.msra.mxu0 %v1666_v60  ;;  %v7589_v3 = vpack.c.bf16 %v1655_v62, %v1654_v57 }
 0x49e   : > { %v1645_v63 = vpop.f32.mrb[5].mxu1  ;;  %4688 = vmatprep.subr.bf16.mxu0 %v6493_v0  ;;  %v1644_v4 = vadd.f32 %v1643_v61, %v1512_v40 }
 0x49f   : > { %v1647_v2 = vpop.f32.mrb[6].mxu1  ;;  %v1646_v7 = vadd.f32 %v1645_v63, %v1516_v42 }
 0x4a0   : > { %v1648_v5 = vadd.f32 %v1647_v2, %v1512_v40  ;;  %v1649_v6 = vpop.f32.mrb[7].mxu1 }
 0x4a1   : > { %v1650_v8 = vadd.f32 %v1649_v6, %v1516_v42 }
 0x4a2   : > { %v7591_v9 = vpack.c.bf16 %v1648_v5, %v1644_v4 }
 0x4a3   : > { %v7593_v10 = vpack.c.bf16 %v1650_v8, %v1646_v7 }
 0x4a4   : > { %v1669_v11 = vsel %vm1661_vm1, %v7591_v9, 0 }
 0x4a5   : > { %4689 = vmatpush3.bf16.xpose.msra.mxu0 %v1669_v11 }
 0x4a6   : > { %4694 = vmatprep.subr.bf16.mxu0 %v6493_v0 }
 0x4ac   : > { %4691 = vmatmul.mubr.msk.bf16.vlgmr.msra.gmra.mrb[4].mxu0 %vm1661_vm1, %v7589_v3 }
 0x4ad   : > { %4695 = vmatpush3.bf16.msra.mxu0 %v7584_v56  ;;  %4698 = vmatprep.mubr.msk.bf16.mxu0 %vm6495_vm0, %v6493_v0 }
 0x4ae   : > { %4696 = vmatprep.subr.bf16.mxu0 %v6493_v0 }
 0x4b1   : > { %4697 = vmatpush3.bf16.msra.mxu0 %v7593_v10 }
 0x4b2   : > { %4702 = vmatprep.subr.bf16.mxu0 %v6493_v0 }
 0x57f   : > { %v1705_v16 = vpop.f32.mrb[4].mxu0 }
 0x580   : > { %v1712_v18 = vsel %vm7607_vm2, %v1705_v16, -10000.0  ;;  %v4692_v19 = vpop.f32.mrb[5].mxu0 }
 0x581   : > { %v1708_v20 = vpop.f32.mrb[6].mxu0  ;;  %v1714_v21 = vsel %vm1661_vm1, %v1712_v18, -inf }
 0x582   : > { %v1713_v22 = vsel %vm7611_vm3, %v1708_v20, -10000.0  ;;  %1715 = vmax.xlane.f32.xlu0 %v1714_v21  ;;  %v4693_v23 = vpop.f32.mrb[7].mxu0 }
 0x583   : > { %v1717_v24 = vsel %vm1661_vm1, %v1713_v22, -inf }
 0x586   : > { %1718 = vmax.xlane.f32.xlu0 %v1717_v24 }
 0x59c   : > { %1786 = vrot.lane.b32.xlu0 %v7582_v54, %s6496_s20 }
 0x60f   : > { %v1716_v25 = vpop.xlane.xlu0 %1715 }
 0x610   : > { %v1720_v26 = vsub.f32 %v1712_v18, %v1716_v25 }
 0x612   : > { %v1722_v27 = vmul.f32 1.442695, %v1720_v26 }
 0x613   : > { %v1719_v30 = vpop.xlane.xlu0 %1718 }
 0x614   : > { %5410 = vpow2.f32 %v1722_v27  ;;  %v1721_v31 = vsub.f32 %v1713_v22, %v1719_v30 }
 0x616   : > { %v1724_v32 = vmul.f32 1.442695, %v1721_v31 }
 0x617   : > { %v1787_v45 = vpop.permute.xlu0 %1786 }
 0x618   : > { %5412 = vpow2.f32 %v1724_v32  ;;  %v1794_v47 = vsel %vm1661_vm1, %v1787_v45, 0 }
 0x61e   : > { %v5411_v33 = vpop.eup %5410 }
 0x61f   : > { %v1726_v34 = vsel %vm1661_vm1, %v5411_v33, 0.0 }
 0x620   : > { %1727 = vadd.xlane.f32.xlu1 %v1726_v34 }
 0x622   : > { %v5413_v35 = vpop.eup %5412 }
 0x623   : > { %v1729_v36 = vsel %vm1661_vm1, %v5413_v35, 0.0 }
 0x624   : > { %1730 = vadd.xlane.f32.xlu1 %v1729_v36 }
 0x635   : > { %1788 = vrot.lane.b32.xlu1 %v7591_v9, %s6496_s20 }
 0x639   : > { %1782 = vrot.lane.b32.xlu1 %v7589_v3, %s6496_s20 }
 0x6ad   : > { %v1728_v38 = vpop.xlane.xlu1 %1727 }
 0x6ae   : > { %5414 = vrcp.f32 %v1728_v38 }
 0x6b1   : > { %v1731_v40 = vpop.xlane.xlu1 %1730 }
 0x6b2   : > { %5416 = vrcp.f32 %v1731_v40 }
 0x6b5   : > { %v1789_v48 = vpop.permute.xlu1 %1788 }
 0x6b6   : > { %v1797_v49 = vsel %vm1661_vm1, %v1789_v48, 0 }
 0x6b8   : > { %v5415_v41 = vpop.eup %5414 }
 0x6b9   : > { %v1734_v43 = vmul.f32 %v5415_v41, %v5411_v33  ;;  %v1783_v50 = vpop.permute.xlu1 %1782 }
 0x6bc   : > { %v5417_v42 = vpop.eup %5416 }
 0x6bd   : > { %v1735_v44 = vmul.f32 %v5417_v42, %v5413_v35 }
 0x6bf   : > { %v1736_v46 = vpack.c.bf16 %v1735_v44, %v1734_v43 }
 0x6c1   : > { %4699 = vmatmul.mubr.msk.bf16.vlgmr.msra.gmra.mrb[8].mxu0 %vm1661_vm1, %v1736_v46 }
 0x6c2   : > { %4703 = vmatpush3.bf16.xpose.msra.mxu0 %v1794_v47  ;;  %4706 = vmatprep.mubr.msk.bf16.mxu0 %vm6495_vm0, %v6493_v0 }
 0x6c3   : > { %4704 = vmatprep.subr.bf16.mxu0 %v6493_v0 }
 0x6ca   : > { %4705 = vmatpush3.bf16.xpose.msra.mxu0 %v1797_v49 }
 0x6cb   : > { %4726 = vmatprep.subr.bf16.mxu0 %v6493_v0 }
 0x6d1   : > { %4707 = vmatmul.mubr.msk.bf16.vlgmr.msra.gmra.mrb[12].mxu0 %vm1661_vm1, %v1783_v50 }
 0x6d2   : > { %4730 = vmatprep.mubr.msk.bf16.mxu0 %vm6495_vm0, %v6493_v0 }
 0x794   : > { %v7639_v51 = vpop.f32.mrb[8].mxu0 }
 0x795   : > { %v4700_v52 = vpop.f32.mrb[9].mxu0 }
 0x796   : > { %v7641_v53 = vpop.f32.mrb[10].mxu0 }
 0x797   : > { %v4701_v55 = vpop.f32.mrb[11].mxu0 }
 0x7a4   : > { %v1833_v57 = vpop.f32.mrb[12].mxu0 }
 0x7a5   : > { %v1840_v58 = vsel %vm7607_vm2, %v1833_v57, -10000.0  ;;  %v4708_v59 = vpop.f32.mrb[13].mxu0 }
 0x7a6   : > { %v1836_v60 = vpop.f32.mrb[14].mxu0  ;;  %v1842_v61 = vsel %vm1661_vm1, %v1840_v58, -inf }
 0x7a7   : > { %v1841_v62 = vsel %vm7611_vm3, %v1836_v60, -10000.0  ;;  %1843 = vmax.xlane.f32.xlu1 %v1842_v61  ;;  %v4709_v63 = vpop.f32.mrb[15].mxu0 }
 0x7a8   : > { %v1845_v2 = vsel %vm1661_vm1, %v1841_v62, -inf }
 0x7a9   : > { %1846 = vmax.xlane.f32.xlu0 %v1845_v2 }
 0x7b8   : > { %1867 = vrot.lane.b32.xlu1 %v7584_v56, %s6496_s20 }
 0x7bc   : > { %1919 = vrot.lane.b32.xlu1 %v7582_v54, %s6497_s22 }
 0x7c0   : > { %1921 = vrot.lane.b32.xlu1 %v7591_v9, %s6497_s22 }
 0x7c4   : > { %1917 = vrot.lane.b32.xlu1 %v7589_v3, %s6497_s22 }
 0x834   : > { %v1844_v4 = vpop.xlane.xlu1 %1843 }
 0x835   : > { %v1848_v5 = vsub.f32 %v1840_v58, %v1844_v4 }
 0x836   : > { %v1847_v6 = vpop.xlane.xlu0 %1846 }
 0x837   : > { %v1850_v7 = vmul.f32 1.442695, %v1848_v5  ;;  %v1849_v8 = vsub.f32 %v1841_v62, %v1847_v6 }
 0x838   : > { %v1868_v11 = vpop.permute.xlu1 %1867 }
 0x839   : > { %5418 = vpow2.f32 %v1850_v7  ;;  %v1852_v12 = vmul.f32 1.442695, %v1849_v8  ;;  %4711 = vmatpush3.bf16.msra.mxu1 %v1868_v11 }
 0x83a   : > { %4712 = vmatprep.subr.bf16.mxu1 %v6493_v0 }
 0x83b   : > { %5420 = vpow2.f32 %v1852_v12 }
 0x83c   : > { %v1920_v26 = vpop.permute.xlu1 %1919 }
 0x83d   : > { %v1927_v30 = vsel %vm1661_vm1, %v1920_v26, 0 }
 0x840   : > { %v1922_v31 = vpop.permute.xlu1 %1921 }
 0x841   : > { %v1930_v32 = vsel %vm1661_vm1, %v1922_v31, 0 }
 0x843   : > { %v5419_v13 = vpop.eup %5418 }
 0x844   : > { %v1854_v14 = vsel %vm1661_vm1, %v5419_v13, 0.0  ;;  %v1918_v33 = vpop.permute.xlu1 %1917 }
 0x845   : > { %v5421_v16 = vpop.eup %5420  ;;  %1855 = vadd.xlane.f32.xlu0 %v1854_v14 }
 0x846   : > { %v1857_v18 = vsel %vm1661_vm1, %v5421_v16, 0.0 }
 0x849   : > { %1858 = vadd.xlane.f32.xlu0 %v1857_v18 }
 0x85f   : > { %1869 = vrot.lane.b32.xlu0 %v7593_v10, %s6496_s20 }
 0x8d2   : > { %v1856_v19 = vpop.xlane.xlu0 %1855 }
 0x8d3   : > { %5422 = vrcp.f32 %v1856_v19 }
 0x8d6   : > { %v1859_v20 = vpop.xlane.xlu0 %1858 }
 0x8d7   : > { %5424 = vrcp.f32 %v1859_v20 }
 0x8da   : > { %v1870_v21 = vpop.permute.xlu0 %1869 }
 0x8db   : > { %4713 = vmatpush3.bf16.msra.mxu1 %v1870_v21 }
 0x8dc   : > { %4718 = vmatprep.subr.bf16.mxu1 %v6493_v0 }
 0x8dd   : > { %v5423_v22 = vpop.eup %5422 }
 0x8de   : > { %v1862_v24 = vmul.f32 %v5423_v22, %v5419_v13 }
 0x8e1   : > { %v5425_v23 = vpop.eup %5424 }
 0x8e2   : > { %v1863_v25 = vmul.f32 %v5425_v23, %v5421_v16 }
 0x8e4   : > { %v1864_v27 = vpack.c.bf16 %v1863_v25, %v1862_v24 }
 0x8e6   : > { %4715 = vmatmul.mubr.msk.bf16.vlgmr.msra.gmra.mrb[8].mxu1 %vm1661_vm1, %v1864_v27 }
 0x8e7   : > { %4719 = vmatpush3.bf16.xpose.msra.mxu1 %v1927_v30  ;;  %4722 = vmatprep.mubr.msk.bf16.mxu1 %vm6495_vm0, %v6493_v0 }
 0x8e8   : > { %4720 = vmatprep.subr.bf16.mxu1 %v6493_v0 }
 0x8ef   : > { %4721 = vmatpush3.bf16.xpose.msra.mxu1 %v1930_v32 }
 0x8f0   : > { %4742 = vmatprep.subr.bf16.mxu1 %v6493_v0 }
 0x8f6   : > { %4723 = vmatmul.mubr.msk.bf16.vlgmr.msra.gmra.mrb[12].mxu1 %vm1661_vm1, %v1918_v33 }
 0x8f7   : > { %4746 = vmatprep.mubr.msk.bf16.mxu1 %vm6495_vm0, %v6493_v0 }
 0x9b9   : > { %v7673_v34 = vpop.f32.mrb[8].mxu1 }
 0x9ba   : > { %v4716_v35 = vpop.f32.mrb[9].mxu1 }
 0x9bb   : > { %v7675_v36 = vpop.f32.mrb[10].mxu1 }
 0x9bc   : > { %v5236_v38 = vpack.i.bf16 %v7675_v36, %v7673_v34  ;;  %v4717_v40 = vpop.f32.mrb[11].mxu1 }
 0x9c9   : > { %v1966_v41 = vpop.f32.mrb[12].mxu1 }
 0x9ca   : > { %v1973_v42 = vsel %vm7607_vm2, %v1966_v41, -10000.0  ;;  %v4724_v43 = vpop.f32.mrb[13].mxu1 }
 0x9cb   : > { %v1969_v44 = vpop.f32.mrb[14].mxu1  ;;  %v1975_v45 = vsel %vm1661_vm1, %v1973_v42, -inf }
 0x9cc   : > { %v1974_v46 = vsel %vm7611_vm3, %v1969_v44, -10000.0  ;;  %1976 = vmax.xlane.f32.xlu0 %v1975_v45  ;;  %v4725_v47 = vpop.f32.mrb[15].mxu1 }
 0x9cd   : > { %v1978_v48 = vsel %vm1661_vm1, %v1974_v46, -inf }
 0x9ce   : > { %1979 = vmax.xlane.f32.xlu1 %v1978_v48 }
 0x9df   : > { %2000 = vrot.lane.b32.xlu1 %v7593_v10, %s6497_s22 }
 0x9e3   : > { %2050 = vrot.lane.b32.xlu1 %v7582_v54, %s6498_s0 }
 0x9e7   : > { %2052 = vrot.lane.b32.xlu1 %v7591_v9, %s6498_s0 }
 0xa59   : > { %v1977_v49 = vpop.xlane.xlu0 %1976 }
 0xa5a   : > { %v1981_v50 = vsub.f32 %v1973_v42, %v1977_v49 }
 0xa5b   : > { %v1980_v52 = vpop.xlane.xlu1 %1979 }
 0xa5c   : > { %v1983_v55 = vmul.f32 1.442695, %v1981_v50  ;;  %v1982_v57 = vsub.f32 %v1974_v46, %v1980_v52  ;;  %v5298_v50 = vld [vmem:[#allocation17] sm:$0xff]   ;;  %v5300_v52 = vld [vmem:[#allocation17 + $0x10] sm:$0xff]  }
 0xa5e   : > { %5426 = vpow2.f32 %v1983_v55  ;;  %v1985_v58 = vmul.f32 1.442695, %v1982_v57  ;;  %v5301_v55 = vld [vmem:[#allocation17 + $0x18] sm:$0xff]   ;;  %v5302_v57 = vld [vmem:[#allocation17 + $0x20] sm:$0xff]  }
 0xa5f   : > { %v2001_v2 = vpop.permute.xlu1 %2000 }
 0xa60   : > { %5428 = vpow2.f32 %v1985_v58  ;;  %v5303_v58 = vld [vmem:[#allocation17 + $0x28] sm:$0xff]  }
 0xa63   : > { %v2051_v8 = vpop.permute.xlu1 %2050 }
 0xa67   : > { %v2053_v12 = vpop.permute.xlu1 %2052 }
 0xa68   : > { %v5427_v59 = vpop.eup %5426  ;;  %v2061_v13 = vsel %vm1661_vm1, %v2053_v12, 0 }
 0xa69   : > { %v1987_v60 = vsel %vm1661_vm1, %v5427_v59, 0.0 }
 0xa6a   : > { %v5429_v61 = vpop.eup %5428  ;;  %1988 = vadd.xlane.f32.xlu0 %v1987_v60  ;;  %v5305_v60 = vld [vmem:[#allocation17 + $0x38] sm:$0xff]  }
 0xa6b   : > { %v1990_v62 = vsel %vm1661_vm1, %v5429_v61, 0.0 }
 0xa6e   : > { %1991 = vadd.xlane.f32.xlu0 %v1990_v62 }
 0xa84   : > { %1998 = vrot.lane.b32.xlu0 %v7584_v56, %s6497_s22 }
 0xa88   : > { %2048 = vrot.lane.b32.xlu0 %v7589_v3, %s6498_s0  ;;  %v2058_v3 = vsel %vm1661_vm1, %v2051_v8, 0 }
 0xaf7   : > { %v1989_v54 = vpop.xlane.xlu0 %1988 }
 0xaf8   : > { %5430 = vrcp.f32 %v1989_v54 }
 0xafb   : > { %v1992_v9 = vpop.xlane.xlu0 %1991 }
 0xafc   : > { %5432 = vrcp.f32 %v1992_v9 }
 0xaff   : > { %v1999_v63 = vpop.permute.xlu0 %1998 }
 0xb00   : > { %4727 = vmatpush3.bf16.msra.mxu0 %v1999_v63 }
 0xb01   : > { %4728 = vmatprep.subr.bf16.mxu0 %v6493_v0 }
 0xb02   : > { %v5431_v4 = vpop.eup %5430 }
 0xb03   : > { %v1995_v6 = vmul.f32 %v5431_v4, %v5427_v59  ;;  %v2049_v14 = vpop.permute.xlu0 %2048  ;;  %v5304_v59 = vld [vmem:[#allocation17 + $0x30] sm:$0xff]  }
 0xb04   : > { %4729 = vmatpush3.bf16.msra.mxu0 %v2001_v2 }
 0xb05   : > { %4734 = vmatprep.subr.bf16.mxu0 %v6493_v0 }
 0xb06   : > { %v5433_v5 = vpop.eup %5432 }
 0xb07   : > { %v1996_v7 = vmul.f32 %v5433_v5, %v5429_v61 }
 0xb09   : > { %v1997_v11 = vpack.c.bf16 %v1996_v7, %v1995_v6 }
 0xb0b   : > { %4731 = vmatmul.mubr.msk.bf16.vlgmr.msra.gmra.mrb[16].mxu0 %vm1661_vm1, %v1997_v11 }
 0xb0c   : > { %4738 = vmatprep.mubr.msk.bf16.mxu0 %vm6495_vm0, %v6493_v0 }
 0xb0d   : > { %4735 = vmatpush3.bf16.xpose.msra.mxu0 %v2058_v3 }
 0xb0e   : > { %4736 = vmatprep.subr.bf16.mxu0 %v6493_v0 }
 0xb15   : > { %4737 = vmatpush3.bf16.xpose.msra.mxu0 %v2061_v13 }
 0xb16   : > { %4770 = vmatprep.subr.bf16.mxu0 %v6493_v0 }
 0xb1c   : > { %4739 = vmatmul.mubr.msk.bf16.vlgmr.msra.gmra.mrb[20].mxu0 %vm1661_vm1, %v2049_v14 }
 0xb1d   : > { %4786 = vmatprep.mubr.msk.bf16.mxu0 %vm6495_vm0, %v6493_v0 }
 0xbde   : > { %v2041_v16 = vpop.f32.mrb[16].mxu0 }
 0xbdf   : > { %v4732_v18 = vpop.f32.mrb[17].mxu0 }
 0xbe0   : > { %v2044_v19 = vpop.f32.mrb[18].mxu0 }
 0xbe1   : > { %v5241_v20 = vpack.i.bf16 %v2044_v19, %v2041_v16  ;;  %v4733_v21 = vpop.f32.mrb[19].mxu0 }
 0xbef   : > { %v2097_v22 = vpop.f32.mrb[20].mxu0 }
 0xbf0   : > { %v2104_v23 = vsel %vm7607_vm2, %v2097_v22, -10000.0  ;;  %v4740_v24 = vpop.f32.mrb[21].mxu0  ;;  %v4434_v22 = vld [vmem:[#allocation19] ss:$0 sm:$0xff] }
 0xbf1   : > { %v2100_v25 = vpop.f32.mrb[22].mxu0  ;;  %v2106_v26 = vsel %vm1661_vm1, %v2104_v23, -inf }
 0xbf2   : > { %v2105_v27 = vsel %vm7611_vm3, %v2100_v25, -10000.0  ;;  %2107 = vmax.xlane.f32.xlu1 %v2106_v26  ;;  %v4741_v30 = vpop.f32.mrb[23].mxu0 }
 0xbf3   : > { %v2109_v31 = vsel %vm1661_vm1, %v2105_v27, -inf }
 0xbf4   : > { %2110 = vmax.xlane.f32.xlu0 %v2109_v31  ;;  %v5306_v31 = vld [vmem:[#allocation26] ss:$8 sps:$4 sm:$0xff]  }
 0xc03   : > { %2129 = vrot.lane.b32.xlu1 %v7584_v56, %s6498_s0 }
 0xc07   : > { %5237 = vrot.lane.b32.xlu1 %v5236_v38, %s6498_s0 }
 0xc0b   : > { %5242 = vrot.lane.b32.xlu1 %v5241_v20, %s6497_s22 }
 0xc7f   : > { %v2108_v15 = vpop.xlane.xlu1 %2107 }
 0xc80   : > { %v2112_v32 = vsub.f32 %v2104_v23, %v2108_v15  ;;  %v5308_v15 = vld [vmem:[#allocation26 + $0x4] ss:$8 sps:$4 sm:$0xff]  }
 0xc81   : > { %v2111_v33 = vpop.xlane.xlu0 %2110 }
 0xc82   : > { %v2114_v17 = vmul.f32 1.442695, %v2112_v32  ;;  %v2113_v35 = vsub.f32 %v2105_v27, %v2111_v33  ;;  %v5311_v32 = vld [vmem:[#allocation26 + $0x14] ss:$8 sps:$4 sm:$0xff]   ;;  %v5309_v33 = vld [vmem:[#allocation26 + $0x10] ss:$8 sps:$4 sm:$0xff]  }
 0xc83   : > { %v2130_v40 = vpop.permute.xlu1 %2129 }
 0xc84   : > { %5434 = vpow2.f32 %v2114_v17  ;;  %v2116_v41 = vmul.f32 1.442695, %v2113_v35  ;;  %4743 = vmatpush3.bf16.msra.mxu1 %v2130_v40  ;;  %v5314_v17 = vld [vmem:[#allocation26 + $0x24] ss:$8 sps:$4 sm:$0xff]   ;;  %v5312_v35 = vld [vmem:[#allocation26 + $0x20] ss:$8 sps:$4 sm:$0xff]  }
 0xc85   : > { %4744 = vmatprep.subr.bf16.mxu1 %v6493_v0  ;;  %v5345_v40 = vld [vmem:[#allocation23] sm:$0xff]  }
 0xc86   : > { %5436 = vpow2.f32 %v2116_v41  ;;  %4771 = vmatpush3.bf16.msra.mxu0 %v5345_v40  ;;  %v5315_v41 = vld [vmem:[#allocation26 + $0x30] ss:$8 sps:$4 sm:$0xff]  }
 0xc87   : > { %v5238_v2 = vpop.permute.xlu1 %5237  ;;  %4772 = vmatprep.subr.bf16.mxu0 %v6493_v0 }
 0xc88   : > { %v5240_v5 = vunpack.i.h.bf16 %v5238_v2  ;;  %v5239_v6 = vunpack.i.l.bf16 %v5238_v2 }
 0xc8a   : > { %v2204_v3 = vsel %vm1661_vm1, %v7641_v53, %v5240_v5  ;;  %v2203_v12 = vsel %vm1661_vm1, %v7639_v51, %v5239_v6  ;;  %v5349_v5 = vld [vmem:[#allocation23 + $0x8] sm:$0xff]  }
 0xc8b   : > { %v5243_v4 = vpop.permute.xlu1 %5242  ;;  %4773 = vmatpush3.bf16.msra.mxu0 %v5349_v5  ;;  %v5352_v6 = vld [vmem:[#allocation26 + $0xe4] ss:$8 sps:$4 sm:$0xff]  }
 0xc8c   : > { %v5245_v7 = vunpack.i.h.bf16 %v5243_v4  ;;  %v5244_v8 = vunpack.i.l.bf16 %v5243_v4  ;;  %4774 = vmatprep.subr.bf16.mxu0 %v6493_v0 }
 0xc8e   : > { %v5435_v56 = vpop.eup %5434  ;;  %v2206_v16 = vsel %vm2205_vm4, %v2203_v12, %v5244_v8  ;;  %v2207_v18 = vsel %vm2205_vm4, %v2204_v3, %v5245_v7  ;;  %v5350_v7 = vld [vmem:[#allocation26 + $0xe0] ss:$8 sps:$4 sm:$0xff]   ;;  %v5353_v8 = vld [vmem:[#allocation23 + $0x10] sm:$0xff]   ;;  %v5357_v12 = vld [vmem:[#allocation23 + $0x18] sm:$0xff]  }
 0xc8f   : > { %v2118_v42 = vsel %vm1661_vm1, %v5435_v56, 0.0  ;;  %4775 = vmatpush3.bf16.msra.mxu0 %v5353_v8  ;;  %v5354_v3 = vld [vmem:[#allocation26 + $0xf0] ss:$8 sps:$4 sm:$0xff]  }
 0xc90   : > { %v5437_v43 = vpop.eup %5436  ;;  %2119 = vadd.xlane.f32.xlu0 %v2118_v42  ;;  %v5323_v42 = vld [vmem:[#allocation26 + $0x54] ss:$8 sps:$4 sm:$0xff]   ;;  %4776 = vmatprep.subr.bf16.mxu0 %v6493_v0 }
 0xc91   : > { %v2121_v34 = vsel %vm1661_vm1, %v5437_v43, 0.0 }
 0xc93   : > { %4777 = vmatpush3.bf16.msra.mxu0 %v5357_v12 }
 0xc94   : > { %2122 = vadd.xlane.f32.xlu0 %v2121_v34  ;;  %v5326_v34 = vld [vmem:[#allocation26 + $0x64] ss:$8 sps:$4 sm:$0xff]   ;;  %4778 = vmatprep.subr.bf16.mxu0 %v6493_v0 }
 0xcaa   : > { %2131 = vrot.lane.b32.xlu0 %v7593_v10, %s6498_s0  ;;  %v5299_v10 = vld [vmem:[#allocation17 + $0x8] sm:$0xff]  }
 0xd1d   : > { %v2120_v36 = vpop.xlane.xlu0 %2119 }
 0xd1e   : > { %5438 = vrcp.f32 %v2120_v36  ;;  %v5324_v36 = vld [vmem:[#allocation26 + $0x60] ss:$8 sps:$4 sm:$0xff]  }
 0xd21   : > { %v2123_v38 = vpop.xlane.xlu0 %2122 }
 0xd22   : > { %5440 = vrcp.f32 %v2123_v38  ;;  %v5329_v38 = vld [vmem:[#allocation26 + $0x74] ss:$8 sps:$4 sm:$0xff]  }
 0xd25   : > { %v2132_v44 = vpop.permute.xlu0 %2131 }
 0xd26   : > { %4745 = vmatpush3.bf16.msra.mxu1 %v2132_v44  ;;  %v5327_v44 = vld [vmem:[#allocation26 + $0x70] ss:$8 sps:$4 sm:$0xff]  }
 0xd27   : > { %4750 = vmatprep.subr.bf16.mxu1 %v6493_v0 }
 0xd28   : > { %v5439_v45 = vpop.eup %5438 }
 0xd29   : > { %v2126_v47 = vmul.f32 %v5439_v45, %v5435_v56  ;;  %v5318_v56 = vld [vmem:[#allocation26 + $0x40] ss:$8 sps:$4 sm:$0xff]   ;;  %v5332_v45 = vld [vmem:[#allocation26 + $0x84] ss:$8 sps:$4 sm:$0xff]  }
 0xd2c   : > { %v5441_v46 = vpop.eup %5440 }
 0xd2d   : > { %v2127_v48 = vmul.f32 %v5441_v46, %v5437_v43  ;;  %v5321_v43 = vld [vmem:[#allocation26 + $0x50] ss:$8 sps:$4 sm:$0xff]   ;;  %v5330_v46 = vld [vmem:[#allocation26 + $0x80] ss:$8 sps:$4 sm:$0xff]  }
 0xd2f   : > { %v2128_v49 = vpack.c.bf16 %v2127_v48, %v2126_v47  ;;  %v5335_v47 = vld [vmem:[#allocation26 + $0x94] ss:$8 sps:$4 sm:$0xff]   ;;  %v5333_v48 = vld [vmem:[#allocation26 + $0x90] ss:$8 sps:$4 sm:$0xff]  }
 0xd31   : > { %4747 = vmatmul.mubr.msk.bf16.vlgmr.msra.gmra.mrb[16].mxu1 %vm1661_vm1, %v2128_v49  ;;  %v5338_v49 = vld [vmem:[#allocation26 + $0xa4] ss:$8 sps:$4 sm:$0xff]  }
 0xd32   : > { %4766 = vmatprep.mubr.msk.bf16.mxu1 %vm6495_vm0, %v6493_v0  ;;  %4751 = vmatpush3.bf16.msra.mxu1 %v5298_v50  ;;  %v5336_v50 = vld [vmem:[#allocation26 + $0xa0] ss:$8 sps:$4 sm:$0xff]  }
 0xd33   : > { %4752 = vmatprep.subr.bf16.mxu1 %v6493_v0 }
 0xd36   : > { %4753 = vmatpush3.bf16.msra.mxu1 %v5299_v10  ;;  %v5341_v10 = vld [vmem:[#allocation26 + $0xb4] ss:$8 sps:$4 sm:$0xff]  }
 0xd37   : > { %4754 = vmatprep.subr.bf16.mxu1 %v6493_v0 }
 0xd3a   : > { %4755 = vmatpush3.bf16.msra.mxu1 %v5300_v52  ;;  %v5339_v52 = vld [vmem:[#allocation26 + $0xb0] ss:$8 sps:$4 sm:$0xff]  }
 0xd3b   : > { %4756 = vmatprep.subr.bf16.mxu1 %v6493_v0 }
 0xd3e   : > { %4757 = vmatpush3.bf16.msra.mxu1 %v5301_v55  ;;  %v5344_v55 = vld [vmem:[#allocation26 + $0xc4] ss:$8 sps:$4 sm:$0xff]  }
 0xd3f   : > { %4758 = vmatprep.subr.bf16.mxu1 %v6493_v0 }
 0xd42   : > { %4759 = vmatpush3.bf16.msra.mxu1 %v5302_v57  ;;  %v5342_v57 = vld [vmem:[#allocation26 + $0xc0] ss:$8 sps:$4 sm:$0xff]  }
 0xd43   : > { %4760 = vmatprep.subr.bf16.mxu1 %v6493_v0 }
 0xd46   : > { %4761 = vmatpush3.bf16.msra.mxu1 %v5303_v58  ;;  %v5348_v58 = vld [vmem:[#allocation26 + $0xd4] ss:$8 sps:$4 sm:$0xff]  }
 0xd47   : > { %4762 = vmatprep.subr.bf16.mxu1 %v6493_v0 }
 0xd4a   : > { %4763 = vmatpush3.bf16.msra.mxu1 %v5304_v59  ;;  %v5346_v59 = vld [vmem:[#allocation26 + $0xd0] ss:$8 sps:$4 sm:$0xff]  }
 0xd4b   : > { %4764 = vmatprep.subr.bf16.mxu1 %v6493_v0 }
 0xd4e   : > { %4765 = vmatpush3.bf16.msra.mxu1 %v5305_v60 }
 0xd4f   : > { %2688 = vmatprep.subr.bf16.mxu1 %v5308_v15 }
 0xe04   : > { %v2172_v61 = vpop.f32.mrb[16].mxu1 }
 0xe05   : > { %v4748_v62 = vpop.f32.mrb[17].mxu1 }
 0xe06   : > { %v2175_v54 = vpop.f32.mrb[18].mxu1 }
 0xe07   : > { %v5246_v9 = vpack.i.bf16 %v2175_v54, %v2172_v61  ;;  %v4749_v63 = vpop.f32.mrb[19].mxu1 }
 0xe09   : > { %5247 = vrot.lane.b32.xlu1 %v5246_v9, %s6496_s20 }
 0xe7b   : > { %v5248_v11 = vpop.permute.xlu1 %5247 }
 0xe7c   : > { %v5250_v13 = vunpack.i.h.bf16 %v5248_v11  ;;  %v5249_v14 = vunpack.i.l.bf16 %v5248_v11  ;;  %v5356_v11 = vld [vmem:[#allocation26 + $0xf4] ss:$8 sps:$4 sm:$0xff]  }
 0xe7e   : > { %v2210_v19 = vsel %vm2208_vm5, %v2207_v18, %v5250_v13  ;;  %v2209_v20 = vsel %vm2208_vm5, %v2206_v16, %v5249_v14  ;;  %v1361_v13 = vld [vmem:[%s7490_s27 + $0x8] sm:$0xff]  ;;  %v1363_v14 = vld [vmem:[%s7490_s27 + $0x18] sm:$0xff]  ;;  %v1360_v18 = vld [vmem:[%s7490_s27] sm:$0xff] }
 0xe7f   : > { %v2211_v21 = vpack.c.bf16 %v2210_v19, %v2209_v20  ;;  %v2481_v16 = vpack.c.bf16 %v1363_v14, %v1361_v13  ;;  %v1362_v19 = vld [vmem:[%s7490_s27 + $0x10] sm:$0xff] }
 0xe80   : > { %v2480_v20 = vpack.c.bf16 %v1362_v19, %v1360_v18 }
 0xe81   : > { %4767 = vmatmul.mubr.bf16.vlgmr.msra.gmra.mrb[20].mxu1 %v2211_v21  ;;  %v5358_v21 = vld [vmem:[#allocation23 + $0x20] sm:$0xff]  }
 0xe82   : > { %2689 = vmatpush1.bf16.msra.mxu1 %v5306_v31  ;;  %2720 = vmatprep.mubr.bf16.mxu1 %v2481_v16 }
 0xe83   : > { %2690 = vmatprep.subr.bf16.mxu1 %v5311_v32  ;;  %4779 = vmatpush3.bf16.msra.mxu0 %v5358_v21 }
 0xe84   : > { %4780 = vmatprep.subr.bf16.mxu0 %v6493_v0 }
 0xe86   : > { %2691 = vmatpush1.bf16.msra.mxu1 %v5309_v33 }
 0xe87   : > { %2692 = vmatprep.subr.bf16.mxu1 %v5314_v17 }
 0xe8a   : > { %2693 = vmatpush1.bf16.msra.mxu1 %v5312_v35 }
 0xf54   : > { %v2317_v23 = vpop.f32.mrb[20].mxu1 }
 0xf55   : > { %v2318_v24 = vadd.f32 %v4434_v22, %v2317_v23  ;;  %v4768_v25 = vpop.f32.mrb[21].mxu1  ;;  %v1365_v23 = vld [vmem:[%s7490_s27 + $0x28] sm:$0xff] }
 0xf56   : > { %v2320_v53 = vpop.f32.mrb[22].mxu1 }
 0xf57   : > { %v2321_v26 = vadd.f32 %v4434_v22, %v2320_v53  ;;  %v4769_v27 = vpop.f32.mrb[23].mxu1  ;;  %v7748_v51 = vadd.f32 %v2318_v24, %v7558_v28  ;;  %v5317_v28 = vld [vmem:[#allocation26 + $0x34] ss:$8 sps:$4 sm:$0xff]   ;;  %v5359_v22 = vld [vmem:[#allocation23 + $0x28] sm:$0xff]  }
 0xf58   : > { %2694 = vmatprep.subr.bf16.mxu1 %v5317_v28  ;;  %v1367_v24 = vld [vmem:[%s7490_s27 + $0x38] sm:$0xff]  ;;  %v1364_v53 = vld [vmem:[%s7490_s27 + $0x20] sm:$0xff]  ;;  %4781 = vmatpush3.bf16.msra.mxu0 %v5359_v22 }
 0xf59   : > { %2326 = vadd.xlane.f32.xlu0 %v7748_v51  ;;  %v7752_v30 = vadd.f32 %v2321_v26, %v7562_v29  ;;  %v5320_v29 = vld [vmem:[#allocation26 + $0x44] ss:$8 sps:$4 sm:$0xff]   ;;  %2695 = vmatpush1.bf16.msra.mxu1 %v5315_v41  ;;  %v2483_v25 = vpack.c.bf16 %v1367_v24, %v1365_v23  ;;  %v4443_v41 = vld [vmem:[#allocation20] ss:$0 sm:$0xff] }
 0xf5a   : > { %2696 = vmatprep.subr.bf16.mxu1 %v5320_v29  ;;  %v1366_v26 = vld [vmem:[%s7490_s27 + $0x30] sm:$0xff]  ;;  %4782 = vmatprep.subr.bf16.mxu0 %v6493_v0  ;;  %s3868_s27 = scalar_lea.sflag [#allocation46], %s7470_s8 }
 0xf5b   : > { %2328 = vadd.xlane.f32.xlu1 %v7752_v30  ;;  %v2482_v27 = vpack.c.bf16 %v1366_v26, %v1364_v53  ;;  %v4557_v23 = vld [vmem:[%s7498_s14] sm:$0xff]   ;;  %s6256_s14 = sshll.u32 %s6499_s10, 4  ;;  %s6257_s14 = int_to_ptr.vmem [resolvable:$false] %s6256_s14 }
 0xf5c   : > { %v4558_v24 = vunpack.c.l.bf16 %v4557_v23  ;;  %p6259_p10 = scmp.lt.s32.totalorder %s8014_s11, %s6257_s14 }
 0xf5d   : > { %2697 = vmatpush1.bf16.msra.mxu1 %v5318_v56 }
 0xf5e   : > { %2698 = vmatprep.subr.bf16.mxu1 %v5323_v42  ;;  %vm7821_vm6 = vcmp.gt.f32.partialorder %v4558_v24, 0.5 }
 0xf61   : > { %2699 = vmatpush1.bf16.msra.mxu1 %v5321_v43  ;;  %v4444_v43 = vld [vmem:[#allocation22] ss:$0 sm:$0xff] }
 0xf62   : > { %2700 = vmatprep.subr.bf16.mxu1 %v5326_v34 }
 0xf65   : > { %2701 = vmatpush1.bf16.msra.mxu1 %v5324_v36 }
 0xf66   : > { %2702 = vmatprep.subr.bf16.mxu1 %v5329_v38 }
 0xf69   : > { %2703 = vmatpush1.bf16.msra.mxu1 %v5327_v44 }
 0xf6a   : > { %2704 = vmatprep.subr.bf16.mxu1 %v5332_v45  ;;  %v2516_v45 = vld [vmem:[#allocation28] sm:$0x3] }
 0xf6d   : > { %2705 = vmatpush1.bf16.msra.mxu1 %v5330_v46  ;;  %v2521_v46 = vrot.slane %v2516_v45, %v7576_v37 }
 0xf6e   : > { %2706 = vmatprep.subr.bf16.mxu1 %v5335_v47  ;;  %v2525_v47 = vrot.slane %v2516_v45, %v7578_v39 }
 0xf71   : > { %2707 = vmatpush1.bf16.msra.mxu1 %v5333_v48 }
 0xf72   : > { %2708 = vmatprep.subr.bf16.mxu1 %v5338_v49 }
 0xf75   : > { %2709 = vmatpush1.bf16.msra.mxu1 %v5336_v50 }
 0xf76   : > { %2710 = vmatprep.subr.bf16.mxu1 %v5341_v10 }
 0xf79   : > { %2711 = vmatpush1.bf16.msra.mxu1 %v5339_v52 }
 0xf7a   : > { %2712 = vmatprep.subr.bf16.mxu1 %v5344_v55 }
 0xf7d   : > { %2713 = vmatpush1.bf16.msra.mxu1 %v5342_v57 }
 0xf7e   : > { %2714 = vmatprep.subr.bf16.mxu1 %v5348_v58 }
 0xf81   : > { %2715 = vmatpush1.bf16.msra.mxu1 %v5346_v59 }
 0xf82   : > { %2716 = vmatprep.subr.bf16.mxu1 %v5352_v6 }
 0xf85   : > { %2717 = vmatpush1.bf16.msra.mxu1 %v5350_v7 }
 0xf86   : > { %2718 = vmatprep.subr.bf16.mxu1 %v5356_v11 }
 0xf89   : > { %2719 = vmatpush1.bf16.msra.mxu1 %v5354_v3  ;;  %v4445_v3 = vld [vmem:[#allocation25] ss:$0 sm:$0xff] }
 0xf8a   : > { %4838 = vmatprep.subr.bf16.mxu1 %v6493_v0 }
 0xf8c   : > { %2721 = vmatmul.mubr.bf16.vlgmr.msra.gmra.mrb[24].mxu1 %v2480_v20 }
 0xf8d   : > { %2730 = vmatprep.mubr.bf16.mxu1 %v2483_v25  ;;  %v4559_v25 = vunpack.c.h.bf16 %v4557_v23 }
 0xf8f   : > { %vm7825_vm7 = vcmp.gt.f32.partialorder %v4559_v25, 0.5 }
 0xf94   : > { %2731 = vmatmul.mubr.bf16.gmra.mrb[28].mxu1 %v2482_v27 }
 0xf95   : > { %4842 = vmatprep.mubr.msk.bf16.mxu1 %vm6495_vm0, %v6493_v0 }
 0xfe6   : > { %v2327_v60 = vpop.xlane.xlu0 %2326 }
 0xfe7   : > { %v2331_v61 = vmul.f32 0.0078125, %v2327_v60 }
 0xfe8   : > { %v2329_v62 = vpop.xlane.xlu1 %2328 }
 0xfe9   : > { %v7757_v54 = vsub.f32 %v7748_v51, %v2331_v61  ;;  %v2332_v9 = vmul.f32 0.0078125, %v2329_v62  ;;  %v5360_v51 = vld [vmem:[#allocation23 + $0x30] sm:$0xff]  }
 0xfea   : > { %4783 = vmatpush3.bf16.msra.mxu0 %v5360_v51 }
 0xfeb   : > { %v7760_v63 = vsub.f32 %v7752_v30, %v2332_v9  ;;  %v2335_v2 = vmul.f32 %v7757_v54, %v7757_v54  ;;  %v5361_v30 = vld [vmem:[#allocation23 + $0x38] sm:$0xff]   ;;  %4784 = vmatprep.subr.bf16.mxu0 %v6493_v0 }
 0xfed   : > { %2337 = vadd.xlane.f32.xlu0 %v2335_v2  ;;  %v2336_v4 = vmul.f32 %v7760_v63, %v7760_v63 }
 0xfee   : > { %4785 = vmatpush3.bf16.msra.mxu0 %v5361_v30 }
 0xfef   : > { %4790 = vmatprep.subr.bf16.mxu0 %v6493_v0 }
 0xff1   : > { %2339 = vadd.xlane.f32.xlu0 %v2336_v4 }
0x105f   : > { %v2722_v48 = vpop.f32.mrb[24].mxu1 }
0x1060   : > { %v2723_v49 = vadd.f32 %v2722_v48, %v2521_v46  ;;  %v2724_v50 = vpop.f32.mrb[25].mxu1 }
0x1061   : > { %v2725_v10 = vadd.f32 %v2724_v50, %v2525_v47  ;;  %v2726_v52 = vpop.f32.mrb[26].mxu1 }
0x1062   : > { %v2727_v55 = vadd.f32 %v2726_v52, %v2521_v46  ;;  %v2728_v57 = vpop.f32.mrb[27].mxu1 }
0x1063   : > { %v2729_v58 = vadd.f32 %v2728_v57, %v2525_v47 }
0x1064   : > { %v7796_v59 = vpack.c.bf16 %v2727_v55, %v2723_v49 }
0x1065   : > { %v7798_v60 = vpack.c.bf16 %v2729_v58, %v2725_v10 }
0x1066   : > { %v2754_v61 = vsel %vm1661_vm1, %v7796_v59, 0 }
0x1067   : > { %v2732_v62 = vpop.f32.mrb[28].mxu1 }
0x1068   : > { %v2734_v9 = vpop.f32.mrb[29].mxu1 }
0x1069   : > { %v2736_v2 = vpop.f32.mrb[30].mxu1 }
0x106a   : > { %v2737_v4 = vadd.f32 %v2736_v2, %v2521_v46  ;;  %v2738_v5 = vpop.f32.mrb[31].mxu1 }
0x106b   : > { %v2739_v6 = vadd.f32 %v2738_v5, %v2525_v47 }
0x107a   : > { %v2338_v31 = vpop.xlane.xlu0 %2337 }
0x107b   : > { %v2341_v15 = vmul.f32 0.0078125, %v2338_v31 }
0x107d   : > { %v2343_v32 = vadd.f32 1e-05, %v2341_v15 }
0x107e   : > { %v2340_v33 = vpop.xlane.xlu0 %2339 }
0x107f   : > { %5442 = vrsqrt.f32 %v2343_v32  ;;  %v2342_v17 = vmul.f32 0.0078125, %v2340_v33 }
0x1081   : > { %v2344_v35 = vadd.f32 1e-05, %v2342_v17 }
0x1083   : > { %5444 = vrsqrt.f32 %v2344_v35 }
0x1089   : > { %v5443_v28 = vpop.eup %5442 }
0x108a   : > { %v2347_v40 = vmul.f32 %v5443_v28, %v7757_v54  ;;  %v2733_v54 = vadd.f32 %v2732_v62, %v2521_v46 }
0x108c   : > { %v2356_v42 = vmul.f32 %v4443_v41, %v2347_v40  ;;  %v7803_v7 = vpack.c.bf16 %v2737_v4, %v2733_v54 }
0x108d   : > { %v5445_v29 = vpop.eup %5444 }
0x108e   : > { %v2348_v56 = vmul.f32 %v5445_v29, %v7760_v63  ;;  %v7786_v36 = vadd.f32 %v4444_v43, %v2356_v42  ;;  %v2735_v63 = vadd.f32 %v2734_v9, %v2525_v47  ;;  %v2757_v11 = vsel %vm1661_vm1, %v7803_v7, 0 }
0x1090   : > { %v2357_v34 = vmul.f32 %v4443_v41, %v2348_v56  ;;  %v7805_v8 = vpack.c.bf16 %v2739_v6, %v2735_v63 }
0x1092   : > { %v7788_v38 = vadd.f32 %v4444_v43, %v2357_v34 }
0x1094   : > { %v2367_v44 = vpack.c.bf16 %v7788_v38, %v7786_v36 }
0x1096   : > { %4787 = vmatmul.mubr.bf16.vlgmr.msra.gmra.mrb[24].mxu0 %v2367_v44 }
0x1097   : > { %4794 = vmatprep.mubr.msk.bf16.mxu0 %vm6495_vm0, %v6493_v0  ;;  %4791 = vmatpush3.bf16.xpose.msra.mxu0 %v2754_v61 }
0x1098   : > { %4792 = vmatprep.subr.bf16.mxu0 %v6493_v0 }
0x109f   : > { %4793 = vmatpush3.bf16.xpose.msra.mxu0 %v2757_v11 }
0x10a0   : > { %4798 = vmatprep.subr.bf16.mxu0 %v6493_v0 }
0x1169   : > { %v2473_v12 = vpop.f32.mrb[24].mxu0 }
0x116a   : > { %v2474_v13 = vadd.f32 %v4445_v3, %v2473_v12  ;;  %v4788_v14 = vpop.f32.mrb[25].mxu0 }
0x116b   : > { %v2476_v16 = vpop.f32.mrb[26].mxu0 }
0x116c   : > { %v2477_v18 = vadd.f32 %v4445_v3, %v2476_v16  ;;  %v4789_v19 = vpop.f32.mrb[27].mxu0  ;;  %v2743_v20 = vmul.f32 0.17677669, %v2474_v13 }
0x116e   : > { %v2744_v21 = vmul.f32 0.17677669, %v2477_v18 }
0x1170   : > { %v7810_v22 = vpack.c.bf16 %v2744_v21, %v2743_v20 }
0x1172   : > { %4795 = vmatmul.mubr.msk.bf16.vlgmr.msra.gmra.mrb[28].mxu0 %vm1661_vm1, %v7810_v22 }
0x1173   : > { %4799 = vmatpush3.bf16.msra.mxu0 %v7798_v60  ;;  %4802 = vmatprep.mubr.msk.bf16.mxu0 %vm6495_vm0, %v6493_v0 }
0x1174   : > { %4800 = vmatprep.subr.bf16.mxu0 %v6493_v0 }
0x1177   : > { %4801 = vmatpush3.bf16.msra.mxu0 %v7805_v8 }
0x1178   : > { %4806 = vmatprep.subr.bf16.mxu0 %v6493_v0 }
0x1245   : > { %v2793_v26 = vpop.f32.mrb[28].mxu0 }
0x1246   : > { %v2800_v51 = vsel %vm7821_vm6, %v2793_v26, -10000.0  ;;  %v4796_v30 = vpop.f32.mrb[29].mxu0 }
0x1247   : > { %v2796_v31 = vpop.f32.mrb[30].mxu0  ;;  %v2802_v15 = vsel %vm1661_vm1, %v2800_v51, -inf }
0x1248   : > { %v2801_v32 = vsel %vm7825_vm7, %v2796_v31, -10000.0  ;;  %2803 = vmax.xlane.f32.xlu0 %v2802_v15  ;;  %v4797_v33 = vpop.f32.mrb[31].mxu0 }
0x1249   : > { %v2805_v17 = vsel %vm1661_vm1, %v2801_v32, -inf }
0x124a   : > { %2806 = vmax.xlane.f32.xlu1 %v2805_v17 }
0x12d5   : > { %v2804_v35 = vpop.xlane.xlu0 %2803 }
0x12d6   : > { %v2808_v28 = vsub.f32 %v2800_v51, %v2804_v35 }
0x12d7   : > { %v2807_v40 = vpop.xlane.xlu1 %2806 }
0x12d8   : > { %v2810_v41 = vmul.f32 1.442695, %v2808_v28  ;;  %v2809_v29 = vsub.f32 %v2801_v32, %v2807_v40 }
0x12da   : > { %5446 = vpow2.f32 %v2810_v41  ;;  %v2812_v56 = vmul.f32 1.442695, %v2809_v29 }
0x12dc   : > { %5448 = vpow2.f32 %v2812_v56 }
0x12e4   : > { %v5447_v42 = vpop.eup %5446 }
0x12e5   : > { %v2814_v43 = vsel %vm1661_vm1, %v5447_v42, 0.0 }
0x12e6   : > { %v5449_v34 = vpop.eup %5448  ;;  %2815 = vadd.xlane.f32.xlu0 %v2814_v43 }
0x12e7   : > { %v2817_v44 = vsel %vm1661_vm1, %v5449_v34, 0.0 }
0x12e8   : > { %2818 = vadd.xlane.f32.xlu1 %v2817_v44 }
0x12f9   : > { %2876 = vrot.lane.b32.xlu1 %v7803_v7, %s6496_s20 }
0x12fc   : > { %2874 = vrot.lane.b32.xlu0 %v7796_v59, %s6496_s20 }
0x12fd   : > { %2870 = vrot.lane.b32.xlu1 %v7810_v22, %s6496_s20 }
0x1373   : > { %v2816_v45 = vpop.xlane.xlu0 %2815 }
0x1374   : > { %5450 = vrcp.f32 %v2816_v45 }
0x1375   : > { %v2819_v46 = vpop.xlane.xlu1 %2818 }
0x1376   : > { %5452 = vrcp.f32 %v2819_v46 }
0x1377   : > { %v2875_v10 = vpop.permute.xlu0 %2874 }
0x1378   : > { %v2882_v55 = vsel %vm1661_vm1, %v2875_v10, 0 }
0x1379   : > { %v2877_v57 = vpop.permute.xlu1 %2876 }
0x137a   : > { %v2885_v58 = vsel %vm1661_vm1, %v2877_v57, 0 }
0x137d   : > { %v2871_v61 = vpop.permute.xlu1 %2870 }
0x137e   : > { %v5451_v47 = vpop.eup %5450 }
0x137f   : > { %v7843_v49 = vmul.f32 %v5451_v47, %v5447_v42 }
0x1380   : > { %v5453_v48 = vpop.eup %5452 }
0x1381   : > { %v7845_v50 = vmul.f32 %v5453_v48, %v5449_v34 }
0x1383   : > { %v2824_v52 = vpack.c.bf16 %v7845_v50, %v7843_v49 }
0x1385   : > { %4803 = vmatmul.mubr.msk.bf16.vlgmr.msra.gmra.mrb[32].mxu0 %vm1661_vm1, %v2824_v52 }
0x1386   : > { %4807 = vmatpush3.bf16.xpose.msra.mxu0 %v2882_v55  ;;  %4810 = vmatprep.mubr.msk.bf16.mxu0 %vm6495_vm0, %v6493_v0 }
0x1387   : > { %4808 = vmatprep.subr.bf16.mxu0 %v6493_v0 }
0x138e   : > { %4809 = vmatpush3.bf16.xpose.msra.mxu0 %v2885_v58 }
0x138f   : > { %4814 = vmatprep.subr.bf16.mxu0 %v6493_v0 }
0x1395   : > { %4811 = vmatmul.mubr.msk.bf16.vlgmr.msra.gmra.mrb[36].mxu0 %vm1661_vm1, %v2871_v61 }
0x1396   : > { %4818 = vmatprep.mubr.msk.bf16.mxu0 %vm6495_vm0, %v6493_v0 }
0x1458   : > { %v7859_v62 = vpop.f32.mrb[32].mxu0 }
0x1459   : > { %v4804_v54 = vpop.f32.mrb[33].mxu0 }
0x145a   : > { %v7861_v9 = vpop.f32.mrb[34].mxu0 }
0x145b   : > { %v4805_v63 = vpop.f32.mrb[35].mxu0 }
0x1468   : > { %v2921_v2 = vpop.f32.mrb[36].mxu0 }
0x1469   : > { %v2928_v4 = vsel %vm7821_vm6, %v2921_v2, -10000.0  ;;  %v4812_v5 = vpop.f32.mrb[37].mxu0 }
0x146a   : > { %v2924_v6 = vpop.f32.mrb[38].mxu0  ;;  %v2930_v11 = vsel %vm1661_vm1, %v2928_v4, -inf }
0x146b   : > { %v2929_v3 = vsel %vm7825_vm7, %v2924_v6, -10000.0  ;;  %2931 = vmax.xlane.f32.xlu1 %v2930_v11  ;;  %v4813_v12 = vpop.f32.mrb[39].mxu0 }
0x146c   : > { %v2933_v13 = vsel %vm1661_vm1, %v2929_v3, -inf }
0x146d   : > { %2934 = vmax.xlane.f32.xlu0 %v2933_v13 }
0x147c   : > { %2955 = vrot.lane.b32.xlu1 %v7798_v60, %s6496_s20 }
0x1480   : > { %3007 = vrot.lane.b32.xlu1 %v7796_v59, %s6497_s22 }
0x1484   : > { %3009 = vrot.lane.b32.xlu1 %v7803_v7, %s6497_s22 }
0x1488   : > { %3138 = vrot.lane.b32.xlu1 %v7796_v59, %s6498_s0 }
0x148c   : > { %3140 = vrot.lane.b32.xlu1 %v7803_v7, %s6498_s0 }
0x14f8   : > { %v2932_v14 = vpop.xlane.xlu1 %2931 }
0x14f9   : > { %v2936_v16 = vsub.f32 %v2928_v4, %v2932_v14 }
0x14fa   : > { %v2935_v18 = vpop.xlane.xlu0 %2934 }
0x14fb   : > { %v2938_v19 = vmul.f32 1.442695, %v2936_v16  ;;  %v2937_v20 = vsub.f32 %v2929_v3, %v2935_v18 }
0x14fc   : > { %v2956_v21 = vpop.permute.xlu1 %2955 }
0x14fd   : > { %5454 = vpow2.f32 %v2938_v19  ;;  %v2940_v23 = vmul.f32 1.442695, %v2937_v20  ;;  %4815 = vmatpush3.bf16.msra.mxu0 %v2956_v21 }
0x14fe   : > { %4816 = vmatprep.subr.bf16.mxu0 %v6493_v0 }
0x14ff   : > { %5456 = vpow2.f32 %v2940_v23 }
0x1500   : > { %v3008_v24 = vpop.permute.xlu1 %3007 }
0x1501   : > { %v3015_v43 = vsel %vm1661_vm1, %v3008_v24, 0 }
0x1504   : > { %v3010_v25 = vpop.permute.xlu1 %3009 }
0x1505   : > { %v3018_v34 = vsel %vm1661_vm1, %v3010_v25, 0 }
0x1507   : > { %v5455_v26 = vpop.eup %5454 }
0x1508   : > { %v3139_v51 = vpop.permute.xlu1 %3138  ;;  %v2942_v59 = vsel %vm1661_vm1, %v5455_v26, 0.0 }
0x1509   : > { %v5457_v30 = vpop.eup %5456  ;;  %v3146_v7 = vsel %vm1661_vm1, %v3139_v51, 0  ;;  %2943 = vadd.xlane.f32.xlu0 %v2942_v59 }
0x150a   : > { %4839 = vmatpush3.bf16.xpose.msra.mxu1 %v3146_v7  ;;  %v2945_v31 = vsel %vm1661_vm1, %v5457_v30, 0.0 }
0x150b   : > { %4840 = vmatprep.subr.bf16.mxu1 %v6493_v0 }
0x150c   : > { %v3141_v15 = vpop.permute.xlu1 %3140 }
0x150d   : > { %2946 = vadd.xlane.f32.xlu0 %v2945_v31  ;;  %v3149_v32 = vsel %vm1661_vm1, %v3141_v15, 0 }
0x1512   : > { %4841 = vmatpush3.bf16.xpose.msra.mxu1 %v3149_v32 }
0x1513   : > { %4854 = vmatprep.subr.bf16.mxu1 %v6493_v0 }
0x1523   : > { %2957 = vrot.lane.b32.xlu0 %v7805_v8, %s6496_s20 }
0x1527   : > { %3005 = vrot.lane.b32.xlu0 %v7810_v22, %s6497_s22 }
0x152b   : > { %3136 = vrot.lane.b32.xlu0 %v7810_v22, %s6498_s0 }
0x1596   : > { %v2944_v33 = vpop.xlane.xlu0 %2943 }
0x1597   : > { %5458 = vrcp.f32 %v2944_v33 }
0x159a   : > { %v2947_v17 = vpop.xlane.xlu0 %2946 }
0x159b   : > { %5460 = vrcp.f32 %v2947_v17 }
0x159e   : > { %v2958_v35 = vpop.permute.xlu0 %2957 }
0x159f   : > { %4817 = vmatpush3.bf16.msra.mxu0 %v2958_v35 }
0x15a0   : > { %4822 = vmatprep.subr.bf16.mxu0 %v6493_v0 }
0x15a1   : > { %v5459_v40 = vpop.eup %5458 }
0x15a2   : > { %v3006_v28 = vpop.permute.xlu0 %3005  ;;  %v7893_v29 = vmul.f32 %v5459_v40, %v5455_v26 }
0x15a5   : > { %v5461_v41 = vpop.eup %5460 }
0x15a6   : > { %v7895_v56 = vmul.f32 %v5461_v41, %v5457_v30  ;;  %v3137_v42 = vpop.permute.xlu0 %3136 }
0x15a7   : > { %4843 = vmatmul.mubr.msk.bf16.vlgmr.msra.gmra.mrb[32].mxu1 %vm1661_vm1, %v3137_v42 }
0x15a8   : > { %v2952_v22 = vpack.c.bf16 %v7895_v56, %v7893_v29  ;;  %4870 = vmatprep.mubr.msk.bf16.mxu1 %vm6495_vm0, %v6493_v0 }
0x15aa   : > { %4819 = vmatmul.mubr.msk.bf16.vlgmr.msra.gmra.mrb[40].mxu0 %vm1661_vm1, %v2952_v22 }
0x15ab   : > { %4823 = vmatpush3.bf16.xpose.msra.mxu0 %v3015_v43  ;;  %4826 = vmatprep.mubr.msk.bf16.mxu0 %vm6495_vm0, %v6493_v0 }
0x15ac   : > { %4824 = vmatprep.subr.bf16.mxu0 %v6493_v0 }
0x15b3   : > { %4825 = vmatpush3.bf16.xpose.msra.mxu0 %v3018_v34 }
0x15b4   : > { %4830 = vmatprep.subr.bf16.mxu0 %v6493_v0 }
0x15ba   : > { %4827 = vmatmul.mubr.msk.bf16.vlgmr.msra.gmra.mrb[44].mxu0 %vm1661_vm1, %v3006_v28 }
0x15bb   : > { %4834 = vmatprep.mubr.msk.bf16.mxu0 %vm6495_vm0, %v6493_v0 }
0x167a   : > { %v3185_v44 = vpop.f32.mrb[32].mxu1 }
0x167b   : > { %v4844_v45 = vpop.f32.mrb[33].mxu1  ;;  %v3192_v11 = vsel %vm7821_vm6, %v3185_v44, -10000.0 }
0x167c   : > { %v3188_v46 = vpop.f32.mrb[34].mxu1  ;;  %v3194_v3 = vsel %vm1661_vm1, %v3192_v11, -inf }
0x167d   : > { %v2998_v47 = vpop.f32.mrb[40].mxu0  ;;  %v4845_v48 = vpop.f32.mrb[35].mxu1  ;;  %v3193_v12 = vsel %vm7825_vm7, %v3188_v46, -10000.0 }
0x167e   : > { %v4820_v10 = vpop.f32.mrb[41].mxu0  ;;  %v3197_v13 = vsel %vm1661_vm1, %v3193_v12, -inf }
0x167f   : > { %v3001_v52 = vpop.f32.mrb[42].mxu0 }
0x1680   : > { %v5251_v55 = vpack.i.bf16 %v3001_v52, %v2998_v47  ;;  %v4821_v57 = vpop.f32.mrb[43].mxu0 }
0x1681   : > { %v5363_v57 = vld [vmem:[#allocation29 + $0x8] sm:$0xff]  }
0x168d   : > { %v3054_v58 = vpop.f32.mrb[44].mxu0 }
0x168e   : > { %v3061_v61 = vsel %vm7821_vm6, %v3054_v58, -10000.0  ;;  %v4828_v54 = vpop.f32.mrb[45].mxu0  ;;  %v5364_v58 = vld [vmem:[#allocation29 + $0x10] sm:$0xff]  }
0x168f   : > { %v3057_v63 = vpop.f32.mrb[46].mxu0  ;;  %v3063_v2 = vsel %vm1661_vm1, %v3061_v61, -inf  ;;  %v5366_v54 = vld [vmem:[#allocation29 + $0x20] sm:$0xff]  }
0x1690   : > { %v3062_v4 = vsel %vm7825_vm7, %v3057_v63, -10000.0  ;;  %3064 = vmax.xlane.f32.xlu1 %v3063_v2  ;;  %v4829_v5 = vpop.f32.mrb[47].mxu0  ;;  %v5368_v63 = vld [vmem:[#allocation29 + $0x30] sm:$0xff]  }
0x1691   : > { %v3066_v6 = vsel %vm1661_vm1, %v3062_v4, -inf  ;;  %v5369_v5 = vld [vmem:[#allocation29 + $0x38] sm:$0xff]  }
0x1692   : > { %3067 = vmax.xlane.f32.xlu0 %v3066_v6 }
0x1696   : > { %3195 = vmax.xlane.f32.xlu0 %v3194_v3 }
0x169a   : > { %3198 = vmax.xlane.f32.xlu0 %v3197_v13 }
0x171d   : > { %v3065_v7 = vpop.xlane.xlu1 %3064 }
0x171e   : > { %v3069_v31 = vsub.f32 %v3061_v61, %v3065_v7  ;;  %v5365_v61 = vld [vmem:[#allocation29 + $0x18] sm:$0xff]  }
0x171f   : > { %v3068_v14 = vpop.xlane.xlu0 %3067 }
0x1720   : > { %v3070_v19 = vsub.f32 %v3062_v4, %v3068_v14  ;;  %v3071_v15 = vmul.f32 1.442695, %v3069_v31 }
0x1722   : > { %v3073_v53 = vmul.f32 1.442695, %v3070_v19 }
0x1723   : > { %v3196_v16 = vpop.xlane.xlu0 %3195 }
0x1724   : > { %v3200_v18 = vsub.f32 %v3192_v11, %v3196_v16 }
0x1726   : > { %v3202_v20 = vmul.f32 1.442695, %v3200_v18 }
0x1727   : > { %v3199_v21 = vpop.xlane.xlu0 %3198 }
0x1728   : > { %5462 = vpow2.f32 %v3202_v20  ;;  %v3201_v23 = vsub.f32 %v3193_v12, %v3199_v21 }
0x172a   : > { %v3204_v24 = vmul.f32 1.442695, %v3201_v23 }
0x172c   : > { %5464 = vpow2.f32 %v3204_v24 }
0x172d   : > { %5466 = vpow2.f32 %v3073_v53 }
0x172e   : > { %5468 = vpow2.f32 %v3071_v15 }
0x1732   : > { %v5463_v25 = vpop.eup %5462 }
0x1733   : > { %v3206_v27 = vsel %vm1661_vm1, %v5463_v25, 0.0 }
0x1734   : > { %3207 = vadd.xlane.f32.xlu1 %v3206_v27 }
0x1736   : > { %v5465_v26 = vpop.eup %5464 }
0x1737   : > { %v3209_v51 = vsel %vm1661_vm1, %v5465_v26, 0.0  ;;  %v5467_v59 = vpop.eup %5466 }
0x1738   : > { %3210 = vadd.xlane.f32.xlu0 %v3209_v51  ;;  %v3078_v30 = vsel %vm1661_vm1, %v5467_v59, 0.0  ;;  %v5469_v32 = vpop.eup %5468 }
0x1739   : > { %v3075_v33 = vsel %vm1661_vm1, %v5469_v32, 0.0 }
0x173c   : > { %3079 = vadd.xlane.f32.xlu0 %v3078_v30 }
0x1745   : > { %3086 = vrot.lane.b32.xlu1 %v7798_v60, %s6497_s22 }
0x1752   : > { %3088 = vrot.lane.b32.xlu0 %v7805_v8, %s6497_s22 }
0x1769   : > { %3076 = vadd.xlane.f32.xlu1 %v3075_v33 }
0x177a   : > { %3217 = vrot.lane.b32.xlu1 %v7798_v60, %s6498_s0 }
0x177e   : > { %3219 = vrot.lane.b32.xlu1 %v7805_v8, %s6498_s0 }
0x1782   : > { %5252 = vrot.lane.b32.xlu1 %v5251_v55, %s6498_s0  ;;  %v5362_v55 = vld [vmem:[#allocation29] sm:$0xff]  }
0x1783   : > { %4855 = vmatpush3.bf16.msra.mxu1 %v5362_v55 }
0x1784   : > { %4856 = vmatprep.subr.bf16.mxu1 %v6493_v0 }
0x1787   : > { %4857 = vmatpush3.bf16.msra.mxu1 %v5363_v57  ;;  %v5378_v57 = vld [vmem:[#allocation35 + $0x24] ss:$8 sps:$4 sm:$0xff]  }
0x1788   : > { %4858 = vmatprep.subr.bf16.mxu1 %v6493_v0 }
0x178b   : > { %4859 = vmatpush3.bf16.msra.mxu1 %v5364_v58  ;;  %v5376_v58 = vld [vmem:[#allocation35 + $0x20] ss:$8 sps:$4 sm:$0xff]  }
0x178c   : > { %4860 = vmatprep.subr.bf16.mxu1 %v6493_v0 }
0x178f   : > { %4861 = vmatpush3.bf16.msra.mxu1 %v5365_v61  ;;  %v5381_v61 = vld [vmem:[#allocation35 + $0x34] ss:$8 sps:$4 sm:$0xff]  }
0x1790   : > { %4862 = vmatprep.subr.bf16.mxu1 %v6493_v0 }
0x1793   : > { %4863 = vmatpush3.bf16.msra.mxu1 %v5366_v54  ;;  %v5379_v54 = vld [vmem:[#allocation35 + $0x30] ss:$8 sps:$4 sm:$0xff]  }
0x1794   : > { %4864 = vmatprep.subr.bf16.mxu1 %v6493_v0 }
0x17c1   : > { %v3208_v17 = vpop.xlane.xlu1 %3207 }
0x17c5   : > { %v3087_v35 = vpop.permute.xlu1 %3086  ;;  %v3211_v28 = vpop.xlane.xlu0 %3210 }
0x17c6   : > { %4831 = vmatpush3.bf16.msra.mxu0 %v3087_v35 }
0x17c7   : > { %4832 = vmatprep.subr.bf16.mxu0 %v6493_v0 }
0x17c9   : > { %v3080_v40 = vpop.xlane.xlu0 %3079 }
0x17ca   : > { %5470 = vrcp.f32 %v3080_v40 }
0x17cd   : > { %v3089_v41 = vpop.permute.xlu0 %3088 }
0x17ce   : > { %4833 = vmatpush3.bf16.msra.mxu0 %v3089_v41 }
0x17cf   : > { %4846 = vmatprep.subr.bf16.mxu0 %v6493_v0 }
0x17d4   : > { %v5471_v60 = vpop.eup %5470 }
0x17d5   : > { %v7939_v22 = vmul.f32 %v5471_v60, %v5467_v59  ;;  %v5372_v60 = vld [vmem:[#allocation35 + $0x4] ss:$8 sps:$4 sm:$0xff]  }
0x17f6   : > { %v3077_v42 = vpop.xlane.xlu1 %3076 }
0x17f7   : > { %5472 = vrcp.f32 %v3077_v42  ;;  %v5370_v42 = vld [vmem:[#allocation35] ss:$8 sps:$4 sm:$0xff]  }
0x17f8   : > { %5474 = vrcp.f32 %v3211_v28 }
0x17f9   : > { %5476 = vrcp.f32 %v3208_v17 }
0x17fa   : > { %v3218_v34 = vpop.permute.xlu1 %3217 }
0x17fe   : > { %v3220_v10 = vpop.permute.xlu1 %3219 }
0x1801   : > { %v5473_v8 = vpop.eup %5472 }
0x1802   : > { %v7941_v43 = vmul.f32 %v5473_v8, %v5469_v32  ;;  %v5475_v45 = vpop.eup %5474  ;;  %v5253_v19 = vpop.permute.xlu1 %5252  ;;  %v4494_v32 = vld [vmem:[#allocation31] ss:$0 sm:$0xff]  ;;  %v5375_v8 = vld [vmem:[#allocation35 + $0x14] ss:$8 sps:$4 sm:$0xff]  }
0x1803   : > { %v5477_v46 = vpop.eup %5476  ;;  %v7948_v47 = vmul.f32 %v5475_v45, %v5465_v26  ;;  %v5255_v21 = vunpack.i.h.bf16 %v5253_v19  ;;  %v5254_v23 = vunpack.i.l.bf16 %v5253_v19  ;;  %v5399_v19 = vld [vmem:[#allocation38 + $0x10] sm:$0xff]  }
0x1804   : > { %v3085_v44 = vpack.c.bf16 %v7939_v22, %v7941_v43  ;;  %v7951_v48 = vmul.f32 %v5477_v46, %v5463_v25 }
0x1805   : > { %v3292_v25 = vsel %vm1661_vm1, %v7861_v9, %v5255_v21  ;;  %v3291_v27 = vsel %vm1661_vm1, %v7859_v62, %v5254_v23  ;;  %v5401_v21 = vld [vmem:[#allocation38 + $0x18] sm:$0xff]   ;;  %v5402_v23 = vld [vmem:[#allocation38 + $0x60] sm:$0xff]  }
0x1806   : > { %4835 = vmatmul.mubr.msk.bf16.vlgmr.msra.gmra.mrb[48].mxu0 %vm1661_vm1, %v3085_v44  ;;  %v3216_v52 = vpack.c.bf16 %v7948_v47, %v7951_v48 }
0x1807   : > { %4847 = vmatpush3.bf16.msra.mxu0 %v3218_v34  ;;  %4850 = vmatprep.mubr.msk.bf16.mxu0 %vm6495_vm0, %v6493_v0  ;;  %v5373_v34 = vld [vmem:[#allocation35 + $0x10] ss:$8 sps:$4 sm:$0xff]  }
0x1808   : > { %4848 = vmatprep.subr.bf16.mxu0 %v6493_v0 }
0x180b   : > { %4849 = vmatpush3.bf16.msra.mxu0 %v3220_v10 }
0x180c   : > { %3593 = vmatprep.subr.bf16.mxu0 %v5372_v60  ;;  %v5408_v60 = vld [vmem:[#allocation38 + $0x78] sm:$0xff]  }
0x180e   : > { %4851 = vmatmul.mubr.msk.bf16.vlgmr.msra.gmra.mrb[52].mxu0 %vm1661_vm1, %v3216_v52 }
0x180f   : > { %3625 = vmatprep.mubr.bf16.mxu0 %v6494_v1  ;;  %v5367_v1 = vld [vmem:[#allocation29 + $0x28] sm:$0xff]   ;;  %3594 = vmatpush1.bf16.msra.mxu0 %v5370_v42  ;;  %v5407_v42 = vld [vmem:[#allocation38 + $0x30] sm:$0xff]  }
0x1810   : > { %4865 = vmatpush3.bf16.msra.mxu1 %v5367_v1  ;;  %3595 = vmatprep.subr.bf16.mxu0 %v5375_v8  ;;  %v5384_v1 = vld [vmem:[#allocation35 + $0x44] ss:$8 sps:$4 sm:$0xff]   ;;  %v5409_v8 = vld [vmem:[#allocation38 + $0x38] sm:$0xff]  }
0x1811   : > { %4866 = vmatprep.subr.bf16.mxu1 %v6493_v0 }
0x1813   : > { %3596 = vmatpush1.bf16.msra.mxu0 %v5373_v34  ;;  %v3501_v34 = vld [vmem:[#allocation37] sm:$0x3] }
0x1814   : > { %4867 = vmatpush3.bf16.msra.mxu1 %v5368_v63  ;;  %3597 = vmatprep.subr.bf16.mxu0 %v5378_v57  ;;  %v5382_v63 = vld [vmem:[#allocation35 + $0x40] ss:$8 sps:$4 sm:$0xff]  }
0x1815   : > { %4868 = vmatprep.subr.bf16.mxu1 %v6493_v0 }
0x1817   : > { %3598 = vmatpush1.bf16.msra.mxu0 %v5376_v58 }
0x1818   : > { %4869 = vmatpush3.bf16.msra.mxu1 %v5369_v5  ;;  %3599 = vmatprep.subr.bf16.mxu0 %v5381_v61  ;;  %v5390_v5 = vld [vmem:[#allocation35 + $0x64] ss:$8 sps:$4 sm:$0xff]  }
0x181b   : > { %3600 = vmatpush1.bf16.msra.mxu0 %v5379_v54 }
0x181c   : > { %3601 = vmatprep.subr.bf16.mxu0 %v5384_v1 }
0x181f   : > { %3602 = vmatpush1.bf16.msra.mxu0 %v5382_v63 }
0x18d9   : > { %v3129_v2 = vpop.f32.mrb[48].mxu0 }
0x18da   : > { %v4836_v4 = vpop.f32.mrb[49].mxu0 }
0x18db   : > { %v3132_v6 = vpop.f32.mrb[50].mxu0  ;;  %v5385_v4 = vld [vmem:[#allocation35 + $0x50] ss:$8 sps:$4 sm:$0xff]  }
0x18dc   : > { %v5256_v11 = vpack.i.bf16 %v3132_v6, %v3129_v2  ;;  %v4837_v3 = vpop.f32.mrb[51].mxu0  ;;  %v5387_v2 = vld [vmem:[#allocation35 + $0x54] ss:$8 sps:$4 sm:$0xff]   ;;  %v5388_v6 = vld [vmem:[#allocation35 + $0x60] ss:$8 sps:$4 sm:$0xff]  }
0x18dd   : > { %3603 = vmatprep.subr.bf16.mxu0 %v5387_v2  ;;  %v5391_v3 = vld [vmem:[#allocation35 + $0x70] ss:$8 sps:$4 sm:$0xff]  }
0x18de   : > { %5257 = vrot.lane.b32.xlu0 %v5256_v11, %s6497_s22  ;;  %3604 = vmatpush1.bf16.msra.mxu0 %v5385_v4  ;;  %v5393_v11 = vld [vmem:[#allocation35 + $0x74] ss:$8 sps:$4 sm:$0xff]  }
0x18df   : > { %3605 = vmatprep.subr.bf16.mxu0 %v5390_v5 }
0x18e1   : > { %v3260_v12 = vpop.f32.mrb[52].mxu0 }
0x18e2   : > { %v4852_v13 = vpop.f32.mrb[53].mxu0  ;;  %3606 = vmatpush1.bf16.msra.mxu0 %v5388_v6 }
0x18e3   : > { %v3263_v14 = vpop.f32.mrb[54].mxu0  ;;  %3607 = vmatprep.subr.bf16.mxu0 %v5393_v11  ;;  %v5395_v13 = vld [vmem:[#allocation38] sm:$0xff]  }
0x18e4   : > { %v5261_v16 = vpack.i.bf16 %v3263_v14, %v3260_v12  ;;  %v4853_v18 = vpop.f32.mrb[55].mxu0  ;;  %v5394_v12 = vld [vmem:[#allocation38 + $0x40] sm:$0xff]   ;;  %v5396_v14 = vld [vmem:[#allocation38 + $0x48] sm:$0xff]  }
0x18e5   : > { %4644 = vmatprep.subr.bf16.mxu1 %v5394_v12  ;;  %v5398_v18 = vld [vmem:[#allocation38 + $0x50] sm:$0xff]  }
0x18e6   : > { %5262 = vrot.lane.b32.xlu1 %v5261_v16, %s6496_s20  ;;  %3608 = vmatpush1.bf16.msra.mxu0 %v5391_v3  ;;  %v5397_v16 = vld [vmem:[#allocation38 + $0x8] sm:$0xff]  }
0x1950   : > { %v5258_v20 = vpop.permute.xlu0 %5257 }
0x1951   : > { %v5260_v0 = vunpack.i.h.bf16 %v5258_v20  ;;  %v5259_v53 = vunpack.i.l.bf16 %v5258_v20  ;;  %v5400_v20 = vld [vmem:[#allocation38 + $0x58] sm:$0xff]  }
0x1953   : > { %v3294_v59 = vsel %vm2205_vm4, %v3292_v25, %v5260_v0  ;;  %v3293_v30 = vsel %vm2205_vm4, %v3291_v27, %v5259_v53  ;;  %v5403_v0 = vld [vmem:[#allocation38 + $0x20] sm:$0xff]   ;;  %v5404_v53 = vld [vmem:[#allocation38 + $0x68] sm:$0xff]  }
0x1958   : > { %v5263_v24 = vpop.permute.xlu1 %5262 }
0x1959   : > { %v5265_v26 = vunpack.i.h.bf16 %v5263_v24  ;;  %v5264_v51 = vunpack.i.l.bf16 %v5263_v24 }
0x195b   : > { %v3296_v7 = vsel %vm2208_vm5, %v3294_v59, %v5265_v26  ;;  %v3295_v31 = vsel %vm2208_vm5, %v3293_v30, %v5264_v51 }
0x195c   : > { %v3329_v15 = vpack.c.bf16 %v3296_v7, %v3295_v31  ;;  %v4503_v31 = vld [vmem:[#allocation32] ss:$0 sm:$0xff] }
0x195e   : > { %4871 = vmatmul.mubr.bf16.vlgmr.msra.gmra.mrb[36].mxu1 %v3329_v15 }
0x195f   : > { %4645 = vmatpush3.bf16.msra.mxu1 %v5395_v13 }
0x1960   : > { %4646 = vmatprep.subr.bf16.mxu1 %v5396_v14 }
0x1963   : > { %4647 = vmatpush3.bf16.msra.mxu1 %v5397_v16 }
0x1964   : > { %4648 = vmatprep.subr.bf16.mxu1 %v5398_v18 }
0x1967   : > { %4649 = vmatpush3.bf16.msra.mxu1 %v5399_v19 }
0x1968   : > { %4650 = vmatprep.subr.bf16.mxu1 %v5400_v20 }
0x196b   : > { %4651 = vmatpush3.bf16.msra.mxu1 %v5401_v21 }
0x196c   : > { %4652 = vmatprep.subr.bf16.mxu1 %v5402_v23 }
0x196f   : > { %4653 = vmatpush3.bf16.msra.mxu1 %v5403_v0 }
0x1970   : > { %4654 = vmatprep.subr.bf16.mxu1 %v5404_v53 }
0x1a31   : > { %v3435_v33 = vpop.f32.mrb[36].mxu1 }
0x1a32   : > { %v3436_v17 = vadd.f32 %v4494_v32, %v3435_v33  ;;  %v4872_v35 = vpop.f32.mrb[37].mxu1 }
0x1a33   : > { %v3438_v9 = vpop.f32.mrb[38].mxu1 }
0x1a34   : > { %v3439_v28 = vadd.f32 %v4494_v32, %v3438_v9  ;;  %v4873_v40 = vpop.f32.mrb[39].mxu1  ;;  %v3442_v62 = vadd.f32 %v3436_v17, %v7786_v36  ;;  %v4504_v17 = vld [vmem:[#allocation34] ss:$0 sm:$0xff] }
0x1a36   : > { %3444 = vadd.xlane.f32.xlu0 %v3442_v62  ;;  %v3443_v41 = vadd.f32 %v3439_v28, %v7788_v38 }
0x1a38   : > { %3446 = vadd.xlane.f32.xlu1 %v3443_v41 }
0x1ac3   : > { %v3445_v44 = vpop.xlane.xlu0 %3444 }
0x1ac4   : > { %v3448_v45 = vmul.f32 0.0078125, %v3445_v44  ;;  %v3506_v44 = vrot.slane %v3501_v34, %v7576_v37  ;;  %v4521_v37 = vld [vmem:[#allocation40] ss:$0 sm:$0xff] }
0x1ac5   : > { %v3447_v46 = vpop.xlane.xlu1 %3446 }
0x1ac6   : > { %v3450_v10 = vsub.f32 %v3442_v62, %v3448_v45  ;;  %v3449_v52 = vmul.f32 0.0078125, %v3447_v46  ;;  %v5405_v62 = vld [vmem:[#allocation38 + $0x28] sm:$0xff]   ;;  %v3510_v45 = vrot.slane %v3501_v34, %v7578_v39 }
0x1ac7   : > { %4655 = vmatpush3.bf16.msra.mxu1 %v5405_v62 }
0x1ac8   : > { %v7976_v55 = vsub.f32 %v3443_v41, %v3449_v52  ;;  %v3452_v36 = vmul.f32 %v3450_v10, %v3450_v10  ;;  %v5406_v41 = vld [vmem:[#allocation38 + $0x70] sm:$0xff]  }
0x1ac9   : > { %4656 = vmatprep.subr.bf16.mxu1 %v5406_v41 }
0x1aca   : > { %3454 = vadd.xlane.f32.xlu0 %v3452_v36  ;;  %v3453_v38 = vmul.f32 %v7976_v55, %v7976_v55 }
0x1acb   : > { %4657 = vmatpush3.bf16.msra.mxu1 %v5407_v42 }
0x1acc   : > { %4658 = vmatprep.subr.bf16.mxu1 %v5408_v60 }
0x1ace   : > { %3456 = vadd.xlane.f32.xlu0 %v3453_v38 }
0x1acf   : > { %4659 = vmatpush3.bf16.msra.mxu1 %v5409_v8 }
0x1b57   : > { %v3455_v24 = vpop.xlane.xlu0 %3454 }
0x1b58   : > { %v3458_v25 = vmul.f32 0.0078125, %v3455_v24 }
0x1b5a   : > { %v3460_v27 = vadd.f32 1e-05, %v3458_v25 }
0x1b5b   : > { %v3457_v26 = vpop.xlane.xlu0 %3456 }
0x1b5c   : > { %5478 = vrsqrt.f32 %v3460_v27  ;;  %v3459_v51 = vmul.f32 0.0078125, %v3457_v26 }
0x1b5e   : > { %v3461_v59 = vadd.f32 1e-05, %v3459_v51 }
0x1b60   : > { %5480 = vrsqrt.f32 %v3461_v59 }
0x1b66   : > { %v5479_v30 = vpop.eup %5478 }
0x1b67   : > { %v3464_v7 = vmul.f32 %v5479_v30, %v3450_v10 }
0x1b69   : > { %v3473_v33 = vmul.f32 %v4503_v31, %v3464_v7 }
0x1b6a   : > { %v5481_v15 = vpop.eup %5480 }
0x1b6b   : > { %v3465_v32 = vmul.f32 %v5481_v15, %v7976_v55  ;;  %v3482_v9 = vadd.f32 %v4504_v17, %v3473_v33 }
0x1b6d   : > { %v3474_v35 = vmul.f32 %v4503_v31, %v3465_v32 }
0x1b6f   : > { %v3483_v28 = vadd.f32 %v4504_v17, %v3474_v35 }
0x1b71   : > { %v3484_v40 = vpack.c.bf16 %v3483_v28, %v3482_v9 }
0x1b73   : > { %3626 = vmatmul.mubr.bf16.vlgmr.msra.gmra.mrb[56].mxu0 %v3484_v40 }
0x1c46   : > { %v3627_v46 = vpop.f32.mrb[56].mxu0 }
0x1c47   : > { %v3628_v10 = vadd.f32 %v3627_v46, %v3506_v44  ;;  %v3629_v52 = vpop.f32.mrb[57].mxu0 }
0x1c48   : > { %v3630_v55 = vadd.f32 %v3629_v52, %v3510_v45  ;;  %v3631_v36 = vpop.f32.mrb[58].mxu0 }
0x1c49   : > { %v3632_v38 = vadd.f32 %v3631_v36, %v3506_v44  ;;  %v3633_v57 = vpop.f32.mrb[59].mxu0  ;;  %v3636_v61 = vmax.f32 %v3628_v10, 0.0 }
0x1c4a   : > { %v3634_v58 = vadd.f32 %v3633_v57, %v3510_v45  ;;  %v3637_v1 = vmax.f32 %v3630_v55, 0.0 }
0x1c4b   : > { %v3638_v54 = vmax.f32 %v3632_v38, 0.0 }
0x1c4c   : > { %v3639_v63 = vmax.f32 %v3634_v58, 0.0 }
0x1c4d   : > { %v3640_v2 = vpack.c.bf16 %v3638_v54, %v3636_v61 }
0x1c4e   : > { %v3641_v4 = vpack.c.bf16 %v3639_v63, %v3637_v1 }
0x1c50   : > { %3809 = vmatprep.mubr.bf16.mxu1 %v3641_v4 }
0x1c51   : > { %3810 = vmatmul.mubr.bf16.vlgmr.msra.gmra.mrb[40].mxu1 %v3640_v2 }
0x1d24   : > { %v4660_v5 = vpop.f32.mrb[40].mxu1 }
0x1d25   : > { %v4661_v6 = vpop.f32.mrb[41].mxu1 }
0x1d26   : > { %v4662_v39 = vadd.f32 %v4661_v6, %v4660_v5  ;;  %v4663_v11 = vpop.f32.mrb[42].mxu1 }
0x1d27   : > { %v4664_v3 = vpop.f32.mrb[43].mxu1 }
0x1d28   : > { %v3812_v12 = vadd.f32 %v4662_v39, %v4521_v37  ;;  %v4665_v13 = vadd.f32 %v4664_v3, %v4663_v11 }
0x1d2a   : > { %v3815_v14 = vadd.f32 %v4665_v13, %v4521_v37  ;;  %v3818_v16 = vadd.f32 %v3812_v12, %v3482_v9 }
0x1d2c   : > { %3820 = vadd.xlane.f32.xlu0 %v3818_v16  ;;  %v3819_v18 = vadd.f32 %v3815_v14, %v3483_v28 }
0x1d2e   : > { %3822 = vadd.xlane.f32.xlu1 %v3819_v18 }
0x1d3f   : > { %3301 = vrot.lane.b32.xlu1 %v7895_v56, %s6498_s0 }
0x1d43   : > { %3307 = vrot.lane.b32.xlu1 %v7941_v43, %s6497_s22 }
0x1d47   : > { %3309 = vrot.lane.b32.xlu1 %v7939_v22, %s6497_s22 }
0x1db9   : > { %v3821_v19 = vpop.xlane.xlu0 %3820 }
0x1dba   : > { %v3824_v20 = vmul.f32 0.0078125, %v3821_v19 }
0x1dbb   : > { %v3823_v21 = vpop.xlane.xlu1 %3822 }
0x1dbc   : > { %v7989_v23 = vsub.f32 %v3818_v16, %v3824_v20  ;;  %v3825_v0 = vmul.f32 0.0078125, %v3823_v21 }
0x1dbe   : > { %v7991_v53 = vsub.f32 %v3819_v18, %v3825_v0  ;;  %v3828_v24 = vmul.f32 %v7989_v23, %v7989_v23 }
0x1dbf   : > { %v3302_v22 = vpop.permute.xlu1 %3301 }
0x1dc0   : > { %3830 = vadd.xlane.f32.xlu0 %v3828_v24  ;;  %v3829_v56 = vmul.f32 %v7991_v53, %v7991_v53 }
0x1dc2   : > { %3832 = vadd.xlane.f32.xlu1 %v3829_v56 }
0x1dc3   : > { %v3308_v43 = vpop.permute.xlu1 %3307 }
0x1dc7   : > { %v3310_v25 = vpop.permute.xlu1 %3309 }
0x1dd3   : > { %3317 = vrot.lane.b32.xlu1 %v7948_v47, %s6496_s20  ;;  %v3322_v47 = vsel %vm1661_vm1, %v7845_v50, %v3302_v22 }
0x1dd4   : > { %v3324_v31 = vsel %vm2205_vm4, %v3322_v47, %v3310_v25 }
0x1dd6   : > { %3299 = vrot.lane.b32.xlu0 %v7893_v29, %s6498_s0 }
0x1dda   : > { %3315 = vrot.lane.b32.xlu0 %v7951_v48, %s6496_s20  ;;  %s6258_s20 = scalar_lea.vmem %s6257_s14, 512 }
0x1ddb   : > { %p6260_p6 = scmp.lt.s32.totalorder %s6258_s20, %s6252_s28 }
0x1ddd   : > { %p6261_p13 = por %p6260_p6, %p6259_p10 }
0x1ddf   : > { %p6262_p5 = pnand %p6261_p13, %p6255_p7 }
0x1e4d   : > { %v3831_v27 = vpop.xlane.xlu0 %3830 }
0x1e4e   : > { %v3834_v26 = vmul.f32 0.0078125, %v3831_v27 }
0x1e4f   : > { %v3833_v51 = vpop.xlane.xlu1 %3832 }
0x1e50   : > { %v3836_v59 = vadd.f32 1e-05, %v3834_v26  ;;  %v3835_v30 = vmul.f32 0.0078125, %v3833_v51 }
0x1e51   : > { %v3300_v29 = vpop.permute.xlu0 %3299 }
0x1e52   : > { %5482 = vrsqrt.f32 %v3836_v59  ;;  %v3837_v48 = vadd.f32 1e-05, %v3835_v30  ;;  %v3321_v7 = vsel %vm1661_vm1, %v7843_v49, %v3300_v29 }
0x1e53   : > { %v3318_v15 = vpop.permute.xlu1 %3317  ;;  %v3323_v50 = vsel %vm2205_vm4, %v3321_v7, %v3308_v43 }
0x1e54   : > { %5484 = vrsqrt.f32 %v3837_v48  ;;  %v3326_v32 = vsel %vm2208_vm5, %v3324_v31, %v3318_v15 }
0x1e55   : > { %3328 = vst [vmem:[%s1347_s24 + $0x8] sm:$0xff] %v3326_v32  ;;  %v3316_v33 = vpop.permute.xlu0 %3315 }
0x1e56   : > { %v3325_v49 = vsel %vm2208_vm5, %v3323_v50, %v3316_v33 }
0x1e57   : > { %3327 = vst [vmem:[%s1347_s24] sm:$0xff] %v3325_v49 }
0x1e58   : > { %6265 = shalt.err (!%p6262_p5)
}
0x1e59   : > { %s6266_s22 = scalar_lea.hbm %s8023_s3, 256  ;;  %s6270_s15 = scalar_lea.hbm %s8411_s1, 1024 }
0x1e5a   : > { %p6267_p3 = scmp.ne.s32.totalorder %s8023_s3, %s6266_s22  ;;  %p6271_p2 = scmp.lt.u32.totalorder %s8023_s3, %s8411_s1 }
0x1e5b   : > { %p6272_p8 = scmp.lt.u32.totalorder %s6270_s15, %s6266_s22  ;;  %p6274_p4 = scmp.lt.u32.totalorder %s6266_s22, %s8023_s3 }
0x1e5c   : > { %p6268_p9 = pnand %p6267_p3, %p8412_p12 }
0x1e5d   : > { %p6273_p1 = por %p6272_p8, %p6271_p2 }
0x1e5e   : > { %p6269_p11 = pneg %p6268_p9 }
0x1e5f   : > { %p6275_p0 = por %p6274_p4, %p6273_p1 }
0x1e61   : > { %p6276_p7 = pnand %p6275_p0, %p6269_p11 }
0x1e63   : > { %6279 = shalt.err (!%p6276_p7)
}
0x1e64   : > { %s6500_s24 = smov 128   ;;  %s6501_s30 = smov 8   ;;  %v5483_v17 = vpop.eup %5482  ;;  %v4538_v35 = vld [vmem:[#allocation41] ss:$0 sm:$0xff]  ;;  %v4539_v40 = vld [vmem:[#allocation43] ss:$0 sm:$0xff] }
0x1e65   : > { %4973 = dma.vmem_to_hbm [thread:$0]  (%p8412_p12), %s8014_s11, 256, %s8023_s3, %s3868_s27, %s6500_s24, %s6500_s24, %s6501_s30   ;;  %v3840_v9 = vmul.f32 %v5483_v17, %v7989_v23  ;;  %v5485_v28 = vpop.eup %5484 }
0x1e66   : > { %v3841_v41 = vmul.f32 %v5485_v28, %v7991_v53  ;;  %s1340_s9 = scalar_lea.vmem [#allocation44], %s7473_s17  ;;  %s8413_s3 = sld [smem:[#allocation112_spill]] }
0x1e67   : > { %v3849_v62 = vmul.f32 %v4538_v35, %v3840_v9  ;;  %s3883_s6 = sshll.u32 %s1340_s9, 4  ;;  %s3863_s14 = scalar_lea.sflag [#allocation4], %s7470_s8  ;;  %s8063_s6 = int_to_ptr.vmem [resolvable:$true] %s3883_s6 }
0x1e68   : > { %v3850_v60 = vmul.f32 %v4538_v35, %v3841_v41  ;;  %s6280_s20 = scalar_lea.vmem %s8063_s6, 256  ;;  %s6502_s17 = smov [#allocation44]  }
0x1e69   : > { %v3858_v42 = vadd.f32 %v4539_v40, %v3849_v62  ;;  %p6281_p10 = scmp.ne.s32.totalorder %s8063_s6, %s6280_s20  ;;  %s6284_s22 = sshll.u32 %s6502_s17, 4  ;;  %s6285_s22 = int_to_ptr.vmem [resolvable:$false] %s6284_s22 }
0x1e6a   : > { %v3859_v8 = vadd.f32 %v4539_v40, %v3850_v60  ;;  %s6286_s2 = scalar_lea.vmem %s6285_s22, 512  ;;  %p6287_p5 = scmp.lt.s32.totalorder %s8063_s6, %s6285_s22 }
0x1e6b   : > { %3860 = vst [vmem:[%s1340_s9] sm:$0xff] %v3858_v42  ;;  %p6282_p6 = pnand %p6281_p10, %p8412_p12  ;;  %p6288_p3 = scmp.lt.s32.totalorder %s6286_s2, %s6280_s20 }
0x1e6c   : > { %s8414_s27 = smov %s8413_s3  ;;  %s8061_s10 = scalar_lea.hbm %s8413_s3, %s4544_s7  ;;  %3861 = vst [vmem:[%s1340_s9 + $0x8] sm:$0xff] %v3859_v8 }
0x1e6d   : > { %p6283_p13 = pneg %p6282_p6  ;;  %p6289_p9 = por %p6288_p3, %p6287_p5 }
0x1e6f   : > { %p6290_p11 = pnand %p6289_p9, %p6283_p13 }
0x1e71   : > { %6293 = shalt.err (!%p6290_p11)
}
0x1e72   : > { %s6294_s7 = scalar_lea.hbm %s8061_s10, 256  ;;  %s6298_s15 = scalar_lea.hbm %s8414_s27, 1024 }
0x1e73   : > { %p6295_p2 = scmp.ne.s32.totalorder %s8061_s10, %s6294_s7  ;;  %p6299_p4 = scmp.lt.u32.totalorder %s8061_s10, %s8414_s27 }
0x1e74   : > { %p6300_p0 = scmp.lt.u32.totalorder %s6298_s15, %s6294_s7  ;;  %p6302_p10 = scmp.lt.u32.totalorder %s6294_s7, %s8061_s10 }
0x1e75   : > { %p6296_p8 = pnand %p6295_p2, %p8412_p12 }
0x1e76   : > { %p6301_p7 = por %p6300_p0, %p6299_p4 }
0x1e77   : > { %p6297_p1 = pneg %p6296_p8 }
0x1e78   : > { %p6303_p6 = por %p6302_p10, %p6301_p7 }
0x1e7a   : > { %p6304_p13 = pnand %p6303_p6, %p6297_p1 }
0x1e7c   : > { %6307 = shalt.err (!%p6304_p13)
}
0x1e7d   : > { %4972 = dma.vmem_to_hbm [thread:$0]  (%p8412_p12), %s8063_s6, 256, %s8061_s10, %s3863_s14, %s6500_s24, %s6500_s24, %s6501_s30  }
0x1e7e PF: > { %s8415_s9 = sld [smem:[#allocation71_spill]]  ;;  %s8416_s28 = sld [smem:[#allocation65_spill]] }
0x1e7f   : > { %s8417_s11 = sld [smem:[#allocation81_spill]] }
0x1e84   : > { %p5111_p5 = scmp.ge.s32.totalorder %s8415_s9, 2  ;;  %s3916_s3 = sand.u32 1, %s8416_s28  }
0x1e85   : > { %p8418_p3 = scmp.ne.s32.totalorder %s8417_s11, 0  ;;  %s3917_s20 = scalar_lea.sflag [#allocation4], %s3916_s3 }
0x1e87   : > { %p5060_p9 = pnand %p5111_p5, %p8418_p3 }
0x1e89   : > { %6409 = dma.done.wait (!%p5060_p9), %s3917_s20, 256  }
0x1e8a   : > { %6411 = vsyncadd (!%p5060_p9), %s3917_s20, 4294967040  ;;  %s3926_s12 = scalar_lea.sflag [#allocation46], %s3916_s3 }
0x1e8b   : > { %6413 = dma.done.wait (!%p5060_p9), %s3926_s12, 256  }
0x1e8c   : > { %6415 = vsyncadd (!%p5060_p9), %s3926_s12, 4294967040  ;;  %s65_s2 = sadd.s32 1, %s8415_s9   ;;  %s8419_s8 = sld [smem:[#allocation63_spill]] }
0x1e8d   : > { %p62_p11 = scmp.ge.s32.totalorder %s65_s2, 6   ;;  %s8420_s5 = sld [smem:[#allocation64_spill]] }
0x1e8e   : > { %s8421_s9 = sld [smem:[#allocation82_spill]]  ;;  %s8422_s30 = sld [smem:[#allocation66_spill]] }
0x1e8f   : > { %s8423_s3 = sld [smem:[#allocation67_spill]]  ;;  %s8424_s6 = sld [smem:[#allocation83_spill]] }
0x1e90   : > { %s8425_s10 = sld [smem:[#allocation70_spill]]  ;;  %s8426_s11 = sld [smem:[#allocation77_spill]] }
0x1e91   : > { %s8427_s24 = sld [smem:[#allocation78_spill]]  ;;  %s8428_s0 = smov %s6454_s29 }
0x1e92   :  { %64 = sbr.rel (!%p62_p11) target bundleno = 56 (0x38), region = 326 }
0x1e97   : > { %s8429_s29 = smov %s8427_s24 }
0x1e99   :  { %3931 = vsyncpa [#allocation3], 1 }
0x1e9a   :  { %3933 = vsyncpa [#allocation3 + $0x1], 1 }
0x1e9b   :  { %3934 = vsyncpa [#allocation6], 1 }
0x1e9c   :  { %3936 = vsyncpa [#allocation6 + $0x1], 1 }
0x1e9d   :  { %3937 = vsyncpa [#allocation9], 1 }
0x1e9e   :  { %3939 = vsyncpa [#allocation9 + $0x1], 1 }
0x1e9f   :  { %3940 = vsyncpa [#allocation12], 1 }
0x1ea0   :  { %3941 = vsyncpa [#allocation15], 1 }
0x1ea1   :  { %3942 = vsyncpa [#allocation18], 1 }
0x1ea2   :  { %3943 = vsyncpa [#allocation21], 1 }
0x1ea3   :  { %3944 = vsyncpa [#allocation24], 1 }
0x1ea4   :  { %3945 = vsyncpa [#allocation27], 1 }
0x1ea5   :  { %3946 = vsyncpa [#allocation30], 1 }
0x1ea6   :  { %3947 = vsyncpa [#allocation33], 1 }
0x1ea7   :  { %3948 = vsyncpa [#allocation36], 1 }
0x1ea8   :  { %3949 = vsyncpa [#allocation39], 1 }
0x1ea9   :  { %3950 = vsyncpa [#allocation42], 1 }
0x1eaa   :  { %3951 = vsyncpa [#allocation4], 1 }
0x1eab   :  { %3953 = vsyncpa [#allocation4 + $0x1], 1 }
0x1eac   :  { %3954 = vsyncpa [#allocation46], 1 }
0x1ead   :  { %3956 = vsyncpa [#allocation46 + $0x1], 1 }

// kernel: tpu_custom_call.1
= control target key start
LH: loop header
LB: loop body
LE: loop exit
PB: predicated region body
PF: predicated region fallthrough
CT: control target
= control target key end

     0   :  { %s7474_s0 = inlined_call_operand.hbm [shape: f32[2,32,128], index: 0, kind: input, shape index: {}]   ;;  %s7475_s1 = inlined_call_operand.hbm [shape: f32[2,32,128], index: 1, kind: input, shape index: {}]   ;;  %s7476_s2 = inlined_call_operand.hbm [shape: f32[2,32,256], index: 2, kind: input, shape index: {}]   ;;  %s7477_s3 = inlined_call_operand.hbm [shape: bf16[2,32,32], index: 3, kind: input, shape index: {}]   ;;  %s7478_s4 = inlined_call_operand.hbm [shape: bf16[2,32,32], index: 4, kind: input, shape index: {}]   ;;  %s7479_s5 = inlined_call_operand.hbm [shape: bf16[128,128], index: 5, kind: input, shape index: {}]   ;;  %s7480_s6 = inlined_call_operand.hbm [shape: f32[1,128], index: 6, kind: input, shape index: {}]   ;;  %s7481_s7 = inlined_call_operand.hbm [shape: bf16[128,256], index: 7, kind: input, shape index: {}]   ;;  %s7482_s8 = inlined_call_operand.hbm [shape: f32[1,256], index: 8, kind: input, shape index: {}]   ;;  %s7483_s9 = inlined_call_operand.hbm [shape: bf16[128,128], index: 9, kind: input, shape index: {}]   ;;  %s7484_s10 = inlined_call_operand.hbm [shape: f32[1,128], index: 10, kind: input, shape index: {}]   ;;  %s7485_s11 = inlined_call_operand.hbm [shape: f32[1,128], index: 11, kind: input, shape index: {}]   ;;  %s7486_s12 = inlined_call_operand.hbm [shape: f32[1,128], index: 12, kind: input, shape index: {}]   ;;  %s7487_s13 = inlined_call_operand.hbm [shape: bf16[128,128], index: 13, kind: input, shape index: {}]   ;;  %s7488_s14 = inlined_call_operand.hbm [shape: f32[1,128], index: 14, kind: input, shape index: {}]   ;;  %s7489_s15 = inlined_call_operand.hbm [shape: bf16[256,256], index: 15, kind: input, shape index: {}]   ;;  %s7490_s16 = inlined_call_operand.hbm [shape: f32[1,256], index: 16, kind: input, shape index: {}]   ;;  %s7491_s17 = inlined_call_operand.vmem [shape: bf16[128,128], index: 17, kind: input, shape index: {}]   ;;  %s7492_s18 = inlined_call_operand.vmem [shape: f32[1,128], index: 18, kind: input, shape index: {}]   ;;  %s7493_s19 = inlined_call_operand.vmem [shape: f32[1,128], index: 19, kind: input, shape index: {}]   ;;  %s7494_s20 = inlined_call_operand.vmem [shape: f32[1,128], index: 20, kind: input, shape index: {}]   ;;  %s7495_s21 = inlined_call_operand.hbm [shape: bf16[128,256], index: 21, kind: input, shape index: {}]   ;;  %s7496_s22 = inlined_call_operand.vmem [shape: f32[1,256], index: 22, kind: input, shape index: {}]   ;;  %s7497_s23 = inlined_call_operand.hbm [shape: bf16[256,128], index: 23, kind: input, shape index: {}]   ;;  %s7498_s24 = inlined_call_operand.vmem [shape: f32[1,128], index: 24, kind: input, shape index: {}]   ;;  %s7499_s25 = inlined_call_operand.vmem [shape: f32[1,128], index: 25, kind: input, shape index: {}]   ;;  %s7500_s26 = inlined_call_operand.vmem [shape: f32[1,128], index: 26, kind: input, shape index: {}]   ;;  %s7501_s27 = inlined_call_operand.hbm [shape: f32[2,32,128], index: 27, kind: output, shape index: {0}]   ;;  %s7502_s28 = inlined_call_operand.hbm [shape: f32[2,32,128], index: 28, kind: output, shape index: {1}]  }
   0x1   :  { %7584 = sst [smem:[#allocation69_spill]] %s7474_s0 }
   0x2   :  { %7585 = sst [smem:[#allocation70_spill]] %s7475_s1 }
   0x3   :  { %7586 = sst [smem:[#allocation71_spill]] %s7476_s2 }
   0x4   :  { %7587 = sst [smem:[#allocation72_spill]] %s7477_s3 }
   0x5   :  { %7588 = sst [smem:[#allocation73_spill]] %s7478_s4 }
   0x6   :  { %7589 = sst [smem:[#allocation74_spill]] %s7479_s5 }
   0x7   :  { %7590 = sst [smem:[#allocation75_spill]] %s7480_s6 }
   0x8   :  { %7591 = sst [smem:[#allocation76_spill]] %s7481_s7 }
   0x9   :  { %7592 = sst [smem:[#allocation77_spill]] %s7482_s8 }
   0xa   :  { %7593 = sst [smem:[#allocation78_spill]] %s7483_s9 }
   0xb   :  { %7594 = sst [smem:[#allocation79_spill]] %s7484_s10 }
   0xc   :  { %7595 = sst [smem:[#allocation80_spill]] %s7485_s11 }
   0xd   :  { %7596 = sst [smem:[#allocation81_spill]] %s7486_s12 }
   0xe   :  { %7597 = sst [smem:[#allocation82_spill]] %s7487_s13 }
   0xf   :  { %7598 = sst [smem:[#allocation83_spill]] %s7488_s14 }
  0x10   :  { %7599 = sst [smem:[#allocation84_spill]] %s7489_s15 }
  0x11   :  { %7600 = sst [smem:[#allocation85_spill]] %s7490_s16 }
  0x12   :  { %7601 = sst [smem:[#allocation86_spill]] %s7491_s17 }
  0x13   :  { %7602 = sst [smem:[#allocation87_spill]] %s7492_s18 }
  0x14   :  { %7603 = sst [smem:[#allocation88_spill]] %s7493_s19 }
  0x15   :  { %7604 = sst [smem:[#allocation89_spill]] %s7494_s20 }
  0x16   :  { %7605 = sst [smem:[#allocation90_spill]] %s7495_s21 }
  0x17   :  { %7606 = sst [smem:[#allocation91_spill]] %s7496_s22 }
  0x18   :  { %7607 = sst [smem:[#allocation92_spill]] %s7497_s23 }
  0x19   :  { %7608 = sst [smem:[#allocation93_spill]] %s7498_s24 }
  0x1a   :  { %7609 = sst [smem:[#allocation94_spill]] %s7499_s25 }
  0x1b   :  { %7610 = sst [smem:[#allocation95_spill]] %s7500_s26 }
  0x1c   :  { %7611 = sst [smem:[#allocation96_spill]] %s7501_s27 }
  0x1d   :  { %7612 = sst [smem:[#allocation97_spill]] %s7502_s28 }
  0x1e   :  { %34 = vsyncpa [#allocation3], 0 }
  0x1f   :  { %36 = vsyncpa [#allocation3 + $0x1], 0 }
  0x20   :  { %37 = vsyncpa [#allocation6], 0 }
  0x21   :  { %39 = vsyncpa [#allocation6 + $0x1], 0 }
  0x22   :  { %40 = vsyncpa [#allocation9], 0 }
  0x23   :  { %42 = vsyncpa [#allocation9 + $0x1], 0 }
  0x24   :  { %43 = vsyncpa [#allocation12], 0 }
  0x25   :  { %44 = vsyncpa [#allocation15], 0 }
  0x26   :  { %45 = vsyncpa [#allocation18], 0 }
  0x27   :  { %46 = vsyncpa [#allocation21], 0 }
  0x28   :  { %47 = vsyncpa [#allocation24], 0 }
  0x29   :  { %48 = vsyncpa [#allocation27], 0 }
  0x2a   :  { %49 = vsyncpa [#allocation30], 0 }
  0x2b   :  { %50 = vsyncpa [#allocation4], 0 }
  0x2c   :  { %52 = vsyncpa [#allocation4 + $0x1], 0 }
  0x2d   :  { %53 = vsyncpa [#allocation34], 0 }
  0x2e   :  { %55 = vsyncpa [#allocation34 + $0x1], 0  ;;  %s6126_s8 = smov 0   ;;  %s6128_s5 = smov 0  }
  0x2f   :  { %s6130_s9 = smov 0   ;;  %s6132_s30 = smov 0  }
  0x30   :  { %s6134_s3 = smov 0   ;;  %s6136_s6 = smov 0  }
  0x31   :  { %s6138_s10 = smov 0   ;;  %s6140_s0 = smov 0  }
  0x32   :  { %s6142_s11 = smov 0   ;;  %s6144_s29 = smov 0  }
  0x33   :  { %s6146_s2 = smov 0  }
  0x34 LB: > { %7613 = sst [smem:[#allocation47_spill]] %s5908_s5  ;;  %s6182_s7 = sadd.s32 4294967295, %s5944_s2   ;;  %s5944_s2 = sphi %s6146_s2, %s61_s2   ;;  %s5940_s29 = sphi %s6144_s29, %s7756_s29   ;;  %s5936_s11 = sphi %s6142_s11, %s7753_s11   ;;  %s5932_s0 = sphi %s6140_s0, %s7755_s0   ;;  %s5928_s10 = sphi %s6138_s10, %s7752_s10   ;;  %s5924_s6 = sphi %s6136_s6, %s7751_s6   ;;  %s5920_s3 = sphi %s6134_s3, %s7750_s3   ;;  %s5916_s30 = sphi %s6132_s30, %s7749_s30   ;;  %s5912_s9 = sphi %s6130_s9, %s7748_s9   ;;  %s5908_s5 = sphi %s6128_s5, %s7747_s5   ;;  %s5904_s8 = sphi %s6126_s8, %s7746_s8  }
  0x35   : > { %7614 = sst [smem:[#allocation48_spill]] %s5912_s9  ;;  %p4151_p0 = scmp.ge.s32.totalorder %s5944_s2, 1 }
  0x36   : > { %7615 = sst [smem:[#allocation49_spill]] %s5916_s30  ;;  %p7518_p1 = scmp.eq.s32.totalorder %s6182_s7, 0 }
  0x37   : > { %7616 = sst [smem:[#allocation50_spill]] %s5920_s3  ;;  %p732_p2 = scmp.lt.s32.totalorder %s5944_s2, 5 }
  0x38   : > { %7617 = sst [smem:[#allocation51_spill]] %s5924_s6  ;;  %s5946_s1 = smov [#allocation11]  }
  0x39   : > { %7618 = sst [smem:[#allocation52_spill]] %s5928_s10  ;;  %p6187_p3 = pnand %p4151_p0, %p732_p2 }
  0x3a   : > { %7619 = sst [smem:[#allocation53_spill]] %s5932_s0  ;;  %s744_s4 = sshll.u32 %s5946_s1, 4  ;;  %s745_s4 = int_to_ptr.vmem [resolvable:$true] %s744_s4 }
  0x3b   : > { %7620 = sst [smem:[#allocation54_spill]] %s5936_s11  ;;  %p4750_p4 = pneg %p6187_p3 }
  0x3c   : > { %7621 = sst [smem:[#allocation55_spill]] %s5944_s2  ;;  %s5947_s26 = smov [#allocation14]  }
  0x3d   : > { %7622 = sst [smem:[#allocation56_spill]] %s6182_s7  ;;  %p6195_p5 = pnand %p4750_p4, %p7518_p1 }
  0x3e   : > { %s7623_s12 = scalar_select %p6187_p3, 1, 0 }
  0x3f   : > { %s7625_s27 = scalar_select %p6195_p5, 1, 0 }
  0x40   : > { %7624 = sst [smem:[#allocation57_spill]] %s7623_s12  ;;  %s768_s25 = sshll.u32 %s5947_s26, 4  ;;  %s6199_s25 = int_to_ptr.vmem [resolvable:$true] %s768_s25 }
  0x41   : > { %s7626_s10 = sld [smem:[#allocation74_spill]]  ;;  %p6209_p7 = pneg %p6195_p5 }
  0x43   : > { %s7628_s1 = scalar_select %p6209_p7, 1, 0 }
  0x47   : > { %s7627_s24 = smov %s7626_s10  ;;  %s5212_s22 = scalar_lea.hbm %s7626_s10, 1024 }
  0x48   : > { %p5213_p6 = scmp.ne.s32.totalorder %s7627_s24, %s5212_s22  ;;  %p5219_p10 = scmp.lt.u32.totalorder %s5212_s22, %s7627_s24 }
  0x4a   : > { %p5215_p8 = pnand %p6209_p7, %p5213_p6 }
  0x4c   : > { %p5216_p9 = pneg %p5215_p8 }
  0x4e   : > { %p5221_p11 = pnand %p5219_p10, %p5216_p9 }
  0x50   : > { %5224 = shalt.err (!%p5221_p11)
}
  0x51   : > { %s5225_s28 = scalar_lea.vmem %s745_s4, 1024  ;;  %p5233_p2 = scmp.lt.s32.totalorder %s745_s4, %s745_s4 }
  0x52   : > { %p5226_p12 = scmp.ne.s32.totalorder %s745_s4, %s5225_s28  ;;  %p5234_p4 = scmp.lt.s32.totalorder %s5225_s28, %s5225_s28 }
  0x54   : > { %p5228_p13 = pnand %p5226_p12, %p6209_p7  ;;  %p5235_p1 = por %p5234_p4, %p5233_p2 }
  0x56   : > { %p5229_p0 = pneg %p5228_p13 }
  0x58   : > { %p5236_p3 = pnand %p5235_p1, %p5229_p0 }
  0x5a   : > { %5239 = shalt.err (!%p5236_p3)
}
  0x5b   : > { %s7524_s19 = smov 64   ;;  %s7526_s20 = smov 4  }
  0x5c   : > { %4753 = dma.hbm_to_vmem [thread:$0]  (!%p6195_p5), %s7627_s24, 1024, %s745_s4, [#allocation12], %s7524_s19, %s7524_s19, %s7526_s20  }
  0x5d   : > { %s7629_s26 = sld [smem:[#allocation76_spill]] }
  0x63   : > { %s5240_s17 = scalar_lea.hbm %s7629_s26, 2048 }
  0x64   : > { %p5241_p1 = scmp.ne.s32.totalorder %s7629_s26, %s5240_s17  ;;  %p5247_p8 = scmp.lt.u32.totalorder %s5240_s17, %s7629_s26 }
  0x66   : > { %p5243_p3 = pnand %p5241_p1, %p6209_p7 }
  0x68   : > { %p5244_p6 = pneg %p5243_p3 }
  0x6a   : > { %p5249_p9 = pnand %p5247_p8, %p5244_p6 }
  0x6c   : > { %5252 = shalt.err (!%p5249_p9)
}
  0x6d   : > { %s5253_s4 = scalar_lea.vmem %s6199_s25, 2048  ;;  %p5261_p13 = scmp.lt.s32.totalorder %s6199_s25, %s6199_s25 }
  0x6e   : > { %p5254_p10 = scmp.ne.s32.totalorder %s6199_s25, %s5253_s4  ;;  %p5262_p0 = scmp.lt.s32.totalorder %s5253_s4, %s5253_s4 }
  0x70   : > { %p5256_p11 = pnand %p5254_p10, %p6209_p7  ;;  %p5263_p2 = por %p5262_p0, %p5261_p13 }
  0x72   : > { %p5257_p12 = pneg %p5256_p11 }
  0x74   : > { %p5264_p4 = pnand %p5263_p2, %p5257_p12 }
  0x76   : > { %5267 = shalt.err (!%p5264_p4)
}
  0x77   : > { %s7530_s12 = smov 128   ;;  %s7532_s16 = smov 8  }
  0x78   : > { %4759 = dma.hbm_to_vmem [thread:$0]  (!%p6195_p5), %s7629_s26, 2048, %s6199_s25, [#allocation15], %s7530_s12, %s7530_s12, %s7532_s16  }
  0x79   : > { %s5952_s18 = smov [#allocation17]   ;;  %s5953_s10 = smov [#allocation20]  }
  0x7a   : > { %s792_s22 = sshll.u32 %s5952_s18, 4  ;;  %s817_s0 = sshll.u32 %s5953_s10, 4  ;;  %s793_s22 = int_to_ptr.vmem [resolvable:$true] %s792_s22  ;;  %s6254_s0 = int_to_ptr.vmem [resolvable:$true] %s817_s0 }
  0x7b   : > { %s7630_s19 = sld [smem:[#allocation78_spill]] }
  0x81   : > { %s5268_s20 = scalar_lea.hbm %s7630_s19, 1024 }
  0x82   : > { %p5269_p1 = scmp.ne.s32.totalorder %s7630_s19, %s5268_s20  ;;  %p5275_p8 = scmp.lt.u32.totalorder %s5268_s20, %s7630_s19 }
  0x84   : > { %p5271_p3 = pnand %p5269_p1, %p6209_p7 }
  0x86   : > { %p5272_p6 = pneg %p5271_p3 }
  0x88   : > { %p5277_p9 = pnand %p5275_p8, %p5272_p6 }
  0x8a   : > { %5280 = shalt.err (!%p5277_p9)
}
  0x8b   : > { %s5281_s23 = scalar_lea.vmem %s793_s22, 1024  ;;  %p5289_p13 = scmp.lt.s32.totalorder %s793_s22, %s793_s22 }
  0x8c   : > { %p5282_p10 = scmp.ne.s32.totalorder %s793_s22, %s5281_s23  ;;  %p5290_p0 = scmp.lt.s32.totalorder %s5281_s23, %s5281_s23 }
  0x8e   : > { %p5284_p11 = pnand %p5282_p10, %p6209_p7  ;;  %p5291_p2 = por %p5290_p0, %p5289_p13 }
  0x90   : > { %p5285_p12 = pneg %p5284_p11 }
  0x92   : > { %p5292_p4 = pnand %p5291_p2, %p5285_p12 }
  0x94   : > { %5295 = shalt.err (!%p5292_p4)
}
  0x95   : > { %s7631_s14 = smov 4   ;;  %s7632_s24 = smov 64  }
  0x96   : > { %4765 = dma.hbm_to_vmem [thread:$0]  (!%p6195_p5), %s7630_s19, 1024, %s793_s22, [#allocation18], %s7632_s24, %s7632_s24, %s7631_s14  }
  0x97   : > { %s7633_s4 = sld [smem:[#allocation80_spill]] }
  0x9d   : > { %s5296_s17 = scalar_lea.hbm %s7633_s4, 16 }
  0x9e   : > { %p5297_p1 = scmp.ne.s32.totalorder %s7633_s4, %s5296_s17  ;;  %p5303_p8 = scmp.lt.u32.totalorder %s5296_s17, %s7633_s4 }
  0xa0   : > { %p5299_p3 = pnand %p5297_p1, %p6209_p7 }
  0xa2   : > { %p5300_p6 = pneg %p5299_p3 }
  0xa4   : > { %p5305_p9 = pnand %p5303_p8, %p5300_p6 }
  0xa6   : > { %5308 = shalt.err (!%p5305_p9)
}
  0xa7   : > { %s5309_s22 = scalar_lea.vmem %s6254_s0, 16  ;;  %s5316_s12 = scalar_lea.vmem %s6254_s0, 32 }
  0xa8   : > { %p5310_p10 = scmp.ne.s32.totalorder %s6254_s0, %s5309_s22  ;;  %p5317_p13 = scmp.lt.s32.totalorder %s6254_s0, %s6254_s0 }
  0xa9   : > { %p5318_p0 = scmp.lt.s32.totalorder %s5316_s12, %s5309_s22 }
  0xaa   : > { %p5312_p11 = pnand %p5310_p10, %p6209_p7 }
  0xab   : > { %p5319_p2 = por %p5318_p0, %p5317_p13 }
  0xac   : > { %p5313_p12 = pneg %p5312_p11 }
  0xae   : > { %p5320_p4 = pnand %p5319_p2, %p5313_p12 }
  0xb0   : > { %5323 = shalt.err (!%p5320_p4)
}
  0xb1   : > { %4771 = dma.hbm_to_vmem [thread:$0]  (!%p6195_p5), %s7633_s4, 16, %s6254_s0, [#allocation21]  }
  0xb2   : > { %s5954_s20 = smov [#allocation23]   ;;  %s5955_s28 = smov [#allocation26]  }
  0xb3   : > { %s838_s10 = sshll.u32 %s5954_s20, 4  ;;  %s862_s17 = sshll.u32 %s5955_s28, 4  ;;  %s839_s10 = int_to_ptr.vmem [resolvable:$true] %s838_s10  ;;  %s6301_s17 = int_to_ptr.vmem [resolvable:$true] %s862_s17 }
  0xb4   : > { %s7634_s13 = sld [smem:[#allocation82_spill]] }
  0xba   : > { %s5324_s22 = scalar_lea.hbm %s7634_s13, 1024 }
  0xbb   : > { %p5325_p1 = scmp.ne.s32.totalorder %s7634_s13, %s5324_s22  ;;  %p5331_p8 = scmp.lt.u32.totalorder %s5324_s22, %s7634_s13 }
  0xbd   : > { %p5327_p3 = pnand %p5325_p1, %p6209_p7 }
  0xbf   : > { %p5328_p6 = pneg %p5327_p3 }
  0xc1   : > { %p5333_p9 = pnand %p5331_p8, %p5328_p6 }
  0xc3   : > { %5336 = shalt.err (!%p5333_p9)
}
  0xc4   : > { %s5337_s18 = scalar_lea.vmem %s839_s10, 1024  ;;  %p5345_p13 = scmp.lt.s32.totalorder %s839_s10, %s839_s10 }
  0xc5   : > { %p5338_p10 = scmp.ne.s32.totalorder %s839_s10, %s5337_s18  ;;  %p5346_p0 = scmp.lt.s32.totalorder %s5337_s18, %s5337_s18 }
  0xc7   : > { %p5340_p11 = pnand %p5338_p10, %p6209_p7  ;;  %p5347_p2 = por %p5346_p0, %p5345_p13 }
  0xc9   : > { %p5341_p12 = pneg %p5340_p11 }
  0xcb   : > { %p5348_p4 = pnand %p5347_p2, %p5341_p12 }
  0xcd   : > { %5351 = shalt.err (!%p5348_p4)
}
  0xce   : > { %4777 = dma.hbm_to_vmem [thread:$0]  (!%p6195_p5), %s7634_s13, 1024, %s839_s10, [#allocation24], %s7632_s24, %s7632_s24, %s7631_s14  }
  0xcf   : > { %s7635_s15 = sld [smem:[#allocation84_spill]] }
  0xd5   : > { %s5352_s23 = scalar_lea.hbm %s7635_s15, 4096 }
  0xd6   : > { %p5353_p1 = scmp.ne.s32.totalorder %s7635_s15, %s5352_s23  ;;  %p5359_p8 = scmp.lt.u32.totalorder %s5352_s23, %s7635_s15 }
  0xd8   : > { %p5355_p3 = pnand %p5353_p1, %p6209_p7 }
  0xda   : > { %p5356_p6 = pneg %p5355_p3 }
  0xdc   : > { %p5361_p9 = pnand %p5359_p8, %p5356_p6 }
  0xde   : > { %5364 = shalt.err (!%p5361_p9)
}
  0xdf   : > { %s5365_s10 = scalar_lea.vmem %s6301_s17, 4096  ;;  %p5373_p13 = scmp.lt.s32.totalorder %s6301_s17, %s6301_s17 }
  0xe0   : > { %p5366_p10 = scmp.ne.s32.totalorder %s6301_s17, %s5365_s10  ;;  %p5374_p0 = scmp.lt.s32.totalorder %s5365_s10, %s5365_s10 }
  0xe2   : > { %p5368_p11 = pnand %p5366_p10, %p6209_p7  ;;  %p5375_p2 = por %p5374_p0, %p5373_p13 }
  0xe4   : > { %p5369_p12 = pneg %p5368_p11 }
  0xe6   : > { %p5376_p4 = pnand %p5375_p2, %p5369_p12 }
  0xe8   : > { %5379 = shalt.err (!%p5376_p4)
}
  0xe9   : > { %s7636_s18 = smov 8   ;;  %s7637_s19 = smov 128  }
  0xea   : > { %4783 = dma.hbm_to_vmem [thread:$0]  (!%p6195_p5), %s7635_s15, 4096, %s6301_s17, [#allocation27], %s7637_s19, %s7637_s19, %s7636_s18  }
  0xeb   : > { %s5956_s25 = smov [#allocation29]   ;;  %s7638_s21 = sld [smem:[#allocation90_spill]] }
  0xec   : > { %s898_s23 = sshll.u32 %s5956_s25, 4  ;;  %s899_s23 = int_to_ptr.vmem [resolvable:$true] %s898_s23 }
  0xf1   : > { %s5380_s16 = scalar_lea.hbm %s7638_s21, 2048 }
  0xf2   : > { %p5381_p1 = scmp.ne.s32.totalorder %s7638_s21, %s5380_s16  ;;  %p5387_p8 = scmp.lt.u32.totalorder %s5380_s16, %s7638_s21 }
  0xf4   : > { %p5383_p3 = pnand %p5381_p1, %p6209_p7 }
  0xf6   : > { %p5384_p6 = pneg %p5383_p3 }
  0xf8   : > { %p5389_p9 = pnand %p5387_p8, %p5384_p6 }
  0xfa   : > { %5392 = shalt.err (!%p5389_p9)
}
  0xfb   : > { %s5393_s17 = scalar_lea.vmem %s899_s23, 2048  ;;  %p5401_p13 = scmp.lt.s32.totalorder %s899_s23, %s899_s23 }
  0xfc   : > { %p5394_p10 = scmp.ne.s32.totalorder %s899_s23, %s5393_s17  ;;  %p5402_p0 = scmp.lt.s32.totalorder %s5393_s17, %s5393_s17 }
  0xfe   : > { %p5396_p11 = pnand %p5394_p10, %p6209_p7  ;;  %p5403_p2 = por %p5402_p0, %p5401_p13 }
 0x100   : > { %p5397_p12 = pneg %p5396_p11 }
 0x102   : > { %p5404_p4 = pnand %p5403_p2, %p5397_p12 }
 0x104   : > { %5407 = shalt.err (!%p5404_p4)
}
 0x105   : > { %4789 = dma.hbm_to_vmem [thread:$0]  (!%p6195_p5), %s7638_s21, 2048, %s899_s23, [#allocation30], %s7637_s19, %s7637_s19, %s7636_s18  }
 0x106   : > { %p7537_p1 = scmp.eq.s32.totalorder %s5944_s2, 0  ;;  %p115_p3 = scmp.ne.s32.totalorder %s5912_s9, %s5908_s5 }
 0x107   : > { %p121_p6 = scmp.ne.s32.totalorder %s5908_s5, %s5904_s8  ;;  %p7536_p8 = scmp.lt.s32.totalorder %s5944_s2, 4 }
 0x108   : > { %p117_p9 = por %p115_p3, %p7537_p1  ;;  %s7538_s28 = sand.u32 1, %s5944_s2  }
 0x109   : > { %p7639_p10 = scmp.eq.s32.totalorder %s6182_s7, 0  ;;  %s962_s22 = sand.u32 1, %s5912_s9  }
 0x10a   : > { %s4356_s12 = sshll.u32 %s5940_s29, 9  ;;  %s4171_s16 = sshll.u32 %s962_s22, 5 }
 0x10b   : > { %p6383_p11 = por %p121_p6, %p7639_p10  ;;  %s7642_s23 = sld [smem:[#allocation70_spill]] }
 0x10c   : > { %p6396_p12 = pnand %p7536_p8, %p117_p9  ;;  %s964_s13 = scalar_lea.vmem [#allocation5], %s4171_s16 }
 0x10d   : > { %s7640_s25 = scalar_select %p6383_p11, 1, 0 }
 0x10e   : > { %s7643_s8 = scalar_select %p6396_p12, 1, 0 }
 0x10f   : > { %7641 = sst [smem:[#allocation58_spill]] %s7640_s25  ;;  %s971_s4 = sshll.u32 %s964_s13, 4  ;;  %s6402_s4 = int_to_ptr.vmem [resolvable:$true] %s971_s4 }
 0x110   : > { %7644 = sst [smem:[#allocation59_spill]] %s7643_s8  ;;  %s6400_s20 = sshll.u32 %s962_s22, 6 }
 0x111   : > { %s6392_s17 = scalar_lea.hbm %s7642_s23, %s4356_s12  ;;  %s6406_s12 = scalar_lea.sflag [#allocation6], %s7538_s28 }
 0x112   : > { %7645 = sst [smem:[#allocation60_spill]] %s6406_s12  ;;  %s5408_s0 = scalar_lea.hbm %s6392_s17, 512 }
 0x113   : > { %p5409_p13 = scmp.ne.s32.totalorder %s6392_s17, %s5408_s0  ;;  %p7556_p0 = pneg %p6396_p12 }
 0x114   : > { %s5413_s16 = scalar_lea.hbm %s7642_s23, 1024  ;;  %p5414_p3 = scmp.lt.u32.totalorder %s6392_s17, %s7642_s23 }
 0x115   : > { %p5411_p2 = pnand %p7556_p0, %p5409_p13  ;;  %p5415_p6 = scmp.lt.u32.totalorder %s5413_s16, %s5408_s0 }
 0x116   : > { %p5417_p10 = scmp.lt.u32.totalorder %s5408_s0, %s6392_s17 }
 0x117   : > { %p5412_p4 = pneg %p5411_p2  ;;  %p5416_p9 = por %p5415_p6, %p5414_p3 }
 0x119   : > { %p5418_p8 = por %p5417_p10, %p5416_p9 }
 0x11b   : > { %p5419_p1 = pnand %p5418_p8, %p5412_p4 }
 0x11d   : > { %5422 = shalt.err (!%p5419_p1)
}
 0x11e   : > { %s5423_s28 = scalar_lea.vmem %s6402_s4, 512  ;;  %s5957_s15 = smov [#allocation5]  }
 0x11f   : > { %p5424_p13 = scmp.ne.s32.totalorder %s6402_s4, %s5423_s28  ;;  %s5428_s10 = sshll.u32 %s5957_s15, 4  ;;  %s5429_s10 = int_to_ptr.vmem [resolvable:$false] %s5428_s10 }
 0x120   : > { %s5430_s13 = scalar_lea.vmem %s5429_s10, 1024  ;;  %p5431_p5 = scmp.lt.s32.totalorder %s6402_s4, %s5429_s10 }
 0x121   : > { %p5426_p2 = pnand %p5424_p13, %p7556_p0  ;;  %p5432_p3 = scmp.lt.s32.totalorder %s5430_s13, %s5423_s28 }
 0x123   : > { %p5427_p11 = pneg %p5426_p2  ;;  %p5433_p6 = por %p5432_p3, %p5431_p5 }
 0x125   : > { %p5434_p9 = pnand %p5433_p6, %p5427_p11 }
 0x127   : > { %5437 = shalt.err (!%p5434_p9)
}
 0x128   : > { %4799 = dma.hbm_to_vmem [thread:$0]  (!%p6396_p12), %s6392_s17, 512, %s6402_s4, %s6406_s12, %s7637_s19, %s7637_s19, %s7636_s18  }
 0x129   : > { %s985_s28 = scalar_lea.vmem [#allocation7], %s6400_s20  ;;  %s4150_s16 = sadd.s32 4294967294, %s5944_s2  }
 0x12a   : > { %s6438_s0 = sshll.u32 %s985_s28, 4  ;;  %s70_s22 = sadd.s32 1, %s5936_s11 }
 0x12b   : > { %7646 = sst [smem:[#allocation61_spill]] %s6438_s0  ;;  %p71_p5 = scmp.ge.s32.totalorder %s70_s22, 2 }
 0x12c   : > { %s73_s15 = sadd.s32 1, %s5940_s29  ;;  %s82_s10 = sadd.s32 1, %s5924_s6 }
 0x12d   : > { %p89_p1 = scmp.ne.s32.totalorder %s5924_s6, %s5920_s3  ;;  %s7758_s22 = smov (%p71_p5, %s70_s22), 0 }
 0x12e   : > { %7647 = sst [smem:[#allocation62_spill]] %s7758_s22  ;;  %s7760_s15 = smov (!%p71_p5, %s73_s15), %s5940_s29 }
 0x12f   : > { %s78_s13 = ssub.s32 %s5936_s11, %s7758_s22  ;;  %p7648_p8 = scmp.eq.s32.totalorder %s5944_s2, 0 }
 0x130   : > { %p75_p4 = scmp.ge.s32.totalorder %s7760_s15, 2  ;;  %p95_p10 = scmp.ne.s32.totalorder %s5920_s3, %s5916_s30 }
 0x131   : > { %p6453_p11 = por %p7648_p8, %p89_p1  ;;  %p691_p13 = scmp.eq.s32.totalorder %s6182_s7, 3 }
 0x132   : > { %p697_p2 = scmp.eq.s32.totalorder %s4150_s16, 3  ;;  %s7762_s15 = smov (%p75_p4, %s7760_s15), 0 }
 0x133   : > { %7650 = sst [smem:[#allocation63_spill]] %s7762_s15  ;;  %p7651_p3 = scmp.eq.s32.totalorder %s6182_s7, 0 }
 0x134   : > { %p6468_p9 = por %p691_p13, %p89_p1  ;;  %s77_s28 = ssub.s32 %s5940_s29, %s7762_s15 }
 0x135   : > { %p6464_p6 = por %p7651_p3, %p95_p10  ;;  %p6474_p5 = por %p697_p2, %p95_p10 }
 0x136   : > { %s7654_s4 = scalar_select %p6468_p9, 1, 0 }
 0x137   : > { %s7652_s17 = scalar_select %p6464_p6, 1, 0 }
 0x138   : > { %7655 = sst [smem:[#allocation65_spill]] %s7654_s4  ;;  %s79_s23 = sor.u32 %s78_s13, %s77_s28 }
 0x139   : > { %7653 = sst [smem:[#allocation64_spill]] %s7652_s17  ;;  %p106_p8 = scmp.eq.s32.totalorder %s77_s28, 0 }
 0x13a   : > { %s7656_s21 = scalar_select %p6474_p5, 1, 0 }
 0x13b   : > { %p80_p4 = scmp.eq.s32.totalorder %s79_s23, 0  ;;  %s6479_s16 = sand.u32 1, %s5924_s6  }
 0x13c   : > { %7657 = sst [smem:[#allocation66_spill]] %s7656_s21  ;;  %s7658_s26 = sadd.s32 1, %s5912_s9 }
 0x13d   : > { %s6484_s22 = scalar_select %p106_p8, %s5912_s9, %s7658_s26  }
 0x13e   : > { %s6487_s30 = scalar_select %p80_p4, %s5924_s6, %s82_s10  }
 0x13f   : > { %7659 = sst [smem:[#allocation67_spill]] %s6484_s22  ;;  %s4168_s25 = sshll.u32 %s5936_s11, 1 }
 0x140   : > { %7660 = sst [smem:[#allocation68_spill]] %s6487_s30  ;;  %s4169_s4 = sshll.u32 %s5940_s29, 2 }
 0x141   : > { %s6491_s15 = sadd.s32 %s4169_s4, %s4168_s25  ;;  %p7661_p1 = scmp.lt.s32.totalorder %s5944_s2, 4 }
 0x142   : > { %s7554_s23 = sshll.u32 %s6479_s16, 3  ;;  %s7555_s28 = sshll.u32 %s6491_s15, 6 }
 0x143   : > { %p6497_p10 = pnand %p7661_p1, %p6453_p11  ;;  %s1006_s26 = scalar_lea.vmem [#allocation8], %s7554_s23 }
 0x144   : > { %s1015_s22 = sshll.u32 %s1006_s26, 4  ;;  %s7663_s30 = sld [smem:[#allocation72_spill]]  ;;  %s6512_s22 = int_to_ptr.vmem [resolvable:$true] %s1015_s22 }
 0x145   : > { %s7662_s13 = scalar_select %p6497_p10, 1, 0 }
 0x146   : > { %s7665_s20 = sand.u32 1, %s5944_s2   ;;  %p6522_p13 = pneg %p6497_p10 }
 0x147   : > { %s6516_s4 = scalar_lea.sflag [#allocation9], %s7665_s20 }
 0x148   : > { %s7666_s26 = scalar_select %p6522_p13, 1, 0 }
 0x14a   : > { %s7664_s21 = smov %s7663_s30  ;;  %s6510_s25 = scalar_lea.hbm %s7663_s30, %s7555_s28 }
 0x14b   : > { %s5438_s6 = scalar_lea.hbm %s6510_s25, 128  ;;  %s5443_s10 = scalar_lea.hbm %s7664_s21, 512 }
 0x14c   : > { %p5439_p11 = scmp.ne.s32.totalorder %s6510_s25, %s5438_s6  ;;  %p5444_p8 = scmp.lt.u32.totalorder %s6510_s25, %s7664_s21 }
 0x14d   : > { %p5445_p4 = scmp.lt.u32.totalorder %s5443_s10, %s5438_s6  ;;  %p5447_p0 = scmp.lt.u32.totalorder %s5438_s6, %s6510_s25 }
 0x14e   : > { %p5441_p2 = pnand %p6522_p13, %p5439_p11 }
 0x14f   : > { %p5446_p1 = por %p5445_p4, %p5444_p8 }
 0x150   : > { %p5442_p3 = pneg %p5441_p2 }
 0x151   : > { %p5448_p5 = por %p5447_p0, %p5446_p1 }
 0x153   : > { %p5449_p9 = pnand %p5448_p5, %p5442_p3 }
 0x155   : > { %5452 = shalt.err (!%p5449_p9)
}
 0x156   : > { %s5453_s20 = scalar_lea.vmem %s6512_s22, 128  ;;  %s5958_s30 = smov [#allocation8]  }
 0x157   : > { %p5454_p11 = scmp.ne.s32.totalorder %s6512_s22, %s5453_s20  ;;  %s5458_s11 = sshll.u32 %s5958_s30, 4  ;;  %s5459_s11 = int_to_ptr.vmem [resolvable:$false] %s5458_s11 }
 0x158   : > { %s5460_s23 = scalar_lea.vmem %s5459_s11, 256  ;;  %p5461_p12 = scmp.lt.s32.totalorder %s6512_s22, %s5459_s11 }
 0x159   : > { %p5456_p2 = pnand %p5454_p11, %p6522_p13  ;;  %p5462_p7 = scmp.lt.s32.totalorder %s5460_s23, %s5453_s20 }
 0x15b   : > { %p5457_p6 = pneg %p5456_p2  ;;  %p5463_p8 = por %p5462_p7, %p5461_p12 }
 0x15d   : > { %p5464_p4 = pnand %p5463_p8, %p5457_p6 }
 0x15f   : > { %5467 = shalt.err (!%p5464_p4)
}
 0x160   : > { %4805 = dma.hbm_to_vmem [thread:$0]  (!%p6497_p10), %s6510_s25, 128, %s6512_s22, %s6516_s4, %s7632_s24, %s7632_s24, %s7631_s14  }
 0x161   : > { %s7667_s6 = sshll.u32 %s6491_s15, 6  ;;  %s7668_s30 = sld [smem:[#allocation73_spill]] }
 0x162   : > { %s7670_s11 = sshll.u32 %s6479_s16, 3  ;;  %s5959_s2 = smov [#allocation13]  }
 0x163   : > { %s1029_s23 = scalar_lea.vmem [#allocation10], %s7670_s11  ;;  %s758_s5 = sshll.u32 %s5959_s2, 4  ;;  %s759_s5 = int_to_ptr.vmem [resolvable:$true] %s758_s5 }
 0x164   : > { %s1038_s9 = sshll.u32 %s1029_s23, 4  ;;  %s7671_s3 = sld [smem:[#allocation75_spill]]  ;;  %s6558_s9 = int_to_ptr.vmem [resolvable:$true] %s1038_s9 }
 0x165   : > { %p7673_p12 = scmp.ne.s32.totalorder %s7628_s1, 0 }
 0x167   : > { %s7669_s21 = smov %s7668_s30  ;;  %s6554_s20 = scalar_lea.hbm %s7668_s30, %s7667_s6 }
 0x16a   : > { %s7672_s12 = smov %s7671_s3  ;;  %s5468_s8 = scalar_lea.hbm %s7671_s3, 16 }
 0x16b   : > { %p5469_p7 = scmp.ne.s32.totalorder %s7672_s12, %s5468_s8  ;;  %p5475_p9 = scmp.lt.u32.totalorder %s5468_s8, %s7672_s12 }
 0x16d   : > { %p5471_p0 = pnand %p5469_p7, %p7673_p12 }
 0x16f   : > { %p5472_p6 = pneg %p5471_p0 }
 0x171   : > { %p5477_p5 = pnand %p5475_p9, %p5472_p6 }
 0x173   : > { %5480 = shalt.err (!%p5477_p5)
}
 0x174   : > { %s5481_s28 = scalar_lea.vmem %s759_s5, 16  ;;  %s5488_s3 = scalar_lea.vmem %s759_s5, 32 }
 0x175   : > { %p5482_p3 = scmp.ne.s32.totalorder %s759_s5, %s5481_s28  ;;  %p5489_p2 = scmp.lt.s32.totalorder %s759_s5, %s759_s5 }
 0x176   : > { %p5490_p8 = scmp.lt.s32.totalorder %s5488_s3, %s5481_s28 }
 0x177   : > { %p5484_p1 = pnand %p5482_p3, %p7673_p12 }
 0x178   : > { %p5491_p4 = por %p5490_p8, %p5489_p2 }
 0x179   : > { %p5485_p11 = pneg %p5484_p1 }
 0x17b   : > { %p5492_p10 = pnand %p5491_p4, %p5485_p11 }
 0x17d   : > { %5495 = shalt.err (!%p5492_p10)
}
 0x17e   : > { %p7674_p7 = scmp.ne.s32.totalorder %s7625_s27, 0  ;;  %s5960_s8 = smov [#allocation16]  }
 0x17f   : > { %s782_s0 = sshll.u32 %s5960_s8, 4  ;;  %s5961_s17 = smov [#allocation19]   ;;  %s783_s0 = int_to_ptr.vmem [resolvable:$true] %s782_s0 }
 0x180   : > { %4756 = dma.hbm_to_vmem [thread:$0]  (!%p7674_p7), %s7672_s12, 16, %s759_s5, [#allocation12]  }
 0x181   : > { %s806_s10 = sshll.u32 %s5961_s17, 4  ;;  %s7675_s23 = sld [smem:[#allocation77_spill]]  ;;  %s807_s10 = int_to_ptr.vmem [resolvable:$true] %s806_s10 }
 0x187   : > { %s5496_s22 = scalar_lea.hbm %s7675_s23, 32 }
 0x188   : > { %p5497_p10 = scmp.ne.s32.totalorder %s7675_s23, %s5496_s22  ;;  %p5503_p9 = scmp.lt.u32.totalorder %s5496_s22, %s7675_s23 }
 0x18a   : > { %p5499_p0 = pnand %p5497_p10, %p7673_p12 }
 0x18c   : > { %p5500_p6 = pneg %p5499_p0 }
 0x18e   : > { %p5505_p5 = pnand %p5503_p9, %p5500_p6 }
 0x190   : > { %5508 = shalt.err (!%p5505_p5)
}
 0x191   : > { %s5509_s5 = scalar_lea.vmem %s783_s0, 32  ;;  %p5517_p2 = scmp.lt.s32.totalorder %s783_s0, %s783_s0 }
 0x192   : > { %p5510_p3 = scmp.ne.s32.totalorder %s783_s0, %s5509_s5  ;;  %p5518_p8 = scmp.lt.s32.totalorder %s5509_s5, %s5509_s5 }
 0x194   : > { %p5512_p1 = pnand %p5510_p3, %p7673_p12  ;;  %p5519_p4 = por %p5518_p8, %p5517_p2 }
 0x196   : > { %p5513_p11 = pneg %p5512_p1 }
 0x198   : > { %p5520_p13 = pnand %p5519_p4, %p5513_p11 }
 0x19a   : > { %5523 = shalt.err (!%p5520_p13)
}
 0x19b   : > { %4762 = dma.hbm_to_vmem [thread:$0]  (!%p7674_p7), %s7675_s23, 32, %s783_s0, [#allocation15]  }
 0x19c   : > { %s7676_s30 = sld [smem:[#allocation79_spill]] }
 0x1a2   : > { %s7677_s22 = smov %s7676_s30  ;;  %s5524_s11 = scalar_lea.hbm %s7676_s30, 16 }
 0x1a3   : > { %p5525_p10 = scmp.ne.s32.totalorder %s7677_s22, %s5524_s11  ;;  %p5531_p13 = scmp.lt.u32.totalorder %s5524_s11, %s7677_s22 }
 0x1a5   : > { %p5527_p0 = pnand %p5525_p10, %p7673_p12 }
 0x1a7   : > { %p5528_p6 = pneg %p5527_p0 }
 0x1a9   : > { %p5533_p9 = pnand %p5531_p13, %p5528_p6 }
 0x1ab   : > { %5536 = shalt.err (!%p5533_p9)
}
 0x1ac   : > { %s5537_s5 = scalar_lea.vmem %s807_s10, 16  ;;  %s5544_s0 = scalar_lea.vmem %s807_s10, 32 }
 0x1ad   : > { %p5538_p5 = scmp.ne.s32.totalorder %s807_s10, %s5537_s5  ;;  %p5545_p11 = scmp.lt.s32.totalorder %s807_s10, %s807_s10 }
 0x1ae   : > { %p5546_p2 = scmp.lt.s32.totalorder %s5544_s0, %s5537_s5 }
 0x1af   : > { %p5540_p3 = pnand %p5538_p5, %p7673_p12 }
 0x1b0   : > { %p5547_p8 = por %p5546_p2, %p5545_p11 }
 0x1b1   : > { %p5541_p1 = pneg %p5540_p3 }
 0x1b3   : > { %p5548_p4 = pnand %p5547_p8, %p5541_p1 }
 0x1b5   : > { %5551 = shalt.err (!%p5548_p4)
}
 0x1b6   : > { %4768 = dma.hbm_to_vmem [thread:$0]  (!%p7674_p7), %s7677_s22, 16, %s807_s10, [#allocation18]  }
 0x1b7   : > { %s5962_s8 = smov [#allocation22]   ;;  %s5963_s30 = smov [#allocation25]  }
 0x1b8   : > { %s828_s17 = sshll.u32 %s5962_s8, 4  ;;  %s852_s11 = sshll.u32 %s5963_s30, 4  ;;  %s829_s17 = int_to_ptr.vmem [resolvable:$true] %s828_s17  ;;  %s853_s11 = int_to_ptr.vmem [resolvable:$true] %s852_s11 }
 0x1b9   : > { %s7678_s28 = sld [smem:[#allocation81_spill]] }
 0x1bf   : > { %s5552_s3 = scalar_lea.hbm %s7678_s28, 16 }
 0x1c0   : > { %p5553_p10 = scmp.ne.s32.totalorder %s7678_s28, %s5552_s3  ;;  %p5559_p13 = scmp.lt.u32.totalorder %s5552_s3, %s7678_s28 }
 0x1c2   : > { %p5555_p0 = pnand %p5553_p10, %p7673_p12 }
 0x1c4   : > { %p5556_p6 = pneg %p5555_p0 }
 0x1c6   : > { %p5561_p9 = pnand %p5559_p13, %p5556_p6 }
 0x1c8   : > { %5564 = shalt.err (!%p5561_p9)
}
 0x1c9   : > { %s5565_s10 = scalar_lea.vmem %s829_s17, 16  ;;  %s5572_s7 = scalar_lea.vmem %s829_s17, 32 }
 0x1ca   : > { %p5566_p5 = scmp.ne.s32.totalorder %s829_s17, %s5565_s10  ;;  %p5573_p11 = scmp.lt.s32.totalorder %s829_s17, %s829_s17 }
 0x1cb   : > { %p5574_p2 = scmp.lt.s32.totalorder %s5572_s7, %s5565_s10 }
 0x1cc   : > { %p5568_p3 = pnand %p5566_p5, %p7673_p12 }
 0x1cd   : > { %p5575_p8 = por %p5574_p2, %p5573_p11 }
 0x1ce   : > { %p5569_p1 = pneg %p5568_p3 }
 0x1d0   : > { %p5576_p4 = pnand %p5575_p8, %p5569_p1 }
 0x1d2   : > { %5579 = shalt.err (!%p5576_p4)
}
 0x1d3   : > { %4774 = dma.hbm_to_vmem [thread:$0]  (!%p7674_p7), %s7678_s28, 16, %s829_s17, [#allocation21]  }
 0x1d4   : > { %s7679_s6 = sld [smem:[#allocation83_spill]] }
 0x1da   : > { %s7680_s22 = smov %s7679_s6  ;;  %s5580_s3 = scalar_lea.hbm %s7679_s6, 16 }
 0x1db   : > { %p5581_p10 = scmp.ne.s32.totalorder %s7680_s22, %s5580_s3  ;;  %p5587_p13 = scmp.lt.u32.totalorder %s5580_s3, %s7680_s22 }
 0x1dd   : > { %p5583_p0 = pnand %p5581_p10, %p7673_p12 }
 0x1df   : > { %p5584_p6 = pneg %p5583_p0 }
 0x1e1   : > { %p5589_p9 = pnand %p5587_p13, %p5584_p6 }
 0x1e3   : > { %5592 = shalt.err (!%p5589_p9)
}
 0x1e4   : > { %s5593_s7 = scalar_lea.vmem %s853_s11, 16  ;;  %s5600_s17 = scalar_lea.vmem %s853_s11, 32 }
 0x1e5   : > { %p5594_p5 = scmp.ne.s32.totalorder %s853_s11, %s5593_s7  ;;  %p5601_p11 = scmp.lt.s32.totalorder %s853_s11, %s853_s11 }
 0x1e6   : > { %p5602_p2 = scmp.lt.s32.totalorder %s5600_s17, %s5593_s7 }
 0x1e7   : > { %p5596_p3 = pnand %p5594_p5, %p7673_p12 }
 0x1e8   : > { %p5603_p8 = por %p5602_p2, %p5601_p11 }
 0x1e9   : > { %p5597_p1 = pneg %p5596_p3 }
 0x1eb   : > { %p5604_p4 = pnand %p5603_p8, %p5597_p1 }
 0x1ed   : > { %5607 = shalt.err (!%p5604_p4)
}
 0x1ee   : > { %4780 = dma.hbm_to_vmem [thread:$0]  (!%p7674_p7), %s7680_s22, 16, %s853_s11, [#allocation24]  }
 0x1ef   : > { %s5964_s12 = smov [#allocation28]   ;;  %s5965_s6 = smov [#allocation31]  }
 0x1f0   : > { %s876_s25 = sshll.u32 %s5964_s12, 4  ;;  %s914_s3 = sshll.u32 %s5965_s6, 4  ;;  %s877_s25 = int_to_ptr.vmem [resolvable:$true] %s876_s25  ;;  %s915_s3 = int_to_ptr.vmem [resolvable:$true] %s914_s3 }
 0x1f1   : > { %s7681_s2 = sld [smem:[#allocation85_spill]] }
 0x1f7   : > { %s7682_s23 = smov %s7681_s2  ;;  %s5608_s10 = scalar_lea.hbm %s7681_s2, 32 }
 0x1f8   : > { %p5609_p10 = scmp.ne.s32.totalorder %s7682_s23, %s5608_s10  ;;  %p5615_p13 = scmp.lt.u32.totalorder %s5608_s10, %s7682_s23 }
 0x1fa   : > { %p5611_p0 = pnand %p5609_p10, %p7673_p12 }
 0x1fc   : > { %p5612_p6 = pneg %p5611_p0 }
 0x1fe   : > { %p5617_p9 = pnand %p5615_p13, %p5612_p6 }
 0x200   : > { %5620 = shalt.err (!%p5617_p9)
}
 0x201   : > { %s5621_s11 = scalar_lea.vmem %s877_s25, 32  ;;  %p5629_p11 = scmp.lt.s32.totalorder %s877_s25, %s877_s25 }
 0x202   : > { %p5622_p5 = scmp.ne.s32.totalorder %s877_s25, %s5621_s11  ;;  %p5630_p2 = scmp.lt.s32.totalorder %s5621_s11, %s5621_s11 }
 0x204   : > { %p5624_p3 = pnand %p5622_p5, %p7673_p12  ;;  %p5631_p8 = por %p5630_p2, %p5629_p11 }
 0x206   : > { %p5625_p1 = pneg %p5624_p3 }
 0x208   : > { %p5632_p4 = pnand %p5631_p8, %p5625_p1 }
 0x20a   : > { %5635 = shalt.err (!%p5632_p4)
}
 0x20b   : > { %4786 = dma.hbm_to_vmem [thread:$0]  (!%p7674_p7), %s7682_s23, 32, %s877_s25, [#allocation27]  }
 0x20c   : > { %s7683_s5 = sld [smem:[#allocation92_spill]] }
 0x212   : > { %s7684_s7 = smov %s7683_s5  ;;  %s5636_s0 = scalar_lea.hbm %s7683_s5, 2048 }
 0x213   : > { %p5637_p10 = scmp.ne.s32.totalorder %s7684_s7, %s5636_s0  ;;  %p5643_p13 = scmp.lt.u32.totalorder %s5636_s0, %s7684_s7 }
 0x215   : > { %p5639_p0 = pnand %p5637_p10, %p7673_p12 }
 0x217   : > { %p5640_p6 = pneg %p5639_p0 }
 0x219   : > { %p5645_p9 = pnand %p5643_p13, %p5640_p6 }
 0x21b   : > { %5648 = shalt.err (!%p5645_p9)
}
 0x21c   : > { %s5649_s11 = scalar_lea.vmem %s915_s3, 2048  ;;  %p5657_p11 = scmp.lt.s32.totalorder %s915_s3, %s915_s3 }
 0x21d   : > { %p5650_p5 = scmp.ne.s32.totalorder %s915_s3, %s5649_s11  ;;  %p5658_p2 = scmp.lt.s32.totalorder %s5649_s11, %s5649_s11 }
 0x21f   : > { %p5652_p3 = pnand %p5650_p5, %p7673_p12  ;;  %p5659_p8 = por %p5658_p2, %p5657_p11 }
 0x221   : > { %p5653_p1 = pneg %p5652_p3 }
 0x223   : > { %p5660_p4 = pnand %p5659_p8, %p5653_p1 }
 0x225   : > { %5663 = shalt.err (!%p5660_p4)
}
 0x226   : > { %4792 = dma.hbm_to_vmem [thread:$0]  (!%p7674_p7), %s7684_s7, 2048, %s915_s3, [#allocation30], %s7632_s24, %s7632_s24, %s7631_s14  }
 0x227   : > { %s4167_s1 = sshll.u32 %s6479_s16, 4  ;;  %s4170_s12 = sshll.u32 %s6491_s15, 7 }
 0x228   : > { %s7685_s5 = sld [smem:[#allocation69_spill]]  ;;  %s941_s27 = scalar_lea.vmem [#allocation2], %s4167_s1 }
 0x229   : > { %s950_s2 = sshll.u32 %s941_s27, 4  ;;  %s4357_s10 = sshll.u32 %s5940_s29, 10  ;;  %s6697_s2 = int_to_ptr.vmem [resolvable:$true] %s950_s2 }
 0x22a   : > { %s7687_s25 = sld [smem:[#allocation71_spill]]  ;;  %s938_s15 = scalar_lea.sflag [#allocation3], %s6479_s16 }
 0x22b   : > { %p7688_p7 = scmp.ne.s32.totalorder %s7666_s26, 0 }
 0x22e   : > { %s7686_s17 = smov %s7685_s5  ;;  %s6694_s0 = scalar_lea.hbm %s7685_s5, %s4170_s12 }
 0x22f   : > { %s5664_s30 = scalar_lea.hbm %s6694_s0, 256  ;;  %s5669_s6 = scalar_lea.hbm %s7686_s17, 1024 }
 0x230   : > { %s6702_s3 = scalar_lea.hbm %s7687_s25, %s4357_s10  ;;  %p5665_p12 = scmp.ne.s32.totalorder %s6694_s0, %s5664_s30 }
 0x231   : > { %p5670_p6 = scmp.lt.u32.totalorder %s6694_s0, %s7686_s17  ;;  %p5671_p13 = scmp.lt.u32.totalorder %s5669_s6, %s5664_s30 }
 0x232   : > { %p5667_p10 = pnand %p5665_p12, %p7688_p7  ;;  %p5673_p5 = scmp.lt.u32.totalorder %s5664_s30, %s6694_s0 }
 0x233   : > { %p5672_p9 = por %p5671_p13, %p5670_p6 }
 0x234   : > { %p5668_p0 = pneg %p5667_p10 }
 0x235   : > { %p5674_p3 = por %p5673_p5, %p5672_p9 }
 0x237   : > { %p5675_p1 = pnand %p5674_p3, %p5668_p0 }
 0x239   : > { %5678 = shalt.err (!%p5675_p1)
}
 0x23a   : > { %s5679_s27 = scalar_lea.vmem %s6697_s2, 256  ;;  %s5966_s10 = smov [#allocation2]  }
 0x23b   : > { %p5680_p11 = scmp.ne.s32.totalorder %s6697_s2, %s5679_s27  ;;  %s5684_s8 = sshll.u32 %s5966_s10, 4  ;;  %s5685_s8 = int_to_ptr.vmem [resolvable:$false] %s5684_s8 }
 0x23c   : > { %s5686_s11 = scalar_lea.vmem %s5685_s8, 512  ;;  %p5687_p4 = scmp.lt.s32.totalorder %s6697_s2, %s5685_s8 }
 0x23d   : > { %p5682_p2 = pnand %p5680_p11, %p7688_p7  ;;  %p5688_p12 = scmp.lt.s32.totalorder %s5686_s11, %s5679_s27 }
 0x23f   : > { %p5683_p8 = pneg %p5682_p2  ;;  %p5689_p10 = por %p5688_p12, %p5687_p4 }
 0x241   : > { %p5690_p6 = pnand %p5689_p10, %p5683_p8 }
 0x243   : > { %5693 = shalt.err (!%p5690_p6)
}
 0x244   : > { %p7689_p0 = scmp.ne.s32.totalorder %s7662_s13, 0  ;;  %s7690_s30 = sld [smem:[#allocation61_spill]]  ;;  %s6732_s30 = int_to_ptr.vmem [resolvable:$true] %s7690_s30 }
 0x245   : > { %s7691_s12 = sld [smem:[#allocation59_spill]]  ;;  %s5694_s28 = scalar_lea.hbm %s6702_s3, 1024 }
 0x246   : > { %4796 = dma.hbm_to_vmem [thread:$0]  (!%p7689_p0), %s6694_s0, 256, %s6697_s2, %s938_s15, %s7637_s19, %s7637_s19, %s7636_s18  }
 0x247   : > { %p5695_p13 = scmp.ne.s32.totalorder %s6702_s3, %s5694_s28  ;;  %s5699_s16 = scalar_lea.hbm %s7687_s25, 2048 }
 0x248   : > { %p5700_p11 = scmp.lt.u32.totalorder %s6702_s3, %s7687_s25  ;;  %p5701_p2 = scmp.lt.u32.totalorder %s5699_s16, %s5694_s28 }
 0x249   : > { %p5703_p4 = scmp.lt.u32.totalorder %s5694_s28, %s6702_s3 }
 0x24a   : > { %p5702_p8 = por %p5701_p2, %p5700_p11 }
 0x24b   : > { %p7692_p9 = scmp.ne.s32.totalorder %s7691_s12, 0 }
 0x24c   : > { %p5704_p12 = por %p5703_p4, %p5702_p8 }
 0x24d   : > { %p7693_p5 = pneg %p7692_p9 }
 0x24f   : > { %p5697_p3 = pnand %p5695_p13, %p7693_p5 }
 0x251   : > { %p5698_p1 = pneg %p5697_p3 }
 0x253   : > { %p5705_p10 = pnand %p5704_p12, %p5698_p1 }
 0x255   : > { %5708 = shalt.err (!%p5705_p10)
}
 0x256   : > { %s5709_s18 = scalar_lea.vmem %s6732_s30, 1024  ;;  %p7694_p13 = pmov %p7693_p5 }
 0x257   : > { %p5710_p6 = scmp.ne.s32.totalorder %s6732_s30, %s5709_s18  ;;  %s5967_s19 = smov [#allocation7]  }
 0x258   : > { %s5714_s0 = sshll.u32 %s5967_s19, 4  ;;  %s5715_s0 = int_to_ptr.vmem [resolvable:$false] %s5714_s0 }
 0x259   : > { %p5712_p5 = pnand %p5710_p6, %p7694_p13  ;;  %s5716_s2 = scalar_lea.vmem %s5715_s0, 2048 }
 0x25a   : > { %p5717_p0 = scmp.lt.s32.totalorder %s6732_s30, %s5715_s0  ;;  %p5718_p11 = scmp.lt.s32.totalorder %s5716_s2, %s5709_s18 }
 0x25b   : > { %p5713_p3 = pneg %p5712_p5 }
 0x25c   : > { %p5719_p2 = por %p5718_p11, %p5717_p0 }
 0x25e   : > { %p5720_p8 = pnand %p5719_p2, %p5713_p3 }
 0x260   : > { %5723 = shalt.err (!%p5720_p8)
}
 0x261   : > { %s5968_s15 = smov 256   ;;  %s7695_s10 = sld [smem:[#allocation60_spill]] }
 0x262   : > { %s5969_s8 = smov 16   ;;  %s5724_s11 = scalar_lea.hbm %s6554_s20, 128 }
 0x263   : > { %p5725_p1 = scmp.ne.s32.totalorder %s6554_s20, %s5724_s11  ;;  %s5729_s1 = scalar_lea.hbm %s7669_s21, 512 }
 0x264   : > { %p5730_p12 = scmp.lt.u32.totalorder %s6554_s20, %s7669_s21  ;;  %p5731_p10 = scmp.lt.u32.totalorder %s5729_s1, %s5724_s11 }
 0x265   : > { %p5727_p4 = pnand %p5725_p1, %p7688_p7  ;;  %p5733_p13 = scmp.lt.u32.totalorder %s5724_s11, %s6554_s20 }
 0x266   : > { %p5732_p6 = por %p5731_p10, %p5730_p12 }
 0x267   : > { %4802 = dma.hbm_to_vmem [thread:$0]  (!%p7692_p9), %s6702_s3, 1024, %s6732_s30, %s7695_s10, %s5968_s15, %s5968_s15, %s5969_s8  }
 0x268   : > { %p5728_p0 = pneg %p5727_p4  ;;  %p5734_p5 = por %p5733_p13, %p5732_p6 }
 0x26a   : > { %p5735_p3 = pnand %p5734_p5, %p5728_p0 }
 0x26c   : > { %5738 = shalt.err (!%p5735_p3)
}
 0x26d   : > { %s5739_s3 = scalar_lea.vmem %s6558_s9, 128  ;;  %s5970_s30 = smov [#allocation10]  }
 0x26e   : > { %p5740_p9 = scmp.ne.s32.totalorder %s6558_s9, %s5739_s3  ;;  %s5744_s12 = sshll.u32 %s5970_s30, 4  ;;  %s5745_s12 = int_to_ptr.vmem [resolvable:$false] %s5744_s12 }
 0x26f   : > { %s5746_s27 = scalar_lea.vmem %s5745_s12, 256  ;;  %p5747_p8 = scmp.lt.s32.totalorder %s6558_s9, %s5745_s12 }
 0x270   : > { %p5742_p11 = pnand %p5740_p9, %p7688_p7  ;;  %p5748_p1 = scmp.lt.s32.totalorder %s5746_s27, %s5739_s3 }
 0x272   : > { %p5743_p2 = pneg %p5742_p11  ;;  %p5749_p4 = por %p5748_p1, %p5747_p8 }
 0x274   : > { %p5750_p12 = pnand %p5749_p4, %p5743_p2 }
 0x276   : > { %5753 = shalt.err (!%p5750_p12)
}
 0x277   : > { %p7696_p0 = scmp.ne.s32.totalorder %s7662_s13, 0  ;;  %s7697_s26 = sld [smem:[#allocation57_spill]] }
 0x279   : > { %4808 = dma.hbm_to_vmem [thread:$0]  (!%p7696_p0), %s6554_s20, 128, %s6558_s9, %s6516_s4, %s7632_s24, %s7632_s24, %s7631_s14  }
 0x27d   : > { %p7698_p7 = scmp.ne.s32.totalorder %s7697_s26, 0 }
 0x27e   : > { %s7699_s18 = sld [smem:[#allocation50_spill]] (!%p7698_p7)  ;;  %s7700_s19 = sld [smem:[#allocation64_spill]] (!%p7698_p7) }
 0x27f   : > { %1050 = sbr.rel (%p7698_p7) target bundleno = 7565 (0x1d8d), region = 128 }
 0x284   : > { %s6786_s0 = sand.u32 (!%p7698_p7), 1, %s7699_s18   ;;  %p7701_p10 = scmp.ne.s32.totalorder (!%p7698_p7), %s7700_s19, 0 }
 0x285   : > { %s6789_s2 = sshll.u32 (!%p7698_p7), %s6786_s0, 4  ;;  %s1053_s13 = scalar_lea.sflag (!%p7698_p7), [#allocation3], %s6786_s0 }
 0x286   : > { %s1056_s15 = scalar_lea.vmem [#allocation2], %s6789_s2 }
 0x287   : > { %5855 = dma.done.wait (%p7701_p10), %s1053_s13, 256  }
 0x288   : > { %5857 = vsyncadd (%p7701_p10), %s1053_s13, 4294967040  ;;  %s7702_s9 = sld [smem:[#allocation56_spill]]  ;;  %s7703_s14 = sld [smem:[#allocation47_spill]] }
 0x289   : > { %s7704_s24 = sld [smem:[#allocation58_spill]] }
 0x28e   : > { %s1061_s4 = sand.u32 1, %s7702_s9   ;;  %s1063_s20 = sand.u32 1, %s7703_s14  }
 0x28f   : > { %s4187_s10 = sshll.u32 %s1063_s20, 5  ;;  %s1062_s8 = scalar_lea.sflag [#allocation6], %s1061_s4 }
 0x290   : > { %s6799_s11 = scalar_lea.vmem [#allocation5], %s4187_s10  ;;  %p7705_p6 = scmp.ne.s32.totalorder %s7704_s24, 0 }
 0x292   : > { %5859 = dma.done.wait (%p7705_p6), %s1062_s8, 1536  }
 0x293   : > { %5861 = vsyncadd (%p7705_p6), %s1062_s8, 4294965760  ;;  %s4188_s28 = sshll.u32 %s1063_s20, 6  ;;  %s4189_s6 = sshll.u32 %s6786_s0, 3 }
 0x294   : > { %s6806_s1 = scalar_lea.vmem [#allocation7], %s4188_s28  ;;  %s1080_s16 = scalar_lea.sflag [#allocation9], %s1061_s4 }
 0x295   : > { %s6808_s5 = scalar_lea.vmem [#allocation8], %s4189_s6 }
 0x296   : > { %5863 = dma.done.wait (%p7701_p10), %s1080_s16, 256  }
 0x297   : > { %5865 = vsyncadd (%p7701_p10), %s1080_s16, 4294967040  ;;  %s6814_s3 = scalar_lea.vmem [#allocation10], %s4189_s6  ;;  %p7706_p13 = scmp.eq.s32.totalorder %s7702_s9, 0 }
 0x299   : > { %5867 = dma.done.wait (%p7706_p13), [#allocation12], 1040   ;;  %p7707_p5 = pmov %p7706_p13 }
 0x29b   : > { %5869 = vsyncadd (%p7707_p5), [#allocation12], 4294966256  ;;  %p7708_p3 = pmov %p7707_p5 }
 0x29d   : > { %5871 = dma.done.wait (%p7708_p3), [#allocation15], 2080   ;;  %p7709_p9 = pmov %p7708_p3 }
 0x29e   : > { %p7710_p11 = pmov %p7708_p3 }
 0x29f   : > { %5873 = vsyncadd (%p7709_p9), [#allocation15], 4294965216 }
 0x2a0   : > { %5875 = dma.done.wait (%p7710_p11), [#allocation18], 1040   ;;  %p7711_p2 = pmov %p7708_p3 }
 0x2a2   : > { %5877 = vsyncadd (%p7711_p2), [#allocation18], 4294966256  ;;  %p7712_p8 = pmov %p7711_p2 }
 0x2a3   : > { %p7713_p1 = pmov %p7711_p2 }
 0x2a4   : > { %5879 = dma.done.wait (%p7712_p8), [#allocation21], 32  }
 0x2a5   : > { %5881 = vsyncadd (%p7713_p1), [#allocation21], 4294967264  ;;  %p7714_p4 = pmov %p7713_p1 }
 0x2a6   : > { %p7715_p12 = pmov %p7713_p1 }
 0x2a7   : > { %5883 = dma.done.wait (%p7714_p4), [#allocation24], 1040  }
 0x2a8   : > { %5885 = vsyncadd (%p7715_p12), [#allocation24], 4294966256  ;;  %p7716_p0 = pmov %p7713_p1 }
 0x2aa   : > { %5887 = dma.done.wait (%p7716_p0), [#allocation27], 4128   ;;  %p7717_p7 = pmov %p7716_p0 }
 0x2ab   : > { %p7718_p10 = pmov %p7716_p0 }
 0x2ac   : > { %5889 = vsyncadd (%p7717_p7), [#allocation27], 4294963168 }
 0x2ad   : > { %5891 = dma.done.wait (%p7718_p10), [#allocation30], 4096   ;;  %p7719_p6 = pmov %p7716_p0 }
 0x2ae   : > { %v5971_v0 = vmov 0.0   ;;  %v5972_v1 = vmov 0   ;;  %vm5973_vm0 = vmmov 0   ;;  %v4992_v2 = vld [vmem:[#allocation14 + $0x4] ss:$8 sps:$4 sm:$0xff]   ;;  %v5013_v14 = vld [vmem:[#allocation11 + $0x18] sm:$0xff]   ;;  %v1407_v35 = vlaneseq }
 0x2af   : > { %5893 = vsyncadd (%p7719_p6), [#allocation30], 4294963200  ;;  %4472 = vmatprep.subr.bf16.mxu0 %v5971_v0  ;;  %1529 = vmatprep.mubr.bf16.mxu1 %v5972_v1  ;;  %v4994_v3 = vld [vmem:[#allocation14] ss:$8 sps:$4 sm:$0xff]   ;;  %v4995_v4 = vld [vmem:[#allocation14 + $0x14] ss:$8 sps:$4 sm:$0xff]  }
 0x2b0   : > { %4488 = vmatprep.mubr.msk.bf16.mxu0 %vm5973_vm0, %v5971_v0  ;;  %1497 = vmatprep.subr.bf16.mxu1 %v4992_v2  ;;  %v4997_v5 = vld [vmem:[#allocation14 + $0x10] ss:$8 sps:$4 sm:$0xff]   ;;  %v4998_v6 = vld [vmem:[#allocation14 + $0x24] ss:$8 sps:$4 sm:$0xff]   ;;  %v5000_v8 = vld [vmem:[#allocation14 + $0x20] ss:$8 sps:$4 sm:$0xff]  }
 0x2b1   : > { %1498 = vmatpush1.bf16.msra.mxu1 %v4994_v3  ;;  %v5001_v7 = vld [vmem:[#allocation11] sm:$0xff]   ;;  %v5005_v9 = vld [vmem:[#allocation11 + $0x8] sm:$0xff]   ;;  %v5009_v11 = vld [vmem:[#allocation11 + $0x10] sm:$0xff]   ;;  %v1408_v36 = vshrl.u32 %v1407_v35, 7  ;;  %vm1559_vm1 = vcmask 261120   ;;  %s5974_s30 = smov 96  }
 0x2b2   : > { %1499 = vmatprep.subr.bf16.mxu1 %v4995_v4  ;;  %4473 = vmatpush3.bf16.msra.mxu0 %v5001_v7  ;;  %v5002_v10 = vld [vmem:[#allocation14 + $0x34] ss:$8 sps:$4 sm:$0xff]   ;;  %v5004_v12 = vld [vmem:[#allocation14 + $0x30] ss:$8 sps:$4 sm:$0xff]   ;;  %v5006_v13 = vld [vmem:[#allocation14 + $0x44] ss:$8 sps:$4 sm:$0xff]  }
 0x2b3   : > { %4474 = vmatprep.subr.bf16.mxu0 %v5971_v0  ;;  %v5008_v15 = vld [vmem:[#allocation14 + $0x40] ss:$8 sps:$4 sm:$0xff]   ;;  %v5010_v16 = vld [vmem:[#allocation14 + $0x54] ss:$8 sps:$4 sm:$0xff]   ;;  %v5012_v18 = vld [vmem:[#allocation14 + $0x50] ss:$8 sps:$4 sm:$0xff]  }
 0x2b4   : > { %v5017_v17 = vld [vmem:[#allocation11 + $0x20] sm:$0xff]   ;;  %v5021_v20 = vld [vmem:[#allocation11 + $0x28] sm:$0xff]   ;;  %v5022_v23 = vld [vmem:[#allocation11 + $0x30] sm:$0xff]   ;;  %v6876_v37 = vsub.s32 0, %v1408_v36  ;;  %v6878_v39 = vsub.s32 1, %v1408_v36  ;;  %s5975_s12 = smov 64  }
 0x2b5   : > { %1500 = vmatpush1.bf16.msra.mxu1 %v4997_v5  ;;  %v5014_v19 = vld [vmem:[#allocation14 + $0x64] ss:$8 sps:$4 sm:$0xff]   ;;  %v5016_v21 = vld [vmem:[#allocation14 + $0x60] ss:$8 sps:$4 sm:$0xff]   ;;  %v5018_v22 = vld [vmem:[#allocation14 + $0x74] ss:$8 sps:$4 sm:$0xff]  }
 0x2b6   : > { %1501 = vmatprep.subr.bf16.mxu1 %v4998_v6  ;;  %4475 = vmatpush3.bf16.msra.mxu0 %v5005_v9  ;;  %v5020_v24 = vld [vmem:[#allocation14 + $0x70] ss:$8 sps:$4 sm:$0xff]   ;;  %v1254_v25 = vld [vmem:[%s6799_s11] sm:$0xff]  ;;  %v1255_v26 = vld [vmem:[%s6799_s11 + $0x8] sm:$0xff]  ;;  %s5976_s27 = smov 32   ;;  %vm2103_vm4 = vcmask 523264  }
 0x2b7   : > { %4476 = vmatprep.subr.bf16.mxu0 %v5971_v0  ;;  %v5023_v27 = vld [vmem:[#allocation11 + $0x38] sm:$0xff]   ;;  %v6858_v28 = vld [vmem:[%s1056_s15] sm:$0xff]  ;;  %v1387_v30 = vpack.c.bf16 %v1255_v26, %v1254_v25  ;;  %vm2106_vm5 = vcmask 785408   ;;  %s7728_s19 = sld [smem:[#allocation86_spill]]  ;;  %s7729_s26 = sld [smem:[#allocation87_spill]] }
 0x2b8   : > { %v6862_v29 = vld [vmem:[%s1056_s15 + $0x8] sm:$0xff]  ;;  %v1256_v31 = vld [vmem:[%s6799_s11 + $0x10] sm:$0xff]  ;;  %v1405_v38 = vld [vmem:[#allocation16] sm:$0x3]  ;;  %s7730_s15 = sld [smem:[#allocation88_spill]]  ;;  %s7731_s24 = sld [smem:[#allocation89_spill]] }
 0x2b9   : > { %1502 = vmatpush1.bf16.msra.mxu1 %v5000_v8  ;;  %v1257_v32 = vld [vmem:[%s6799_s11 + $0x18] sm:$0xff]  ;;  %v1274_v33 = vpack.c.bf16 %v6862_v29, %v6858_v28  ;;  %v1410_v40 = vrot.slane %v1405_v38, %v6876_v37  ;;  %v1414_v42 = vrot.slane %v1405_v38, %v6878_v39  ;;  %v4207_v44 = vld [vmem:[#allocation13] ss:$0 sm:$0xff]  ;;  %s7732_s10 = sld [smem:[#allocation91_spill]]  ;;  %s7733_s28 = sld [smem:[#allocation93_spill]] }
 0x2ba   : > { %1503 = vmatprep.subr.bf16.mxu1 %v5002_v10  ;;  %4477 = vmatpush3.bf16.msra.mxu0 %v5009_v11  ;;  %v1388_v34 = vpack.c.bf16 %v1257_v32, %v1256_v31  ;;  %s7734_s6 = sld [smem:[#allocation52_spill]]  ;;  %s3766_s14 = scalar_lea.sflag [#allocation34], %s6786_s0 }
 0x2bb   : > { %4478 = vmatprep.subr.bf16.mxu0 %v5971_v0  ;;  %s5977_s4 = smov [#allocation33]  }
 0x2bc   : > { %s5758_s20 = sshll.u32 %s5977_s4, 4  ;;  %s5759_s20 = int_to_ptr.vmem [resolvable:$false] %s5758_s20 }
 0x2bd   : > { %1504 = vmatpush1.bf16.msra.mxu1 %v5004_v12  ;;  %v4359_v12 = vld [vmem:[%s6808_s5] sm:$0xff]  }
 0x2be   : > { %1505 = vmatprep.subr.bf16.mxu1 %v5006_v13  ;;  %4479 = vmatpush3.bf16.msra.mxu0 %v5013_v14  ;;  %v4360_v13 = vunpack.c.l.bf16 %v4359_v12  ;;  %v4361_v14 = vunpack.c.h.bf16 %v4359_v12 }
 0x2bf   : > { %4480 = vmatprep.subr.bf16.mxu0 %v5971_v0 }
 0x2c0   : > { %vm6907_vm2 = vcmp.gt.f32.partialorder %v4360_v13, 0.5  ;;  %vm6911_vm3 = vcmp.gt.f32.partialorder %v4361_v14, 0.5 }
 0x2c1   : > { %1506 = vmatpush1.bf16.msra.mxu1 %v5008_v15 }
 0x2c2   : > { %1507 = vmatprep.subr.bf16.mxu1 %v5010_v16  ;;  %4481 = vmatpush3.bf16.msra.mxu0 %v5017_v17 }
 0x2c3   : > { %4482 = vmatprep.subr.bf16.mxu0 %v5971_v0 }
 0x2c5   : > { %1508 = vmatpush1.bf16.msra.mxu1 %v5012_v18 }
 0x2c6   : > { %1509 = vmatprep.subr.bf16.mxu1 %v5014_v19  ;;  %4483 = vmatpush3.bf16.msra.mxu0 %v5021_v20 }
 0x2c7   : > { %4484 = vmatprep.subr.bf16.mxu0 %v5971_v0 }
 0x2c9   : > { %1510 = vmatpush1.bf16.msra.mxu1 %v5016_v21 }
 0x2ca   : > { %1511 = vmatprep.subr.bf16.mxu1 %v5018_v22  ;;  %4485 = vmatpush3.bf16.msra.mxu0 %v5022_v23 }
 0x2cb   : > { %4486 = vmatprep.subr.bf16.mxu0 %v5971_v0 }
 0x2cd   : > { %1512 = vmatpush1.bf16.msra.mxu1 %v5020_v24 }
 0x2ce   : > { %4516 = vmatprep.subr.bf16.mxu1 %v5971_v0  ;;  %4487 = vmatpush3.bf16.msra.mxu0 %v5023_v27 }
 0x2cf   : > { %4492 = vmatprep.subr.bf16.mxu0 %v5971_v0 }
 0x2d0   : > { %1530 = vmatmul.mubr.bf16.vlgmr.msra.gmra.mrb[0].mxu1 %v1387_v30 }
 0x2d1   : > { %1539 = vmatprep.mubr.bf16.mxu1 %v5972_v1  ;;  %4489 = vmatmul.mubr.bf16.vlgmr.msra.gmra.mrb[0].mxu0 %v1274_v33 }
 0x2d2   : > { %4496 = vmatprep.mubr.msk.bf16.mxu0 %vm5973_vm0, %v5971_v0 }
 0x2d8   : > { %1540 = vmatmul.mubr.bf16.gmra.mrb[4].mxu1 %v1388_v34 }
 0x2d9   : > { %4520 = vmatprep.mubr.msk.bf16.mxu1 %vm5973_vm0, %v5971_v0 }
 0x3a3   : > { %v1531_v41 = vpop.f32.mrb[0].mxu1 }
 0x3a4   : > { %v1533_v43 = vpop.f32.mrb[1].mxu1  ;;  %v1532_v46 = vadd.f32 %v1531_v41, %v1410_v40  ;;  %v1380_v49 = vpop.f32.mrb[0].mxu0 }
 0x3a5   : > { %v1535_v45 = vpop.f32.mrb[2].mxu1  ;;  %v1534_v50 = vadd.f32 %v1533_v43, %v1414_v42  ;;  %v1381_v52 = vadd.f32 %v4207_v44, %v1380_v49  ;;  %v4490_v53 = vpop.f32.mrb[1].mxu0 }
 0x3a6   : > { %v1536_v47 = vadd.f32 %v1535_v45, %v1410_v40  ;;  %v1537_v48 = vpop.f32.mrb[3].mxu1  ;;  %v1383_v55 = vpop.f32.mrb[2].mxu0 }
 0x3a7   : > { %v1538_v51 = vadd.f32 %v1537_v48, %v1414_v42  ;;  %v1552_v57 = vmul.f32 0.17677669, %v1381_v52  ;;  %v1384_v58 = vadd.f32 %v4207_v44, %v1383_v55  ;;  %v4491_v59 = vpop.f32.mrb[3].mxu0 }
 0x3a8   : > { %v6882_v54 = vpack.c.bf16 %v1536_v47, %v1532_v46 }
 0x3a9   : > { %v6884_v56 = vpack.c.bf16 %v1538_v51, %v1534_v50  ;;  %v1553_v62 = vmul.f32 0.17677669, %v1384_v58 }
 0x3aa   : > { %v1564_v60 = vsel %vm1559_vm1, %v6882_v54, 0 }
 0x3ab   : > { %v1541_v61 = vpop.f32.mrb[4].mxu1  ;;  %4493 = vmatpush3.bf16.xpose.msra.mxu0 %v1564_v60  ;;  %v6889_v3 = vpack.c.bf16 %v1553_v62, %v1552_v57 }
 0x3ac   : > { %v1543_v63 = vpop.f32.mrb[5].mxu1  ;;  %4494 = vmatprep.subr.bf16.mxu0 %v5971_v0  ;;  %v1542_v4 = vadd.f32 %v1541_v61, %v1410_v40 }
 0x3ad   : > { %v1545_v2 = vpop.f32.mrb[6].mxu1  ;;  %v1544_v7 = vadd.f32 %v1543_v63, %v1414_v42 }
 0x3ae   : > { %v1546_v5 = vadd.f32 %v1545_v2, %v1410_v40  ;;  %v1547_v6 = vpop.f32.mrb[7].mxu1 }
 0x3af   : > { %v1548_v8 = vadd.f32 %v1547_v6, %v1414_v42 }
 0x3b0   : > { %v6891_v9 = vpack.c.bf16 %v1546_v5, %v1542_v4 }
 0x3b1   : > { %v6893_v10 = vpack.c.bf16 %v1548_v8, %v1544_v7 }
 0x3b2   : > { %v1567_v11 = vsel %vm1559_vm1, %v6891_v9, 0 }
 0x3b3   : > { %4495 = vmatpush3.bf16.xpose.msra.mxu0 %v1567_v11 }
 0x3b4   : > { %4500 = vmatprep.subr.bf16.mxu0 %v5971_v0 }
 0x3ba   : > { %4497 = vmatmul.mubr.msk.bf16.vlgmr.msra.gmra.mrb[4].mxu0 %vm1559_vm1, %v6889_v3 }
 0x3bb   : > { %4501 = vmatpush3.bf16.msra.mxu0 %v6884_v56  ;;  %4504 = vmatprep.mubr.msk.bf16.mxu0 %vm5973_vm0, %v5971_v0 }
 0x3bc   : > { %4502 = vmatprep.subr.bf16.mxu0 %v5971_v0 }
 0x3bf   : > { %4503 = vmatpush3.bf16.msra.mxu0 %v6893_v10 }
 0x3c0   : > { %4508 = vmatprep.subr.bf16.mxu0 %v5971_v0 }
 0x48d   : > { %v1603_v16 = vpop.f32.mrb[4].mxu0 }
 0x48e   : > { %v1610_v18 = vsel %vm6907_vm2, %v1603_v16, -10000.0  ;;  %v4498_v19 = vpop.f32.mrb[5].mxu0 }
 0x48f   : > { %v1606_v20 = vpop.f32.mrb[6].mxu0  ;;  %v1612_v21 = vsel %vm1559_vm1, %v1610_v18, -inf }
 0x490   : > { %v1611_v22 = vsel %vm6911_vm3, %v1606_v20, -10000.0  ;;  %1613 = vmax.xlane.f32.xlu0 %v1612_v21  ;;  %v4499_v23 = vpop.f32.mrb[7].mxu0 }
 0x491   : > { %v1615_v24 = vsel %vm1559_vm1, %v1611_v22, -inf }
 0x494   : > { %1616 = vmax.xlane.f32.xlu0 %v1615_v24 }
 0x4aa   : > { %1684 = vrot.lane.b32.xlu0 %v6882_v54, %s5974_s30 }
 0x51d   : > { %v1614_v25 = vpop.xlane.xlu0 %1613 }
 0x51e   : > { %v1618_v26 = vsub.f32 %v1610_v18, %v1614_v25 }
 0x520   : > { %v1620_v27 = vmul.f32 1.442695, %v1618_v26 }
 0x521   : > { %v1617_v30 = vpop.xlane.xlu0 %1616 }
 0x522   : > { %5136 = vpow2.f32 %v1620_v27  ;;  %v1619_v31 = vsub.f32 %v1611_v22, %v1617_v30 }
 0x524   : > { %v1622_v32 = vmul.f32 1.442695, %v1619_v31 }
 0x525   : > { %v1685_v45 = vpop.permute.xlu0 %1684 }
 0x526   : > { %5138 = vpow2.f32 %v1622_v32  ;;  %v1692_v47 = vsel %vm1559_vm1, %v1685_v45, 0 }
 0x52c   : > { %v5137_v33 = vpop.eup %5136 }
 0x52d   : > { %v1624_v34 = vsel %vm1559_vm1, %v5137_v33, 0.0 }
 0x52e   : > { %1625 = vadd.xlane.f32.xlu1 %v1624_v34 }
 0x530   : > { %v5139_v35 = vpop.eup %5138 }
 0x531   : > { %v1627_v36 = vsel %vm1559_vm1, %v5139_v35, 0.0 }
 0x532   : > { %1628 = vadd.xlane.f32.xlu1 %v1627_v36 }
 0x543   : > { %1686 = vrot.lane.b32.xlu1 %v6891_v9, %s5974_s30 }
 0x547   : > { %1680 = vrot.lane.b32.xlu1 %v6889_v3, %s5974_s30 }
 0x5bb   : > { %v1626_v38 = vpop.xlane.xlu1 %1625 }
 0x5bc   : > { %5140 = vrcp.f32 %v1626_v38 }
 0x5bf   : > { %v1629_v40 = vpop.xlane.xlu1 %1628 }
 0x5c0   : > { %5142 = vrcp.f32 %v1629_v40 }
 0x5c3   : > { %v1687_v48 = vpop.permute.xlu1 %1686 }
 0x5c4   : > { %v1695_v49 = vsel %vm1559_vm1, %v1687_v48, 0 }
 0x5c6   : > { %v5141_v41 = vpop.eup %5140 }
 0x5c7   : > { %v1632_v43 = vmul.f32 %v5141_v41, %v5137_v33  ;;  %v1681_v50 = vpop.permute.xlu1 %1680 }
 0x5ca   : > { %v5143_v42 = vpop.eup %5142 }
 0x5cb   : > { %v1633_v44 = vmul.f32 %v5143_v42, %v5139_v35 }
 0x5cd   : > { %v1634_v46 = vpack.c.bf16 %v1633_v44, %v1632_v43 }
 0x5cf   : > { %4505 = vmatmul.mubr.msk.bf16.vlgmr.msra.gmra.mrb[8].mxu0 %vm1559_vm1, %v1634_v46 }
 0x5d0   : > { %4509 = vmatpush3.bf16.xpose.msra.mxu0 %v1692_v47  ;;  %4512 = vmatprep.mubr.msk.bf16.mxu0 %vm5973_vm0, %v5971_v0 }
 0x5d1   : > { %4510 = vmatprep.subr.bf16.mxu0 %v5971_v0 }
 0x5d8   : > { %4511 = vmatpush3.bf16.xpose.msra.mxu0 %v1695_v49 }
 0x5d9   : > { %4532 = vmatprep.subr.bf16.mxu0 %v5971_v0 }
 0x5df   : > { %4513 = vmatmul.mubr.msk.bf16.vlgmr.msra.gmra.mrb[12].mxu0 %vm1559_vm1, %v1681_v50 }
 0x5e0   : > { %4536 = vmatprep.mubr.msk.bf16.mxu0 %vm5973_vm0, %v5971_v0 }
 0x6a2   : > { %v6939_v51 = vpop.f32.mrb[8].mxu0 }
 0x6a3   : > { %v4506_v52 = vpop.f32.mrb[9].mxu0 }
 0x6a4   : > { %v6941_v53 = vpop.f32.mrb[10].mxu0 }
 0x6a5   : > { %v4507_v55 = vpop.f32.mrb[11].mxu0 }
 0x6b2   : > { %v1731_v57 = vpop.f32.mrb[12].mxu0 }
 0x6b3   : > { %v1738_v58 = vsel %vm6907_vm2, %v1731_v57, -10000.0  ;;  %v4514_v59 = vpop.f32.mrb[13].mxu0 }
 0x6b4   : > { %v1734_v60 = vpop.f32.mrb[14].mxu0  ;;  %v1740_v61 = vsel %vm1559_vm1, %v1738_v58, -inf }
 0x6b5   : > { %v1739_v62 = vsel %vm6911_vm3, %v1734_v60, -10000.0  ;;  %1741 = vmax.xlane.f32.xlu1 %v1740_v61  ;;  %v4515_v63 = vpop.f32.mrb[15].mxu0 }
 0x6b6   : > { %v1743_v2 = vsel %vm1559_vm1, %v1739_v62, -inf }
 0x6b7   : > { %1744 = vmax.xlane.f32.xlu0 %v1743_v2 }
 0x6c6   : > { %1765 = vrot.lane.b32.xlu1 %v6884_v56, %s5974_s30 }
 0x6ca   : > { %1817 = vrot.lane.b32.xlu1 %v6882_v54, %s5975_s12 }
 0x6ce   : > { %1819 = vrot.lane.b32.xlu1 %v6891_v9, %s5975_s12 }
 0x6d2   : > { %1815 = vrot.lane.b32.xlu1 %v6889_v3, %s5975_s12 }
 0x742   : > { %v1742_v4 = vpop.xlane.xlu1 %1741 }
 0x743   : > { %v1746_v5 = vsub.f32 %v1738_v58, %v1742_v4 }
 0x744   : > { %v1745_v6 = vpop.xlane.xlu0 %1744 }
 0x745   : > { %v1748_v7 = vmul.f32 1.442695, %v1746_v5  ;;  %v1747_v8 = vsub.f32 %v1739_v62, %v1745_v6 }
 0x746   : > { %v1766_v11 = vpop.permute.xlu1 %1765 }
 0x747   : > { %5144 = vpow2.f32 %v1748_v7  ;;  %v1750_v12 = vmul.f32 1.442695, %v1747_v8  ;;  %4517 = vmatpush3.bf16.msra.mxu1 %v1766_v11 }
 0x748   : > { %4518 = vmatprep.subr.bf16.mxu1 %v5971_v0 }
 0x749   : > { %5146 = vpow2.f32 %v1750_v12 }
 0x74a   : > { %v1818_v26 = vpop.permute.xlu1 %1817 }
 0x74b   : > { %v1825_v30 = vsel %vm1559_vm1, %v1818_v26, 0 }
 0x74e   : > { %v1820_v31 = vpop.permute.xlu1 %1819 }
 0x74f   : > { %v1828_v32 = vsel %vm1559_vm1, %v1820_v31, 0 }
 0x751   : > { %v5145_v13 = vpop.eup %5144 }
 0x752   : > { %v1752_v14 = vsel %vm1559_vm1, %v5145_v13, 0.0  ;;  %v1816_v33 = vpop.permute.xlu1 %1815 }
 0x753   : > { %v5147_v16 = vpop.eup %5146  ;;  %1753 = vadd.xlane.f32.xlu0 %v1752_v14 }
 0x754   : > { %v1755_v18 = vsel %vm1559_vm1, %v5147_v16, 0.0 }
 0x757   : > { %1756 = vadd.xlane.f32.xlu0 %v1755_v18 }
 0x76d   : > { %1767 = vrot.lane.b32.xlu0 %v6893_v10, %s5974_s30 }
 0x7e0   : > { %v1754_v19 = vpop.xlane.xlu0 %1753 }
 0x7e1   : > { %5148 = vrcp.f32 %v1754_v19 }
 0x7e4   : > { %v1757_v20 = vpop.xlane.xlu0 %1756 }
 0x7e5   : > { %5150 = vrcp.f32 %v1757_v20 }
 0x7e8   : > { %v1768_v21 = vpop.permute.xlu0 %1767 }
 0x7e9   : > { %4519 = vmatpush3.bf16.msra.mxu1 %v1768_v21 }
 0x7ea   : > { %4524 = vmatprep.subr.bf16.mxu1 %v5971_v0 }
 0x7eb   : > { %v5149_v22 = vpop.eup %5148 }
 0x7ec   : > { %v1760_v24 = vmul.f32 %v5149_v22, %v5145_v13 }
 0x7ef   : > { %v5151_v23 = vpop.eup %5150 }
 0x7f0   : > { %v1761_v25 = vmul.f32 %v5151_v23, %v5147_v16 }
 0x7f2   : > { %v1762_v27 = vpack.c.bf16 %v1761_v25, %v1760_v24 }
 0x7f4   : > { %4521 = vmatmul.mubr.msk.bf16.vlgmr.msra.gmra.mrb[8].mxu1 %vm1559_vm1, %v1762_v27 }
 0x7f5   : > { %4525 = vmatpush3.bf16.xpose.msra.mxu1 %v1825_v30  ;;  %4528 = vmatprep.mubr.msk.bf16.mxu1 %vm5973_vm0, %v5971_v0 }
 0x7f6   : > { %4526 = vmatprep.subr.bf16.mxu1 %v5971_v0 }
 0x7fd   : > { %4527 = vmatpush3.bf16.xpose.msra.mxu1 %v1828_v32 }
 0x7fe   : > { %4548 = vmatprep.subr.bf16.mxu1 %v5971_v0 }
 0x804   : > { %4529 = vmatmul.mubr.msk.bf16.vlgmr.msra.gmra.mrb[12].mxu1 %vm1559_vm1, %v1816_v33 }
 0x805   : > { %4552 = vmatprep.mubr.msk.bf16.mxu1 %vm5973_vm0, %v5971_v0 }
 0x8c7   : > { %v6973_v34 = vpop.f32.mrb[8].mxu1 }
 0x8c8   : > { %v4522_v35 = vpop.f32.mrb[9].mxu1 }
 0x8c9   : > { %v6975_v36 = vpop.f32.mrb[10].mxu1 }
 0x8ca   : > { %v4962_v38 = vpack.i.bf16 %v6975_v36, %v6973_v34  ;;  %v4523_v40 = vpop.f32.mrb[11].mxu1 }
 0x8d7   : > { %v1864_v41 = vpop.f32.mrb[12].mxu1 }
 0x8d8   : > { %v1871_v42 = vsel %vm6907_vm2, %v1864_v41, -10000.0  ;;  %v4530_v43 = vpop.f32.mrb[13].mxu1 }
 0x8d9   : > { %v1867_v44 = vpop.f32.mrb[14].mxu1  ;;  %v1873_v45 = vsel %vm1559_vm1, %v1871_v42, -inf }
 0x8da   : > { %v1872_v46 = vsel %vm6911_vm3, %v1867_v44, -10000.0  ;;  %1874 = vmax.xlane.f32.xlu0 %v1873_v45  ;;  %v4531_v47 = vpop.f32.mrb[15].mxu1 }
 0x8db   : > { %v1876_v48 = vsel %vm1559_vm1, %v1872_v46, -inf }
 0x8dc   : > { %1877 = vmax.xlane.f32.xlu1 %v1876_v48 }
 0x8ed   : > { %1898 = vrot.lane.b32.xlu1 %v6893_v10, %s5975_s12 }
 0x8f1   : > { %1948 = vrot.lane.b32.xlu1 %v6882_v54, %s5976_s27 }
 0x8f5   : > { %1950 = vrot.lane.b32.xlu1 %v6891_v9, %s5976_s27 }
 0x967   : > { %v1875_v49 = vpop.xlane.xlu0 %1874 }
 0x968   : > { %v1879_v50 = vsub.f32 %v1871_v42, %v1875_v49 }
 0x969   : > { %v1878_v52 = vpop.xlane.xlu1 %1877 }
 0x96a   : > { %v1881_v55 = vmul.f32 1.442695, %v1879_v50  ;;  %v1880_v57 = vsub.f32 %v1872_v46, %v1878_v52  ;;  %v5024_v50 = vld [vmem:[#allocation17] sm:$0xff]   ;;  %v5026_v52 = vld [vmem:[#allocation17 + $0x10] sm:$0xff]  }
 0x96c   : > { %5152 = vpow2.f32 %v1881_v55  ;;  %v1883_v58 = vmul.f32 1.442695, %v1880_v57  ;;  %v5027_v55 = vld [vmem:[#allocation17 + $0x18] sm:$0xff]   ;;  %v5028_v57 = vld [vmem:[#allocation17 + $0x20] sm:$0xff]  }
 0x96d   : > { %v1899_v2 = vpop.permute.xlu1 %1898 }
 0x96e   : > { %5154 = vpow2.f32 %v1883_v58  ;;  %v5029_v58 = vld [vmem:[#allocation17 + $0x28] sm:$0xff]  }
 0x971   : > { %v1949_v8 = vpop.permute.xlu1 %1948 }
 0x975   : > { %v1951_v12 = vpop.permute.xlu1 %1950 }
 0x976   : > { %v5153_v59 = vpop.eup %5152  ;;  %v1959_v13 = vsel %vm1559_vm1, %v1951_v12, 0 }
 0x977   : > { %v1885_v60 = vsel %vm1559_vm1, %v5153_v59, 0.0 }
 0x978   : > { %v5155_v61 = vpop.eup %5154  ;;  %1886 = vadd.xlane.f32.xlu0 %v1885_v60  ;;  %v5031_v60 = vld [vmem:[#allocation17 + $0x38] sm:$0xff]  }
 0x979   : > { %v1888_v62 = vsel %vm1559_vm1, %v5155_v61, 0.0 }
 0x97c   : > { %1889 = vadd.xlane.f32.xlu0 %v1888_v62 }
 0x992   : > { %1896 = vrot.lane.b32.xlu0 %v6884_v56, %s5975_s12 }
 0x996   : > { %1946 = vrot.lane.b32.xlu0 %v6889_v3, %s5976_s27  ;;  %v1956_v3 = vsel %vm1559_vm1, %v1949_v8, 0 }
 0xa05   : > { %v1887_v54 = vpop.xlane.xlu0 %1886 }
 0xa06   : > { %5156 = vrcp.f32 %v1887_v54 }
 0xa09   : > { %v1890_v9 = vpop.xlane.xlu0 %1889 }
 0xa0a   : > { %5158 = vrcp.f32 %v1890_v9 }
 0xa0d   : > { %v1897_v63 = vpop.permute.xlu0 %1896 }
 0xa0e   : > { %4533 = vmatpush3.bf16.msra.mxu0 %v1897_v63 }
 0xa0f   : > { %4534 = vmatprep.subr.bf16.mxu0 %v5971_v0 }
 0xa10   : > { %v5157_v4 = vpop.eup %5156 }
 0xa11   : > { %v1893_v6 = vmul.f32 %v5157_v4, %v5153_v59  ;;  %v1947_v14 = vpop.permute.xlu0 %1946  ;;  %v5030_v59 = vld [vmem:[#allocation17 + $0x30] sm:$0xff]  }
 0xa12   : > { %4535 = vmatpush3.bf16.msra.mxu0 %v1899_v2 }
 0xa13   : > { %4540 = vmatprep.subr.bf16.mxu0 %v5971_v0 }
 0xa14   : > { %v5159_v5 = vpop.eup %5158 }
 0xa15   : > { %v1894_v7 = vmul.f32 %v5159_v5, %v5155_v61 }
 0xa17   : > { %v1895_v11 = vpack.c.bf16 %v1894_v7, %v1893_v6 }
 0xa19   : > { %4537 = vmatmul.mubr.msk.bf16.vlgmr.msra.gmra.mrb[16].mxu0 %vm1559_vm1, %v1895_v11 }
 0xa1a   : > { %4544 = vmatprep.mubr.msk.bf16.mxu0 %vm5973_vm0, %v5971_v0 }
 0xa1b   : > { %4541 = vmatpush3.bf16.xpose.msra.mxu0 %v1956_v3 }
 0xa1c   : > { %4542 = vmatprep.subr.bf16.mxu0 %v5971_v0 }
 0xa23   : > { %4543 = vmatpush3.bf16.xpose.msra.mxu0 %v1959_v13 }
 0xa24   : > { %4576 = vmatprep.subr.bf16.mxu0 %v5971_v0 }
 0xa2a   : > { %4545 = vmatmul.mubr.msk.bf16.vlgmr.msra.gmra.mrb[20].mxu0 %vm1559_vm1, %v1947_v14 }
 0xa2b   : > { %4592 = vmatprep.mubr.msk.bf16.mxu0 %vm5973_vm0, %v5971_v0 }
 0xaec   : > { %v1939_v16 = vpop.f32.mrb[16].mxu0 }
 0xaed   : > { %v4538_v18 = vpop.f32.mrb[17].mxu0 }
 0xaee   : > { %v1942_v19 = vpop.f32.mrb[18].mxu0 }
 0xaef   : > { %v4967_v20 = vpack.i.bf16 %v1942_v19, %v1939_v16  ;;  %v4539_v21 = vpop.f32.mrb[19].mxu0 }
 0xafd   : > { %v1995_v22 = vpop.f32.mrb[20].mxu0 }
 0xafe   : > { %v2002_v23 = vsel %vm6907_vm2, %v1995_v22, -10000.0  ;;  %v4546_v24 = vpop.f32.mrb[21].mxu0  ;;  %v4240_v22 = vld [vmem:[#allocation19] ss:$0 sm:$0xff] }
 0xaff   : > { %v1998_v25 = vpop.f32.mrb[22].mxu0  ;;  %v2004_v26 = vsel %vm1559_vm1, %v2002_v23, -inf }
 0xb00   : > { %v2003_v27 = vsel %vm6911_vm3, %v1998_v25, -10000.0  ;;  %2005 = vmax.xlane.f32.xlu1 %v2004_v26  ;;  %v4547_v30 = vpop.f32.mrb[23].mxu0 }
 0xb01   : > { %v2007_v31 = vsel %vm1559_vm1, %v2003_v27, -inf }
 0xb02   : > { %2008 = vmax.xlane.f32.xlu0 %v2007_v31  ;;  %v5032_v31 = vld [vmem:[#allocation26] ss:$8 sps:$4 sm:$0xff]  }
 0xb11   : > { %2027 = vrot.lane.b32.xlu1 %v6884_v56, %s5976_s27 }
 0xb15   : > { %4963 = vrot.lane.b32.xlu1 %v4962_v38, %s5976_s27 }
 0xb19   : > { %4968 = vrot.lane.b32.xlu1 %v4967_v20, %s5975_s12 }
 0xb8d   : > { %v2006_v15 = vpop.xlane.xlu1 %2005 }
 0xb8e   : > { %v2010_v32 = vsub.f32 %v2002_v23, %v2006_v15  ;;  %v5034_v15 = vld [vmem:[#allocation26 + $0x4] ss:$8 sps:$4 sm:$0xff]  }
 0xb8f   : > { %v2009_v33 = vpop.xlane.xlu0 %2008 }
 0xb90   : > { %v2012_v17 = vmul.f32 1.442695, %v2010_v32  ;;  %v2011_v35 = vsub.f32 %v2003_v27, %v2009_v33  ;;  %v5037_v32 = vld [vmem:[#allocation26 + $0x14] ss:$8 sps:$4 sm:$0xff]   ;;  %v5035_v33 = vld [vmem:[#allocation26 + $0x10] ss:$8 sps:$4 sm:$0xff]  }
 0xb91   : > { %v2028_v40 = vpop.permute.xlu1 %2027 }
 0xb92   : > { %5160 = vpow2.f32 %v2012_v17  ;;  %v2014_v41 = vmul.f32 1.442695, %v2011_v35  ;;  %4549 = vmatpush3.bf16.msra.mxu1 %v2028_v40  ;;  %v5040_v17 = vld [vmem:[#allocation26 + $0x24] ss:$8 sps:$4 sm:$0xff]   ;;  %v5038_v35 = vld [vmem:[#allocation26 + $0x20] ss:$8 sps:$4 sm:$0xff]  }
 0xb93   : > { %4550 = vmatprep.subr.bf16.mxu1 %v5971_v0  ;;  %v5071_v40 = vld [vmem:[#allocation23] sm:$0xff]  }
 0xb94   : > { %5162 = vpow2.f32 %v2014_v41  ;;  %4577 = vmatpush3.bf16.msra.mxu0 %v5071_v40  ;;  %v5041_v41 = vld [vmem:[#allocation26 + $0x30] ss:$8 sps:$4 sm:$0xff]  }
 0xb95   : > { %v4964_v2 = vpop.permute.xlu1 %4963  ;;  %4578 = vmatprep.subr.bf16.mxu0 %v5971_v0 }
 0xb96   : > { %v4966_v5 = vunpack.i.h.bf16 %v4964_v2  ;;  %v4965_v6 = vunpack.i.l.bf16 %v4964_v2 }
 0xb98   : > { %v2102_v3 = vsel %vm1559_vm1, %v6941_v53, %v4966_v5  ;;  %v2101_v12 = vsel %vm1559_vm1, %v6939_v51, %v4965_v6  ;;  %v5075_v5 = vld [vmem:[#allocation23 + $0x8] sm:$0xff]  }
 0xb99   : > { %v4969_v4 = vpop.permute.xlu1 %4968  ;;  %4579 = vmatpush3.bf16.msra.mxu0 %v5075_v5  ;;  %v5078_v6 = vld [vmem:[#allocation26 + $0xe4] ss:$8 sps:$4 sm:$0xff]  }
 0xb9a   : > { %v4971_v7 = vunpack.i.h.bf16 %v4969_v4  ;;  %v4970_v8 = vunpack.i.l.bf16 %v4969_v4  ;;  %4580 = vmatprep.subr.bf16.mxu0 %v5971_v0 }
 0xb9c   : > { %v5161_v56 = vpop.eup %5160  ;;  %v2104_v16 = vsel %vm2103_vm4, %v2101_v12, %v4970_v8  ;;  %v2105_v18 = vsel %vm2103_vm4, %v2102_v3, %v4971_v7  ;;  %v5076_v7 = vld [vmem:[#allocation26 + $0xe0] ss:$8 sps:$4 sm:$0xff]   ;;  %v5079_v8 = vld [vmem:[#allocation23 + $0x10] sm:$0xff]   ;;  %v5083_v12 = vld [vmem:[#allocation23 + $0x18] sm:$0xff]  }
 0xb9d   : > { %v2016_v42 = vsel %vm1559_vm1, %v5161_v56, 0.0  ;;  %4581 = vmatpush3.bf16.msra.mxu0 %v5079_v8  ;;  %v5080_v3 = vld [vmem:[#allocation26 + $0xf0] ss:$8 sps:$4 sm:$0xff]  }
 0xb9e   : > { %v5163_v43 = vpop.eup %5162  ;;  %2017 = vadd.xlane.f32.xlu0 %v2016_v42  ;;  %v5049_v42 = vld [vmem:[#allocation26 + $0x54] ss:$8 sps:$4 sm:$0xff]   ;;  %4582 = vmatprep.subr.bf16.mxu0 %v5971_v0 }
 0xb9f   : > { %v2019_v34 = vsel %vm1559_vm1, %v5163_v43, 0.0 }
 0xba1   : > { %4583 = vmatpush3.bf16.msra.mxu0 %v5083_v12 }
 0xba2   : > { %2020 = vadd.xlane.f32.xlu0 %v2019_v34  ;;  %v5052_v34 = vld [vmem:[#allocation26 + $0x64] ss:$8 sps:$4 sm:$0xff]   ;;  %4584 = vmatprep.subr.bf16.mxu0 %v5971_v0 }
 0xbb8   : > { %2029 = vrot.lane.b32.xlu0 %v6893_v10, %s5976_s27  ;;  %v5025_v10 = vld [vmem:[#allocation17 + $0x8] sm:$0xff]  }
 0xc2b   : > { %v2018_v36 = vpop.xlane.xlu0 %2017 }
 0xc2c   : > { %5164 = vrcp.f32 %v2018_v36  ;;  %v5050_v36 = vld [vmem:[#allocation26 + $0x60] ss:$8 sps:$4 sm:$0xff]  }
 0xc2f   : > { %v2021_v38 = vpop.xlane.xlu0 %2020 }
 0xc30   : > { %5166 = vrcp.f32 %v2021_v38  ;;  %v5055_v38 = vld [vmem:[#allocation26 + $0x74] ss:$8 sps:$4 sm:$0xff]  }
 0xc33   : > { %v2030_v44 = vpop.permute.xlu0 %2029 }
 0xc34   : > { %4551 = vmatpush3.bf16.msra.mxu1 %v2030_v44  ;;  %v5053_v44 = vld [vmem:[#allocation26 + $0x70] ss:$8 sps:$4 sm:$0xff]  }
 0xc35   : > { %4556 = vmatprep.subr.bf16.mxu1 %v5971_v0 }
 0xc36   : > { %v5165_v45 = vpop.eup %5164 }
 0xc37   : > { %v2024_v47 = vmul.f32 %v5165_v45, %v5161_v56  ;;  %v5044_v56 = vld [vmem:[#allocation26 + $0x40] ss:$8 sps:$4 sm:$0xff]   ;;  %v5058_v45 = vld [vmem:[#allocation26 + $0x84] ss:$8 sps:$4 sm:$0xff]  }
 0xc3a   : > { %v5167_v46 = vpop.eup %5166 }
 0xc3b   : > { %v2025_v48 = vmul.f32 %v5167_v46, %v5163_v43  ;;  %v5047_v43 = vld [vmem:[#allocation26 + $0x50] ss:$8 sps:$4 sm:$0xff]   ;;  %v5056_v46 = vld [vmem:[#allocation26 + $0x80] ss:$8 sps:$4 sm:$0xff]  }
 0xc3d   : > { %v2026_v49 = vpack.c.bf16 %v2025_v48, %v2024_v47  ;;  %v5061_v47 = vld [vmem:[#allocation26 + $0x94] ss:$8 sps:$4 sm:$0xff]   ;;  %v5059_v48 = vld [vmem:[#allocation26 + $0x90] ss:$8 sps:$4 sm:$0xff]  }
 0xc3f   : > { %4553 = vmatmul.mubr.msk.bf16.vlgmr.msra.gmra.mrb[16].mxu1 %vm1559_vm1, %v2026_v49  ;;  %v5064_v49 = vld [vmem:[#allocation26 + $0xa4] ss:$8 sps:$4 sm:$0xff]  }
 0xc40   : > { %4572 = vmatprep.mubr.msk.bf16.mxu1 %vm5973_vm0, %v5971_v0  ;;  %4557 = vmatpush3.bf16.msra.mxu1 %v5024_v50  ;;  %v5062_v50 = vld [vmem:[#allocation26 + $0xa0] ss:$8 sps:$4 sm:$0xff]  }
 0xc41   : > { %4558 = vmatprep.subr.bf16.mxu1 %v5971_v0 }
 0xc44   : > { %4559 = vmatpush3.bf16.msra.mxu1 %v5025_v10  ;;  %v5067_v10 = vld [vmem:[#allocation26 + $0xb4] ss:$8 sps:$4 sm:$0xff]  }
 0xc45   : > { %4560 = vmatprep.subr.bf16.mxu1 %v5971_v0 }
 0xc48   : > { %4561 = vmatpush3.bf16.msra.mxu1 %v5026_v52  ;;  %v5065_v52 = vld [vmem:[#allocation26 + $0xb0] ss:$8 sps:$4 sm:$0xff]  }
 0xc49   : > { %4562 = vmatprep.subr.bf16.mxu1 %v5971_v0 }
 0xc4c   : > { %4563 = vmatpush3.bf16.msra.mxu1 %v5027_v55  ;;  %v5070_v55 = vld [vmem:[#allocation26 + $0xc4] ss:$8 sps:$4 sm:$0xff]  }
 0xc4d   : > { %4564 = vmatprep.subr.bf16.mxu1 %v5971_v0 }
 0xc50   : > { %4565 = vmatpush3.bf16.msra.mxu1 %v5028_v57  ;;  %v5068_v57 = vld [vmem:[#allocation26 + $0xc0] ss:$8 sps:$4 sm:$0xff]  }
 0xc51   : > { %4566 = vmatprep.subr.bf16.mxu1 %v5971_v0 }
 0xc54   : > { %4567 = vmatpush3.bf16.msra.mxu1 %v5029_v58  ;;  %v5074_v58 = vld [vmem:[#allocation26 + $0xd4] ss:$8 sps:$4 sm:$0xff]  }
 0xc55   : > { %4568 = vmatprep.subr.bf16.mxu1 %v5971_v0 }
 0xc58   : > { %4569 = vmatpush3.bf16.msra.mxu1 %v5030_v59  ;;  %v5072_v59 = vld [vmem:[#allocation26 + $0xd0] ss:$8 sps:$4 sm:$0xff]  }
 0xc59   : > { %4570 = vmatprep.subr.bf16.mxu1 %v5971_v0 }
 0xc5c   : > { %4571 = vmatpush3.bf16.msra.mxu1 %v5031_v60 }
 0xc5d   : > { %2586 = vmatprep.subr.bf16.mxu1 %v5034_v15 }
 0xd12   : > { %v2070_v61 = vpop.f32.mrb[16].mxu1 }
 0xd13   : > { %v4554_v62 = vpop.f32.mrb[17].mxu1 }
 0xd14   : > { %v2073_v54 = vpop.f32.mrb[18].mxu1 }
 0xd15   : > { %v4972_v9 = vpack.i.bf16 %v2073_v54, %v2070_v61  ;;  %v4555_v63 = vpop.f32.mrb[19].mxu1 }
 0xd17   : > { %4973 = vrot.lane.b32.xlu1 %v4972_v9, %s5974_s30 }
 0xd89   : > { %v4974_v11 = vpop.permute.xlu1 %4973 }
 0xd8a   : > { %v4976_v13 = vunpack.i.h.bf16 %v4974_v11  ;;  %v4975_v14 = vunpack.i.l.bf16 %v4974_v11  ;;  %v5082_v11 = vld [vmem:[#allocation26 + $0xf4] ss:$8 sps:$4 sm:$0xff]  }
 0xd8c   : > { %v2108_v19 = vsel %vm2106_vm5, %v2105_v18, %v4976_v13  ;;  %v2107_v20 = vsel %vm2106_vm5, %v2104_v16, %v4975_v14  ;;  %v1259_v13 = vld [vmem:[%s6806_s1 + $0x8] sm:$0xff]  ;;  %v1261_v14 = vld [vmem:[%s6806_s1 + $0x18] sm:$0xff]  ;;  %v1258_v18 = vld [vmem:[%s6806_s1] sm:$0xff] }
 0xd8d   : > { %v2109_v21 = vpack.c.bf16 %v2108_v19, %v2107_v20  ;;  %v2379_v16 = vpack.c.bf16 %v1261_v14, %v1259_v13  ;;  %v1260_v19 = vld [vmem:[%s6806_s1 + $0x10] sm:$0xff] }
 0xd8e   : > { %v2378_v20 = vpack.c.bf16 %v1260_v19, %v1258_v18 }
 0xd8f   : > { %4573 = vmatmul.mubr.bf16.vlgmr.msra.gmra.mrb[20].mxu1 %v2109_v21  ;;  %v5084_v21 = vld [vmem:[#allocation23 + $0x20] sm:$0xff]  }
 0xd90   : > { %2587 = vmatpush1.bf16.msra.mxu1 %v5032_v31  ;;  %2618 = vmatprep.mubr.bf16.mxu1 %v2379_v16 }
 0xd91   : > { %2588 = vmatprep.subr.bf16.mxu1 %v5037_v32  ;;  %4585 = vmatpush3.bf16.msra.mxu0 %v5084_v21 }
 0xd92   : > { %4586 = vmatprep.subr.bf16.mxu0 %v5971_v0 }
 0xd94   : > { %2589 = vmatpush1.bf16.msra.mxu1 %v5035_v33 }
 0xd95   : > { %2590 = vmatprep.subr.bf16.mxu1 %v5040_v17 }
 0xd98   : > { %2591 = vmatpush1.bf16.msra.mxu1 %v5038_v35 }
 0xe62   : > { %v2215_v23 = vpop.f32.mrb[20].mxu1 }
 0xe63   : > { %v2216_v24 = vadd.f32 %v4240_v22, %v2215_v23  ;;  %v4574_v25 = vpop.f32.mrb[21].mxu1  ;;  %v1263_v23 = vld [vmem:[%s6806_s1 + $0x28] sm:$0xff] }
 0xe64   : > { %v2218_v53 = vpop.f32.mrb[22].mxu1 }
 0xe65   : > { %v2219_v26 = vadd.f32 %v4240_v22, %v2218_v53  ;;  %v4575_v27 = vpop.f32.mrb[23].mxu1  ;;  %v7048_v51 = vadd.f32 %v2216_v24, %v6858_v28  ;;  %v5043_v28 = vld [vmem:[#allocation26 + $0x34] ss:$8 sps:$4 sm:$0xff]   ;;  %v5085_v22 = vld [vmem:[#allocation23 + $0x28] sm:$0xff]  }
 0xe66   : > { %2592 = vmatprep.subr.bf16.mxu1 %v5043_v28  ;;  %v1265_v24 = vld [vmem:[%s6806_s1 + $0x38] sm:$0xff]  ;;  %v1262_v53 = vld [vmem:[%s6806_s1 + $0x20] sm:$0xff]  ;;  %4587 = vmatpush3.bf16.msra.mxu0 %v5085_v22 }
 0xe67   : > { %2224 = vadd.xlane.f32.xlu0 %v7048_v51  ;;  %v7052_v30 = vadd.f32 %v2219_v26, %v6862_v29  ;;  %v5046_v29 = vld [vmem:[#allocation26 + $0x44] ss:$8 sps:$4 sm:$0xff]   ;;  %2593 = vmatpush1.bf16.msra.mxu1 %v5041_v41  ;;  %v2381_v25 = vpack.c.bf16 %v1265_v24, %v1263_v23  ;;  %v4249_v41 = vld [vmem:[#allocation20] ss:$0 sm:$0xff] }
 0xe68   : > { %2594 = vmatprep.subr.bf16.mxu1 %v5046_v29  ;;  %v1264_v26 = vld [vmem:[%s6806_s1 + $0x30] sm:$0xff]  ;;  %4588 = vmatprep.subr.bf16.mxu0 %v5971_v0  ;;  %s7735_s1 = sld [smem:[#allocation53_spill]] }
 0xe69   : > { %2226 = vadd.xlane.f32.xlu1 %v7052_v30  ;;  %v2380_v27 = vpack.c.bf16 %v1264_v26, %v1262_v53  ;;  %v4363_v23 = vld [vmem:[%s6814_s3] sm:$0xff]   ;;  %s1245_s3 = scalar_lea.vmem [#allocation33], %s6789_s2 }
 0xe6a   : > { %v4364_v24 = vunpack.c.l.bf16 %v4363_v23 }
 0xe6b   : > { %2595 = vmatpush1.bf16.msra.mxu1 %v5044_v56 }
 0xe6c   : > { %2596 = vmatprep.subr.bf16.mxu1 %v5049_v42  ;;  %vm7121_vm6 = vcmp.gt.f32.partialorder %v4364_v24, 0.5 }
 0xe6e   : > { %s4349_s16 = sshll.u32 %s7735_s1, 2 }
 0xe6f   : > { %2597 = vmatpush1.bf16.msra.mxu1 %v5047_v43  ;;  %v4250_v43 = vld [vmem:[#allocation22] ss:$0 sm:$0xff] }
 0xe70   : > { %2598 = vmatprep.subr.bf16.mxu1 %v5052_v34 }
 0xe73   : > { %2599 = vmatpush1.bf16.msra.mxu1 %v5050_v36 }
 0xe74   : > { %2600 = vmatprep.subr.bf16.mxu1 %v5055_v38 }
 0xe77   : > { %2601 = vmatpush1.bf16.msra.mxu1 %v5053_v44 }
 0xe78   : > { %2602 = vmatprep.subr.bf16.mxu1 %v5058_v45  ;;  %v2414_v45 = vld [vmem:[#allocation28] sm:$0x3] }
 0xe7b   : > { %2603 = vmatpush1.bf16.msra.mxu1 %v5056_v46  ;;  %v2419_v46 = vrot.slane %v2414_v45, %v6876_v37 }
 0xe7c   : > { %2604 = vmatprep.subr.bf16.mxu1 %v5061_v47  ;;  %v2423_v47 = vrot.slane %v2414_v45, %v6878_v39 }
 0xe7f   : > { %2605 = vmatpush1.bf16.msra.mxu1 %v5059_v48 }
 0xe80   : > { %2606 = vmatprep.subr.bf16.mxu1 %v5064_v49 }
 0xe83   : > { %2607 = vmatpush1.bf16.msra.mxu1 %v5062_v50 }
 0xe84   : > { %2608 = vmatprep.subr.bf16.mxu1 %v5067_v10 }
 0xe87   : > { %2609 = vmatpush1.bf16.msra.mxu1 %v5065_v52 }
 0xe88   : > { %2610 = vmatprep.subr.bf16.mxu1 %v5070_v55 }
 0xe8b   : > { %2611 = vmatpush1.bf16.msra.mxu1 %v5068_v57 }
 0xe8c   : > { %2612 = vmatprep.subr.bf16.mxu1 %v5074_v58 }
 0xe8f   : > { %2613 = vmatpush1.bf16.msra.mxu1 %v5072_v59 }
 0xe90   : > { %2614 = vmatprep.subr.bf16.mxu1 %v5078_v6 }
 0xe93   : > { %2615 = vmatpush1.bf16.msra.mxu1 %v5076_v7 }
 0xe94   : > { %2616 = vmatprep.subr.bf16.mxu1 %v5082_v11 }
 0xe97   : > { %2617 = vmatpush1.bf16.msra.mxu1 %v5080_v3  ;;  %v4251_v3 = vld [vmem:[#allocation25] ss:$0 sm:$0xff] }
 0xe98   : > { %4644 = vmatprep.subr.bf16.mxu1 %v5971_v0 }
 0xe9a   : > { %2619 = vmatmul.mubr.bf16.vlgmr.msra.gmra.mrb[24].mxu1 %v2378_v20 }
 0xe9b   : > { %2628 = vmatprep.mubr.bf16.mxu1 %v2381_v25  ;;  %v4365_v25 = vunpack.c.h.bf16 %v4363_v23 }
 0xe9d   : > { %vm7125_vm7 = vcmp.gt.f32.partialorder %v4365_v25, 0.5 }
 0xea2   : > { %2629 = vmatmul.mubr.bf16.gmra.mrb[28].mxu1 %v2380_v27 }
 0xea3   : > { %4648 = vmatprep.mubr.msk.bf16.mxu1 %vm5973_vm0, %v5971_v0 }
 0xef4   : > { %v2225_v60 = vpop.xlane.xlu0 %2224 }
 0xef5   : > { %v2229_v61 = vmul.f32 0.0078125, %v2225_v60 }
 0xef6   : > { %v2227_v62 = vpop.xlane.xlu1 %2226 }
 0xef7   : > { %v7057_v54 = vsub.f32 %v7048_v51, %v2229_v61  ;;  %v2230_v9 = vmul.f32 0.0078125, %v2227_v62  ;;  %v5086_v51 = vld [vmem:[#allocation23 + $0x30] sm:$0xff]  }
 0xef8   : > { %4589 = vmatpush3.bf16.msra.mxu0 %v5086_v51 }
 0xef9   : > { %v7060_v63 = vsub.f32 %v7052_v30, %v2230_v9  ;;  %v2233_v2 = vmul.f32 %v7057_v54, %v7057_v54  ;;  %v5087_v30 = vld [vmem:[#allocation23 + $0x38] sm:$0xff]   ;;  %4590 = vmatprep.subr.bf16.mxu0 %v5971_v0 }
 0xefb   : > { %2235 = vadd.xlane.f32.xlu0 %v2233_v2  ;;  %v2234_v4 = vmul.f32 %v7060_v63, %v7060_v63 }
 0xefc   : > { %4591 = vmatpush3.bf16.msra.mxu0 %v5087_v30 }
 0xefd   : > { %4596 = vmatprep.subr.bf16.mxu0 %v5971_v0 }
 0xeff   : > { %2237 = vadd.xlane.f32.xlu0 %v2234_v4 }
 0xf6d   : > { %v2620_v48 = vpop.f32.mrb[24].mxu1 }
 0xf6e   : > { %v2621_v49 = vadd.f32 %v2620_v48, %v2419_v46  ;;  %v2622_v50 = vpop.f32.mrb[25].mxu1 }
 0xf6f   : > { %v2623_v10 = vadd.f32 %v2622_v50, %v2423_v47  ;;  %v2624_v52 = vpop.f32.mrb[26].mxu1 }
 0xf70   : > { %v2625_v55 = vadd.f32 %v2624_v52, %v2419_v46  ;;  %v2626_v57 = vpop.f32.mrb[27].mxu1 }
 0xf71   : > { %v2627_v58 = vadd.f32 %v2626_v57, %v2423_v47 }
 0xf72   : > { %v7096_v59 = vpack.c.bf16 %v2625_v55, %v2621_v49 }
 0xf73   : > { %v7098_v60 = vpack.c.bf16 %v2627_v58, %v2623_v10 }
 0xf74   : > { %v2652_v61 = vsel %vm1559_vm1, %v7096_v59, 0 }
 0xf75   : > { %v2630_v62 = vpop.f32.mrb[28].mxu1 }
 0xf76   : > { %v2632_v9 = vpop.f32.mrb[29].mxu1 }
 0xf77   : > { %v2634_v2 = vpop.f32.mrb[30].mxu1 }
 0xf78   : > { %v2635_v4 = vadd.f32 %v2634_v2, %v2419_v46  ;;  %v2636_v5 = vpop.f32.mrb[31].mxu1 }
 0xf79   : > { %v2637_v6 = vadd.f32 %v2636_v5, %v2423_v47 }
 0xf88   : > { %v2236_v31 = vpop.xlane.xlu0 %2235 }
 0xf89   : > { %v2239_v15 = vmul.f32 0.0078125, %v2236_v31 }
 0xf8b   : > { %v2241_v32 = vadd.f32 1e-05, %v2239_v15 }
 0xf8c   : > { %v2238_v33 = vpop.xlane.xlu0 %2237 }
 0xf8d   : > { %5168 = vrsqrt.f32 %v2241_v32  ;;  %v2240_v17 = vmul.f32 0.0078125, %v2238_v33 }
 0xf8f   : > { %v2242_v35 = vadd.f32 1e-05, %v2240_v17 }
 0xf91   : > { %5170 = vrsqrt.f32 %v2242_v35 }
 0xf97   : > { %v5169_v28 = vpop.eup %5168 }
 0xf98   : > { %v2245_v40 = vmul.f32 %v5169_v28, %v7057_v54  ;;  %v2631_v54 = vadd.f32 %v2630_v62, %v2419_v46 }
 0xf9a   : > { %v2254_v42 = vmul.f32 %v4249_v41, %v2245_v40  ;;  %v7103_v7 = vpack.c.bf16 %v2635_v4, %v2631_v54 }
 0xf9b   : > { %v5171_v29 = vpop.eup %5170 }
 0xf9c   : > { %v2246_v56 = vmul.f32 %v5171_v29, %v7060_v63  ;;  %v7086_v36 = vadd.f32 %v4250_v43, %v2254_v42  ;;  %v2633_v63 = vadd.f32 %v2632_v9, %v2423_v47  ;;  %v2655_v11 = vsel %vm1559_vm1, %v7103_v7, 0 }
 0xf9e   : > { %v2255_v34 = vmul.f32 %v4249_v41, %v2246_v56  ;;  %v7105_v8 = vpack.c.bf16 %v2637_v6, %v2633_v63 }
 0xfa0   : > { %v7088_v38 = vadd.f32 %v4250_v43, %v2255_v34 }
 0xfa2   : > { %v2265_v44 = vpack.c.bf16 %v7088_v38, %v7086_v36 }
 0xfa4   : > { %4593 = vmatmul.mubr.bf16.vlgmr.msra.gmra.mrb[24].mxu0 %v2265_v44 }
 0xfa5   : > { %4600 = vmatprep.mubr.msk.bf16.mxu0 %vm5973_vm0, %v5971_v0  ;;  %4597 = vmatpush3.bf16.xpose.msra.mxu0 %v2652_v61 }
 0xfa6   : > { %4598 = vmatprep.subr.bf16.mxu0 %v5971_v0 }
 0xfad   : > { %4599 = vmatpush3.bf16.xpose.msra.mxu0 %v2655_v11 }
 0xfae   : > { %4604 = vmatprep.subr.bf16.mxu0 %v5971_v0 }
0x1077   : > { %v2371_v12 = vpop.f32.mrb[24].mxu0 }
0x1078   : > { %v2372_v13 = vadd.f32 %v4251_v3, %v2371_v12  ;;  %v4594_v14 = vpop.f32.mrb[25].mxu0 }
0x1079   : > { %v2374_v16 = vpop.f32.mrb[26].mxu0 }
0x107a   : > { %v2375_v18 = vadd.f32 %v4251_v3, %v2374_v16  ;;  %v4595_v19 = vpop.f32.mrb[27].mxu0  ;;  %v2641_v20 = vmul.f32 0.17677669, %v2372_v13 }
0x107c   : > { %v2642_v21 = vmul.f32 0.17677669, %v2375_v18 }
0x107e   : > { %v7110_v22 = vpack.c.bf16 %v2642_v21, %v2641_v20 }
0x1080   : > { %4601 = vmatmul.mubr.msk.bf16.vlgmr.msra.gmra.mrb[28].mxu0 %vm1559_vm1, %v7110_v22 }
0x1081   : > { %4605 = vmatpush3.bf16.msra.mxu0 %v7098_v60  ;;  %4608 = vmatprep.mubr.msk.bf16.mxu0 %vm5973_vm0, %v5971_v0 }
0x1082   : > { %4606 = vmatprep.subr.bf16.mxu0 %v5971_v0 }
0x1085   : > { %4607 = vmatpush3.bf16.msra.mxu0 %v7105_v8 }
0x1086   : > { %4612 = vmatprep.subr.bf16.mxu0 %v5971_v0 }
0x1153   : > { %v2691_v26 = vpop.f32.mrb[28].mxu0 }
0x1154   : > { %v2698_v51 = vsel %vm7121_vm6, %v2691_v26, -10000.0  ;;  %v4602_v30 = vpop.f32.mrb[29].mxu0 }
0x1155   : > { %v2694_v31 = vpop.f32.mrb[30].mxu0  ;;  %v2700_v15 = vsel %vm1559_vm1, %v2698_v51, -inf }
0x1156   : > { %v2699_v32 = vsel %vm7125_vm7, %v2694_v31, -10000.0  ;;  %2701 = vmax.xlane.f32.xlu0 %v2700_v15  ;;  %v4603_v33 = vpop.f32.mrb[31].mxu0 }
0x1157   : > { %v2703_v17 = vsel %vm1559_vm1, %v2699_v32, -inf }
0x1158   : > { %2704 = vmax.xlane.f32.xlu1 %v2703_v17 }
0x11e3   : > { %v2702_v35 = vpop.xlane.xlu0 %2701 }
0x11e4   : > { %v2706_v28 = vsub.f32 %v2698_v51, %v2702_v35 }
0x11e5   : > { %v2705_v40 = vpop.xlane.xlu1 %2704 }
0x11e6   : > { %v2708_v41 = vmul.f32 1.442695, %v2706_v28  ;;  %v2707_v29 = vsub.f32 %v2699_v32, %v2705_v40 }
0x11e8   : > { %5172 = vpow2.f32 %v2708_v41  ;;  %v2710_v56 = vmul.f32 1.442695, %v2707_v29 }
0x11ea   : > { %5174 = vpow2.f32 %v2710_v56 }
0x11f2   : > { %v5173_v42 = vpop.eup %5172 }
0x11f3   : > { %v2712_v43 = vsel %vm1559_vm1, %v5173_v42, 0.0 }
0x11f4   : > { %v5175_v34 = vpop.eup %5174  ;;  %2713 = vadd.xlane.f32.xlu0 %v2712_v43 }
0x11f5   : > { %v2715_v44 = vsel %vm1559_vm1, %v5175_v34, 0.0 }
0x11f6   : > { %2716 = vadd.xlane.f32.xlu1 %v2715_v44 }
0x1207   : > { %2774 = vrot.lane.b32.xlu1 %v7103_v7, %s5974_s30 }
0x120a   : > { %2772 = vrot.lane.b32.xlu0 %v7096_v59, %s5974_s30 }
0x120b   : > { %2768 = vrot.lane.b32.xlu1 %v7110_v22, %s5974_s30 }
0x1281   : > { %v2714_v45 = vpop.xlane.xlu0 %2713 }
0x1282   : > { %5176 = vrcp.f32 %v2714_v45 }
0x1283   : > { %v2717_v46 = vpop.xlane.xlu1 %2716 }
0x1284   : > { %5178 = vrcp.f32 %v2717_v46 }
0x1285   : > { %v2773_v10 = vpop.permute.xlu0 %2772 }
0x1286   : > { %v2780_v55 = vsel %vm1559_vm1, %v2773_v10, 0 }
0x1287   : > { %v2775_v57 = vpop.permute.xlu1 %2774 }
0x1288   : > { %v2783_v58 = vsel %vm1559_vm1, %v2775_v57, 0 }
0x128b   : > { %v2769_v61 = vpop.permute.xlu1 %2768 }
0x128c   : > { %v5177_v47 = vpop.eup %5176 }
0x128d   : > { %v7143_v49 = vmul.f32 %v5177_v47, %v5173_v42 }
0x128e   : > { %v5179_v48 = vpop.eup %5178 }
0x128f   : > { %v7145_v50 = vmul.f32 %v5179_v48, %v5175_v34 }
0x1291   : > { %v2722_v52 = vpack.c.bf16 %v7145_v50, %v7143_v49 }
0x1293   : > { %4609 = vmatmul.mubr.msk.bf16.vlgmr.msra.gmra.mrb[32].mxu0 %vm1559_vm1, %v2722_v52 }
0x1294   : > { %4613 = vmatpush3.bf16.xpose.msra.mxu0 %v2780_v55  ;;  %4616 = vmatprep.mubr.msk.bf16.mxu0 %vm5973_vm0, %v5971_v0 }
0x1295   : > { %4614 = vmatprep.subr.bf16.mxu0 %v5971_v0 }
0x129c   : > { %4615 = vmatpush3.bf16.xpose.msra.mxu0 %v2783_v58 }
0x129d   : > { %4620 = vmatprep.subr.bf16.mxu0 %v5971_v0 }
0x12a3   : > { %4617 = vmatmul.mubr.msk.bf16.vlgmr.msra.gmra.mrb[36].mxu0 %vm1559_vm1, %v2769_v61 }
0x12a4   : > { %4624 = vmatprep.mubr.msk.bf16.mxu0 %vm5973_vm0, %v5971_v0 }
0x1366   : > { %v7159_v62 = vpop.f32.mrb[32].mxu0 }
0x1367   : > { %v4610_v54 = vpop.f32.mrb[33].mxu0 }
0x1368   : > { %v7161_v9 = vpop.f32.mrb[34].mxu0 }
0x1369   : > { %v4611_v63 = vpop.f32.mrb[35].mxu0 }
0x1376   : > { %v2819_v2 = vpop.f32.mrb[36].mxu0 }
0x1377   : > { %v2826_v4 = vsel %vm7121_vm6, %v2819_v2, -10000.0  ;;  %v4618_v5 = vpop.f32.mrb[37].mxu0 }
0x1378   : > { %v2822_v6 = vpop.f32.mrb[38].mxu0  ;;  %v2828_v11 = vsel %vm1559_vm1, %v2826_v4, -inf }
0x1379   : > { %v2827_v3 = vsel %vm7125_vm7, %v2822_v6, -10000.0  ;;  %2829 = vmax.xlane.f32.xlu1 %v2828_v11  ;;  %v4619_v12 = vpop.f32.mrb[39].mxu0 }
0x137a   : > { %v2831_v13 = vsel %vm1559_vm1, %v2827_v3, -inf }
0x137b   : > { %2832 = vmax.xlane.f32.xlu0 %v2831_v13 }
0x138a   : > { %2853 = vrot.lane.b32.xlu1 %v7098_v60, %s5974_s30 }
0x138e   : > { %2905 = vrot.lane.b32.xlu1 %v7096_v59, %s5975_s12 }
0x1392   : > { %2907 = vrot.lane.b32.xlu1 %v7103_v7, %s5975_s12 }
0x1396   : > { %3036 = vrot.lane.b32.xlu1 %v7096_v59, %s5976_s27 }
0x139a   : > { %3038 = vrot.lane.b32.xlu1 %v7103_v7, %s5976_s27 }
0x1406   : > { %v2830_v14 = vpop.xlane.xlu1 %2829 }
0x1407   : > { %v2834_v16 = vsub.f32 %v2826_v4, %v2830_v14 }
0x1408   : > { %v2833_v18 = vpop.xlane.xlu0 %2832 }
0x1409   : > { %v2836_v19 = vmul.f32 1.442695, %v2834_v16  ;;  %v2835_v20 = vsub.f32 %v2827_v3, %v2833_v18 }
0x140a   : > { %v2854_v21 = vpop.permute.xlu1 %2853 }
0x140b   : > { %5180 = vpow2.f32 %v2836_v19  ;;  %v2838_v23 = vmul.f32 1.442695, %v2835_v20  ;;  %4621 = vmatpush3.bf16.msra.mxu0 %v2854_v21 }
0x140c   : > { %4622 = vmatprep.subr.bf16.mxu0 %v5971_v0 }
0x140d   : > { %5182 = vpow2.f32 %v2838_v23 }
0x140e   : > { %v2906_v24 = vpop.permute.xlu1 %2905 }
0x140f   : > { %v2913_v43 = vsel %vm1559_vm1, %v2906_v24, 0 }
0x1412   : > { %v2908_v25 = vpop.permute.xlu1 %2907 }
0x1413   : > { %v2916_v34 = vsel %vm1559_vm1, %v2908_v25, 0 }
0x1415   : > { %v5181_v26 = vpop.eup %5180 }
0x1416   : > { %v3037_v51 = vpop.permute.xlu1 %3036  ;;  %v2840_v59 = vsel %vm1559_vm1, %v5181_v26, 0.0 }
0x1417   : > { %v5183_v30 = vpop.eup %5182  ;;  %v3044_v7 = vsel %vm1559_vm1, %v3037_v51, 0  ;;  %2841 = vadd.xlane.f32.xlu0 %v2840_v59 }
0x1418   : > { %4645 = vmatpush3.bf16.xpose.msra.mxu1 %v3044_v7  ;;  %v2843_v31 = vsel %vm1559_vm1, %v5183_v30, 0.0 }
0x1419   : > { %4646 = vmatprep.subr.bf16.mxu1 %v5971_v0 }
0x141a   : > { %v3039_v15 = vpop.permute.xlu1 %3038 }
0x141b   : > { %2844 = vadd.xlane.f32.xlu0 %v2843_v31  ;;  %v3047_v32 = vsel %vm1559_vm1, %v3039_v15, 0 }
0x1420   : > { %4647 = vmatpush3.bf16.xpose.msra.mxu1 %v3047_v32 }
0x1421   : > { %4660 = vmatprep.subr.bf16.mxu1 %v5971_v0 }
0x1431   : > { %2855 = vrot.lane.b32.xlu0 %v7105_v8, %s5974_s30 }
0x1435   : > { %2903 = vrot.lane.b32.xlu0 %v7110_v22, %s5975_s12 }
0x1439   : > { %3034 = vrot.lane.b32.xlu0 %v7110_v22, %s5976_s27 }
0x14a4   : > { %v2842_v33 = vpop.xlane.xlu0 %2841 }
0x14a5   : > { %5184 = vrcp.f32 %v2842_v33 }
0x14a8   : > { %v2845_v17 = vpop.xlane.xlu0 %2844 }
0x14a9   : > { %5186 = vrcp.f32 %v2845_v17 }
0x14ac   : > { %v2856_v35 = vpop.permute.xlu0 %2855 }
0x14ad   : > { %4623 = vmatpush3.bf16.msra.mxu0 %v2856_v35 }
0x14ae   : > { %4628 = vmatprep.subr.bf16.mxu0 %v5971_v0 }
0x14af   : > { %v5185_v40 = vpop.eup %5184 }
0x14b0   : > { %v2904_v28 = vpop.permute.xlu0 %2903  ;;  %v7193_v29 = vmul.f32 %v5185_v40, %v5181_v26 }
0x14b3   : > { %v5187_v41 = vpop.eup %5186 }
0x14b4   : > { %v7195_v56 = vmul.f32 %v5187_v41, %v5183_v30  ;;  %v3035_v42 = vpop.permute.xlu0 %3034 }
0x14b5   : > { %4649 = vmatmul.mubr.msk.bf16.vlgmr.msra.gmra.mrb[32].mxu1 %vm1559_vm1, %v3035_v42 }
0x14b6   : > { %v2850_v22 = vpack.c.bf16 %v7195_v56, %v7193_v29  ;;  %4676 = vmatprep.mubr.msk.bf16.mxu1 %vm5973_vm0, %v5971_v0 }
0x14b8   : > { %4625 = vmatmul.mubr.msk.bf16.vlgmr.msra.gmra.mrb[40].mxu0 %vm1559_vm1, %v2850_v22 }
0x14b9   : > { %4629 = vmatpush3.bf16.xpose.msra.mxu0 %v2913_v43  ;;  %4632 = vmatprep.mubr.msk.bf16.mxu0 %vm5973_vm0, %v5971_v0 }
0x14ba   : > { %4630 = vmatprep.subr.bf16.mxu0 %v5971_v0 }
0x14c1   : > { %4631 = vmatpush3.bf16.xpose.msra.mxu0 %v2916_v34 }
0x14c2   : > { %4636 = vmatprep.subr.bf16.mxu0 %v5971_v0 }
0x14c8   : > { %4633 = vmatmul.mubr.msk.bf16.vlgmr.msra.gmra.mrb[44].mxu0 %vm1559_vm1, %v2904_v28 }
0x14c9   : > { %4640 = vmatprep.mubr.msk.bf16.mxu0 %vm5973_vm0, %v5971_v0 }
0x1588   : > { %v3083_v44 = vpop.f32.mrb[32].mxu1 }
0x1589   : > { %v4650_v45 = vpop.f32.mrb[33].mxu1  ;;  %v3090_v11 = vsel %vm7121_vm6, %v3083_v44, -10000.0 }
0x158a   : > { %v3086_v46 = vpop.f32.mrb[34].mxu1  ;;  %v3092_v3 = vsel %vm1559_vm1, %v3090_v11, -inf }
0x158b   : > { %v2896_v47 = vpop.f32.mrb[40].mxu0  ;;  %v4651_v48 = vpop.f32.mrb[35].mxu1  ;;  %v3091_v12 = vsel %vm7125_vm7, %v3086_v46, -10000.0 }
0x158c   : > { %v4626_v10 = vpop.f32.mrb[41].mxu0  ;;  %v3095_v13 = vsel %vm1559_vm1, %v3091_v12, -inf }
0x158d   : > { %v2899_v52 = vpop.f32.mrb[42].mxu0 }
0x158e   : > { %v4977_v55 = vpack.i.bf16 %v2899_v52, %v2896_v47  ;;  %v4627_v57 = vpop.f32.mrb[43].mxu0 }
0x158f   : > { %v5089_v57 = vld [vmem:[%s7728_s19 + $0x8] sm:$0xff]  }
0x159b   : > { %v2952_v58 = vpop.f32.mrb[44].mxu0 }
0x159c   : > { %v2959_v61 = vsel %vm7121_vm6, %v2952_v58, -10000.0  ;;  %v4634_v54 = vpop.f32.mrb[45].mxu0  ;;  %v5090_v58 = vld [vmem:[%s7728_s19 + $0x10] sm:$0xff]  }
0x159d   : > { %v2955_v63 = vpop.f32.mrb[46].mxu0  ;;  %v2961_v2 = vsel %vm1559_vm1, %v2959_v61, -inf  ;;  %v5093_v54 = vld [vmem:[%s7728_s19 + $0x28] sm:$0xff]  }
0x159e   : > { %v2960_v4 = vsel %vm7125_vm7, %v2955_v63, -10000.0  ;;  %2962 = vmax.xlane.f32.xlu1 %v2961_v2  ;;  %v4635_v5 = vpop.f32.mrb[47].mxu0  ;;  %v5094_v63 = vld [vmem:[%s7728_s19 + $0x30] sm:$0xff]  }
0x159f   : > { %v2964_v6 = vsel %vm1559_vm1, %v2960_v4, -inf  ;;  %v5095_v5 = vld [vmem:[%s7728_s19 + $0x38] sm:$0xff]  }
0x15a0   : > { %2965 = vmax.xlane.f32.xlu0 %v2964_v6 }
0x15a4   : > { %3093 = vmax.xlane.f32.xlu0 %v3092_v3 }
0x15a8   : > { %3096 = vmax.xlane.f32.xlu0 %v3095_v13 }
0x162b   : > { %v2963_v7 = vpop.xlane.xlu1 %2962 }
0x162c   : > { %v2967_v31 = vsub.f32 %v2959_v61, %v2963_v7  ;;  %v5092_v61 = vld [vmem:[%s7728_s19 + $0x20] sm:$0xff]  }
0x162d   : > { %v2966_v14 = vpop.xlane.xlu0 %2965 }
0x162e   : > { %v2968_v19 = vsub.f32 %v2960_v4, %v2966_v14  ;;  %v2969_v15 = vmul.f32 1.442695, %v2967_v31 }
0x1630   : > { %v2971_v53 = vmul.f32 1.442695, %v2968_v19 }
0x1631   : > { %v3094_v16 = vpop.xlane.xlu0 %3093 }
0x1632   : > { %v3098_v18 = vsub.f32 %v3090_v11, %v3094_v16 }
0x1634   : > { %v3100_v20 = vmul.f32 1.442695, %v3098_v18 }
0x1635   : > { %v3097_v21 = vpop.xlane.xlu0 %3096 }
0x1636   : > { %5188 = vpow2.f32 %v3100_v20  ;;  %v3099_v23 = vsub.f32 %v3091_v12, %v3097_v21 }
0x1638   : > { %v3102_v24 = vmul.f32 1.442695, %v3099_v23 }
0x163a   : > { %5190 = vpow2.f32 %v3102_v24 }
0x163b   : > { %5192 = vpow2.f32 %v2971_v53 }
0x163c   : > { %5194 = vpow2.f32 %v2969_v15 }
0x1640   : > { %v5189_v25 = vpop.eup %5188 }
0x1641   : > { %v3104_v27 = vsel %vm1559_vm1, %v5189_v25, 0.0 }
0x1642   : > { %3105 = vadd.xlane.f32.xlu1 %v3104_v27 }
0x1644   : > { %v5191_v26 = vpop.eup %5190 }
0x1645   : > { %v3107_v51 = vsel %vm1559_vm1, %v5191_v26, 0.0  ;;  %v5193_v59 = vpop.eup %5192 }
0x1646   : > { %3108 = vadd.xlane.f32.xlu0 %v3107_v51  ;;  %v2976_v30 = vsel %vm1559_vm1, %v5193_v59, 0.0  ;;  %v5195_v32 = vpop.eup %5194 }
0x1647   : > { %v2973_v33 = vsel %vm1559_vm1, %v5195_v32, 0.0 }
0x164a   : > { %2977 = vadd.xlane.f32.xlu0 %v2976_v30 }
0x1653   : > { %2984 = vrot.lane.b32.xlu1 %v7098_v60, %s5975_s12 }
0x1660   : > { %2986 = vrot.lane.b32.xlu0 %v7105_v8, %s5975_s12 }
0x1677   : > { %2974 = vadd.xlane.f32.xlu1 %v2973_v33 }
0x1688   : > { %3115 = vrot.lane.b32.xlu1 %v7098_v60, %s5976_s27 }
0x168c   : > { %3117 = vrot.lane.b32.xlu1 %v7105_v8, %s5976_s27 }
0x1690   : > { %4978 = vrot.lane.b32.xlu1 %v4977_v55, %s5976_s27  ;;  %v5088_v55 = vld [vmem:[%s7728_s19] sm:$0xff]  }
0x1691   : > { %4661 = vmatpush3.bf16.msra.mxu1 %v5088_v55 }
0x1692   : > { %4662 = vmatprep.subr.bf16.mxu1 %v5971_v0 }
0x1695   : > { %4663 = vmatpush3.bf16.msra.mxu1 %v5089_v57  ;;  %v5104_v57 = vld [vmem:[#allocation29 + $0x24] ss:$8 sps:$4 sm:$0xff]  }
0x1696   : > { %4664 = vmatprep.subr.bf16.mxu1 %v5971_v0 }
0x1699   : > { %4665 = vmatpush3.bf16.msra.mxu1 %v5090_v58  ;;  %v5102_v58 = vld [vmem:[#allocation29 + $0x20] ss:$8 sps:$4 sm:$0xff]  }
0x169a   : > { %4666 = vmatprep.subr.bf16.mxu1 %v5971_v0 }
0x16cf   : > { %v3106_v17 = vpop.xlane.xlu1 %3105 }
0x16d3   : > { %v2985_v35 = vpop.permute.xlu1 %2984  ;;  %v3109_v28 = vpop.xlane.xlu0 %3108 }
0x16d4   : > { %4637 = vmatpush3.bf16.msra.mxu0 %v2985_v35 }
0x16d5   : > { %4638 = vmatprep.subr.bf16.mxu0 %v5971_v0 }
0x16d7   : > { %v2978_v40 = vpop.xlane.xlu0 %2977 }
0x16d8   : > { %5196 = vrcp.f32 %v2978_v40 }
0x16db   : > { %v2987_v41 = vpop.permute.xlu0 %2986 }
0x16dc   : > { %4639 = vmatpush3.bf16.msra.mxu0 %v2987_v41 }
0x16dd   : > { %4652 = vmatprep.subr.bf16.mxu0 %v5971_v0 }
0x16e2   : > { %v5197_v60 = vpop.eup %5196 }
0x16e3   : > { %v7239_v22 = vmul.f32 %v5197_v60, %v5193_v59  ;;  %v5098_v60 = vld [vmem:[#allocation29 + $0x4] ss:$8 sps:$4 sm:$0xff]  }
0x1704   : > { %v2975_v42 = vpop.xlane.xlu1 %2974 }
0x1705   : > { %5198 = vrcp.f32 %v2975_v42  ;;  %v5096_v42 = vld [vmem:[#allocation29] ss:$8 sps:$4 sm:$0xff]  }
0x1706   : > { %5200 = vrcp.f32 %v3109_v28 }
0x1707   : > { %5202 = vrcp.f32 %v3106_v17 }
0x1708   : > { %v3116_v34 = vpop.permute.xlu1 %3115 }
0x170c   : > { %v3118_v10 = vpop.permute.xlu1 %3117 }
0x170f   : > { %v5199_v8 = vpop.eup %5198 }
0x1710   : > { %v7241_v43 = vmul.f32 %v5199_v8, %v5195_v32  ;;  %v5201_v45 = vpop.eup %5200  ;;  %v4979_v19 = vpop.permute.xlu1 %4978  ;;  %v4300_v32 = vld [vmem:[%s7729_s26] ss:$0 sm:$0xff]  ;;  %v5101_v8 = vld [vmem:[#allocation29 + $0x14] ss:$8 sps:$4 sm:$0xff]   ;;  %s3799_s26 = sshll.u32 %s1245_s3, 4  ;;  %s7353_s26 = int_to_ptr.vmem [resolvable:$true] %s3799_s26 }
0x1711   : > { %v5203_v46 = vpop.eup %5202  ;;  %v7248_v47 = vmul.f32 %v5201_v45, %v5191_v26  ;;  %v4981_v20 = vunpack.i.h.bf16 %v4979_v19  ;;  %v4980_v21 = vunpack.i.l.bf16 %v4979_v19  ;;  %v5125_v19 = vld [vmem:[#allocation31 + $0x10] sm:$0xff]   ;;  %p5761_p11 = scmp.lt.s32.totalorder %s7353_s26, %s5759_s20 }
0x1712   : > { %v2983_v44 = vpack.c.bf16 %v7239_v22, %v7241_v43  ;;  %v7251_v48 = vmul.f32 %v5203_v46, %v5189_v25 }
0x1713   : > { %v3190_v25 = vsel %vm1559_vm1, %v7161_v9, %v4981_v20  ;;  %v3189_v27 = vsel %vm1559_vm1, %v7159_v62, %v4980_v21  ;;  %v5127_v20 = vld [vmem:[#allocation31 + $0x18] sm:$0xff]   ;;  %v5128_v21 = vld [vmem:[#allocation31 + $0x60] sm:$0xff]  }
0x1714   : > { %4641 = vmatmul.mubr.msk.bf16.vlgmr.msra.gmra.mrb[48].mxu0 %vm1559_vm1, %v2983_v44  ;;  %v3114_v52 = vpack.c.bf16 %v7248_v47, %v7251_v48 }
0x1715   : > { %4653 = vmatpush3.bf16.msra.mxu0 %v3116_v34  ;;  %4656 = vmatprep.mubr.msk.bf16.mxu0 %vm5973_vm0, %v5971_v0  ;;  %v5099_v34 = vld [vmem:[#allocation29 + $0x10] ss:$8 sps:$4 sm:$0xff]  }
0x1716   : > { %4654 = vmatprep.subr.bf16.mxu0 %v5971_v0 }
0x1719   : > { %4655 = vmatpush3.bf16.msra.mxu0 %v3118_v10 }
0x171a   : > { %3491 = vmatprep.subr.bf16.mxu0 %v5098_v60  ;;  %v5134_v60 = vld [vmem:[#allocation31 + $0x78] sm:$0xff]  }
0x171c   : > { %4657 = vmatmul.mubr.msk.bf16.vlgmr.msra.gmra.mrb[52].mxu0 %vm1559_vm1, %v3114_v52 }
0x171d   : > { %3523 = vmatprep.mubr.bf16.mxu0 %v5972_v1  ;;  %v5091_v1 = vld [vmem:[%s7728_s19 + $0x18] sm:$0xff]   ;;  %3492 = vmatpush1.bf16.msra.mxu0 %v5096_v42 }
0x171e   : > { %4667 = vmatpush3.bf16.msra.mxu1 %v5091_v1  ;;  %3493 = vmatprep.subr.bf16.mxu0 %v5101_v8  ;;  %v5107_v1 = vld [vmem:[#allocation29 + $0x34] ss:$8 sps:$4 sm:$0xff]  }
0x171f   : > { %4668 = vmatprep.subr.bf16.mxu1 %v5971_v0  ;;  %v5133_v42 = vld [vmem:[#allocation31 + $0x30] sm:$0xff]   ;;  %v5135_v8 = vld [vmem:[#allocation31 + $0x38] sm:$0xff]  }
0x1721   : > { %3494 = vmatpush1.bf16.msra.mxu0 %v5099_v34  ;;  %v3399_v34 = vld [vmem:[%s7732_s10] sm:$0x3]  ;;  %s5760_s10 = scalar_lea.vmem %s5759_s20, 512 }
0x1722   : > { %4669 = vmatpush3.bf16.msra.mxu1 %v5092_v61  ;;  %3495 = vmatprep.subr.bf16.mxu0 %v5104_v57  ;;  %v5105_v61 = vld [vmem:[#allocation29 + $0x30] ss:$8 sps:$4 sm:$0xff]  }
0x1723   : > { %4670 = vmatprep.subr.bf16.mxu1 %v5971_v0 }
0x1725   : > { %3496 = vmatpush1.bf16.msra.mxu0 %v5102_v58 }
0x1726   : > { %4671 = vmatpush3.bf16.msra.mxu1 %v5093_v54  ;;  %3497 = vmatprep.subr.bf16.mxu0 %v5107_v1  ;;  %v5110_v54 = vld [vmem:[#allocation29 + $0x44] ss:$8 sps:$4 sm:$0xff]  }
0x1727   : > { %4672 = vmatprep.subr.bf16.mxu1 %v5971_v0 }
0x1729   : > { %3498 = vmatpush1.bf16.msra.mxu0 %v5105_v61 }
0x172a   : > { %4673 = vmatpush3.bf16.msra.mxu1 %v5094_v63  ;;  %v5108_v63 = vld [vmem:[#allocation29 + $0x40] ss:$8 sps:$4 sm:$0xff]   ;;  %3499 = vmatprep.subr.bf16.mxu0 %v5110_v54 }
0x172b   : > { %4674 = vmatprep.subr.bf16.mxu1 %v5971_v0 }
0x172d   : > { %3500 = vmatpush1.bf16.msra.mxu0 %v5108_v63 }
0x172e   : > { %4675 = vmatpush3.bf16.msra.mxu1 %v5095_v5  ;;  %v5116_v5 = vld [vmem:[#allocation29 + $0x64] ss:$8 sps:$4 sm:$0xff]  }
0x17e7   : > { %v3027_v2 = vpop.f32.mrb[48].mxu0 }
0x17e8   : > { %v4642_v4 = vpop.f32.mrb[49].mxu0 }
0x17e9   : > { %v3030_v6 = vpop.f32.mrb[50].mxu0  ;;  %v5111_v4 = vld [vmem:[#allocation29 + $0x50] ss:$8 sps:$4 sm:$0xff]  }
0x17ea   : > { %v4982_v11 = vpack.i.bf16 %v3030_v6, %v3027_v2  ;;  %v4643_v3 = vpop.f32.mrb[51].mxu0  ;;  %v5113_v2 = vld [vmem:[#allocation29 + $0x54] ss:$8 sps:$4 sm:$0xff]   ;;  %v5114_v6 = vld [vmem:[#allocation29 + $0x60] ss:$8 sps:$4 sm:$0xff]  }
0x17eb   : > { %3501 = vmatprep.subr.bf16.mxu0 %v5113_v2  ;;  %v5117_v3 = vld [vmem:[#allocation29 + $0x70] ss:$8 sps:$4 sm:$0xff]  }
0x17ec   : > { %4983 = vrot.lane.b32.xlu0 %v4982_v11, %s5975_s12  ;;  %3502 = vmatpush1.bf16.msra.mxu0 %v5111_v4  ;;  %v5119_v11 = vld [vmem:[#allocation29 + $0x74] ss:$8 sps:$4 sm:$0xff]  }
0x17ed   : > { %3503 = vmatprep.subr.bf16.mxu0 %v5116_v5 }
0x17ef   : > { %v3158_v12 = vpop.f32.mrb[52].mxu0 }
0x17f0   : > { %v4658_v13 = vpop.f32.mrb[53].mxu0  ;;  %3504 = vmatpush1.bf16.msra.mxu0 %v5114_v6 }
0x17f1   : > { %v3161_v14 = vpop.f32.mrb[54].mxu0  ;;  %3505 = vmatprep.subr.bf16.mxu0 %v5119_v11  ;;  %v5121_v13 = vld [vmem:[#allocation31] sm:$0xff]  }
0x17f2   : > { %v4987_v16 = vpack.i.bf16 %v3161_v14, %v3158_v12  ;;  %v4659_v18 = vpop.f32.mrb[55].mxu0  ;;  %v5120_v12 = vld [vmem:[#allocation31 + $0x40] sm:$0xff]   ;;  %v5122_v14 = vld [vmem:[#allocation31 + $0x48] sm:$0xff]  }
0x17f3   : > { %4450 = vmatprep.subr.bf16.mxu1 %v5120_v12  ;;  %v5124_v18 = vld [vmem:[#allocation31 + $0x50] sm:$0xff]  }
0x17f4   : > { %4988 = vrot.lane.b32.xlu1 %v4987_v16, %s5974_s30  ;;  %3506 = vmatpush1.bf16.msra.mxu0 %v5117_v3  ;;  %v5123_v16 = vld [vmem:[#allocation31 + $0x8] sm:$0xff]  }
0x185e   : > { %v4984_v0 = vpop.permute.xlu0 %4983 }
0x185f   : > { %v4986_v23 = vunpack.i.h.bf16 %v4984_v0  ;;  %v4985_v53 = vunpack.i.l.bf16 %v4984_v0  ;;  %v5126_v0 = vld [vmem:[#allocation31 + $0x58] sm:$0xff]  }
0x1861   : > { %v3192_v59 = vsel %vm2103_vm4, %v3190_v25, %v4986_v23  ;;  %v3191_v30 = vsel %vm2103_vm4, %v3189_v27, %v4985_v53  ;;  %v5129_v23 = vld [vmem:[#allocation31 + $0x20] sm:$0xff]   ;;  %v5130_v53 = vld [vmem:[#allocation31 + $0x68] sm:$0xff]  }
0x1866   : > { %v4989_v24 = vpop.permute.xlu1 %4988 }
0x1867   : > { %v4991_v26 = vunpack.i.h.bf16 %v4989_v24  ;;  %v4990_v51 = vunpack.i.l.bf16 %v4989_v24 }
0x1869   : > { %v3194_v7 = vsel %vm2106_vm5, %v3192_v59, %v4991_v26  ;;  %v3193_v31 = vsel %vm2106_vm5, %v3191_v30, %v4990_v51 }
0x186a   : > { %v3227_v15 = vpack.c.bf16 %v3194_v7, %v3193_v31  ;;  %v4309_v31 = vld [vmem:[%s7730_s15] ss:$0 sm:$0xff]  ;;  %s7737_s15 = sld [smem:[#allocation97_spill]] }
0x186c   : > { %4677 = vmatmul.mubr.bf16.vlgmr.msra.gmra.mrb[36].mxu1 %v3227_v15 }
0x186d   : > { %4451 = vmatpush3.bf16.msra.mxu1 %v5121_v13 }
0x186e   : > { %4452 = vmatprep.subr.bf16.mxu1 %v5122_v14 }
0x1871   : > { %4453 = vmatpush3.bf16.msra.mxu1 %v5123_v16 }
0x1872   : > { %4454 = vmatprep.subr.bf16.mxu1 %v5124_v18 }
0x1875   : > { %4455 = vmatpush3.bf16.msra.mxu1 %v5125_v19 }
0x1876   : > { %4456 = vmatprep.subr.bf16.mxu1 %v5126_v0 }
0x1879   : > { %4457 = vmatpush3.bf16.msra.mxu1 %v5127_v20 }
0x187a   : > { %4458 = vmatprep.subr.bf16.mxu1 %v5128_v21 }
0x187d   : > { %4459 = vmatpush3.bf16.msra.mxu1 %v5129_v23 }
0x187e   : > { %4460 = vmatprep.subr.bf16.mxu1 %v5130_v53 }
0x193f   : > { %v3333_v9 = vpop.f32.mrb[36].mxu1 }
0x1940   : > { %v3334_v33 = vadd.f32 %v4300_v32, %v3333_v9  ;;  %v4678_v17 = vpop.f32.mrb[37].mxu1 }
0x1941   : > { %v3336_v62 = vpop.f32.mrb[38].mxu1 }
0x1942   : > { %v3337_v35 = vadd.f32 %v4300_v32, %v3336_v62  ;;  %v4679_v28 = vpop.f32.mrb[39].mxu1  ;;  %v3340_v40 = vadd.f32 %v3334_v33, %v7086_v36  ;;  %v4310_v33 = vld [vmem:[%s7731_s24] ss:$0 sm:$0xff]  ;;  %s5754_s24 = scalar_lea.vmem %s7353_s26, 256 }
0x1943   : > { %p5755_p13 = scmp.ne.s32.totalorder %s7353_s26, %s5754_s24  ;;  %p5762_p2 = scmp.lt.s32.totalorder %s5760_s10, %s5754_s24 }
0x1944   : > { %3342 = vadd.xlane.f32.xlu0 %v3340_v40  ;;  %v3341_v41 = vadd.f32 %v3337_v35, %v7088_v38 }
0x1945   : > { %p5763_p8 = por %p5762_p2, %p5761_p11 }
0x1946   : > { %3344 = vadd.xlane.f32.xlu1 %v3341_v41 }
0x19d1   : > { %v3343_v44 = vpop.xlane.xlu0 %3342 }
0x19d2   : > { %v3346_v45 = vmul.f32 0.0078125, %v3343_v44  ;;  %v3404_v44 = vrot.slane %v3399_v34, %v6876_v37  ;;  %v4327_v37 = vld [vmem:[%s7733_s28] ss:$0 sm:$0xff] }
0x19d3   : > { %v3345_v46 = vpop.xlane.xlu1 %3344 }
0x19d4   : > { %v3348_v10 = vsub.f32 %v3340_v40, %v3346_v45  ;;  %v3347_v52 = vmul.f32 0.0078125, %v3345_v46  ;;  %v5131_v40 = vld [vmem:[#allocation31 + $0x28] sm:$0xff]   ;;  %v3408_v45 = vrot.slane %v3399_v34, %v6878_v39 }
0x19d5   : > { %4461 = vmatpush3.bf16.msra.mxu1 %v5131_v40 }
0x19d6   : > { %v7303_v55 = vsub.f32 %v3341_v41, %v3347_v52  ;;  %v3350_v36 = vmul.f32 %v3348_v10, %v3348_v10  ;;  %v5132_v41 = vld [vmem:[#allocation31 + $0x70] sm:$0xff]  }
0x19d7   : > { %4462 = vmatprep.subr.bf16.mxu1 %v5132_v41 }
0x19d8   : > { %3352 = vadd.xlane.f32.xlu0 %v3350_v36  ;;  %v3351_v38 = vmul.f32 %v7303_v55, %v7303_v55 }
0x19d9   : > { %4463 = vmatpush3.bf16.msra.mxu1 %v5133_v42 }
0x19da   : > { %4464 = vmatprep.subr.bf16.mxu1 %v5134_v60 }
0x19dc   : > { %3354 = vadd.xlane.f32.xlu0 %v3351_v38 }
0x19dd   : > { %4465 = vmatpush3.bf16.msra.mxu1 %v5135_v8 }
0x1a65   : > { %v3353_v24 = vpop.xlane.xlu0 %3352 }
0x1a66   : > { %v3356_v25 = vmul.f32 0.0078125, %v3353_v24 }
0x1a68   : > { %v3358_v27 = vadd.f32 1e-05, %v3356_v25 }
0x1a69   : > { %v3355_v26 = vpop.xlane.xlu0 %3354 }
0x1a6a   : > { %5204 = vrsqrt.f32 %v3358_v27  ;;  %v3357_v51 = vmul.f32 0.0078125, %v3355_v26 }
0x1a6c   : > { %v3359_v59 = vadd.f32 1e-05, %v3357_v51 }
0x1a6e   : > { %5206 = vrsqrt.f32 %v3359_v59 }
0x1a74   : > { %v5205_v30 = vpop.eup %5204 }
0x1a75   : > { %v3362_v7 = vmul.f32 %v5205_v30, %v3348_v10 }
0x1a77   : > { %v3371_v9 = vmul.f32 %v4309_v31, %v3362_v7 }
0x1a78   : > { %v5207_v15 = vpop.eup %5206 }
0x1a79   : > { %v3363_v32 = vmul.f32 %v5207_v15, %v7303_v55  ;;  %v3380_v62 = vadd.f32 %v4310_v33, %v3371_v9 }
0x1a7b   : > { %v3372_v17 = vmul.f32 %v4309_v31, %v3363_v32 }
0x1a7d   : > { %v3381_v35 = vadd.f32 %v4310_v33, %v3372_v17 }
0x1a7f   : > { %v3382_v28 = vpack.c.bf16 %v3381_v35, %v3380_v62 }
0x1a81   : > { %3524 = vmatmul.mubr.bf16.vlgmr.msra.gmra.mrb[56].mxu0 %v3382_v28 }
0x1b54   : > { %v3525_v46 = vpop.f32.mrb[56].mxu0 }
0x1b55   : > { %v3526_v10 = vadd.f32 %v3525_v46, %v3404_v44  ;;  %v3527_v52 = vpop.f32.mrb[57].mxu0 }
0x1b56   : > { %v3528_v55 = vadd.f32 %v3527_v52, %v3408_v45  ;;  %v3529_v36 = vpop.f32.mrb[58].mxu0 }
0x1b57   : > { %v3530_v38 = vadd.f32 %v3529_v36, %v3404_v44  ;;  %v3531_v57 = vpop.f32.mrb[59].mxu0  ;;  %v3534_v1 = vmax.f32 %v3526_v10, 0.0 }
0x1b58   : > { %v3532_v58 = vadd.f32 %v3531_v57, %v3408_v45  ;;  %v3535_v54 = vmax.f32 %v3528_v55, 0.0 }
0x1b59   : > { %v3536_v61 = vmax.f32 %v3530_v38, 0.0 }
0x1b5a   : > { %v3537_v63 = vmax.f32 %v3532_v58, 0.0 }
0x1b5b   : > { %v3538_v2 = vpack.c.bf16 %v3536_v61, %v3534_v1 }
0x1b5c   : > { %v3539_v4 = vpack.c.bf16 %v3537_v63, %v3535_v54 }
0x1b5e   : > { %3707 = vmatprep.mubr.bf16.mxu1 %v3539_v4 }
0x1b5f   : > { %3708 = vmatmul.mubr.bf16.vlgmr.msra.gmra.mrb[40].mxu1 %v3538_v2 }
0x1c32   : > { %v4466_v5 = vpop.f32.mrb[40].mxu1 }
0x1c33   : > { %v4467_v39 = vpop.f32.mrb[41].mxu1 }
0x1c34   : > { %v4468_v6 = vadd.f32 %v4467_v39, %v4466_v5  ;;  %v4469_v11 = vpop.f32.mrb[42].mxu1 }
0x1c35   : > { %v4470_v3 = vpop.f32.mrb[43].mxu1 }
0x1c36   : > { %v3710_v12 = vadd.f32 %v4468_v6, %v4327_v37  ;;  %v4471_v13 = vadd.f32 %v4470_v3, %v4469_v11 }
0x1c38   : > { %v3713_v14 = vadd.f32 %v4471_v13, %v4327_v37  ;;  %v3716_v16 = vadd.f32 %v3710_v12, %v3380_v62 }
0x1c3a   : > { %3718 = vadd.xlane.f32.xlu0 %v3716_v16  ;;  %v3717_v18 = vadd.f32 %v3713_v14, %v3381_v35 }
0x1c3c   : > { %3720 = vadd.xlane.f32.xlu1 %v3717_v18 }
0x1c4d   : > { %3199 = vrot.lane.b32.xlu1 %v7195_v56, %s5976_s27 }
0x1c51   : > { %3205 = vrot.lane.b32.xlu1 %v7241_v43, %s5975_s12 }
0x1c55   : > { %3207 = vrot.lane.b32.xlu1 %v7239_v22, %s5975_s12  ;;  %s4348_s12 = sshll.u32 %s7734_s6, 1 }
0x1c56   : > { %s7344_s5 = sadd.s32 %s4349_s16, %s4348_s12 }
0x1cc7   : > { %v3719_v19 = vpop.xlane.xlu0 %3718 }
0x1cc8   : > { %v3722_v0 = vmul.f32 0.0078125, %v3719_v19 }
0x1cc9   : > { %v3721_v20 = vpop.xlane.xlu1 %3720 }
0x1cca   : > { %v7328_v21 = vsub.f32 %v3716_v16, %v3722_v0  ;;  %v3723_v23 = vmul.f32 0.0078125, %v3721_v20 }
0x1ccc   : > { %v7330_v53 = vsub.f32 %v3717_v18, %v3723_v23  ;;  %v3726_v24 = vmul.f32 %v7328_v21, %v7328_v21 }
0x1ccd   : > { %v3200_v22 = vpop.permute.xlu1 %3199 }
0x1cce   : > { %3728 = vadd.xlane.f32.xlu0 %v3726_v24  ;;  %v3727_v56 = vmul.f32 %v7330_v53, %v7330_v53 }
0x1cd0   : > { %3730 = vadd.xlane.f32.xlu1 %v3727_v56 }
0x1cd1   : > { %v3206_v43 = vpop.permute.xlu1 %3205 }
0x1cd5   : > { %v3208_v25 = vpop.permute.xlu1 %3207 }
0x1ce1   : > { %3215 = vrot.lane.b32.xlu1 %v7248_v47, %s5974_s30  ;;  %v3220_v47 = vsel %vm1559_vm1, %v7145_v50, %v3200_v22 }
0x1ce2   : > { %v3222_v31 = vsel %vm2103_vm4, %v3220_v47, %v3208_v25 }
0x1ce4   : > { %3197 = vrot.lane.b32.xlu0 %v7193_v29, %s5976_s27  ;;  %s4350_s27 = sshll.u32 %s7344_s5, 7 }
0x1ce5   : > { %s7362_s9 = scalar_lea.hbm %s7737_s15, %s4350_s27 }
0x1ce8   : > { %3213 = vrot.lane.b32.xlu0 %v7251_v48, %s5974_s30  ;;  %s7736_s30 = sld [smem:[#allocation65_spill]] }
0x1cee   : > { %p7738_p5 = scmp.ne.s32.totalorder %s7736_s30, 0 }
0x1cf0   : > { %p5756_p3 = pnand %p5755_p13, %p7738_p5 }
0x1cf2   : > { %p5757_p9 = pneg %p5756_p3 }
0x1cf4   : > { %p5764_p1 = pnand %p5763_p8, %p5757_p9 }
0x1d5b   : > { %v3729_v27 = vpop.xlane.xlu0 %3728 }
0x1d5c   : > { %v3732_v26 = vmul.f32 0.0078125, %v3729_v27 }
0x1d5d   : > { %v3731_v51 = vpop.xlane.xlu1 %3730 }
0x1d5e   : > { %v3734_v59 = vadd.f32 1e-05, %v3732_v26  ;;  %v3733_v30 = vmul.f32 0.0078125, %v3731_v51 }
0x1d5f   : > { %v3198_v29 = vpop.permute.xlu0 %3197 }
0x1d60   : > { %5208 = vrsqrt.f32 %v3734_v59  ;;  %v3735_v48 = vadd.f32 1e-05, %v3733_v30  ;;  %v3219_v7 = vsel %vm1559_vm1, %v7143_v49, %v3198_v29 }
0x1d61   : > { %v3216_v15 = vpop.permute.xlu1 %3215  ;;  %v3221_v50 = vsel %vm2103_vm4, %v3219_v7, %v3206_v43 }
0x1d62   : > { %5210 = vrsqrt.f32 %v3735_v48  ;;  %v3224_v32 = vsel %vm2106_vm5, %v3222_v31, %v3216_v15 }
0x1d63   : > { %3226 = vst [vmem:[%s1245_s3 + $0x8] sm:$0xff] %v3224_v32  ;;  %v3214_v9 = vpop.permute.xlu0 %3213 }
0x1d64   : > { %v3223_v49 = vsel %vm2106_vm5, %v3221_v50, %v3214_v9 }
0x1d65   : > { %3225 = vst [vmem:[%s1245_s3] sm:$0xff] %v3223_v49 }
0x1d66   : > { %5767 = shalt.err (!%p5764_p1)
}
0x1d67   : > { %s5768_s8 = scalar_lea.hbm %s7362_s9, 256  ;;  %s5772_s6 = scalar_lea.hbm %s7737_s15, 1024 }
0x1d68   : > { %p5769_p4 = scmp.ne.s32.totalorder %s7362_s9, %s5768_s8  ;;  %p5773_p7 = scmp.lt.u32.totalorder %s7362_s9, %s7737_s15 }
0x1d69   : > { %p5774_p10 = scmp.lt.u32.totalorder %s5772_s6, %s5768_s8  ;;  %p5776_p13 = scmp.lt.u32.totalorder %s5768_s8, %s7362_s9 }
0x1d6a   : > { %p5770_p12 = pnand %p5769_p4, %p7738_p5 }
0x1d6b   : > { %p5775_p6 = por %p5774_p10, %p5773_p7 }
0x1d6c   : > { %p5771_p0 = pneg %p5770_p12 }
0x1d6d   : > { %p5777_p3 = por %p5776_p13, %p5775_p6 }
0x1d6f   : > { %p5778_p9 = pnand %p5777_p3, %p5771_p0 }
0x1d71   : > { %5781 = shalt.err (!%p5778_p9)
}
0x1d72   : > { %s5978_s16 = smov 128   ;;  %s5979_s3 = smov 8   ;;  %v5209_v33 = vpop.eup %5208 }
0x1d73   : > { %4747 = dma.vmem_to_hbm [thread:$0]  (%p7738_p5), %s7353_s26, 256, %s7362_s9, %s3766_s14, %s5978_s16, %s5978_s16, %s5979_s3   ;;  %v3738_v62 = vmul.f32 %v5209_v33, %v7328_v21  ;;  %v5211_v35 = vpop.eup %5210 }
0x1d74   : > { %s7739_s24 = sld [smem:[#allocation94_spill]]  ;;  %s7740_s10 = sld [smem:[#allocation95_spill]]  ;;  %v3739_v41 = vmul.f32 %v5211_v35, %v7330_v53 }
0x1d75   : > { %s1238_s8 = scalar_lea.vmem [#allocation32], %s6789_s2  ;;  %s7741_s14 = sld [smem:[#allocation96_spill]] }
0x1d76   : > { %s3781_s11 = sshll.u32 %s1238_s8, 4  ;;  %s3761_s6 = scalar_lea.sflag [#allocation4], %s6786_s0  ;;  %s7408_s11 = int_to_ptr.vmem [resolvable:$true] %s3781_s11 }
0x1d77   : > { %s5782_s1 = scalar_lea.vmem %s7408_s11, 256  ;;  %s5980_s2 = smov [#allocation32]  }
0x1d78   : > { %p5783_p11 = scmp.ne.s32.totalorder %s7408_s11, %s5782_s1  ;;  %s5786_s12 = sshll.u32 %s5980_s2, 4  ;;  %s5787_s12 = int_to_ptr.vmem [resolvable:$false] %s5786_s12 }
0x1d79   : > { %s5788_s5 = scalar_lea.vmem %s5787_s12, 512  ;;  %p5789_p1 = scmp.lt.s32.totalorder %s7408_s11, %s5787_s12 }
0x1d7a   : > { %v4344_v17 = vld [vmem:[%s7739_s24] ss:$0 sm:$0xff]  ;;  %p5784_p2 = pnand %p5783_p11, %p7738_p5  ;;  %p5790_p4 = scmp.lt.s32.totalorder %s5788_s5, %s5782_s1 }
0x1d7b   : > { %v4345_v28 = vld [vmem:[%s7740_s10] ss:$0 sm:$0xff]  ;;  %v3747_v40 = vmul.f32 %v4344_v17, %v3738_v62  ;;  %v3748_v60 = vmul.f32 %v4344_v17, %v3739_v41  ;;  %s7406_s28 = scalar_lea.hbm %s7741_s14, %s4350_s27 }
0x1d7c   : > { %p5785_p8 = pneg %p5784_p2  ;;  %p5791_p12 = por %p5790_p4, %p5789_p1 }
0x1d7d   : > { %v3756_v42 = vadd.f32 %v4345_v28, %v3747_v40  ;;  %v3757_v8 = vadd.f32 %v4345_v28, %v3748_v60 }
0x1d7e   : > { %p5792_p0 = pnand %p5791_p12, %p5785_p8 }
0x1d7f   : > { %3758 = vst [vmem:[%s1238_s8] sm:$0xff] %v3756_v42  ;;  %3759 = vst [vmem:[%s1238_s8 + $0x8] sm:$0xff] %v3757_v8 }
0x1d80   : > { %5795 = shalt.err (!%p5792_p0)
}
0x1d81   : > { %s5796_s27 = scalar_lea.hbm %s7406_s28, 256  ;;  %s5800_s24 = scalar_lea.hbm %s7741_s14, 1024 }
0x1d82   : > { %p5797_p7 = scmp.ne.s32.totalorder %s7406_s28, %s5796_s27  ;;  %p5801_p13 = scmp.lt.u32.totalorder %s7406_s28, %s7741_s14 }
0x1d83   : > { %p5802_p3 = scmp.lt.u32.totalorder %s5800_s24, %s5796_s27  ;;  %p5804_p11 = scmp.lt.u32.totalorder %s5796_s27, %s7406_s28 }
0x1d84   : > { %p5798_p10 = pnand %p5797_p7, %p7738_p5 }
0x1d85   : > { %p5803_p9 = por %p5802_p3, %p5801_p13 }
0x1d86   : > { %p5799_p6 = pneg %p5798_p10 }
0x1d87   : > { %p5805_p2 = por %p5804_p11, %p5803_p9 }
0x1d89   : > { %p5806_p8 = pnand %p5805_p2, %p5799_p6 }
0x1d8b   : > { %5809 = shalt.err (!%p5806_p8)
}
0x1d8c   : > { %4746 = dma.vmem_to_hbm [thread:$0]  (%p7738_p5), %s7408_s11, 256, %s7406_s28, %s3761_s6, %s5978_s16, %s5978_s16, %s5979_s3  }
0x1d8d PF: > { %s7742_s10 = sld [smem:[#allocation55_spill]]  ;;  %s7743_s8 = sld [smem:[#allocation49_spill]] }
0x1d8e   : > { %s7744_s26 = sld [smem:[#allocation66_spill]] }
0x1d93   : > { %p4845_p1 = scmp.ge.s32.totalorder %s7742_s10, 2  ;;  %s3814_s9 = sand.u32 1, %s7743_s8  }
0x1d94   : > { %p7745_p4 = scmp.ne.s32.totalorder %s7744_s26, 0  ;;  %s3815_s1 = scalar_lea.sflag [#allocation4], %s3814_s9 }
0x1d96   : > { %p4810_p12 = pnand %p4845_p1, %p7745_p4 }
0x1d98   : > { %5895 = dma.done.wait (!%p4810_p12), %s3815_s1, 256  }
0x1d99   : > { %5897 = vsyncadd (!%p4810_p12), %s3815_s1, 4294967040  ;;  %s3824_s30 = scalar_lea.sflag [#allocation34], %s3814_s9 }
0x1d9a   : > { %5899 = dma.done.wait (!%p4810_p12), %s3824_s30, 256  }
0x1d9b   : > { %5901 = vsyncadd (!%p4810_p12), %s3824_s30, 4294967040  ;;  %s61_s2 = sadd.s32 1, %s7742_s10   ;;  %s7746_s8 = sld [smem:[#allocation47_spill]] }
0x1d9c   : > { %p58_p0 = scmp.ge.s32.totalorder %s61_s2, 6   ;;  %s7747_s5 = sld [smem:[#allocation48_spill]] }
0x1d9d   : > { %s7748_s9 = sld [smem:[#allocation67_spill]]  ;;  %s7749_s30 = sld [smem:[#allocation50_spill]] }
0x1d9e   : > { %s7750_s3 = sld [smem:[#allocation51_spill]]  ;;  %s7751_s6 = sld [smem:[#allocation68_spill]] }
0x1d9f   : > { %s7752_s10 = sld [smem:[#allocation54_spill]]  ;;  %s7753_s11 = sld [smem:[#allocation62_spill]] }
0x1da0   : > { %s7754_s16 = sld [smem:[#allocation63_spill]]  ;;  %s7755_s0 = smov %s5940_s29 }
0x1da1   :  { %60 = sbr.rel (!%p58_p0) target bundleno = 52 (0x34), region = 294 }
0x1da6   : > { %s7756_s29 = smov %s7754_s16 }
0x1da8   :  { %3829 = vsyncpa [#allocation3], 1 }
0x1da9   :  { %3831 = vsyncpa [#allocation3 + $0x1], 1 }
0x1daa   :  { %3832 = vsyncpa [#allocation6], 1 }
0x1dab   :  { %3834 = vsyncpa [#allocation6 + $0x1], 1 }
0x1dac   :  { %3835 = vsyncpa [#allocation9], 1 }
0x1dad   :  { %3837 = vsyncpa [#allocation9 + $0x1], 1 }
0x1dae   :  { %3838 = vsyncpa [#allocation12], 1 }
0x1daf   :  { %3839 = vsyncpa [#allocation15], 1 }
0x1db0   :  { %3840 = vsyncpa [#allocation18], 1 }
0x1db1   :  { %3841 = vsyncpa [#allocation21], 1 }
0x1db2   :  { %3842 = vsyncpa [#allocation24], 1 }
0x1db3   :  { %3843 = vsyncpa [#allocation27], 1 }
0x1db4   :  { %3844 = vsyncpa [#allocation30], 1 }
0x1db5   :  { %3845 = vsyncpa [#allocation4], 1 }
0x1db6   :  { %3847 = vsyncpa [#allocation4 + $0x1], 1 }
0x1db7   :  { %3848 = vsyncpa [#allocation34], 1 }
0x1db8   :  { %3850 = vsyncpa [#allocation34 + $0x1], 1 }

</bundles_post_ra>
